<compile_context>
chip_gen: v5e
topology: v5e:2x2
jax: 0.10.0
libtpu: 0.0.40
codegen_flags: <defaults>
</compile_context>

<pallas_src>
import functools
import math

import numpy as np
import jax
import jax.numpy as jnp
from jax import lax
from jax.experimental import pallas as pl
from jax.experimental.pallas import tpu as pltpu

LN_EPS = 1e-5                      # nn.LayerNorm default eps
INV_SQRT2 = 0.7071067811865476
MM_DTYPE = jnp.bfloat16            # MXU operand dtype for every matmul (f32 accumulate)


@functools.lru_cache(maxsize=None)
def _vmem_limit():
    # Generation-aware scoped-VMEM budget: ~75% of detected VMEM, capped at 64 MiB so it is
    # always safe on v7x (64 MiB/TC); falls back to 48 MiB if detection is unavailable.
    try:
        cap = int(pltpu.get_tpu_info().vmem_capacity_bytes)
    except Exception:
        cap = 64 * 1024 * 1024
    return max(32 * 1024 * 1024, min((cap * 3) // 4, 64 * 1024 * 1024))


# --------------------------- in-kernel helpers --------------------------------

def _layernorm(x, g, b):
    # One-pass statistics: E[x] and E[x^2] computed together (halves XLU reductions).
    mu = jnp.mean(x, axis=-1, keepdims=True)
    ms = jnp.mean(x * x, axis=-1, keepdims=True)
    var = jnp.maximum(ms - mu * mu, 0.0)
    return (x - mu) * lax.rsqrt(var + LN_EPS) * g + b


def _expand_g(x, g_rows):
    # Broadcast a per-head table (nh, ...) up to the (TG, ...) window*head tile
    # (G axis is head-minor and TG is a multiple of nh, so a simple tile matches).
    if x.shape[0] == g_rows:
        return x
    return jnp.tile(x, (g_rows // x.shape[0],) + (1,) * (x.ndim - 1))


# --------------------------- Pallas kernels ---------------------------------

def _ln_qkv_kernel(x_ref, g_ref, b_ref, w_ref, qb_ref, o_ref):
    # Fused: LayerNorm1 + batched QKV projection over a row tile.
    xn = _layernorm(x_ref[...], g_ref[...], b_ref[...])
    o_ref[...] = (jnp.dot(xn.astype(w_ref.dtype), w_ref[...],
                          preferred_element_type=jnp.float32) + qb_ref[...])


def _attn_kernel(q_ref, kt_ref, v_ref, scale_ref, bias_ref, o_ref):
    # Cosine window-attention core over a tile of (window, head) pairs.
    # q/v: (TG, N, hd) f32, kt: (TG, hd, N) pre-transposed K, scale: (nh, 1, 1),
    # bias: (TG, N, N) (SW-MSA, rel-pos + shift mask) or (nh, N, N) de-dup (W-MSA).
    q = q_ref[...]
    kt = kt_ref[...]
    tg = q.shape[0]
    # F.normalize(dim=-1): x / max(||x||, 1e-12)  ==  x * rsqrt(max(||x||^2, 1e-24))   (f32)
    qn = q * lax.rsqrt(jnp.maximum(jnp.sum(q * q, axis=-1, keepdims=True), 1e-24))
    kn = kt * lax.rsqrt(jnp.maximum(jnp.sum(kt * kt, axis=1, keepdims=True), 1e-24))
    qn = qn * _expand_g(scale_ref[...], tg)            # fold clamped logit scale into q
    bias = _expand_g(bias_ref[...], tg)
    # bf16 operands on the MXU, f32 accumulation / statistics.
    attn = jnp.einsum('gnd,gdm->gnm', qn.astype(MM_DTYPE), kn.astype(MM_DTYPE),
                      preferred_element_type=jnp.float32) + bias
    m = jnp.max(attn, axis=-1, keepdims=True)
    e = jnp.exp(attn - m)
    p = e * pl.reciprocal(jnp.sum(e, axis=-1, keepdims=True), approx=True)
    o_ref[...] = jnp.einsum('gnm,gmd->gnd', p.astype(MM_DTYPE),
                            v_ref[...].astype(MM_DTYPE),
                            preferred_element_type=jnp.float32).astype(o_ref.dtype)


def _tail_kernel(short_ref, attn_ref, wp_ref, bp_ref, g_ref, b_ref,
                 w1_ref, b1_ref, w2_ref, b2_ref, o_ref):
    # Fused: attention output projection + residual-1 + LayerNorm2 + MLP(GELU exact) + residual-2.
    a = jnp.dot(attn_ref[...].astype(wp_ref.dtype), wp_ref[...],
                preferred_element_type=jnp.float32) + bp_ref[...]
    h = short_ref[...] + a
    hn = _layernorm(h, g_ref[...], b_ref[...])
    z = jnp.dot(hn.astype(w1_ref.dtype), w1_ref[...],
                preferred_element_type=jnp.float32) + b1_ref[...]
    z = 0.5 * z * (1.0 + lax.erf(z * INV_SQRT2))                     # nn.GELU() exact
    z = jnp.dot(z.astype(w2_ref.dtype), w2_ref[...],
                preferred_element_type=jnp.float32) + b2_ref[...]
    o_ref[...] = h + z


def _skip_cat_kernel(x_ref, skip_ref, ws_ref, bs_ref, gs_ref, bes_ref,
                     wcx_ref, wcs_ref, bc_ref, gc_ref, bec_ref, o_ref):
    # Fused skip path:  LN(cat([x, LN(skip@Ws+bs)]) @ Wc + bc)
    # The channel concat is eliminated by splitting Wc into its x-part and skip-part.
    s = jnp.dot(skip_ref[...].astype(ws_ref.dtype), ws_ref[...],
                preferred_element_type=jnp.float32) + bs_ref[...]
    sn = _layernorm(s, gs_ref[...], bes_ref[...])
    y = (jnp.dot(x_ref[...].astype(wcx_ref.dtype), wcx_ref[...],
                 preferred_element_type=jnp.float32)
         + jnp.dot(sn.astype(wcs_ref.dtype), wcs_ref[...],
                   preferred_element_type=jnp.float32)
         + bc_ref[...])
    o_ref[...] = _layernorm(y, gc_ref[...], bec_ref[...])


# --------------------------- pallas_call plumbing -----------------------------

def _pick_row_tile(rows, max_tile=512):
    """Row tile: multiple of 8, capped so the grid has >=2 steps (v7x 2-TC split /
    software pipeline) and at most max_tile rows.  Falls back to a non-dividing
    tile (cdiv grid + masked last block) rather than one whole-array tile."""
    if rows <= 8 or rows % 8 != 0:
        return rows
    cap = max(8, min(max_tile, rows // 2))
    cap = (cap // 8) * 8
    t = cap
    while t >= 8:
        if rows % t == 0:
            return t
        if t <= cap // 2:
            break
        t -= 8
    return cap          # non-dividing: all rowwise ops are row-independent, so masking is safe


def _pick_g_tile(G, nh, N, bias_budget=4 << 20):
    """G (window*head) tile: largest multiple of nh dividing G, bounded by a per-tile
    bias VMEM budget and leaving >=2 grid steps along G when possible."""
    max_rows = max(nh, bias_budget // (N * N * 4))
    cap = min(max_rows, G // 2 if G >= 2 * nh else G)
    cap = max(nh, (cap // nh) * nh)
    t = cap
    while t > nh:
        if G % t == 0:
            return t
        t -= nh
    return nh


def _row_spec(tile, cols):
    return pl.BlockSpec((tile, cols), lambda i: (i, 0))


def _bcast_spec(shape):
    # Resident (grid-constant) weight/bias block.  NOTE: pl.Buffered(1) would avoid
    # double-buffering these, but is left off for lowering robustness across jax versions.
    nd = len(shape)
    return pl.BlockSpec(shape, lambda i, _nd=nd: (0,) * _nd)


def _rowwise_call(kernel, rowwise, bcast, out_cols, out_dtype=jnp.float32, max_tile=512):
    """Row-tiled pallas_call: `rowwise` args are tiled along dim 0, `bcast` args resident."""
    rows = rowwise[0].shape[0]
    tile = _pick_row_tile(rows, max_tile)
    grid = (pl.cdiv(rows, tile),)
    in_specs = ([_row_spec(tile, a.shape[1]) for a in rowwise]
                + [_bcast_spec(a.shape) for a in bcast])
    return pl.pallas_call(
        kernel,
        grid=grid,
        in_specs=in_specs,
        out_specs=_row_spec(tile, out_cols),
        out_shape=jax.ShapeDtypeStruct((rows, out_cols), out_dtype),
        compiler_params=pltpu.CompilerParams(
            dimension_semantics=("parallel",),
            vmem_limit_bytes=_vmem_limit()),
    )(*rowwise, *bcast)


def _attention_call(q, kt, v, scale_h, bias_g, B, nh):
    BG, N, hd = q.shape
    G = BG // B                                      # windows*heads per batch item
    tg = _pick_g_tile(G, nh, N)
    ngt = G // tg
    gb = bias_g.shape[0]                             # nh (W-MSA, de-dup) or G (SW-MSA)

    def g_idx(b, g):
        return (b * ngt + g, 0, 0)

    if gb == G:
        bias_spec = pl.BlockSpec((tg, N, N), lambda b, g: (g, 0, 0))
    else:  # per-head bias only; constant across windows, broadcast in-kernel
        bias_spec = pl.BlockSpec((gb, N, N), lambda b, g: (0, 0, 0))

    return pl.pallas_call(
        _attn_kernel,
        grid=(B, ngt),
        in_specs=[
            pl.BlockSpec((tg, N, hd), g_idx),
            pl.BlockSpec((tg, hd, N), g_idx),        # pre-transposed K
            pl.BlockSpec((tg, N, hd), g_idx),
            pl.BlockSpec((nh, 1, 1), lambda b, g: (0, 0, 0)),
            bias_spec,
        ],
        out_specs=pl.BlockSpec((tg, N, hd), g_idx),
        out_shape=jax.ShapeDtypeStruct((BG, N, hd), jnp.float32),
        compiler_params=pltpu.CompilerParams(
            dimension_semantics=("parallel", "parallel"),
            vmem_limit_bytes=_vmem_limit()),
    )(q, kt, v, scale_h, bias_g)


# --------------------------- layout glue (fused under jit) --------------------

def _to_windows_headmajor(qkv, B, H, W, ws, nh, hd, shift):
    """(B*L, 3C) token-major -> q, v each (B*nW*nh, N, hd) and kt (B*nW*nh, hd, N),
    shifted window / head-major.  K is pre-transposed here so the attention kernel
    never has to transpose tiny (N, hd) tiles through the XLU."""
    nW = (H // ws) * (W // ws)
    t = qkv.reshape(B, H, W, 3, nh, hd)
    if shift > 0:
        t = jnp.roll(t, shift=(-shift, -shift), axis=(1, 2))
    t = t.reshape(B, H // ws, ws, W // ws, ws, 3, nh, hd)
    t = jnp.transpose(t, (5, 0, 1, 3, 6, 2, 4, 7))     # (3, B, nWh, nWw, nh, ws, ws, hd)
    t = t.reshape(3, B * nW * nh, ws * ws, hd)
    q, k, v = t[0], t[1], t[2]
    kt = jnp.swapaxes(k, -1, -2)                        # (B*G, hd, N)
    return q, kt, v


def _from_windows_headmajor(o, B, H, W, ws, nh, hd, shift):
    """(B*nW*nh, N, hd) -> (B*L, C) token-major (inverse of the partition above)."""
    o = o.reshape(B, H // ws, W // ws, nh, ws, ws, hd)
    o = jnp.transpose(o, (0, 1, 4, 2, 5, 3, 6))        # (B, nWh, ws, nWw, ws, nh, hd)
    o = o.reshape(B, H, W, nh * hd)
    if shift > 0:
        o = jnp.roll(o, shift=(shift, shift), axis=(1, 2))
    return o.reshape(B * H * W, nh * hd)


# --------------------------- constant-table helpers ----------------------------

def _np_window_partition(x, ws):
    B, H, W, C = x.shape
    x = x.reshape(B, H // ws, ws, W // ws, ws, C)
    x = x.transpose(0, 1, 3, 2, 4, 5)
    return x.reshape(-1, ws, ws, C)


def compute_attn_mask(H, W, ws, shift):
    img_mask = np.zeros((1, H, W, 1), np.float32)
    h_slices = (slice(0, -ws), slice(-ws, -shift), slice(-shift, None))
    w_slices = (slice(0, -ws), slice(-ws, -shift), slice(-shift, None))
    cnt = 0
    for h in h_slices:
        for w in w_slices:
            img_mask[:, h, w, :] = cnt
            cnt += 1
    mw = _np_window_partition(img_mask, ws).reshape(-1, ws * ws)
    attn_mask = mw[:, None, :] - mw[:, :, None]
    attn_mask = np.where(attn_mask != 0, -100.0, 0.0).astype(np.float32)
    return jnp.asarray(attn_mask)                       # (nW, N, N)


def compute_relative_position_bias(cpb, ws, num_heads):
    # Continuous relative position bias (parameter-derived constant; precomputed at init).
    rel = np.arange(-(ws - 1), ws, dtype=np.float32)
    table = np.stack(np.meshgrid(rel, rel, indexing='ij'), axis=-1)[None]     # (1, 2ws-1, 2ws-1, 2)
    table = table / (ws - 1)
    table = table * 8.0
    table = np.sign(table) * np.log2(np.abs(table) + 1.0) / np.log2(8.0)
    table = jnp.asarray(table, jnp.float32)
    h1 = jnp.maximum(table @ cpb['cpb_w1'].T + cpb['cpb_b1'], 0.0)            # Linear(2,512)+ReLU
    bias_table = (h1 @ cpb['cpb_w2'].T).reshape(-1, num_heads)                # (49, H)

    coords = np.stack(np.meshgrid(np.arange(ws), np.arange(ws), indexing='ij'))
    cf = coords.reshape(2, -1)
    rc = cf[:, :, None] - cf[:, None, :]
    rc = rc.transpose(1, 2, 0)
    rc[:, :, 0] += ws - 1
    rc[:, :, 1] += ws - 1
    rc[:, :, 0] *= 2 * ws - 1
    idx = rc.sum(-1)                                                          # (N, N)
    N = ws * ws
    bias = bias_table[idx.reshape(-1)].reshape(N, N, num_heads)
    bias = jnp.transpose(bias, (2, 0, 1))                                     # (heads, N, N)
    return 16.0 * jax.nn.sigmoid(bias)


# --------------------------- model forward -----------------------------------

def swin_block_forward(x2d, blk, shift, B, H, W, ws, nh):
    # TODO(synk): at very small B*L the three pallas_calls per block could be fused into one
    # (doing window partition/shift in-kernel) to remove two HBM round-trips; lane-dense
    # padding of the 3C / hd trailing dims is likewise left to a future revision.
    C = x2d.shape[-1]
    hd = C // nh

    # LN1 + fused QKV matmul over all B*L rows (row-tiled, MXU-friendly).
    qkv = _rowwise_call(
        _ln_qkv_kernel,
        rowwise=[x2d],
        bcast=[blk['norm1_g'], blk['norm1_b'], blk['qkv_w_t'], blk['qkv_bias']],
        out_cols=3 * C)

    # shift + window-partition + head split + K pre-transpose (pure layout, fused by XLA).
    q, kt, v = _to_windows_headmajor(qkv, B, H, W, ws, nh, hd, shift)

    # per-head clamped logit scale, folded into q inside the kernel
    scale_h = jnp.exp(jnp.minimum(blk['logit_scale'].reshape(nh, 1, 1), math.log(100.0)))

    attn_w = _attention_call(q, kt, v, scale_h, blk['bias_g'], B, nh)

    # window-reverse + un-shift back to token layout.
    attn2d = _from_windows_headmajor(attn_w, B, H, W, ws, nh, hd, shift)

    # output projection + residual + LN2 + MLP + residual, fused and row-tiled.
    return _rowwise_call(
        _tail_kernel,
        rowwise=[x2d, attn2d],
        bcast=[blk['proj_w_t'], blk['proj_b'],
               blk['norm2_g'], blk['norm2_b'],
               blk['fc1_w_t'], blk['fc1_b'],
               blk['fc2_w_t'], blk['fc2_b']],
        out_cols=C)


@functools.partial(jax.jit, static_argnames=("input_resolution", "window_size", "num_heads"))
def basic_layer_up_forward(x, skip, params, *, input_resolution, window_size, num_heads):
    H, W = input_resolution
    B, L, C = x.shape
    x2d = x.reshape(B * L, C)
    for i, blk in enumerate(params['blocks']):
        shift = 0 if i % 2 == 0 else window_size // 2
        x2d = swin_block_forward(x2d, blk, shift, B, H, W, window_size, num_heads)
    # upsample=None in this configuration (BasicLayerUp default), so no upsampling stage.
    if skip is not None:
        Bs, Ls, Cs = skip.shape
        if Ls != L:
            # TODO(synk): bilinear F.interpolate resize of skip (L_skip != L_x) not implemented.
            raise NotImplementedError("mismatched skip resolution not supported in this test")
        x2d = _rowwise_call(
            _skip_cat_kernel,
            rowwise=[x2d, skip.reshape(B * L, Cs)],
            bcast=[params['skip_w_t'], params['skip_b'], params['skip_g'], params['skip_beta'],
                   params['cat_w_t_x'], params['cat_w_t_s'], params['cat_b'],
                   params['cat_g'], params['cat_beta']],
            out_cols=C)
    return x2d.reshape(B, L, C)


# --------------------------- deterministic parameter init ---------------------

def init_params(key, dim, depth, num_heads, window_size, mlp_ratio, input_resolution, skip_channels):
    H, W = input_resolution
    N = window_size * window_size
    nW = (H // window_size) * (W // window_size)
    hidden = int(dim * mlp_ratio)
    kit = iter(jax.random.split(key, depth * 6 + 2))

    def nrm(shape, scale=0.02):
        return (scale * jax.random.normal(next(kit), shape)).astype(jnp.float32)

    blocks = []
    for i in range(depth):
        shift = 0 if i % 2 == 0 else window_size // 2
        qkv_w = nrm((3 * dim, dim))                  # torch qkv.weight layout (3C, C)
        proj_w = nrm((dim, dim))
        fc1_w = nrm((hidden, dim))
        fc2_w = nrm((dim, hidden))
        cpb = dict(cpb_w1=nrm((512, 2)), cpb_b1=jnp.zeros((512,), jnp.float32),
                   cpb_w2=nrm((num_heads, 512)))
        rel_bias = compute_relative_position_bias(cpb, window_size, num_heads)   # (heads, N, N)
        if shift > 0:
            mask = compute_attn_mask(H, W, window_size, shift)                   # (nW, N, N)
            # Pre-folded (rel-pos bias + shift mask), window-major / head-minor: (nW*heads, N, N)
            bias_g = (rel_bias[None, :, :, :] + mask[:, None, :, :]).reshape(nW * num_heads, N, N)
        else:
            # W-MSA: bias is identical for every window; store per-head only (nW x less HBM).
            bias_g = rel_bias                                                    # (heads, N, N)

        q_bias = jnp.zeros((dim,), jnp.float32)
        v_bias = jnp.zeros((dim,), jnp.float32)
        blk = dict(
            norm1_g=jnp.ones((1, dim), jnp.float32), norm1_b=jnp.zeros((1, dim), jnp.float32),
            qkv_w_t=qkv_w.T.astype(MM_DTYPE),                                    # (C, 3C)
            qkv_bias=jnp.concatenate([q_bias, jnp.zeros((dim,), jnp.float32), v_bias]
                                     ).reshape(1, 3 * dim),
            logit_scale=jnp.log(10.0) * jnp.ones((num_heads, 1, 1), jnp.float32),
            bias_g=bias_g,
            proj_w_t=proj_w.T.astype(MM_DTYPE), proj_b=jnp.zeros((1, dim), jnp.float32),
            norm2_g=jnp.ones((1, dim), jnp.float32), norm2_b=jnp.zeros((1, dim), jnp.float32),
            fc1_w_t=fc1_w.T.astype(MM_DTYPE), fc1_b=jnp.zeros((1, hidden), jnp.float32),
            fc2_w_t=fc2_w.T.astype(MM_DTYPE), fc2_b=jnp.zeros((1, dim), jnp.float32),
        )
        blocks.append(blk)

    skip_w = nrm((dim, skip_channels))
    cat_w_t = nrm((dim, 2 * dim)).T                    # (2C, C)
    return dict(
        blocks=blocks,
        skip_w_t=skip_w.T.astype(MM_DTYPE), skip_b=jnp.zeros((1, dim), jnp.float32),
        skip_g=jnp.ones((1, dim), jnp.float32), skip_beta=jnp.zeros((1, dim), jnp.float32),
        cat_w_t_x=cat_w_t[:dim].astype(MM_DTYPE),      # concat matmul split: x part
        cat_w_t_s=cat_w_t[dim:].astype(MM_DTYPE),      # concat matmul split: skip part
        cat_b=jnp.zeros((1, dim), jnp.float32),
        cat_g=jnp.ones((1, dim), jnp.float32), cat_beta=jnp.zeros((1, dim), jnp.float32),
    )


# ------------------------------------ main ------------------------------------

if __name__ == "__main__":
    B = 2
    dim = 32
    H = W = 8                      # input_resolution = (8, 8), L = 64
    window_size = 4                # blocks: shift=0 (W-MSA), shift=2 (SW-MSA)
    num_heads = 4
    depth = 2
    mlp_ratio = 4.0
    skip_channels = 48

    key = jax.random.PRNGKey(0)
    kp, kx, ks = jax.random.split(key, 3)
    params = init_params(kp, dim, depth, num_heads, window_size, mlp_ratio, (H, W), skip_channels)

    x = jax.random.normal(kx, (B, H * W, dim), jnp.float32)
    skip = jax.random.normal(ks, (B, H * W, skip_channels), jnp.float32)

    out = basic_layer_up_forward(x, skip, params,
                                 input_resolution=(H, W),
                                 window_size=window_size,
                                 num_heads=num_heads)
    out = jax.block_until_ready(out)
    assert out.shape == (B, H * W, dim), out.shape
    assert bool(jnp.all(jnp.isfinite(out)))
    print("KERNEL_OK")
</pallas_src>

<mosaic_0001>
module attributes {stable_mosaic.version = 11 : i64} {
  func.func @_ln_qkv_kernel(%arg0: i32, %arg1: memref<64x32xf32, #tpu.memory_space<vmem>>, %arg2: memref<1x32xf32, #tpu.memory_space<vmem>>, %arg3: memref<1x32xf32, #tpu.memory_space<vmem>>, %arg4: memref<32x96xbf16, #tpu.memory_space<vmem>>, %arg5: memref<1x96xf32, #tpu.memory_space<vmem>>, %arg6: memref<64x96xf32, #tpu.memory_space<vmem>>) attributes {dimension_semantics = [#tpu.dimension_semantics<parallel>], iteration_bounds = array<i64: 2>, scalar_prefetch = 0 : i64, scratch_operands = 0 : i64, tpu.core_type = #tpu.core_type<tc>, window_params = [{transform_indices = @transform_0, window_bounds = array<i64: 64, 32>}, {pipeline_mode = #tpu.pipeline_mode<synchronous>, transform_indices = @transform_1, window_bounds = array<i64: 1, 32>}, {pipeline_mode = #tpu.pipeline_mode<synchronous>, transform_indices = @transform_2, window_bounds = array<i64: 1, 32>}, {pipeline_mode = #tpu.pipeline_mode<synchronous>, transform_indices = @transform_3, window_bounds = array<i64: 32, 96>}, {pipeline_mode = #tpu.pipeline_mode<synchronous>, transform_indices = @transform_4, window_bounds = array<i64: 1, 96>}, {transform_indices = @transform_5, window_bounds = array<i64: 64, 96>}]} {
    %c0 = arith.constant 0 : index
    %c0_0 = arith.constant 0 : index
    %0 = vector.load %arg1[%c0, %c0_0] : memref<64x32xf32, #tpu.memory_space<vmem>>, vector<64x32xf32>
    %c0_1 = arith.constant 0 : index
    %c0_2 = arith.constant 0 : index
    %1 = vector.load %arg2[%c0_1, %c0_2] : memref<1x32xf32, #tpu.memory_space<vmem>>, vector<1x32xf32>
    %c0_3 = arith.constant 0 : index
    %c0_4 = arith.constant 0 : index
    %2 = vector.load %arg3[%c0_3, %c0_4] : memref<1x32xf32, #tpu.memory_space<vmem>>, vector<1x32xf32>
    %cst = arith.constant dense<0.000000e+00> : vector<64xf32>
    %3 = vector.multi_reduction <add>, %0, %cst [1] : vector<64x32xf32> to vector<64xf32>
    %4 = vector.shape_cast %3 : vector<64xf32> to vector<64x1xf32>
    %cst_5 = arith.constant 3.200000e+01 : f32
    %5 = vector.broadcast %cst_5 : f32 to vector<64x1xf32>
    %6 = arith.divf %4, %5 : vector<64x1xf32>
    %7 = arith.mulf %0, %0 : vector<64x32xf32>
    %cst_6 = arith.constant dense<0.000000e+00> : vector<64xf32>
    %8 = vector.multi_reduction <add>, %7, %cst_6 [1] : vector<64x32xf32> to vector<64xf32>
    %9 = vector.shape_cast %8 : vector<64xf32> to vector<64x1xf32>
    %cst_7 = arith.constant 3.200000e+01 : f32
    %10 = vector.broadcast %cst_7 : f32 to vector<64x1xf32>
    %11 = arith.divf %9, %10 : vector<64x1xf32>
    %12 = arith.mulf %6, %6 : vector<64x1xf32>
    %13 = arith.subf %11, %12 : vector<64x1xf32>
    %cst_8 = arith.constant 0.000000e+00 : f32
    %14 = vector.broadcast %cst_8 : f32 to vector<64x1xf32>
    %15 = arith.maximumf %13, %14 : vector<64x1xf32>
    %16 = vector.broadcast %6 : vector<64x1xf32> to vector<64x32xf32>
    %17 = arith.subf %0, %16 : vector<64x32xf32>
    %cst_9 = arith.constant 9.99999974E-6 : f32
    %18 = vector.broadcast %cst_9 : f32 to vector<64x1xf32>
    %19 = arith.addf %15, %18 : vector<64x1xf32>
    %20 = math.rsqrt %19 : vector<64x1xf32>
    %21 = vector.broadcast %20 : vector<64x1xf32> to vector<64x32xf32>
    %22 = arith.mulf %17, %21 : vector<64x32xf32>
    %23 = vector.broadcast %1 : vector<1x32xf32> to vector<64x32xf32>
    %24 = arith.mulf %22, %23 : vector<64x32xf32>
    %25 = vector.broadcast %2 : vector<1x32xf32> to vector<64x32xf32>
    %26 = arith.addf %24, %25 : vector<64x32xf32>
    %27 = arith.truncf %26 : vector<64x32xf32> to vector<64x32xbf16>
    %c0_10 = arith.constant 0 : index
    %c0_11 = arith.constant 0 : index
    %28 = vector.load %arg4[%c0_10, %c0_11] : memref<32x96xbf16, #tpu.memory_space<vmem>>, vector<32x96xbf16>
    %cst_12 = arith.constant dense<0.000000e+00> : vector<64x96xf32>
    %29 = tpu.matmul %27, %28, %cst_12 {dimension_numbers = #tpu.dot_dimension_numbers<[1], [0], [0], [1], [0, 0, 1, 1], [], []>} : vector<64x32xbf16>, vector<32x96xbf16>, vector<64x96xf32> -> vector<64x96xf32>
    %c0_13 = arith.constant 0 : index
    %c0_14 = arith.constant 0 : index
    %30 = vector.load %arg5[%c0_13, %c0_14] : memref<1x96xf32, #tpu.memory_space<vmem>>, vector<1x96xf32>
    %31 = vector.broadcast %30 : vector<1x96xf32> to vector<64x96xf32>
    %32 = arith.addf %29, %31 : vector<64x96xf32>
    %c0_15 = arith.constant 0 : index
    %c0_16 = arith.constant 0 : index
    %33 = vector.load %arg6[%c0_15, %c0_16] : memref<64x96xf32, #tpu.memory_space<vmem>>, vector<64x96xf32>
    tpu.vector_store %arg6[%c0_15, %c0_16], %32 {strides = array<i32>} : memref<64x96xf32, #tpu.memory_space<vmem>>, vector<64x96xf32>,
    return
  }
  func.func @transform_0(%arg0: i32) -> (i32, i32) {
    %c0_i32 = arith.constant 0 : i32
    %c0_i32_0 = arith.constant 0 : i32
    return %arg0, %c0_i32 : i32, i32
  }
  func.func @transform_1(%arg0: i32) -> (i32, i32) {
    %c0_i32 = arith.constant 0 : i32
    %c0_i32_0 = arith.constant 0 : i32
    %c0_i32_1 = arith.constant 0 : i32
    return %c0_i32, %c0_i32_0 : i32, i32
  }
  func.func @transform_2(%arg0: i32) -> (i32, i32) {
    %c0_i32 = arith.constant 0 : i32
    %c0_i32_0 = arith.constant 0 : i32
    %c0_i32_1 = arith.constant 0 : i32
    return %c0_i32, %c0_i32_0 : i32, i32
  }
  func.func @transform_3(%arg0: i32) -> (i32, i32) {
    %c0_i32 = arith.constant 0 : i32
    %c0_i32_0 = arith.constant 0 : i32
    %c0_i32_1 = arith.constant 0 : i32
    return %c0_i32, %c0_i32_0 : i32, i32
  }
  func.func @transform_4(%arg0: i32) -> (i32, i32) {
    %c0_i32 = arith.constant 0 : i32
    %c0_i32_0 = arith.constant 0 : i32
    %c0_i32_1 = arith.constant 0 : i32
    return %c0_i32, %c0_i32_0 : i32, i32
  }
  func.func @transform_5(%arg0: i32) -> (i32, i32) {
    %c0_i32 = arith.constant 0 : i32
    %c0_i32_0 = arith.constant 0 : i32
    return %arg0, %c0_i32 : i32, i32
  }
}

module attributes {stable_mosaic.version = 11 : i64} {
  func.func @_attn_kernel(%arg0: i32, %arg1: i32, %arg2: memref<8x16x8xf32, #tpu.memory_space<vmem>>, %arg3: memref<8x8x16xf32, #tpu.memory_space<vmem>>, %arg4: memref<8x16x8xf32, #tpu.memory_space<vmem>>, %arg5: memref<4x1x1xf32, #tpu.memory_space<vmem>>, %arg6: memref<4x16x16xf32, #tpu.memory_space<vmem>>, %arg7: memref<8x16x8xf32, #tpu.memory_space<vmem>>) attributes {dimension_semantics = [#tpu.dimension_semantics<parallel>, #tpu.dimension_semantics<parallel>], iteration_bounds = array<i64: 2, 2>, scalar_prefetch = 0 : i64, scratch_operands = 0 : i64, tpu.core_type = #tpu.core_type<tc>, window_params = [{transform_indices = @transform_0, window_bounds = array<i64: 8, 16, 8>}, {transform_indices = @transform_1, window_bounds = array<i64: 8, 8, 16>}, {transform_indices = @transform_2, window_bounds = array<i64: 8, 16, 8>}, {pipeline_mode = #tpu.pipeline_mode<synchronous>, transform_indices = @transform_3, window_bounds = array<i64: 4, 1, 1>}, {pipeline_mode = #tpu.pipeline_mode<synchronous>, transform_indices = @transform_4, window_bounds = array<i64: 4, 16, 16>}, {transform_indices = @transform_5, window_bounds = array<i64: 8, 16, 8>}]} {
    %c0 = arith.constant 0 : index
    %c0_0 = arith.constant 0 : index
    %c0_1 = arith.constant 0 : index
    %0 = vector.load %arg2[%c0, %c0_0, %c0_1] : memref<8x16x8xf32, #tpu.memory_space<vmem>>, vector<8x16x8xf32>
    %c0_2 = arith.constant 0 : index
    %c0_3 = arith.constant 0 : index
    %c0_4 = arith.constant 0 : index
    %1 = vector.load %arg3[%c0_2, %c0_3, %c0_4] : memref<8x8x16xf32, #tpu.memory_space<vmem>>, vector<8x8x16xf32>
    %2 = arith.mulf %0, %0 : vector<8x16x8xf32>
    %cst = arith.constant dense<0.000000e+00> : vector<8x16xf32>
    %3 = vector.multi_reduction <add>, %2, %cst [2] : vector<8x16x8xf32> to vector<8x16xf32>
    %4 = vector.shape_cast %3 : vector<8x16xf32> to vector<8x16x1xf32>
    %cst_5 = arith.constant 1.000000e-24 : f32
    %5 = vector.broadcast %cst_5 : f32 to vector<8x16x1xf32>
    %6 = arith.maximumf %4, %5 : vector<8x16x1xf32>
    %7 = math.rsqrt %6 : vector<8x16x1xf32>
    %8 = vector.broadcast %7 : vector<8x16x1xf32> to vector<8x16x8xf32>
    %9 = arith.mulf %0, %8 : vector<8x16x8xf32>
    %10 = arith.mulf %1, %1 : vector<8x8x16xf32>
    %cst_6 = arith.constant dense<0.000000e+00> : vector<8x16xf32>
    %11 = vector.multi_reduction <add>, %10, %cst_6 [1] : vector<8x8x16xf32> to vector<8x16xf32>
    %12 = vector.shape_cast %11 : vector<8x16xf32> to vector<8x1x16xf32>
    %cst_7 = arith.constant 1.000000e-24 : f32
    %13 = vector.broadcast %cst_7 : f32 to vector<8x1x16xf32>
    %14 = arith.maximumf %12, %13 : vector<8x1x16xf32>
    %15 = math.rsqrt %14 : vector<8x1x16xf32>
    %16 = vector.broadcast %15 : vector<8x1x16xf32> to vector<8x8x16xf32>
    %17 = arith.mulf %1, %16 : vector<8x8x16xf32>
    %c0_8 = arith.constant 0 : index
    %c0_9 = arith.constant 0 : index
    %c0_10 = arith.constant 0 : index
    %18 = vector.load %arg5[%c0_8, %c0_9, %c0_10] : memref<4x1x1xf32, #tpu.memory_space<vmem>>, vector<4x1x1xf32>
    %19 = tpu.concatenate %18, %18 in 0 : vector<4x1x1xf32>, vector<4x1x1xf32> -> vector<8x1x1xf32>
    %20 = vector.broadcast %19 : vector<8x1x1xf32> to vector<8x16x8xf32>
    %21 = arith.mulf %9, %20 : vector<8x16x8xf32>
    %c0_11 = arith.constant 0 : index
    %c0_12 = arith.constant 0 : index
    %c0_13 = arith.constant 0 : index
    %22 = vector.load %arg6[%c0_11, %c0_12, %c0_13] : memref<4x16x16xf32, #tpu.memory_space<vmem>>, vector<4x16x16xf32>
    %23 = tpu.concatenate %22, %22 in 0 : vector<4x16x16xf32>, vector<4x16x16xf32> -> vector<8x16x16xf32>
    %24 = arith.truncf %21 : vector<8x16x8xf32> to vector<8x16x8xbf16>
    %25 = arith.truncf %17 : vector<8x8x16xf32> to vector<8x8x16xbf16>
    "tpu.trace_start"() <{level = 10 : i32, message = "gnd,gdm->gnm"}> : () -> ()
    %cst_14 = arith.constant dense<0.000000e+00> : vector<8x16x16xf32>
    %26 = tpu.matmul %24, %25, %cst_14 {dimension_numbers = #tpu.dot_dimension_numbers<[2], [1], [1], [2], [0, 0, 0, 1, 1, 2], [0], [0]>} : vector<8x16x8xbf16>, vector<8x8x16xbf16>, vector<8x16x16xf32> -> vector<8x16x16xf32>
    "tpu.trace_stop"() : () -> ()
    %27 = arith.addf %26, %23 : vector<8x16x16xf32>
    %cst_15 = arith.constant dense<0xFF800000> : vector<8x16xf32>
    %28 = vector.multi_reduction <maximumf>, %27, %cst_15 [2] : vector<8x16x16xf32> to vector<8x16xf32>
    %29 = vector.shape_cast %28 : vector<8x16xf32> to vector<8x16x1xf32>
    %30 = vector.broadcast %29 : vector<8x16x1xf32> to vector<8x16x16xf32>
    %31 = arith.subf %27, %30 : vector<8x16x16xf32>
    %32 = math.exp %31 : vector<8x16x16xf32>
    %cst_16 = arith.constant dense<0.000000e+00> : vector<8x16xf32>
    %33 = vector.multi_reduction <add>, %32, %cst_16 [2] : vector<8x16x16xf32> to vector<8x16xf32>
    %34 = vector.shape_cast %33 : vector<8x16xf32> to vector<8x16x1xf32>
    %35 = tpu.reciprocal %34 {approx = true} : vector<8x16x1xf32> -> vector<8x16x1xf32>
    %36 = vector.broadcast %35 : vector<8x16x1xf32> to vector<8x16x16xf32>
    %37 = arith.mulf %32, %36 : vector<8x16x16xf32>
    %38 = arith.truncf %37 : vector<8x16x16xf32> to vector<8x16x16xbf16>
    %c0_17 = arith.constant 0 : index
    %c0_18 = arith.constant 0 : index
    %c0_19 = arith.constant 0 : index
    %39 = vector.load %arg4[%c0_17, %c0_18, %c0_19] : memref<8x16x8xf32, #tpu.memory_space<vmem>>, vector<8x16x8xf32>
    %40 = arith.truncf %39 : vector<8x16x8xf32> to vector<8x16x8xbf16>
    "tpu.trace_start"() <{level = 10 : i32, message = "gnm,gmd->gnd"}> : () -> ()
    %cst_20 = arith.constant dense<0.000000e+00> : vector<8x16x8xf32>
    %41 = tpu.matmul %38, %40, %cst_20 {dimension_numbers = #tpu.dot_dimension_numbers<[2], [1], [1], [2], [0, 0, 0, 1, 1, 2], [0], [0]>} : vector<8x16x16xbf16>, vector<8x16x8xbf16>, vector<8x16x8xf32> -> vector<8x16x8xf32>
    "tpu.trace_stop"() : () -> ()
    %c0_21 = arith.constant 0 : index
    %c0_22 = arith.constant 0 : index
    %c0_23 = arith.constant 0 : index
    %42 = vector.load %arg7[%c0_21, %c0_22, %c0_23] : memref<8x16x8xf32, #tpu.memory_space<vmem>>, vector<8x16x8xf32>
    tpu.vector_store %arg7[%c0_21, %c0_22, %c0_23], %41 {strides = array<i32>} : memref<8x16x8xf32, #tpu.memory_space<vmem>>, vector<8x16x8xf32>,
    return
  }
  func.func @transform_0(%arg0: i32, %arg1: i32) -> (i32, i32, i32) {
    %c2_i32 = arith.constant 2 : i32
    %0 = arith.muli %arg0, %c2_i32 : i32
    %1 = arith.addi %0, %arg1 : i32
    %c0_i32 = arith.constant 0 : i32
    %c0_i32_0 = arith.constant 0 : i32
    %c0_i32_1 = arith.constant 0 : i32
    return %1, %c0_i32, %c0_i32_0 : i32, i32, i32
  }
  func.func @transform_1(%arg0: i32, %arg1: i32) -> (i32, i32, i32) {
    %c2_i32 = arith.constant 2 : i32
    %0 = arith.muli %arg0, %c2_i32 : i32
    %1 = arith.addi %0, %arg1 : i32
    %c0_i32 = arith.constant 0 : i32
    %c0_i32_0 = arith.constant 0 : i32
    %c0_i32_1 = arith.constant 0 : i32
    return %1, %c0_i32, %c0_i32_0 : i32, i32, i32
  }
  func.func @transform_2(%arg0: i32, %arg1: i32) -> (i32, i32, i32) {
    %c2_i32 = arith.constant 2 : i32
    %0 = arith.muli %arg0, %c2_i32 : i32
    %1 = arith.addi %0, %arg1 : i32
    %c0_i32 = arith.constant 0 : i32
    %c0_i32_0 = arith.constant 0 : i32
    %c0_i32_1 = arith.constant 0 : i32
    return %1, %c0_i32, %c0_i32_0 : i32, i32, i32
  }
  func.func @transform_3(%arg0: i32, %arg1: i32) -> (i32, i32, i32) {
    %c0_i32 = arith.constant 0 : i32
    %c0_i32_0 = arith.constant 0 : i32
    %c0_i32_1 = arith.constant 0 : i32
    %c0_i32_2 = arith.constant 0 : i32
    return %c0_i32, %c0_i32_0, %c0_i32_1 : i32, i32, i32
  }
  func.func @transform_4(%arg0: i32, %arg1: i32) -> (i32, i32, i32) {
    %c0_i32 = arith.constant 0 : i32
    %c0_i32_0 = arith.constant 0 : i32
    %c0_i32_1 = arith.constant 0 : i32
    %c0_i32_2 = arith.constant 0 : i32
    return %c0_i32, %c0_i32_0, %c0_i32_1 : i32, i32, i32
  }
  func.func @transform_5(%arg0: i32, %arg1: i32) -> (i32, i32, i32) {
    %c2_i32 = arith.constant 2 : i32
    %0 = arith.muli %arg0, %c2_i32 : i32
    %1 = arith.addi %0, %arg1 : i32
    %c0_i32 = arith.constant 0 : i32
    %c0_i32_0 = arith.constant 0 : i32
    %c0_i32_1 = arith.constant 0 : i32
    return %1, %c0_i32, %c0_i32_0 : i32, i32, i32
  }
}

module attributes {stable_mosaic.version = 11 : i64} {
  func.func @_tail_kernel(%arg0: i32, %arg1: memref<64x32xf32, #tpu.memory_space<vmem>>, %arg2: memref<64x32xf32, #tpu.memory_space<vmem>>, %arg3: memref<32x32xbf16, #tpu.memory_space<vmem>>, %arg4: memref<1x32xf32, #tpu.memory_space<vmem>>, %arg5: memref<1x32xf32, #tpu.memory_space<vmem>>, %arg6: memref<1x32xf32, #tpu.memory_space<vmem>>, %arg7: memref<32x128xbf16, #tpu.memory_space<vmem>>, %arg8: memref<1x128xf32, #tpu.memory_space<vmem>>, %arg9: memref<128x32xbf16, #tpu.memory_space<vmem>>, %arg10: memref<1x32xf32, #tpu.memory_space<vmem>>, %arg11: memref<64x32xf32, #tpu.memory_space<vmem>>) attributes {dimension_semantics = [#tpu.dimension_semantics<parallel>], iteration_bounds = array<i64: 2>, scalar_prefetch = 0 : i64, scratch_operands = 0 : i64, tpu.core_type = #tpu.core_type<tc>, window_params = [{transform_indices = @transform_0, window_bounds = array<i64: 64, 32>}, {transform_indices = @transform_1, window_bounds = array<i64: 64, 32>}, {pipeline_mode = #tpu.pipeline_mode<synchronous>, transform_indices = @transform_2, window_bounds = array<i64: 32, 32>}, {pipeline_mode = #tpu.pipeline_mode<synchronous>, transform_indices = @transform_3, window_bounds = array<i64: 1, 32>}, {pipeline_mode = #tpu.pipeline_mode<synchronous>, transform_indices = @transform_4, window_bounds = array<i64: 1, 32>}, {pipeline_mode = #tpu.pipeline_mode<synchronous>, transform_indices = @transform_5, window_bounds = array<i64: 1, 32>}, {pipeline_mode = #tpu.pipeline_mode<synchronous>, transform_indices = @transform_6, window_bounds = array<i64: 32, 128>}, {pipeline_mode = #tpu.pipeline_mode<synchronous>, transform_indices = @transform_7, window_bounds = array<i64: 1, 128>}, {pipeline_mode = #tpu.pipeline_mode<synchronous>, transform_indices = @transform_8, window_bounds = array<i64: 128, 32>}, {pipeline_mode = #tpu.pipeline_mode<synchronous>, transform_indices = @transform_9, window_bounds = array<i64: 1, 32>}, {transform_indices = @transform_10, window_bounds = array<i64: 64, 32>}]} {
    %c0 = arith.constant 0 : index
    %c0_0 = arith.constant 0 : index
    %0 = vector.load %arg2[%c0, %c0_0] : memref<64x32xf32, #tpu.memory_space<vmem>>, vector<64x32xf32>
    %1 = arith.truncf %0 : vector<64x32xf32> to vector<64x32xbf16>
    %c0_1 = arith.constant 0 : index
    %c0_2 = arith.constant 0 : index
    %2 = vector.load %arg3[%c0_1, %c0_2] : memref<32x32xbf16, #tpu.memory_space<vmem>>, vector<32x32xbf16>
    %cst = arith.constant dense<0.000000e+00> : vector<64x32xf32>
    %3 = tpu.matmul %1, %2, %cst {dimension_numbers = #tpu.dot_dimension_numbers<[1], [0], [0], [1], [0, 0, 1, 1], [], []>} : vector<64x32xbf16>, vector<32x32xbf16>, vector<64x32xf32> -> vector<64x32xf32>
    %c0_3 = arith.constant 0 : index
    %c0_4 = arith.constant 0 : index
    %4 = vector.load %arg4[%c0_3, %c0_4] : memref<1x32xf32, #tpu.memory_space<vmem>>, vector<1x32xf32>
    %5 = vector.broadcast %4 : vector<1x32xf32> to vector<64x32xf32>
    %6 = arith.addf %3, %5 : vector<64x32xf32>
    %c0_5 = arith.constant 0 : index
    %c0_6 = arith.constant 0 : index
    %7 = vector.load %arg1[%c0_5, %c0_6] : memref<64x32xf32, #tpu.memory_space<vmem>>, vector<64x32xf32>
    %8 = arith.addf %7, %6 : vector<64x32xf32>
    %c0_7 = arith.constant 0 : index
    %c0_8 = arith.constant 0 : index
    %9 = vector.load %arg5[%c0_7, %c0_8] : memref<1x32xf32, #tpu.memory_space<vmem>>, vector<1x32xf32>
    %c0_9 = arith.constant 0 : index
    %c0_10 = arith.constant 0 : index
    %10 = vector.load %arg6[%c0_9, %c0_10] : memref<1x32xf32, #tpu.memory_space<vmem>>, vector<1x32xf32>
    %cst_11 = arith.constant dense<0.000000e+00> : vector<64xf32>
    %11 = vector.multi_reduction <add>, %8, %cst_11 [1] : vector<64x32xf32> to vector<64xf32>
    %12 = vector.shape_cast %11 : vector<64xf32> to vector<64x1xf32>
    %cst_12 = arith.constant 3.200000e+01 : f32
    %13 = vector.broadcast %cst_12 : f32 to vector<64x1xf32>
    %14 = arith.divf %12, %13 : vector<64x1xf32>
    %15 = arith.mulf %8, %8 : vector<64x32xf32>
    %cst_13 = arith.constant dense<0.000000e+00> : vector<64xf32>
    %16 = vector.multi_reduction <add>, %15, %cst_13 [1] : vector<64x32xf32> to vector<64xf32>
    %17 = vector.shape_cast %16 : vector<64xf32> to vector<64x1xf32>
    %cst_14 = arith.constant 3.200000e+01 : f32
    %18 = vector.broadcast %cst_14 : f32 to vector<64x1xf32>
    %19 = arith.divf %17, %18 : vector<64x1xf32>
    %20 = arith.mulf %14, %14 : vector<64x1xf32>
    %21 = arith.subf %19, %20 : vector<64x1xf32>
    %cst_15 = arith.constant 0.000000e+00 : f32
    %22 = vector.broadcast %cst_15 : f32 to vector<64x1xf32>
    %23 = arith.maximumf %21, %22 : vector<64x1xf32>
    %24 = vector.broadcast %14 : vector<64x1xf32> to vector<64x32xf32>
    %25 = arith.subf %8, %24 : vector<64x32xf32>
    %cst_16 = arith.constant 9.99999974E-6 : f32
    %26 = vector.broadcast %cst_16 : f32 to vector<64x1xf32>
    %27 = arith.addf %23, %26 : vector<64x1xf32>
    %28 = math.rsqrt %27 : vector<64x1xf32>
    %29 = vector.broadcast %28 : vector<64x1xf32> to vector<64x32xf32>
    %30 = arith.mulf %25, %29 : vector<64x32xf32>
    %31 = vector.broadcast %9 : vector<1x32xf32> to vector<64x32xf32>
    %32 = arith.mulf %30, %31 : vector<64x32xf32>
    %33 = vector.broadcast %10 : vector<1x32xf32> to vector<64x32xf32>
    %34 = arith.addf %32, %33 : vector<64x32xf32>
    %35 = arith.truncf %34 : vector<64x32xf32> to vector<64x32xbf16>
    %c0_17 = arith.constant 0 : index
    %c0_18 = arith.constant 0 : index
    %36 = vector.load %arg7[%c0_17, %c0_18] : memref<32x128xbf16, #tpu.memory_space<vmem>>, vector<32x128xbf16>
    %cst_19 = arith.constant dense<0.000000e+00> : vector<64x128xf32>
    %37 = tpu.matmul %35, %36, %cst_19 {dimension_numbers = #tpu.dot_dimension_numbers<[1], [0], [0], [1], [0, 0, 1, 1], [], []>} : vector<64x32xbf16>, vector<32x128xbf16>, vector<64x128xf32> -> vector<64x128xf32>
    %c0_20 = arith.constant 0 : index
    %c0_21 = arith.constant 0 : index
    %38 = vector.load %arg8[%c0_20, %c0_21] : memref<1x128xf32, #tpu.memory_space<vmem>>, vector<1x128xf32>
    %39 = vector.broadcast %38 : vector<1x128xf32> to vector<64x128xf32>
    %40 = arith.addf %37, %39 : vector<64x128xf32>
    %cst_22 = arith.constant 5.000000e-01 : f32
    %41 = vector.broadcast %cst_22 : f32 to vector<64x128xf32>
    %42 = arith.mulf %41, %40 : vector<64x128xf32>
    %cst_23 = arith.constant 0.707106769 : f32
    %43 = vector.broadcast %cst_23 : f32 to vector<64x128xf32>
    %44 = arith.mulf %40, %43 : vector<64x128xf32>
    %45 = math.erf %44 : vector<64x128xf32>
    %cst_24 = arith.constant 1.000000e+00 : f32
    %46 = vector.broadcast %cst_24 : f32 to vector<64x128xf32>
    %47 = arith.addf %46, %45 : vector<64x128xf32>
    %48 = arith.mulf %42, %47 : vector<64x128xf32>
    %49 = arith.truncf %48 : vector<64x128xf32> to vector<64x128xbf16>
    %c0_25 = arith.constant 0 : index
    %c0_26 = arith.constant 0 : index
    %50 = vector.load %arg9[%c0_25, %c0_26] : memref<128x32xbf16, #tpu.memory_space<vmem>>, vector<128x32xbf16>
    %cst_27 = arith.constant dense<0.000000e+00> : vector<64x32xf32>
    %51 = tpu.matmul %49, %50, %cst_27 {dimension_numbers = #tpu.dot_dimension_numbers<[1], [0], [0], [1], [0, 0, 1, 1], [], []>} : vector<64x128xbf16>, vector<128x32xbf16>, vector<64x32xf32> -> vector<64x32xf32>
    %c0_28 = arith.constant 0 : index
    %c0_29 = arith.constant 0 : index
    %52 = vector.load %arg10[%c0_28, %c0_29] : memref<1x32xf32, #tpu.memory_space<vmem>>, vector<1x32xf32>
    %53 = vector.broadcast %52 : vector<1x32xf32> to vector<64x32xf32>
    %54 = arith.addf %51, %53 : vector<64x32xf32>
    %55 = arith.addf %8, %54 : vector<64x32xf32>
    %c0_30 = arith.constant 0 : index
    %c0_31 = arith.constant 0 : index
    %56 = vector.load %arg11[%c0_30, %c0_31] : memref<64x32xf32, #tpu.memory_space<vmem>>, vector<64x32xf32>
    tpu.vector_store %arg11[%c0_30, %c0_31], %55 {strides = array<i32>} : memref<64x32xf32, #tpu.memory_space<vmem>>, vector<64x32xf32>,
    return
  }
  func.func @transform_0(%arg0: i32) -> (i32, i32) {
    %c0_i32 = arith.constant 0 : i32
    %c0_i32_0 = arith.constant 0 : i32
    return %arg0, %c0_i32 : i32, i32
  }
  func.func @transform_1(%arg0: i32) -> (i32, i32) {
    %c0_i32 = arith.constant 0 : i32
    %c0_i32_0 = arith.constant 0 : i32
    return %arg0, %c0_i32 : i32, i32
  }
  func.func @transform_2(%arg0: i32) -> (i32, i32) {
    %c0_i32 = arith.constant 0 : i32
    %c0_i32_0 = arith.constant 0 : i32
    %c0_i32_1 = arith.constant 0 : i32
    return %c0_i32, %c0_i32_0 : i32, i32
  }
  func.func @transform_3(%arg0: i32) -> (i32, i32) {
    %c0_i32 = arith.constant 0 : i32
    %c0_i32_0 = arith.constant 0 : i32
    %c0_i32_1 = arith.constant 0 : i32
    return %c0_i32, %c0_i32_0 : i32, i32
  }
  func.func @transform_4(%arg0: i32) -> (i32, i32) {
    %c0_i32 = arith.constant 0 : i32
    %c0_i32_0 = arith.constant 0 : i32
    %c0_i32_1 = arith.constant 0 : i32
    return %c0_i32, %c0_i32_0 : i32, i32
  }
  func.func @transform_5(%arg0: i32) -> (i32, i32) {
    %c0_i32 = arith.constant 0 : i32
    %c0_i32_0 = arith.constant 0 : i32
    %c0_i32_1 = arith.constant 0 : i32
    return %c0_i32, %c0_i32_0 : i32, i32
  }
  func.func @transform_6(%arg0: i32) -> (i32, i32) {
    %c0_i32 = arith.constant 0 : i32
    %c0_i32_0 = arith.constant 0 : i32
    %c0_i32_1 = arith.constant 0 : i32
    return %c0_i32, %c0_i32_0 : i32, i32
  }
  func.func @transform_7(%arg0: i32) -> (i32, i32) {
    %c0_i32 = arith.constant 0 : i32
    %c0_i32_0 = arith.constant 0 : i32
    %c0_i32_1 = arith.constant 0 : i32
    return %c0_i32, %c0_i32_0 : i32, i32
  }
  func.func @transform_8(%arg0: i32) -> (i32, i32) {
    %c0_i32 = arith.constant 0 : i32
    %c0_i32_0 = arith.constant 0 : i32
    %c0_i32_1 = arith.constant 0 : i32
    return %c0_i32, %c0_i32_0 : i32, i32
  }
  func.func @transform_9(%arg0: i32) -> (i32, i32) {
    %c0_i32 = arith.constant 0 : i32
    %c0_i32_0 = arith.constant 0 : i32
    %c0_i32_1 = arith.constant 0 : i32
    return %c0_i32, %c0_i32_0 : i32, i32
  }
  func.func @transform_10(%arg0: i32) -> (i32, i32) {
    %c0_i32 = arith.constant 0 : i32
    %c0_i32_0 = arith.constant 0 : i32
    return %arg0, %c0_i32 : i32, i32
  }
}

module attributes {stable_mosaic.version = 11 : i64} {
  func.func @_attn_kernel(%arg0: i32, %arg1: i32, %arg2: memref<8x16x8xf32, #tpu.memory_space<vmem>>, %arg3: memref<8x8x16xf32, #tpu.memory_space<vmem>>, %arg4: memref<8x16x8xf32, #tpu.memory_space<vmem>>, %arg5: memref<4x1x1xf32, #tpu.memory_space<vmem>>, %arg6: memref<8x16x16xf32, #tpu.memory_space<vmem>>, %arg7: memref<8x16x8xf32, #tpu.memory_space<vmem>>) attributes {dimension_semantics = [#tpu.dimension_semantics<parallel>, #tpu.dimension_semantics<parallel>], iteration_bounds = array<i64: 2, 2>, scalar_prefetch = 0 : i64, scratch_operands = 0 : i64, tpu.core_type = #tpu.core_type<tc>, window_params = [{transform_indices = @transform_0, window_bounds = array<i64: 8, 16, 8>}, {transform_indices = @transform_1, window_bounds = array<i64: 8, 8, 16>}, {transform_indices = @transform_2, window_bounds = array<i64: 8, 16, 8>}, {pipeline_mode = #tpu.pipeline_mode<synchronous>, transform_indices = @transform_3, window_bounds = array<i64: 4, 1, 1>}, {transform_indices = @transform_4, window_bounds = array<i64: 8, 16, 16>}, {transform_indices = @transform_5, window_bounds = array<i64: 8, 16, 8>}]} {
    %c0 = arith.constant 0 : index
    %c0_0 = arith.constant 0 : index
    %c0_1 = arith.constant 0 : index
    %0 = vector.load %arg2[%c0, %c0_0, %c0_1] : memref<8x16x8xf32, #tpu.memory_space<vmem>>, vector<8x16x8xf32>
    %c0_2 = arith.constant 0 : index
    %c0_3 = arith.constant 0 : index
    %c0_4 = arith.constant 0 : index
    %1 = vector.load %arg3[%c0_2, %c0_3, %c0_4] : memref<8x8x16xf32, #tpu.memory_space<vmem>>, vector<8x8x16xf32>
    %2 = arith.mulf %0, %0 : vector<8x16x8xf32>
    %cst = arith.constant dense<0.000000e+00> : vector<8x16xf32>
    %3 = vector.multi_reduction <add>, %2, %cst [2] : vector<8x16x8xf32> to vector<8x16xf32>
    %4 = vector.shape_cast %3 : vector<8x16xf32> to vector<8x16x1xf32>
    %cst_5 = arith.constant 1.000000e-24 : f32
    %5 = vector.broadcast %cst_5 : f32 to vector<8x16x1xf32>
    %6 = arith.maximumf %4, %5 : vector<8x16x1xf32>
    %7 = math.rsqrt %6 : vector<8x16x1xf32>
    %8 = vector.broadcast %7 : vector<8x16x1xf32> to vector<8x16x8xf32>
    %9 = arith.mulf %0, %8 : vector<8x16x8xf32>
    %10 = arith.mulf %1, %1 : vector<8x8x16xf32>
    %cst_6 = arith.constant dense<0.000000e+00> : vector<8x16xf32>
    %11 = vector.multi_reduction <add>, %10, %cst_6 [1] : vector<8x8x16xf32> to vector<8x16xf32>
    %12 = vector.shape_cast %11 : vector<8x16xf32> to vector<8x1x16xf32>
    %cst_7 = arith.constant 1.000000e-24 : f32
    %13 = vector.broadcast %cst_7 : f32 to vector<8x1x16xf32>
    %14 = arith.maximumf %12, %13 : vector<8x1x16xf32>
    %15 = math.rsqrt %14 : vector<8x1x16xf32>
    %16 = vector.broadcast %15 : vector<8x1x16xf32> to vector<8x8x16xf32>
    %17 = arith.mulf %1, %16 : vector<8x8x16xf32>
    %c0_8 = arith.constant 0 : index
    %c0_9 = arith.constant 0 : index
    %c0_10 = arith.constant 0 : index
    %18 = vector.load %arg5[%c0_8, %c0_9, %c0_10] : memref<4x1x1xf32, #tpu.memory_space<vmem>>, vector<4x1x1xf32>
    %19 = tpu.concatenate %18, %18 in 0 : vector<4x1x1xf32>, vector<4x1x1xf32> -> vector<8x1x1xf32>
    %20 = vector.broadcast %19 : vector<8x1x1xf32> to vector<8x16x8xf32>
    %21 = arith.mulf %9, %20 : vector<8x16x8xf32>
    %c0_11 = arith.constant 0 : index
    %c0_12 = arith.constant 0 : index
    %c0_13 = arith.constant 0 : index
    %22 = vector.load %arg6[%c0_11, %c0_12, %c0_13] : memref<8x16x16xf32, #tpu.memory_space<vmem>>, vector<8x16x16xf32>
    %23 = arith.truncf %21 : vector<8x16x8xf32> to vector<8x16x8xbf16>
    %24 = arith.truncf %17 : vector<8x8x16xf32> to vector<8x8x16xbf16>
    "tpu.trace_start"() <{level = 10 : i32, message = "gnd,gdm->gnm"}> : () -> ()
    %cst_14 = arith.constant dense<0.000000e+00> : vector<8x16x16xf32>
    %25 = tpu.matmul %23, %24, %cst_14 {dimension_numbers = #tpu.dot_dimension_numbers<[2], [1], [1], [2], [0, 0, 0, 1, 1, 2], [0], [0]>} : vector<8x16x8xbf16>, vector<8x8x16xbf16>, vector<8x16x16xf32> -> vector<8x16x16xf32>
    "tpu.trace_stop"() : () -> ()
    %26 = arith.addf %25, %22 : vector<8x16x16xf32>
    %cst_15 = arith.constant dense<0xFF800000> : vector<8x16xf32>
    %27 = vector.multi_reduction <maximumf>, %26, %cst_15 [2] : vector<8x16x16xf32> to vector<8x16xf32>
    %28 = vector.shape_cast %27 : vector<8x16xf32> to vector<8x16x1xf32>
    %29 = vector.broadcast %28 : vector<8x16x1xf32> to vector<8x16x16xf32>
    %30 = arith.subf %26, %29 : vector<8x16x16xf32>
    %31 = math.exp %30 : vector<8x16x16xf32>
    %cst_16 = arith.constant dense<0.000000e+00> : vector<8x16xf32>
    %32 = vector.multi_reduction <add>, %31, %cst_16 [2] : vector<8x16x16xf32> to vector<8x16xf32>
    %33 = vector.shape_cast %32 : vector<8x16xf32> to vector<8x16x1xf32>
    %34 = tpu.reciprocal %33 {approx = true} : vector<8x16x1xf32> -> vector<8x16x1xf32>
    %35 = vector.broadcast %34 : vector<8x16x1xf32> to vector<8x16x16xf32>
    %36 = arith.mulf %31, %35 : vector<8x16x16xf32>
    %37 = arith.truncf %36 : vector<8x16x16xf32> to vector<8x16x16xbf16>
    %c0_17 = arith.constant 0 : index
    %c0_18 = arith.constant 0 : index
    %c0_19 = arith.constant 0 : index
    %38 = vector.load %arg4[%c0_17, %c0_18, %c0_19] : memref<8x16x8xf32, #tpu.memory_space<vmem>>, vector<8x16x8xf32>
    %39 = arith.truncf %38 : vector<8x16x8xf32> to vector<8x16x8xbf16>
    "tpu.trace_start"() <{level = 10 : i32, message = "gnm,gmd->gnd"}> : () -> ()
    %cst_20 = arith.constant dense<0.000000e+00> : vector<8x16x8xf32>
    %40 = tpu.matmul %37, %39, %cst_20 {dimension_numbers = #tpu.dot_dimension_numbers<[2], [1], [1], [2], [0, 0, 0, 1, 1, 2], [0], [0]>} : vector<8x16x16xbf16>, vector<8x16x8xbf16>, vector<8x16x8xf32> -> vector<8x16x8xf32>
    "tpu.trace_stop"() : () -> ()
    %c0_21 = arith.constant 0 : index
    %c0_22 = arith.constant 0 : index
    %c0_23 = arith.constant 0 : index
    %41 = vector.load %arg7[%c0_21, %c0_22, %c0_23] : memref<8x16x8xf32, #tpu.memory_space<vmem>>, vector<8x16x8xf32>
    tpu.vector_store %arg7[%c0_21, %c0_22, %c0_23], %40 {strides = array<i32>} : memref<8x16x8xf32, #tpu.memory_space<vmem>>, vector<8x16x8xf32>,
    return
  }
  func.func @transform_0(%arg0: i32, %arg1: i32) -> (i32, i32, i32) {
    %c2_i32 = arith.constant 2 : i32
    %0 = arith.muli %arg0, %c2_i32 : i32
    %1 = arith.addi %0, %arg1 : i32
    %c0_i32 = arith.constant 0 : i32
    %c0_i32_0 = arith.constant 0 : i32
    %c0_i32_1 = arith.constant 0 : i32
    return %1, %c0_i32, %c0_i32_0 : i32, i32, i32
  }
  func.func @transform_1(%arg0: i32, %arg1: i32) -> (i32, i32, i32) {
    %c2_i32 = arith.constant 2 : i32
    %0 = arith.muli %arg0, %c2_i32 : i32
    %1 = arith.addi %0, %arg1 : i32
    %c0_i32 = arith.constant 0 : i32
    %c0_i32_0 = arith.constant 0 : i32
    %c0_i32_1 = arith.constant 0 : i32
    return %1, %c0_i32, %c0_i32_0 : i32, i32, i32
  }
  func.func @transform_2(%arg0: i32, %arg1: i32) -> (i32, i32, i32) {
    %c2_i32 = arith.constant 2 : i32
    %0 = arith.muli %arg0, %c2_i32 : i32
    %1 = arith.addi %0, %arg1 : i32
    %c0_i32 = arith.constant 0 : i32
    %c0_i32_0 = arith.constant 0 : i32
    %c0_i32_1 = arith.constant 0 : i32
    return %1, %c0_i32, %c0_i32_0 : i32, i32, i32
  }
  func.func @transform_3(%arg0: i32, %arg1: i32) -> (i32, i32, i32) {
    %c0_i32 = arith.constant 0 : i32
    %c0_i32_0 = arith.constant 0 : i32
    %c0_i32_1 = arith.constant 0 : i32
    %c0_i32_2 = arith.constant 0 : i32
    return %c0_i32, %c0_i32_0, %c0_i32_1 : i32, i32, i32
  }
  func.func @transform_4(%arg0: i32, %arg1: i32) -> (i32, i32, i32) {
    %c0_i32 = arith.constant 0 : i32
    %c0_i32_0 = arith.constant 0 : i32
    %c0_i32_1 = arith.constant 0 : i32
    return %arg1, %c0_i32, %c0_i32_0 : i32, i32, i32
  }
  func.func @transform_5(%arg0: i32, %arg1: i32) -> (i32, i32, i32) {
    %c2_i32 = arith.constant 2 : i32
    %0 = arith.muli %arg0, %c2_i32 : i32
    %1 = arith.addi %0, %arg1 : i32
    %c0_i32 = arith.constant 0 : i32
    %c0_i32_0 = arith.constant 0 : i32
    %c0_i32_1 = arith.constant 0 : i32
    return %1, %c0_i32, %c0_i32_0 : i32, i32, i32
  }
}

module attributes {stable_mosaic.version = 11 : i64} {
  func.func @_skip_cat_kernel(%arg0: i32, %arg1: memref<64x32xf32, #tpu.memory_space<vmem>>, %arg2: memref<64x48xf32, #tpu.memory_space<vmem>>, %arg3: memref<48x32xbf16, #tpu.memory_space<vmem>>, %arg4: memref<1x32xf32, #tpu.memory_space<vmem>>, %arg5: memref<1x32xf32, #tpu.memory_space<vmem>>, %arg6: memref<1x32xf32, #tpu.memory_space<vmem>>, %arg7: memref<32x32xbf16, #tpu.memory_space<vmem>>, %arg8: memref<32x32xbf16, #tpu.memory_space<vmem>>, %arg9: memref<1x32xf32, #tpu.memory_space<vmem>>, %arg10: memref<1x32xf32, #tpu.memory_space<vmem>>, %arg11: memref<1x32xf32, #tpu.memory_space<vmem>>, %arg12: memref<64x32xf32, #tpu.memory_space<vmem>>) attributes {dimension_semantics = [#tpu.dimension_semantics<parallel>], iteration_bounds = array<i64: 2>, scalar_prefetch = 0 : i64, scratch_operands = 0 : i64, tpu.core_type = #tpu.core_type<tc>, window_params = [{transform_indices = @transform_0, window_bounds = array<i64: 64, 32>}, {transform_indices = @transform_1, window_bounds = array<i64: 64, 48>}, {pipeline_mode = #tpu.pipeline_mode<synchronous>, transform_indices = @transform_2, window_bounds = array<i64: 48, 32>}, {pipeline_mode = #tpu.pipeline_mode<synchronous>, transform_indices = @transform_3, window_bounds = array<i64: 1, 32>}, {pipeline_mode = #tpu.pipeline_mode<synchronous>, transform_indices = @transform_4, window_bounds = array<i64: 1, 32>}, {pipeline_mode = #tpu.pipeline_mode<synchronous>, transform_indices = @transform_5, window_bounds = array<i64: 1, 32>}, {pipeline_mode = #tpu.pipeline_mode<synchronous>, transform_indices = @transform_6, window_bounds = array<i64: 32, 32>}, {pipeline_mode = #tpu.pipeline_mode<synchronous>, transform_indices = @transform_7, window_bounds = array<i64: 32, 32>}, {pipeline_mode = #tpu.pipeline_mode<synchronous>, transform_indices = @transform_8, window_bounds = array<i64: 1, 32>}, {pipeline_mode = #tpu.pipeline_mode<synchronous>, transform_indices = @transform_9, window_bounds = array<i64: 1, 32>}, {pipeline_mode = #tpu.pipeline_mode<synchronous>, transform_indices = @transform_10, window_bounds = array<i64: 1, 32>}, {transform_indices = @transform_11, window_bounds = array<i64: 64, 32>}]} {
    %c0 = arith.constant 0 : index
    %c0_0 = arith.constant 0 : index
    %0 = vector.load %arg2[%c0, %c0_0] : memref<64x48xf32, #tpu.memory_space<vmem>>, vector<64x48xf32>
    %1 = arith.truncf %0 : vector<64x48xf32> to vector<64x48xbf16>
    %c0_1 = arith.constant 0 : index
    %c0_2 = arith.constant 0 : index
    %2 = vector.load %arg3[%c0_1, %c0_2] : memref<48x32xbf16, #tpu.memory_space<vmem>>, vector<48x32xbf16>
    %cst = arith.constant dense<0.000000e+00> : vector<64x32xf32>
    %3 = tpu.matmul %1, %2, %cst {dimension_numbers = #tpu.dot_dimension_numbers<[1], [0], [0], [1], [0, 0, 1, 1], [], []>} : vector<64x48xbf16>, vector<48x32xbf16>, vector<64x32xf32> -> vector<64x32xf32>
    %c0_3 = arith.constant 0 : index
    %c0_4 = arith.constant 0 : index
    %4 = vector.load %arg4[%c0_3, %c0_4] : memref<1x32xf32, #tpu.memory_space<vmem>>, vector<1x32xf32>
    %5 = vector.broadcast %4 : vector<1x32xf32> to vector<64x32xf32>
    %6 = arith.addf %3, %5 : vector<64x32xf32>
    %c0_5 = arith.constant 0 : index
    %c0_6 = arith.constant 0 : index
    %7 = vector.load %arg5[%c0_5, %c0_6] : memref<1x32xf32, #tpu.memory_space<vmem>>, vector<1x32xf32>
    %c0_7 = arith.constant 0 : index
    %c0_8 = arith.constant 0 : index
    %8 = vector.load %arg6[%c0_7, %c0_8] : memref<1x32xf32, #tpu.memory_space<vmem>>, vector<1x32xf32>
    %cst_9 = arith.constant dense<0.000000e+00> : vector<64xf32>
    %9 = vector.multi_reduction <add>, %6, %cst_9 [1] : vector<64x32xf32> to vector<64xf32>
    %10 = vector.shape_cast %9 : vector<64xf32> to vector<64x1xf32>
    %cst_10 = arith.constant 3.200000e+01 : f32
    %11 = vector.broadcast %cst_10 : f32 to vector<64x1xf32>
    %12 = arith.divf %10, %11 : vector<64x1xf32>
    %13 = arith.mulf %6, %6 : vector<64x32xf32>
    %cst_11 = arith.constant dense<0.000000e+00> : vector<64xf32>
    %14 = vector.multi_reduction <add>, %13, %cst_11 [1] : vector<64x32xf32> to vector<64xf32>
    %15 = vector.shape_cast %14 : vector<64xf32> to vector<64x1xf32>
    %cst_12 = arith.constant 3.200000e+01 : f32
    %16 = vector.broadcast %cst_12 : f32 to vector<64x1xf32>
    %17 = arith.divf %15, %16 : vector<64x1xf32>
    %18 = arith.mulf %12, %12 : vector<64x1xf32>
    %19 = arith.subf %17, %18 : vector<64x1xf32>
    %cst_13 = arith.constant 0.000000e+00 : f32
    %20 = vector.broadcast %cst_13 : f32 to vector<64x1xf32>
    %21 = arith.maximumf %19, %20 : vector<64x1xf32>
    %22 = vector.broadcast %12 : vector<64x1xf32> to vector<64x32xf32>
    %23 = arith.subf %6, %22 : vector<64x32xf32>
    %cst_14 = arith.constant 9.99999974E-6 : f32
    %24 = vector.broadcast %cst_14 : f32 to vector<64x1xf32>
    %25 = arith.addf %21, %24 : vector<64x1xf32>
    %26 = math.rsqrt %25 : vector<64x1xf32>
    %27 = vector.broadcast %26 : vector<64x1xf32> to vector<64x32xf32>
    %28 = arith.mulf %23, %27 : vector<64x32xf32>
    %29 = vector.broadcast %7 : vector<1x32xf32> to vector<64x32xf32>
    %30 = arith.mulf %28, %29 : vector<64x32xf32>
    %31 = vector.broadcast %8 : vector<1x32xf32> to vector<64x32xf32>
    %32 = arith.addf %30, %31 : vector<64x32xf32>
    %c0_15 = arith.constant 0 : index
    %c0_16 = arith.constant 0 : index
    %33 = vector.load %arg1[%c0_15, %c0_16] : memref<64x32xf32, #tpu.memory_space<vmem>>, vector<64x32xf32>
    %34 = arith.truncf %33 : vector<64x32xf32> to vector<64x32xbf16>
    %c0_17 = arith.constant 0 : index
    %c0_18 = arith.constant 0 : index
    %35 = vector.load %arg7[%c0_17, %c0_18] : memref<32x32xbf16, #tpu.memory_space<vmem>>, vector<32x32xbf16>
    %cst_19 = arith.constant dense<0.000000e+00> : vector<64x32xf32>
    %36 = tpu.matmul %34, %35, %cst_19 {dimension_numbers = #tpu.dot_dimension_numbers<[1], [0], [0], [1], [0, 0, 1, 1], [], []>} : vector<64x32xbf16>, vector<32x32xbf16>, vector<64x32xf32> -> vector<64x32xf32>
    %37 = arith.truncf %32 : vector<64x32xf32> to vector<64x32xbf16>
    %c0_20 = arith.constant 0 : index
    %c0_21 = arith.constant 0 : index
    %38 = vector.load %arg8[%c0_20, %c0_21] : memref<32x32xbf16, #tpu.memory_space<vmem>>, vector<32x32xbf16>
    %cst_22 = arith.constant dense<0.000000e+00> : vector<64x32xf32>
    %39 = tpu.matmul %37, %38, %cst_22 {dimension_numbers = #tpu.dot_dimension_numbers<[1], [0], [0], [1], [0, 0, 1, 1], [], []>} : vector<64x32xbf16>, vector<32x32xbf16>, vector<64x32xf32> -> vector<64x32xf32>
    %40 = arith.addf %36, %39 : vector<64x32xf32>
    %c0_23 = arith.constant 0 : index
    %c0_24 = arith.constant 0 : index
    %41 = vector.load %arg9[%c0_23, %c0_24] : memref<1x32xf32, #tpu.memory_space<vmem>>, vector<1x32xf32>
    %42 = vector.broadcast %41 : vector<1x32xf32> to vector<64x32xf32>
    %43 = arith.addf %40, %42 : vector<64x32xf32>
    %c0_25 = arith.constant 0 : index
    %c0_26 = arith.constant 0 : index
    %44 = vector.load %arg10[%c0_25, %c0_26] : memref<1x32xf32, #tpu.memory_space<vmem>>, vector<1x32xf32>
    %c0_27 = arith.constant 0 : index
    %c0_28 = arith.constant 0 : index
    %45 = vector.load %arg11[%c0_27, %c0_28] : memref<1x32xf32, #tpu.memory_space<vmem>>, vector<1x32xf32>
    %cst_29 = arith.constant dense<0.000000e+00> : vector<64xf32>
    %46 = vector.multi_reduction <add>, %43, %cst_29 [1] : vector<64x32xf32> to vector<64xf32>
    %47 = vector.shape_cast %46 : vector<64xf32> to vector<64x1xf32>
    %cst_30 = arith.constant 3.200000e+01 : f32
    %48 = vector.broadcast %cst_30 : f32 to vector<64x1xf32>
    %49 = arith.divf %47, %48 : vector<64x1xf32>
    %50 = arith.mulf %43, %43 : vector<64x32xf32>
    %cst_31 = arith.constant dense<0.000000e+00> : vector<64xf32>
    %51 = vector.multi_reduction <add>, %50, %cst_31 [1] : vector<64x32xf32> to vector<64xf32>
    %52 = vector.shape_cast %51 : vector<64xf32> to vector<64x1xf32>
    %cst_32 = arith.constant 3.200000e+01 : f32
    %53 = vector.broadcast %cst_32 : f32 to vector<64x1xf32>
    %54 = arith.divf %52, %53 : vector<64x1xf32>
    %55 = arith.mulf %49, %49 : vector<64x1xf32>
    %56 = arith.subf %54, %55 : vector<64x1xf32>
    %cst_33 = arith.constant 0.000000e+00 : f32
    %57 = vector.broadcast %cst_33 : f32 to vector<64x1xf32>
    %58 = arith.maximumf %56, %57 : vector<64x1xf32>
    %59 = vector.broadcast %49 : vector<64x1xf32> to vector<64x32xf32>
    %60 = arith.subf %43, %59 : vector<64x32xf32>
    %cst_34 = arith.constant 9.99999974E-6 : f32
    %61 = vector.broadcast %cst_34 : f32 to vector<64x1xf32>
    %62 = arith.addf %58, %61 : vector<64x1xf32>
    %63 = math.rsqrt %62 : vector<64x1xf32>
    %64 = vector.broadcast %63 : vector<64x1xf32> to vector<64x32xf32>
    %65 = arith.mulf %60, %64 : vector<64x32xf32>
    %66 = vector.broadcast %44 : vector<1x32xf32> to vector<64x32xf32>
    %67 = arith.mulf %65, %66 : vector<64x32xf32>
    %68 = vector.broadcast %45 : vector<1x32xf32> to vector<64x32xf32>
    %69 = arith.addf %67, %68 : vector<64x32xf32>
    %c0_35 = arith.constant 0 : index
    %c0_36 = arith.constant 0 : index
    %70 = vector.load %arg12[%c0_35, %c0_36] : memref<64x32xf32, #tpu.memory_space<vmem>>, vector<64x32xf32>
    tpu.vector_store %arg12[%c0_35, %c0_36], %69 {strides = array<i32>} : memref<64x32xf32, #tpu.memory_space<vmem>>, vector<64x32xf32>,
    return
  }
  func.func @transform_0(%arg0: i32) -> (i32, i32) {
    %c0_i32 = arith.constant 0 : i32
    %c0_i32_0 = arith.constant 0 : i32
    return %arg0, %c0_i32 : i32, i32
  }
  func.func @transform_1(%arg0: i32) -> (i32, i32) {
    %c0_i32 = arith.constant 0 : i32
    %c0_i32_0 = arith.constant 0 : i32
    return %arg0, %c0_i32 : i32, i32
  }
  func.func @transform_2(%arg0: i32) -> (i32, i32) {
    %c0_i32 = arith.constant 0 : i32
    %c0_i32_0 = arith.constant 0 : i32
    %c0_i32_1 = arith.constant 0 : i32
    return %c0_i32, %c0_i32_0 : i32, i32
  }
  func.func @transform_3(%arg0: i32) -> (i32, i32) {
    %c0_i32 = arith.constant 0 : i32
    %c0_i32_0 = arith.constant 0 : i32
    %c0_i32_1 = arith.constant 0 : i32
    return %c0_i32, %c0_i32_0 : i32, i32
  }
  func.func @transform_4(%arg0: i32) -> (i32, i32) {
    %c0_i32 = arith.constant 0 : i32
    %c0_i32_0 = arith.constant 0 : i32
    %c0_i32_1 = arith.constant 0 : i32
    return %c0_i32, %c0_i32_0 : i32, i32
  }
  func.func @transform_5(%arg0: i32) -> (i32, i32) {
    %c0_i32 = arith.constant 0 : i32
    %c0_i32_0 = arith.constant 0 : i32
    %c0_i32_1 = arith.constant 0 : i32
    return %c0_i32, %c0_i32_0 : i32, i32
  }
  func.func @transform_6(%arg0: i32) -> (i32, i32) {
    %c0_i32 = arith.constant 0 : i32
    %c0_i32_0 = arith.constant 0 : i32
    %c0_i32_1 = arith.constant 0 : i32
    return %c0_i32, %c0_i32_0 : i32, i32
  }
  func.func @transform_7(%arg0: i32) -> (i32, i32) {
    %c0_i32 = arith.constant 0 : i32
    %c0_i32_0 = arith.constant 0 : i32
    %c0_i32_1 = arith.constant 0 : i32
    return %c0_i32, %c0_i32_0 : i32, i32
  }
  func.func @transform_8(%arg0: i32) -> (i32, i32) {
    %c0_i32 = arith.constant 0 : i32
    %c0_i32_0 = arith.constant 0 : i32
    %c0_i32_1 = arith.constant 0 : i32
    return %c0_i32, %c0_i32_0 : i32, i32
  }
  func.func @transform_9(%arg0: i32) -> (i32, i32) {
    %c0_i32 = arith.constant 0 : i32
    %c0_i32_0 = arith.constant 0 : i32
    %c0_i32_1 = arith.constant 0 : i32
    return %c0_i32, %c0_i32_0 : i32, i32
  }
  func.func @transform_10(%arg0: i32) -> (i32, i32) {
    %c0_i32 = arith.constant 0 : i32
    %c0_i32_0 = arith.constant 0 : i32
    %c0_i32_1 = arith.constant 0 : i32
    return %c0_i32, %c0_i32_0 : i32, i32
  }
  func.func @transform_11(%arg0: i32) -> (i32, i32) {
    %c0_i32 = arith.constant 0 : i32
    %c0_i32_0 = arith.constant 0 : i32
    return %arg0, %c0_i32 : i32, i32
  }
}

</mosaic_0001>

<bundles_post_ra>
// kernel: basic_layer_up_forward.7
= control target key start
LH: loop header
LB: loop body
LE: loop exit
PB: predicated region body
PF: predicated region fallthrough
CT: control target
= control target key end

     0   :  { %s699_s18 = smov 0   ;;  %s933_s0 = inlined_call_operand.vmem [shape: f32[128,32], index: 0, kind: input, shape index: {}]   ;;  %s934_s1 = inlined_call_operand.vmem [shape: f32[1,32], index: 1, kind: input, shape index: {}]   ;;  %s935_s2 = inlined_call_operand.vmem [shape: f32[1,32], index: 2, kind: input, shape index: {}]   ;;  %s936_s3 = inlined_call_operand.vmem [shape: bf16[32,96], index: 3, kind: input, shape index: {}]   ;;  %s937_s4 = inlined_call_operand.vmem [shape: f32[1,96], index: 4, kind: input, shape index: {}]   ;;  %s938_s5 = inlined_call_operand.vmem [shape: f32[128,96], index: 5, kind: output, shape index: {}]  }
   0x1 LB: > { %s599_s19 = sadd.s32 4294967295, %s666_s18   ;;  %p603_p0 = scmp.ge.s32.totalorder %s666_s18, 1  ;;  %s666_s18 = sphi %s699_s18, %s15_s18  }
   0x2   : > { %p188_p1 = scmp.lt.s32.totalorder %s666_s18, 3 }
   0x4   : > { %p189_p2 = pnand %p603_p0, %p188_p1 }
   0x5   : > { %s604_s20 = sshll.u32 (!%p189_p2), %s599_s19, 3 }
   0x6   : > { %192 = sbr.rel (%p189_p2) target bundleno = 344 (0x158), region = 40  ;;  %p217_p3 = scmp.lt.s32.totalorder (!%p189_p2), %s604_s20, 15 }
   0xb   : > { %s944_s20 = smov (!%p217_p3, %s604_s20), 15  ;;  %vm239_vm0 = vcmask 261120   ;;  %v668_v32 = vmov 32.0   ;;  %v623_v45 = vld [vmem:[%s936_s3 + $0x8] sm:$0xff]  ;;  %v622_v53 = vld [vmem:[%s936_s3] sm:$0xff] }
   0xc   : > { %s605_s21 = sshll.u32 %s944_s20, 3  ;;  %642 = vrcp.f32 %v668_v32  ;;  %625 = vmatpush.bf16.msra.mxu2 %v623_v45  ;;  %626 = vmatpush.bf16.msra.mxu3 %v623_v45 }
   0xd   : > { %s220_s24 = scalar_lea.vmem %s933_s0, %s605_s21  ;;  %511 = vmatpush.bf16.msra.mxu0 %v623_v45  ;;  %624 = vmatpush.bf16.msra.mxu1 %v623_v45  ;;  %s226_s12 = scalar_lea.vmem %s938_s5, %s605_s21 }
   0xe   : > { %v715_v0 = vld [vmem:[%s220_s24 + $0x30] sm:$0xff]  ;;  %v717_v1 = vld [vmem:[%s220_s24 + $0x20] sm:$0xff]  ;;  %v725_v5 = vld [vmem:[%s220_s24 + $0x28] sm:$0xff] }
   0xf   : > { %v258_v2 = vsel %vm239_vm0, %v715_v0, 0.0  ;;  %v252_v3 = vsel %vm239_vm0, %v717_v1, 0.0  ;;  %v283_v4 = vmul.f32 %v717_v1, %v717_v1  ;;  %v728_v7 = vld [vmem:[%s220_s24 + $0x38] sm:$0xff]  ;;  %v284_v8 = vmul.f32 %v725_v5, %v725_v5  ;;  %v741_v14 = vld [vmem:[%s220_s24] sm:$0xff]  ;;  %v747_v18 = vld [vmem:[%s220_s24 + $0x10] sm:$0xff] }
  0x10   : > { %259 = vadd.xlane.f32.xlu1 %v258_v2  ;;  %253 = vadd.xlane.f32.xlu0 %v252_v3  ;;  %v261_v9 = vsel %vm239_vm0, %v728_v7, 0.0  ;;  %v255_v10 = vsel %vm239_vm0, %v725_v5, 0.0  ;;  %v286_v12 = vmul.f32 %v728_v7, %v728_v7  ;;  %v285_v13 = vmul.f32 %v715_v0, %v715_v0  ;;  %v749_v19 = vld [vmem:[%s220_s24 + $0x8] sm:$0xff]  ;;  %v751_v20 = vld [vmem:[%s220_s24 + $0x18] sm:$0xff] }
  0x11   : > { %v299_v6 = vsel %vm239_vm0, %v283_v4, 0.0  ;;  %v302_v11 = vsel %vm239_vm0, %v284_v8, 0.0  ;;  %v240_v17 = vsel %vm239_vm0, %v741_v14, 0.0  ;;  %v246_v21 = vsel %vm239_vm0, %v747_v18, 0.0  ;;  %628 = vmatpush.bf16.msra.mxu2 %v622_v53  ;;  %629 = vmatpush.bf16.msra.mxu3 %v622_v53 }
  0x12   : > { %300 = vadd.xlane.f32.xlu2 %v299_v6  ;;  %v308_v15 = vsel %vm239_vm0, %v286_v12, 0.0  ;;  %v305_v16 = vsel %vm239_vm0, %v285_v13, 0.0  ;;  %v243_v22 = vsel %vm239_vm0, %v749_v19, 0.0  ;;  %v249_v23 = vsel %vm239_vm0, %v751_v20, 0.0  ;;  %v643_v33 = vpop.eup %642  ;;  %512 = vmatpush.bf16.msra.mxu0 %v622_v53 }
  0x13   : > { %v280_v24 = vmul.f32 %v749_v19, %v749_v19  ;;  %v279_v25 = vmul.f32 %v741_v14, %v741_v14  ;;  %v281_v26 = vmul.f32 %v747_v18, %v747_v18  ;;  %v282_v30 = vmul.f32 %v751_v20, %v751_v20  ;;  %627 = vmatpush.bf16.msra.mxu1 %v622_v53 }
  0x14   : > { %v265_v34 = vmul.f32 32.0, %v643_v33  ;;  %vm269_vm1 = vweird.f32 %v643_v33 }
  0x15   : > { %v290_v27 = vsel %vm239_vm0, %v280_v24, 0.0  ;;  %v287_v28 = vsel %vm239_vm0, %v279_v25, 0.0  ;;  %v293_v29 = vsel %vm239_vm0, %v281_v26, 0.0  ;;  %v296_v31 = vsel %vm239_vm0, %v282_v30, 0.0 }
  0x16   : > { %v266_v35 = vsub.f32 1.0, %v265_v34 }
  0x18   : > { %262 = vadd.xlane.f32.xlu1 %v261_v9  ;;  %256 = vadd.xlane.f32.xlu0 %v255_v10  ;;  %v267_v36 = vmul.f32 %v643_v33, %v266_v35 }
  0x1a   : > { %303 = vadd.xlane.f32.xlu2 %v302_v11  ;;  %v268_v37 = vadd.f32 %v643_v33, %v267_v36 }
  0x1c   : > { %v771_v38 = vsel %vm269_vm1, %v643_v33, %v268_v37 }
  0x20   : > { %309 = vadd.xlane.f32.xlu1 %v308_v15  ;;  %306 = vadd.xlane.f32.xlu0 %v305_v16 }
  0x22   : > { %241 = vadd.xlane.f32.xlu2 %v240_v17 }
  0x28   : > { %247 = vadd.xlane.f32.xlu1 %v246_v21  ;;  %244 = vadd.xlane.f32.xlu0 %v243_v22 }
  0x2a   : > { %250 = vadd.xlane.f32.xlu2 %v249_v23 }
  0x30   : > { %291 = vadd.xlane.f32.xlu1 %v290_v27  ;;  %288 = vadd.xlane.f32.xlu0 %v287_v28 }
  0x32   : > { %294 = vadd.xlane.f32.xlu2 %v293_v29 }
  0x38   : > { %297 = vadd.xlane.f32.xlu0 %v296_v31 }
  0x83   : > { %v260_v39 = vpop.xlane.xlu1 %259  ;;  %v254_v40 = vpop.xlane.xlu0 %253 }
  0x84   : > { %v774_v41 = vmul.f32 %v771_v38, %v254_v40  ;;  %v795_v57 = vmul.f32 %v771_v38, %v260_v39 }
  0x85   : > { %v301_v42 = vpop.xlane.xlu2 %300 }
  0x86   : > { %v323_v43 = vmul.f32 %v774_v41, %v774_v41  ;;  %v315_v44 = vmul.f32 %v301_v42, %v771_v38  ;;  %v325_v63 = vmul.f32 %v795_v57, %v795_v57  ;;  %v349_v33 = vsub.f32 %v715_v0, %v795_v57 }
  0x87   : > { %v347_v34 = vsub.f32 %v717_v1, %v774_v41 }
  0x88   : > { %v331_v46 = vsub.f32 %v315_v44, %v323_v43 }
  0x8a   : > { %v339_v47 = vmax.f32 %v331_v46, 0.0 }
  0x8b   : > { %v263_v48 = vpop.xlane.xlu1 %262  ;;  %v257_v49 = vpop.xlane.xlu0 %256 }
  0x8c   : > { %v783_v50 = vmul.f32 %v771_v38, %v257_v49  ;;  %v355_v51 = vadd.f32 1e-05, %v339_v47  ;;  %v789_v54 = vmul.f32 %v771_v38, %v263_v48 }
  0x8d   : > { %v304_v52 = vpop.xlane.xlu2 %303 }
  0x8e   : > { %v324_v55 = vmul.f32 %v783_v50, %v783_v50  ;;  %644 = vrsqrt.f32 %v355_v51  ;;  %v316_v56 = vmul.f32 %v304_v52, %v771_v38  ;;  %v326_v59 = vmul.f32 %v789_v54, %v789_v54 }
  0x8f   : > { %vm405_vm3 = vweird.f32 %v355_v51  ;;  %v350_v36 = vsub.f32 %v728_v7, %v789_v54  ;;  %v348_v39 = vsub.f32 %v725_v5, %v783_v50 }
  0x90   : > { %v332_v58 = vsub.f32 %v316_v56, %v324_v55  ;;  %v850_v55 = vld [vmem:[%s934_s1] ss:$0 sm:$0xff] }
  0x92   : > { %v340_v60 = vmax.f32 %v332_v58, 0.0 }
  0x93   : > { %v310_v61 = vpop.xlane.xlu1 %309  ;;  %v307_v62 = vpop.xlane.xlu0 %306 }
  0x94   : > { %v318_v2 = vmul.f32 %v310_v61, %v771_v38  ;;  %v317_v3 = vmul.f32 %v307_v62, %v771_v38  ;;  %v645_v4 = vpop.eup %644  ;;  %v356_v6 = vadd.f32 1e-05, %v340_v60 }
  0x95   : > { %v242_v8 = vpop.xlane.xlu2 %241  ;;  %v400_v9 = vmul.f32 %v645_v4, %v355_v51  ;;  %vm406_vm2 = vweird.f32 %v645_v4 }
  0x96   : > { %v334_v10 = vsub.f32 %v318_v2, %v326_v59  ;;  %v333_v11 = vsub.f32 %v317_v3, %v325_v63  ;;  %646 = vrsqrt.f32 %v356_v6  ;;  %v810_v29 = vmul.f32 %v771_v38, %v242_v8  ;;  %vm822_vm4 = vmor %vm405_vm3, %vm406_vm2 }
  0x97   : > { %v401_v12 = vmul.f32 %v645_v4, %v400_v9  ;;  %vm415_vm5 = vweird.f32 %v356_v6 }
  0x98   : > { %v342_v13 = vmax.f32 %v334_v10, 0.0  ;;  %v341_v15 = vmax.f32 %v333_v11, 0.0  ;;  %v319_v41 = vmul.f32 %v810_v29, %v810_v29 }
  0x99   : > { %v402_v16 = vmul.f32 0.5, %v401_v12 }
  0x9a   : > { %v803_v17 = vadd.f32 1e-05, %v342_v13  ;;  %v805_v21 = vadd.f32 1e-05, %v341_v15 }
  0x9b   : > { %v248_v22 = vpop.xlane.xlu1 %247  ;;  %v245_v23 = vpop.xlane.xlu0 %244  ;;  %v403_v24 = vsub.f32 1.5, %v402_v16 }
  0x9c   : > { %648 = vrsqrt.f32 %v803_v17  ;;  %v647_v25 = vpop.eup %646  ;;  %v813_v30 = vmul.f32 %v771_v38, %v248_v22  ;;  %v816_v32 = vmul.f32 %v771_v38, %v245_v23  ;;  %vm435_vm7 = vweird.f32 %v803_v17 }
  0x9d   : > { %650 = vrsqrt.f32 %v805_v21  ;;  %v251_v26 = vpop.xlane.xlu2 %250  ;;  %v404_v27 = vmul.f32 %v645_v4, %v403_v24  ;;  %v410_v28 = vmul.f32 %v647_v25, %v356_v6  ;;  %vm416_vm6 = vweird.f32 %v647_v25  ;;  %v863_v6 = vld [vmem:[%s935_s2] ss:$0 sm:$0xff] }
  0x9e   : > { %v321_v44 = vmul.f32 %v813_v30, %v813_v30  ;;  %v320_v48 = vmul.f32 %v816_v32, %v816_v32  ;;  %vm417_vm8 = vmor %vm415_vm5, %vm416_vm6  ;;  %v857_v62 = vmul.f32 %v771_v38, %v251_v26  ;;  %vm425_vm11 = vweird.f32 %v805_v21 }
  0x9f   : > { %v411_v31 = vmul.f32 %v647_v25, %v410_v28  ;;  %v408_v42 = vsel %vm822_vm4, %v645_v4, %v404_v27 }
  0xa0   : > { %v443_v53 = vmul.f32 %v408_v42, %v347_v34  ;;  %v322_v28 = vmul.f32 %v857_v62, %v857_v62 }
  0xa1   : > { %v412_v40 = vmul.f32 0.5, %v411_v31 }
  0xa2   : > { %v828_v37 = vpop.eup %648  ;;  %v454_v12 = vmul.f32 %v850_v55, %v443_v53 }
  0xa3   : > { %v651_v43 = vpop.eup %650  ;;  %v430_v1 = vmul.f32 %v828_v37, %v803_v17  ;;  %v292_v45 = vpop.xlane.xlu1 %291  ;;  %v413_v47 = vsub.f32 1.5, %v412_v40  ;;  %vm436_vm9 = vweird.f32 %v828_v37 }
  0xa4   : > { %v289_v46 = vpop.xlane.xlu0 %288  ;;  %v420_v5 = vmul.f32 %v651_v43, %v805_v21  ;;  %v312_v49 = vmul.f32 %v292_v45, %v771_v38  ;;  %vm426_vm10 = vweird.f32 %v651_v43  ;;  %vm872_vm12 = vmor %vm435_vm7, %vm436_vm9  ;;  %v465_v34 = vadd.f32 %v863_v6, %v454_v12 }
  0xa5   : > { %v431_v50 = vmul.f32 %v828_v37, %v430_v1  ;;  %v311_v51 = vmul.f32 %v289_v46, %v771_v38  ;;  %v295_v52 = vpop.xlane.xlu2 %294  ;;  %v414_v56 = vmul.f32 %v647_v25, %v413_v47  ;;  %vm427_vm13 = vmor %vm425_vm11, %vm426_vm10  ;;  %vm534_vm11 = vcmask 785408  }
  0xa6   : > { %v421_v58 = vmul.f32 %v651_v43, %v420_v5  ;;  %v328_v59 = vsub.f32 %v312_v49, %v320_v48  ;;  %v313_v60 = vmul.f32 %v295_v52, %v771_v38 }
  0xa7   : > { %v432_v61 = vmul.f32 0.5, %v431_v50  ;;  %v327_v63 = vsub.f32 %v311_v51, %v319_v41  ;;  %v418_v8 = vsel %vm417_vm8, %v647_v25, %v414_v56 }
  0xa8   : > { %v422_v2 = vmul.f32 0.5, %v421_v58  ;;  %v336_v3 = vmax.f32 %v328_v59, 0.0  ;;  %v329_v4 = vsub.f32 %v313_v60, %v321_v44  ;;  %v444_v11 = vmul.f32 %v418_v8, %v348_v39 }
  0xa9   : > { %v433_v9 = vsub.f32 1.5, %v432_v61  ;;  %v335_v10 = vmax.f32 %v327_v63, 0.0  ;;  %v344_v59 = vsub.f32 %v749_v19, %v816_v32 }
  0xaa   : > { %v423_v13 = vsub.f32 1.5, %v422_v2  ;;  %v352_v15 = vadd.f32 1e-05, %v336_v3  ;;  %v337_v16 = vmax.f32 %v329_v4, 0.0  ;;  %v455_v25 = vmul.f32 %v850_v55, %v444_v11 }
  0xab   : > { %v434_v22 = vmul.f32 %v828_v37, %v433_v9  ;;  %v351_v23 = vadd.f32 1e-05, %v335_v10  ;;  %v343_v3 = vsub.f32 %v741_v14, %v810_v29 }
  0xac   : > { %v298_v24 = vpop.xlane.xlu0 %297  ;;  %v424_v27 = vmul.f32 %v651_v43, %v423_v13  ;;  %652 = vrsqrt.f32 %v352_v15  ;;  %v353_v31 = vadd.f32 1e-05, %v337_v16  ;;  %v466_v35 = vadd.f32 %v863_v6, %v455_v25 }
  0xad   : > { %654 = vrsqrt.f32 %v351_v23  ;;  %v314_v21 = vmul.f32 %v298_v24, %v771_v38  ;;  %v438_v39 = vsel %vm872_vm12, %v828_v37, %v434_v22  ;;  %vm375_vm1 = vweird.f32 %v352_v15 }
  0xae   : > { %656 = vrsqrt.f32 %v353_v31  ;;  %v428_v17 = vsel %vm427_vm13, %v651_v43, %v424_v27  ;;  %v471_v42 = vpack.c.bf16 %v466_v35, %v465_v34  ;;  %v446_v38 = vmul.f32 %v438_v39, %v350_v36 }
  0xaf   : > { %v330_v40 = vsub.f32 %v314_v21, %v322_v28  ;;  %v445_v1 = vmul.f32 %v428_v17, %v349_v33  ;;  %vm365_vm3 = vweird.f32 %v351_v23  ;;  %vm385_vm6 = vweird.f32 %v353_v31 }
  0xb0   : > { %618 = vmatmul.msk.bf16.vlgmr.msra.gmra.mxu2 %vm239_vm0, %v471_v42  ;;  %v457_v43 = vmul.f32 %v850_v55, %v446_v38  ;;  %v346_v25 = vsub.f32 %v751_v20, %v857_v62  ;;  %v641_v20 = vld [vmem:[%s937_s4] ss:$0 sm:$0xff] }
  0xb1   : > { %v338_v41 = vmax.f32 %v330_v40, 0.0  ;;  %v456_v44 = vmul.f32 %v850_v55, %v445_v1 }
  0xb2   : > { %v653_v45 = vpop.eup %652  ;;  %v468_v57 = vadd.f32 %v863_v6, %v457_v43 }
  0xb3   : > { %v655_v46 = vpop.eup %654  ;;  %v370_v37 = vmul.f32 %v653_v45, %v352_v15  ;;  %v354_v47 = vadd.f32 1e-05, %v338_v41  ;;  %v467_v5 = vadd.f32 %v863_v6, %v456_v44  ;;  %vm376_vm14 = vweird.f32 %v653_v45 }
  0xb4   : > { %v657_v48 = vpop.eup %656  ;;  %v360_v0 = vmul.f32 %v655_v46, %v351_v23  ;;  %vm366_vm15 = vweird.f32 %v655_v46  ;;  %vm377_vm2 = vmor %vm375_vm1, %vm376_vm14  ;;  %v345_v15 = vsub.f32 %v747_v18, %v813_v30 }
  0xb5   : > { %v371_v33 = vmul.f32 %v653_v45, %v370_v37  ;;  %v380_v7 = vmul.f32 %v657_v48, %v353_v31  ;;  %658 = vrsqrt.f32 %v354_v47  ;;  %v472_v36 = vpack.c.bf16 %v468_v57, %v467_v5  ;;  %vm367_vm5 = vmor %vm365_vm3, %vm366_vm15 }
  0xb6   : > { %v361_v54 = vmul.f32 %v655_v46, %v360_v0  ;;  %vm386_vm4 = vweird.f32 %v657_v48  ;;  %vm395_vm9 = vweird.f32 %v354_v47 }
  0xb7   : > { %v372_v49 = vmul.f32 0.5, %v371_v33  ;;  %v381_v50 = vmul.f32 %v657_v48, %v380_v7  ;;  %619 = vmatmul.msk.bf16.vlgmr.msra.gmra.mxu3 %vm239_vm0, %v472_v36  ;;  %vm387_vm7 = vmor %vm385_vm6, %vm386_vm4 }
  0xb8   : > { %v362_v51 = vmul.f32 0.5, %v361_v54 }
  0xb9   : > { %v373_v52 = vsub.f32 1.5, %v372_v49  ;;  %v382_v53 = vmul.f32 0.5, %v381_v50 }
  0xba   : > { %v363_v56 = vsub.f32 1.5, %v362_v51 }
  0xbb   : > { %v659_v58 = vpop.eup %658  ;;  %v374_v60 = vmul.f32 %v653_v45, %v373_v52  ;;  %v383_v61 = vsub.f32 1.5, %v382_v53 }
  0xbc   : > { %v364_v63 = vmul.f32 %v655_v46, %v363_v56  ;;  %v390_v2 = vmul.f32 %v659_v58, %v354_v47  ;;  %vm396_vm8 = vweird.f32 %v659_v58 }
  0xbd   : > { %v384_v4 = vmul.f32 %v657_v48, %v383_v61  ;;  %v378_v8 = vsel %vm377_vm2, %v653_v45, %v374_v60  ;;  %vm397_vm10 = vmor %vm395_vm9, %vm396_vm8 }
  0xbe   : > { %v391_v9 = vmul.f32 %v659_v58, %v390_v2  ;;  %v368_v10 = vsel %vm367_vm5, %v655_v46, %v364_v63  ;;  %v440_v11 = vmul.f32 %v378_v8, %v344_v59 }
  0xbf   : > { %v439_v19 = vmul.f32 %v368_v10, %v343_v3  ;;  %v388_v13 = vsel %vm387_vm7, %v657_v48, %v384_v4 }
  0xc0   : > { %v392_v32 = vmul.f32 0.5, %v391_v9  ;;  %v451_v12 = vmul.f32 %v850_v55, %v440_v11  ;;  %v441_v23 = vmul.f32 %v388_v13, %v345_v15 }
  0xc1   : > { %v450_v16 = vmul.f32 %v850_v55, %v439_v19 }
  0xc2   : > { %v393_v22 = vsub.f32 1.5, %v392_v32  ;;  %v462_v14 = vadd.f32 %v863_v6, %v451_v12  ;;  %v452_v30 = vmul.f32 %v850_v55, %v441_v23 }
  0xc3   : > { %v461_v29 = vadd.f32 %v863_v6, %v450_v16 }
  0xc4   : > { %v394_v24 = vmul.f32 %v659_v58, %v393_v22  ;;  %v463_v31 = vadd.f32 %v863_v6, %v452_v30 }
  0xc5   : > { %v469_v26 = vpack.c.bf16 %v462_v14, %v461_v29 }
  0xc6   : > { %v398_v27 = vsel %vm397_vm10, %v659_v58, %v394_v24 }
  0xc7   : > { %616 = vmatmul.msk.bf16.vlgmr.msra.gmra.mxu0 %vm239_vm0, %v469_v26  ;;  %v442_v18 = vmul.f32 %v398_v27, %v346_v25 }
  0xc9   : > { %v453_v28 = vmul.f32 %v850_v55, %v442_v18 }
  0xcb   : > { %v464_v21 = vadd.f32 %v863_v6, %v453_v28 }
  0xcd   : > { %v470_v34 = vpack.c.bf16 %v464_v21, %v463_v31 }
  0xcf   : > { %617 = vmatmul.msk.bf16.vlgmr.msra.gmra.mxu1 %vm239_vm0, %v470_v34 }
 0x133   : > { %v524_v62 = vpop.f32.mrf.mxu2 }
 0x134   : > { %v525_v35 = vadd.f32 %v641_v20, %v524_v62 }
 0x136   : > { %539 = vst.msk [vmem:[%s226_s12 + $0x20] sm:$0xff] %vm534_vm11, %v525_v35 }
 0x13a   : > { %v529_v55 = vpop.f32.mrf.mxu3 }
 0x13b   : > { %v530_v17 = vadd.f32 %v641_v20, %v529_v55  ;;  %v526_v6 = vpop.f32.mrf.mxu2 }
 0x13c   : > { %v527_v39 = vadd.f32 %v641_v20, %v526_v6 }
 0x13d   : > { %541 = vst.msk [vmem:[%s226_s12 + $0x30] sm:$0xff] %vm534_vm11, %v530_v17 }
 0x13e   : > { %540 = vst.msk [vmem:[%s226_s12 + $0x28] sm:$0xff] %vm534_vm11, %v527_v39 }
 0x142   : > { %v531_v40 = vpop.f32.mrf.mxu3 }
 0x143   : > { %v532_v42 = vadd.f32 %v641_v20, %v531_v40 }
 0x144   : > { %v514_v1 = vpop.f32.mrf.mxu0 }
 0x145   : > { %v515_v38 = vadd.f32 %v641_v20, %v514_v1  ;;  %542 = vst.msk [vmem:[%s226_s12 + $0x38] sm:$0xff] %vm534_vm11, %v532_v42 }
 0x147   : > { %535 = vst.msk [vmem:[%s226_s12] sm:$0xff] %vm534_vm11, %v515_v38 }
 0x14c   : > { %v516_v41 = vpop.f32.mrf.mxu0  ;;  %v519_v44 = vpop.f32.mrf.mxu1 }
 0x14d   : > { %v517_v43 = vadd.f32 %v641_v20, %v516_v41  ;;  %v520_v45 = vadd.f32 %v641_v20, %v519_v44 }
 0x14f   : > { %536 = vst.msk [vmem:[%s226_s12 + $0x8] sm:$0xff] %vm534_vm11, %v517_v43 }
 0x150   : > { %537 = vst.msk [vmem:[%s226_s12 + $0x10] sm:$0xff] %vm534_vm11, %v520_v45 }
 0x154   : > { %v521_v46 = vpop.f32.mrf.mxu1 }
 0x155   : > { %v522_v37 = vadd.f32 %v641_v20, %v521_v46 }
 0x157   : > { %538 = vst.msk [vmem:[%s226_s12 + $0x18] sm:$0xff] %vm534_vm11, %v522_v37 }
 0x158 PF: > { %s15_s18 = sadd.s32 1, %s666_s18  }
 0x159   : > { %p12_p4 = scmp.ge.s32.totalorder %s15_s18, 4  }
 0x15b   :  { %14 = sbr.rel (!%p12_p4) target bundleno = 1 (0x1), region = 70 }

// kernel: basic_layer_up_forward.9
= control target key start
LH: loop header
LB: loop body
LE: loop exit
PB: predicated region body
PF: predicated region fallthrough
CT: control target
= control target key end

     0   :  { %s1518_s13 = smov 0   ;;  %s2008_s0 = inlined_call_operand.vmem [shape: f32[128,32], index: 0, kind: input, shape index: {}]   ;;  %s2009_s1 = inlined_call_operand.vmem [shape: f32[128,32], index: 1, kind: input, shape index: {}]   ;;  %s2010_s2 = inlined_call_operand.vmem [shape: bf16[32,32], index: 2, kind: input, shape index: {}]   ;;  %s2011_s3 = inlined_call_operand.vmem [shape: f32[1,32], index: 3, kind: input, shape index: {}]   ;;  %s2012_s4 = inlined_call_operand.vmem [shape: f32[1,32], index: 4, kind: input, shape index: {}]   ;;  %s2013_s5 = inlined_call_operand.vmem [shape: f32[1,32], index: 5, kind: input, shape index: {}]   ;;  %s2014_s6 = inlined_call_operand.vmem [shape: bf16[32,128], index: 6, kind: input, shape index: {}]   ;;  %s2015_s7 = inlined_call_operand.vmem [shape: f32[1,128], index: 7, kind: input, shape index: {}]   ;;  %s2016_s8 = inlined_call_operand.vmem [shape: bf16[128,32], index: 8, kind: input, shape index: {}]   ;;  %s2017_s9 = inlined_call_operand.vmem [shape: f32[1,32], index: 9, kind: input, shape index: {}]   ;;  %s2018_s10 = inlined_call_operand.vmem [shape: f32[128,32], index: 10, kind: output, shape index: {}]  }
   0x1 LB: > { %s1309_s14 = sadd.s32 4294967295, %s1460_s13   ;;  %p1313_p0 = scmp.ge.s32.totalorder %s1460_s13, 1  ;;  %s1460_s13 = sphi %s1518_s13, %s20_s13  }
   0x2   : > { %p324_p1 = scmp.lt.s32.totalorder %s1460_s13, 3 }
   0x4   : > { %p325_p2 = pnand %p1313_p0, %p324_p1 }
   0x5   : > { %s1314_s17 = sshll.u32 (!%p325_p2), %s1309_s14, 3 }
   0x6   : > { %328 = sbr.rel (%p325_p2) target bundleno = 700 (0x2bc), region = 60  ;;  %p368_p3 = scmp.lt.s32.totalorder (!%p325_p2), %s1314_s17, 15 }
   0xb   : > { %v1387_v0 = vld [vmem:[%s2010_s2 + $0x8] sm:$0xff]  ;;  %v1386_v1 = vld [vmem:[%s2010_s2] sm:$0xff]  ;;  %s2022_s17 = smov (!%p368_p3, %s1314_s17), 15  ;;  %vm418_vm0 = vcmask 261120  }
   0xc   : > { %437 = vmatpush.bf16.msra.mxu0 %v1387_v0  ;;  %s1532_s20 = sshll.u32 %s2022_s17, 3  ;;  %v1551_v14 = vld [vmem:[%s2011_s3] ss:$0 sm:$0xff] }
   0xd   : > { %s377_s23 = scalar_lea.vmem %s2009_s1, %s1532_s20  ;;  %s1546_s26 = scalar_lea.vmem %s2008_s0, %s1532_s20 }
   0xe   : > { %v386_v2 = vld [vmem:[%s377_s23] sm:$0xff]  ;;  %v387_v3 = vld [vmem:[%s377_s23 + $0x8] sm:$0xff]  ;;  %v388_v5 = vld [vmem:[%s377_s23 + $0x10] sm:$0xff] }
   0xf   : > { %v394_v4 = vpack.c.bf16 %v387_v3, %v386_v2  ;;  %v389_v6 = vld [vmem:[%s377_s23 + $0x18] sm:$0xff]  ;;  %v390_v8 = vld [vmem:[%s377_s23 + $0x20] sm:$0xff]  ;;  %v391_v9 = vld [vmem:[%s377_s23 + $0x28] sm:$0xff] }
  0x10   : > { %438 = vmatpush.bf16.msra.mxu0 %v1386_v1  ;;  %v395_v7 = vpack.c.bf16 %v389_v6, %v388_v5  ;;  %v396_v10 = vpack.c.bf16 %v391_v9, %v390_v8  ;;  %v392_v11 = vld [vmem:[%s377_s23 + $0x30] sm:$0xff]  ;;  %v393_v12 = vld [vmem:[%s377_s23 + $0x38] sm:$0xff]  ;;  %v460_v16 = vld [vmem:[%s1546_s26] sm:$0xff]  ;;  %s383_s23 = scalar_lea.vmem %s2018_s10, %s1532_s20 }
  0x11   : > { %v397_v13 = vpack.c.bf16 %v393_v12, %v392_v11  ;;  %v461_v23 = vld [vmem:[%s1546_s26 + $0x8] sm:$0xff]  ;;  %v462_v30 = vld [vmem:[%s1546_s26 + $0x10] sm:$0xff]  ;;  %v463_v37 = vld [vmem:[%s1546_s26 + $0x18] sm:$0xff] }
  0x12   : > { %v464_v44 = vld [vmem:[%s1546_s26 + $0x20] sm:$0xff]  ;;  %v465_v51 = vld [vmem:[%s1546_s26 + $0x28] sm:$0xff]  ;;  %v466_v58 = vld [vmem:[%s1546_s26 + $0x30] sm:$0xff] }
  0x13   : > { %1328 = vmatmul.msk.bf16.vlgmr.msra.gmra.mxu0 %vm418_vm0, %v394_v4  ;;  %v467_v1 = vld [vmem:[%s1546_s26 + $0x38] sm:$0xff] }
  0x23   : > { %1329 = vmatmul.msk.bf16.gmra.mxu0 %vm418_vm0, %v395_v7  ;;  %v1462_v7 = vmov 32.0  }
  0x24   : > { %1420 = vrcp.f32 %v1462_v7 }
  0x2a   : > { %v1421_v8 = vpop.eup %1420 }
  0x2b   : > { %v503_v9 = vmul.f32 32.0, %v1421_v8  ;;  %vm507_vm1 = vweird.f32 %v1421_v8 }
  0x33   : > { %1330 = vmatmul.msk.bf16.gmra.mxu0 %vm418_vm0, %v396_v10  ;;  %v504_v10 = vsub.f32 1.0, %v503_v9 }
  0x35   : > { %v505_v11 = vmul.f32 %v1421_v8, %v504_v10 }
  0x37   : > { %v506_v12 = vadd.f32 %v1421_v8, %v505_v11  ;;  %v1660_v11 = vld [vmem:[%s2012_s4] ss:$0 sm:$0xff] }
  0x43   : > { %1331 = vmatmul.msk.bf16.gmra.mxu0 %vm418_vm0, %v397_v13  ;;  %v1625_v13 = vsel %vm507_vm1, %v1421_v8, %v506_v12 }
  0x90   : > { %v440_v15 = vpop.f32.mrf.mxu0 }
  0x91   : > { %v441_v17 = vadd.f32 %v1551_v14, %v440_v15 }
  0x93   : > { %v1555_v18 = vadd.f32 %v460_v16, %v441_v17 }
  0x95   : > { %v478_v19 = vsel %vm418_vm0, %v1555_v18, 0.0  ;;  %v517_v20 = vmul.f32 %v1555_v18, %v1555_v18 }
  0x96   : > { %479 = vadd.xlane.f32.xlu0 %v478_v19 }
  0x97   : > { %v525_v21 = vsel %vm418_vm0, %v517_v20, 0.0 }
  0x98   : > { %v442_v22 = vpop.f32.mrf.mxu0  ;;  %526 = vadd.xlane.f32.xlu1 %v525_v21  ;;  %v1389_v21 = vld [vmem:[%s2014_s6 + $0x8] sm:$0xff] }
  0x99   : > { %v443_v24 = vadd.f32 %v1551_v14, %v442_v22  ;;  %749 = vmatpush.bf16.msra.mxu1 %v1389_v21 }
  0x9b   : > { %v1564_v25 = vadd.f32 %v461_v23, %v443_v24 }
  0x9d   : > { %v481_v26 = vsel %vm418_vm0, %v1564_v25, 0.0  ;;  %v518_v27 = vmul.f32 %v1564_v25, %v1564_v25 }
  0x9e   : > { %482 = vadd.xlane.f32.xlu0 %v481_v26 }
  0x9f   : > { %v528_v28 = vsel %vm418_vm0, %v518_v27, 0.0  ;;  %v1388_v27 = vld [vmem:[%s2014_s6] sm:$0xff] }
  0xa0   : > { %v445_v29 = vpop.f32.mrf.mxu0  ;;  %529 = vadd.xlane.f32.xlu1 %v528_v28  ;;  %750 = vmatpush.bf16.msra.mxu1 %v1388_v27 }
  0xa1   : > { %v446_v31 = vadd.f32 %v1551_v14, %v445_v29 }
  0xa3   : > { %v1573_v32 = vadd.f32 %v462_v30, %v446_v31 }
  0xa5   : > { %v484_v33 = vsel %vm418_vm0, %v1573_v32, 0.0  ;;  %v519_v34 = vmul.f32 %v1573_v32, %v1573_v32 }
  0xa6   : > { %485 = vadd.xlane.f32.xlu2 %v484_v33 }
  0xa7   : > { %v531_v35 = vsel %vm418_vm0, %v519_v34, 0.0 }
  0xa8   : > { %v447_v36 = vpop.f32.mrf.mxu0  ;;  %532 = vadd.xlane.f32.xlu0 %v531_v35 }
  0xa9   : > { %v448_v38 = vadd.f32 %v1551_v14, %v447_v36 }
  0xab   : > { %v1582_v39 = vadd.f32 %v463_v37, %v448_v38 }
  0xad   : > { %v487_v40 = vsel %vm418_vm0, %v1582_v39, 0.0  ;;  %v520_v41 = vmul.f32 %v1582_v39, %v1582_v39 }
  0xae   : > { %488 = vadd.xlane.f32.xlu2 %v487_v40 }
  0xaf   : > { %v534_v42 = vsel %vm418_vm0, %v520_v41, 0.0 }
  0xb0   : > { %v450_v43 = vpop.f32.mrf.mxu0  ;;  %535 = vadd.xlane.f32.xlu1 %v534_v42 }
  0xb1   : > { %v451_v45 = vadd.f32 %v1551_v14, %v450_v43 }
  0xb3   : > { %v1591_v46 = vadd.f32 %v464_v44, %v451_v45 }
  0xb5   : > { %v490_v47 = vsel %vm418_vm0, %v1591_v46, 0.0  ;;  %v521_v48 = vmul.f32 %v1591_v46, %v1591_v46 }
  0xb6   : > { %491 = vadd.xlane.f32.xlu2 %v490_v47 }
  0xb7   : > { %v537_v49 = vsel %vm418_vm0, %v521_v48, 0.0 }
  0xb8   : > { %v452_v50 = vpop.f32.mrf.mxu0  ;;  %538 = vadd.xlane.f32.xlu1 %v537_v49 }
  0xb9   : > { %v453_v52 = vadd.f32 %v1551_v14, %v452_v50 }
  0xbb   : > { %v1600_v53 = vadd.f32 %v465_v51, %v453_v52 }
  0xbd   : > { %v493_v54 = vsel %vm418_vm0, %v1600_v53, 0.0  ;;  %v522_v55 = vmul.f32 %v1600_v53, %v1600_v53 }
  0xbe   : > { %494 = vadd.xlane.f32.xlu0 %v493_v54 }
  0xbf   : > { %v540_v56 = vsel %vm418_vm0, %v522_v55, 0.0 }
  0xc0   : > { %v455_v57 = vpop.f32.mrf.mxu0  ;;  %541 = vadd.xlane.f32.xlu2 %v540_v56 }
  0xc1   : > { %v456_v59 = vadd.f32 %v1551_v14, %v455_v57 }
  0xc3   : > { %v1609_v60 = vadd.f32 %v466_v58, %v456_v59 }
  0xc5   : > { %v496_v61 = vsel %vm418_vm0, %v1609_v60, 0.0  ;;  %v523_v62 = vmul.f32 %v1609_v60, %v1609_v60 }
  0xc6   : > { %497 = vadd.xlane.f32.xlu0 %v496_v61 }
  0xc7   : > { %v543_v63 = vsel %vm418_vm0, %v523_v62, 0.0 }
  0xc8   : > { %v457_v0 = vpop.f32.mrf.mxu0  ;;  %544 = vadd.xlane.f32.xlu2 %v543_v63 }
  0xc9   : > { %v458_v2 = vadd.f32 %v1551_v14, %v457_v0 }
  0xcb   : > { %v1618_v3 = vadd.f32 %v467_v1, %v458_v2 }
  0xcd   : > { %v499_v4 = vsel %vm418_vm0, %v1618_v3, 0.0  ;;  %v524_v5 = vmul.f32 %v1618_v3, %v1618_v3 }
  0xce   : > { %500 = vadd.xlane.f32.xlu1 %v499_v4 }
  0xcf   : > { %v546_v6 = vsel %vm418_vm0, %v524_v5, 0.0 }
  0xd0   : > { %547 = vadd.xlane.f32.xlu0 %v546_v6 }
 0x109   : > { %v480_v14 = vpop.xlane.xlu0 %479 }
 0x10a   : > { %v509_v15 = vmul.f32 %v1625_v13, %v480_v14 }
 0x10b   : > { %v527_v16 = vpop.xlane.xlu1 %526 }
 0x10c   : > { %v557_v17 = vmul.f32 %v509_v15, %v509_v15  ;;  %v549_v19 = vmul.f32 %v527_v16, %v1625_v13  ;;  %v581_v0 = vsub.f32 %v1555_v18, %v509_v15 }
 0x10e   : > { %v565_v20 = vsub.f32 %v549_v19, %v557_v17 }
 0x110   : > { %v573_v22 = vmax.f32 %v565_v20, 0.0 }
 0x111   : > { %v483_v23 = vpop.xlane.xlu0 %482 }
 0x112   : > { %v589_v24 = vadd.f32 1e-05, %v573_v22  ;;  %v1633_v26 = vmul.f32 %v1625_v13, %v483_v23 }
 0x113   : > { %v530_v28 = vpop.xlane.xlu1 %529 }
 0x114   : > { %1422 = vrsqrt.f32 %v589_v24  ;;  %v558_v29 = vmul.f32 %v1633_v26, %v1633_v26  ;;  %v550_v30 = vmul.f32 %v530_v28, %v1625_v13  ;;  %vm603_vm3 = vweird.f32 %v589_v24 }
 0x115   : > { %v582_v16 = vsub.f32 %v1564_v25, %v1633_v26 }
 0x116   : > { %v566_v31 = vsub.f32 %v550_v30, %v558_v29 }
 0x118   : > { %v574_v33 = vmax.f32 %v566_v31, 0.0 }
 0x119   : > { %v486_v34 = vpop.xlane.xlu2 %485 }
 0x11a   : > { %v1423_v35 = vpop.eup %1422  ;;  %v1642_v36 = vmul.f32 %v1625_v13, %v486_v34  ;;  %v590_v38 = vadd.f32 1e-05, %v574_v33 }
 0x11b   : > { %v598_v37 = vmul.f32 %v1423_v35, %v589_v24  ;;  %v533_v40 = vpop.xlane.xlu0 %532  ;;  %vm604_vm2 = vweird.f32 %v1423_v35  ;;  %v1671_v24 = vld [vmem:[%s2013_s5] ss:$0 sm:$0xff] }
 0x11c   : > { %v559_v41 = vmul.f32 %v1642_v36, %v1642_v36  ;;  %v551_v42 = vmul.f32 %v533_v40, %v1625_v13  ;;  %1424 = vrsqrt.f32 %v590_v38  ;;  %vm605_vm4 = vmor %vm603_vm3, %vm604_vm2  ;;  %vm613_vm6 = vweird.f32 %v590_v38 }
 0x11d   : > { %v599_v43 = vmul.f32 %v1423_v35, %v598_v37 }
 0x11e   : > { %v567_v44 = vsub.f32 %v551_v42, %v559_v41 }
 0x11f   : > { %v600_v45 = vmul.f32 0.5, %v599_v43 }
 0x120   : > { %v575_v47 = vmax.f32 %v567_v44, 0.0 }
 0x121   : > { %v601_v48 = vsub.f32 1.5, %v600_v45  ;;  %v489_v49 = vpop.xlane.xlu2 %488 }
 0x122   : > { %v591_v50 = vadd.f32 1e-05, %v575_v47  ;;  %v1648_v51 = vmul.f32 %v1625_v13, %v489_v49  ;;  %v1425_v52 = vpop.eup %1424  ;;  %v583_v49 = vsub.f32 %v1573_v32, %v1642_v36 }
 0x123   : > { %v536_v54 = vpop.xlane.xlu1 %535  ;;  %v602_v55 = vmul.f32 %v1423_v35, %v601_v48  ;;  %v608_v56 = vmul.f32 %v1425_v52, %v590_v38  ;;  %vm614_vm5 = vweird.f32 %v1425_v52 }
 0x124   : > { %1426 = vrsqrt.f32 %v591_v50  ;;  %v560_v57 = vmul.f32 %v1648_v51, %v1648_v51  ;;  %v552_v58 = vmul.f32 %v536_v54, %v1625_v13  ;;  %vm615_vm7 = vmor %vm613_vm6, %vm614_vm5  ;;  %vm623_vm9 = vweird.f32 %v591_v50 }
 0x125   : > { %v609_v59 = vmul.f32 %v1425_v52, %v608_v56  ;;  %v606_v63 = vsel %vm605_vm4, %v1423_v35, %v602_v55 }
 0x126   : > { %v568_v61 = vsub.f32 %v552_v58, %v560_v57  ;;  %v677_v10 = vmul.f32 %v606_v63, %v581_v0  ;;  %v584_v0 = vsub.f32 %v1582_v39, %v1648_v51 }
 0x127   : > { %v610_v62 = vmul.f32 0.5, %v609_v59 }
 0x128   : > { %v576_v1 = vmax.f32 %v568_v61, 0.0  ;;  %v688_v23 = vmul.f32 %v1660_v11, %v677_v10 }
 0x129   : > { %v492_v2 = vpop.xlane.xlu2 %491  ;;  %v611_v5 = vsub.f32 1.5, %v610_v62 }
 0x12a   : > { %v1427_v4 = vpop.eup %1426  ;;  %v1655_v6 = vmul.f32 %v1625_v13, %v492_v2  ;;  %v592_v8 = vadd.f32 1e-05, %v576_v1  ;;  %v699_v35 = vadd.f32 %v1671_v24, %v688_v23 }
 0x12b   : > { %v618_v7 = vmul.f32 %v1427_v4, %v591_v50  ;;  %v539_v9 = vpop.xlane.xlu1 %538  ;;  %v612_v12 = vmul.f32 %v1425_v52, %v611_v5  ;;  %vm624_vm8 = vweird.f32 %v1427_v4 }
 0x12c   : > { %v561_v14 = vmul.f32 %v1655_v6, %v1655_v6  ;;  %v553_v15 = vmul.f32 %v539_v9, %v1625_v13  ;;  %1428 = vrsqrt.f32 %v592_v8  ;;  %vm625_vm10 = vmor %vm623_vm9, %vm624_vm8  ;;  %vm633_vm12 = vweird.f32 %v592_v8 }
 0x12d   : > { %v619_v17 = vmul.f32 %v1427_v4, %v618_v7  ;;  %v616_v20 = vsel %vm615_vm7, %v1425_v52, %v612_v12 }
 0x12e   : > { %v569_v19 = vsub.f32 %v553_v15, %v561_v14  ;;  %v678_v22 = vmul.f32 %v616_v20, %v582_v16 }
 0x12f   : > { %v620_v21 = vmul.f32 0.5, %v619_v17 }
 0x130   : > { %v577_v27 = vmax.f32 %v569_v19, 0.0  ;;  %v689_v30 = vmul.f32 %v1660_v11, %v678_v22 }
 0x131   : > { %v621_v28 = vsub.f32 1.5, %v620_v21  ;;  %v495_v29 = vpop.xlane.xlu0 %494 }
 0x132   : > { %v1674_v26 = vadd.f32 1e-05, %v577_v27  ;;  %v1677_v31 = vmul.f32 %v1625_v13, %v495_v29  ;;  %v1429_v33 = vpop.eup %1428  ;;  %v700_v37 = vadd.f32 %v1671_v24, %v689_v30 }
 0x133   : > { %v542_v34 = vpop.xlane.xlu2 %541  ;;  %v622_v38 = vmul.f32 %v1427_v4, %v621_v28  ;;  %v628_v40 = vmul.f32 %v1429_v33, %v592_v8  ;;  %vm634_vm11 = vweird.f32 %v1429_v33 }
 0x134   : > { %1430 = vrsqrt.f32 %v1674_v26  ;;  %v562_v41 = vmul.f32 %v1677_v31, %v1677_v31  ;;  %v554_v42 = vmul.f32 %v542_v34, %v1625_v13  ;;  %v707_v43 = vpack.c.bf16 %v700_v37, %v699_v35  ;;  %vm635_vm13 = vmor %vm633_vm12, %vm634_vm11 }
 0x135   : > { %v629_v44 = vmul.f32 %v1429_v33, %v628_v40  ;;  %v626_v48 = vsel %vm625_vm10, %v1427_v4, %v622_v38  ;;  %vm643_vm15 = vweird.f32 %v1674_v26  ;;  %v585_v35 = vsub.f32 %v1591_v46, %v1655_v6 }
 0x136   : > { %v570_v45 = vsub.f32 %v554_v42, %v562_v41  ;;  %1340 = vmatmul.msk.bf16.vlgmr.msra.gmra.mxu1 %vm418_vm0, %v707_v43  ;;  %v679_v61 = vmul.f32 %v626_v48, %v583_v49 }
 0x137   : > { %v630_v47 = vmul.f32 0.5, %v629_v44 }
 0x138   : > { %v578_v52 = vmax.f32 %v570_v45, 0.0  ;;  %v690_v9 = vmul.f32 %v1660_v11, %v679_v61 }
 0x139   : > { %v498_v54 = vpop.xlane.xlu0 %497  ;;  %v631_v56 = vsub.f32 1.5, %v630_v47 }
 0x13a   : > { %v1431_v55 = vpop.eup %1430  ;;  %v1689_v57 = vmul.f32 %v1625_v13, %v498_v54  ;;  %v594_v58 = vadd.f32 1e-05, %v578_v52  ;;  %v701_v51 = vadd.f32 %v1671_v24, %v690_v9 }
 0x13b   : > { %v638_v50 = vmul.f32 %v1431_v55, %v1674_v26  ;;  %v545_v59 = vpop.xlane.xlu2 %544  ;;  %v632_v62 = vmul.f32 %v1429_v33, %v631_v56  ;;  %vm644_vm14 = vweird.f32 %v1431_v55  ;;  %v586_v26 = vsub.f32 %v1600_v53, %v1677_v31 }
 0x13c   : > { %v563_v63 = vmul.f32 %v1689_v57, %v1689_v57  ;;  %v555_v36 = vmul.f32 %v545_v59, %v1625_v13  ;;  %1432 = vrsqrt.f32 %v594_v58  ;;  %vm645_vm1 = vmor %vm643_vm15, %vm644_vm14  ;;  %vm653_vm3 = vweird.f32 %v594_v58 }
 0x13d   : > { %v639_v1 = vmul.f32 %v1431_v55, %v638_v50  ;;  %v636_v4 = vsel %vm635_vm13, %v1429_v33, %v632_v62 }
 0x13e   : > { %v571_v2 = vsub.f32 %v555_v36, %v563_v63  ;;  %v680_v7 = vmul.f32 %v636_v4, %v584_v0  ;;  %v587_v63 = vsub.f32 %v1609_v60, %v1689_v57  ;;  %v1725_v57 = vld [vmem:[%s2015_s7] ss:$0 sm:$0xff] }
 0x13f   : > { %v640_v5 = vmul.f32 0.5, %v639_v1 }
 0x140   : > { %v579_v10 = vmax.f32 %v571_v2, 0.0  ;;  %v691_v14 = vmul.f32 %v1660_v11, %v680_v7 }
 0x141   : > { %v641_v12 = vsub.f32 1.5, %v640_v5  ;;  %v501_v8 = vpop.xlane.xlu1 %500 }
 0x142   : > { %v595_v15 = vadd.f32 1e-05, %v579_v10  ;;  %v516_v16 = vmul.f32 %v1625_v13, %v501_v8  ;;  %v1433_v17 = vpop.eup %1432  ;;  %v702_v20 = vadd.f32 %v1671_v24, %v691_v14 }
 0x143   : > { %v548_v19 = vpop.xlane.xlu0 %547  ;;  %v642_v21 = vmul.f32 %v1431_v55, %v641_v12  ;;  %v648_v22 = vmul.f32 %v1433_v17, %v594_v58  ;;  %vm654_vm2 = vweird.f32 %v1433_v17 }
 0x144   : > { %1434 = vrsqrt.f32 %v595_v15  ;;  %v564_v23 = vmul.f32 %v516_v16, %v516_v16  ;;  %v556_v27 = vmul.f32 %v548_v19, %v1625_v13  ;;  %v708_v28 = vpack.c.bf16 %v702_v20, %v701_v51  ;;  %vm655_vm4 = vmor %vm653_vm3, %vm654_vm2  ;;  %v1395_v20 = vld [vmem:[%s2016_s8 + $0x28] sm:$0xff] }
 0x145   : > { %v649_v29 = vmul.f32 %v1433_v17, %v648_v22  ;;  %v646_v34 = vsel %vm645_vm1, %v1431_v55, %v642_v21  ;;  %vm663_vm6 = vweird.f32 %v595_v15  ;;  %v588_v2 = vsub.f32 %v1618_v3, %v516_v16 }
 0x146   : > { %v572_v30 = vsub.f32 %v556_v27, %v564_v23  ;;  %1341 = vmatmul.msk.bf16.gmra.mxu1 %vm418_vm0, %v708_v28  ;;  %v681_v13 = vmul.f32 %v646_v34, %v585_v35 }
 0x147   : > { %v650_v33 = vmul.f32 0.5, %v649_v29  ;;  %v1394_v29 = vld [vmem:[%s2016_s8 + $0x20] sm:$0xff] }
 0x148   : > { %v580_v37 = vmax.f32 %v572_v30, 0.0  ;;  %v692_v6 = vmul.f32 %v1660_v11, %v681_v13 }
 0x149   : > { %v651_v40 = vsub.f32 1.5, %v650_v33 }
 0x14a   : > { %v1435_v38 = vpop.eup %1434  ;;  %v596_v42 = vadd.f32 1e-05, %v580_v37  ;;  %v703_v55 = vadd.f32 %v1671_v24, %v692_v6 }
 0x14b   : > { %v658_v41 = vmul.f32 %v1435_v38, %v595_v15  ;;  %v652_v43 = vmul.f32 %v1433_v17, %v651_v40  ;;  %vm664_vm5 = vweird.f32 %v1435_v38  ;;  %v1397_v15 = vld [vmem:[%s2016_s8 + $0x38] sm:$0xff] }
 0x14c   : > { %1436 = vrsqrt.f32 %v596_v42  ;;  %vm665_vm7 = vmor %vm663_vm6, %vm664_vm5  ;;  %vm673_vm9 = vweird.f32 %v596_v42  ;;  %1196 = vmatpush.bf16.msra.mxu2 %v1397_v15  ;;  %1398 = vmatpush.bf16.msra.mxu3 %v1397_v15  ;;  %v1393_v40 = vld [vmem:[%s2016_s8 + $0x18] sm:$0xff] }
 0x14d   : > { %v659_v44 = vmul.f32 %v1435_v38, %v658_v41  ;;  %v656_v45 = vsel %vm655_vm4, %v1433_v17, %v652_v43 }
 0x14e   : > { %v682_v48 = vmul.f32 %v656_v45, %v586_v26 }
 0x14f   : > { %v660_v47 = vmul.f32 0.5, %v659_v44 }
 0x150   : > { %v693_v52 = vmul.f32 %v1660_v11, %v682_v48  ;;  %v1392_v48 = vld [vmem:[%s2016_s8 + $0x10] sm:$0xff] }
 0x151   : > { %v661_v49 = vsub.f32 1.5, %v660_v47 }
 0x152   : > { %v1437_v54 = vpop.eup %1436  ;;  %v704_v56 = vadd.f32 %v1671_v24, %v693_v52 }
 0x153   : > { %v662_v50 = vmul.f32 %v1435_v38, %v661_v49  ;;  %v668_v58 = vmul.f32 %v1437_v54, %v596_v42  ;;  %vm674_vm8 = vweird.f32 %v1437_v54 }
 0x154   : > { %v709_v31 = vpack.c.bf16 %v704_v56, %v703_v55  ;;  %vm675_vm10 = vmor %vm673_vm9, %vm674_vm8 }
 0x155   : > { %v669_v59 = vmul.f32 %v1437_v54, %v668_v58  ;;  %v666_v62 = vsel %vm665_vm7, %v1435_v38, %v662_v50 }
 0x156   : > { %1342 = vmatmul.msk.bf16.gmra.mxu1 %vm418_vm0, %v709_v31  ;;  %v683_v0 = vmul.f32 %v666_v62, %v587_v63 }
 0x157   : > { %v670_v61 = vmul.f32 0.5, %v669_v59 }
 0x158   : > { %v694_v7 = vmul.f32 %v1660_v11, %v683_v0 }
 0x159   : > { %v671_v36 = vsub.f32 1.5, %v670_v61  ;;  %v1391_v61 = vld [vmem:[%s2016_s8 + $0x8] sm:$0xff] }
 0x15a   : > { %v705_v10 = vadd.f32 %v1671_v24, %v694_v7 }
 0x15b   : > { %v672_v1 = vmul.f32 %v1437_v54, %v671_v36 }
 0x15d   : > { %v676_v4 = vsel %vm675_vm10, %v1437_v54, %v672_v1 }
 0x15e   : > { %v684_v5 = vmul.f32 %v676_v4, %v588_v2 }
 0x160   : > { %v695_v9 = vmul.f32 %v1660_v11, %v684_v5 }
 0x162   : > { %v706_v12 = vadd.f32 %v1671_v24, %v695_v9  ;;  %v1396_v24 = vld [vmem:[%s2016_s8 + $0x30] sm:$0xff]  ;;  %v1390_v9 = vld [vmem:[%s2016_s8] sm:$0xff] }
 0x163   : > { %1197 = vmatpush.bf16.msra.mxu2 %v1396_v24  ;;  %1399 = vmatpush.bf16.msra.mxu3 %v1396_v24 }
 0x164   : > { %v710_v8 = vpack.c.bf16 %v706_v12, %v705_v10 }
 0x166   : > { %1343 = vmatmul.msk.bf16.gmra.mxu1 %vm418_vm0, %v710_v8 }
 0x167   : > { %1198 = vmatpush.bf16.msra.mxu2 %v1395_v20  ;;  %1400 = vmatpush.bf16.msra.mxu3 %v1395_v20 }
 0x16b   : > { %1199 = vmatpush.bf16.msra.mxu2 %v1394_v29  ;;  %1401 = vmatpush.bf16.msra.mxu3 %v1394_v29 }
 0x16f   : > { %1200 = vmatpush.bf16.msra.mxu2 %v1393_v40  ;;  %1402 = vmatpush.bf16.msra.mxu3 %v1393_v40 }
 0x173   : > { %1201 = vmatpush.bf16.msra.mxu2 %v1392_v48  ;;  %1403 = vmatpush.bf16.msra.mxu3 %v1392_v48 }
 0x177   : > { %1202 = vmatpush.bf16.msra.mxu2 %v1391_v61  ;;  %1404 = vmatpush.bf16.msra.mxu3 %v1391_v61 }
 0x17b   : > { %1203 = vmatpush.bf16.msra.mxu2 %v1390_v9  ;;  %1405 = vmatpush.bf16.msra.mxu3 %v1390_v9 }
 0x1b3   : > { %v752_v14 = vpop.f32.mrf.mxu1 }
 0x1b4   : > { %v1731_v16 = vadd.f32 %v1725_v57, %v752_v14 }
 0x1b6   : > { %v1734_v11 = vmul.f32 0.70710677, %v1731_v16 }
 0x1b8   : > { %v788_v17 = vmul.f32 %v1734_v11, %v1734_v11 }
 0x1ba   : > { %v1741_v19 = vmin.f32 %v788_v17, 16.0 }
 0x1bb   : > { %v754_v51 = vpop.f32.mrf.mxu1 }
 0x1bc   : > { %v790_v21 = vmul.f32 2.1237322e-06, %v1741_v19  ;;  %v1748_v22 = vadd.f32 %v1725_v57, %v754_v51  ;;  %v801_v23 = vmul.f32 3.8918573e-05, %v1741_v19 }
 0x1be   : > { %v791_v27 = vadd.f32 0.00028619796, %v790_v21  ;;  %v1752_v28 = vmul.f32 0.70710677, %v1748_v22  ;;  %v802_v30 = vadd.f32 0.001143296, %v801_v23 }
 0x1c0   : > { %v828_v33 = vmul.f32 %v1752_v28, %v1752_v28  ;;  %v803_v34 = vmul.f32 %v802_v30, %v1741_v19  ;;  %v792_v35 = vmul.f32 %v791_v27, %v1741_v19 }
 0x1c2   : > { %v1761_v37 = vmin.f32 %v828_v33, 16.0  ;;  %v804_v41 = vadd.f32 0.014752088, %v803_v34  ;;  %v793_v44 = vadd.f32 0.0036580483, %v792_v35 }
 0x1c3   : > { %v757_v38 = vpop.f32.mrf.mxu1 }
 0x1c4   : > { %v830_v42 = vmul.f32 2.1237322e-06, %v1761_v37  ;;  %v1768_v13 = vadd.f32 %v1725_v57, %v757_v38  ;;  %v841_v43 = vmul.f32 3.8918573e-05, %v1761_v37  ;;  %v805_v26 = vmul.f32 %v804_v41, %v1741_v19 }
 0x1c5   : > { %v794_v56 = vmul.f32 %v793_v44, %v1741_v19 }
 0x1c6   : > { %v831_v45 = vadd.f32 0.00028619796, %v830_v42  ;;  %v1773_v47 = vmul.f32 0.70710677, %v1768_v13  ;;  %v806_v6 = vadd.f32 0.112945676, %v805_v26 }
 0x1c7   : > { %v842_v52 = vadd.f32 0.001143296, %v841_v43  ;;  %v795_v2 = vadd.f32 0.05243302, %v794_v56 }
 0x1c8   : > { %v832_v49 = vmul.f32 %v831_v45, %v1761_v37  ;;  %v868_v54 = vmul.f32 %v1773_v47, %v1773_v47  ;;  %v807_v55 = vmul.f32 %v806_v6, %v1741_v19 }
 0x1c9   : > { %v843_v50 = vmul.f32 %v842_v52, %v1761_v37  ;;  %v796_v15 = vmul.f32 %v795_v2, %v1741_v19 }
 0x1ca   : > { %v833_v58 = vadd.f32 0.0036580483, %v832_v49  ;;  %v1784_v31 = vmin.f32 %v868_v54, 16.0  ;;  %v808_v62 = vadd.f32 0.4994258, %v807_v55 }
 0x1cb   : > { %v759_v59 = vpop.f32.mrf.mxu1  ;;  %v844_v36 = vadd.f32 0.014752088, %v843_v50  ;;  %v797_v34 = vadd.f32 0.18741608, %v796_v15 }
 0x1cc   : > { %v1790_v63 = vadd.f32 %v1725_v57, %v759_v59  ;;  %v809_v0 = vmul.f32 %v808_v62, %v1741_v19  ;;  %v881_v1 = vmul.f32 3.8918573e-05, %v1784_v31  ;;  %v834_v5 = vmul.f32 %v833_v58, %v1761_v37 }
 0x1cd   : > { %v845_v4 = vmul.f32 %v844_v36, %v1761_v37  ;;  %v870_v51 = vmul.f32 2.1237322e-06, %v1784_v31  ;;  %v798_v52 = vmul.f32 %v797_v34, %v1741_v19 }
 0x1ce   : > { %v1797_v7 = vmul.f32 0.70710677, %v1790_v63  ;;  %v810_v10 = vadd.f32 1.0, %v809_v0  ;;  %v882_v8 = vadd.f32 0.001143296, %v881_v1 }
 0x1cf   : > { %v846_v12 = vadd.f32 0.112945676, %v845_v4  ;;  %v835_v17 = vadd.f32 0.05243302, %v834_v5  ;;  %v871_v41 = vadd.f32 0.00028619796, %v870_v51 }
 0x1d0   : > { %v908_v14 = vmul.f32 %v1797_v7, %v1797_v7  ;;  %1438 = vrcp.f32 %v810_v10  ;;  %v883_v23 = vmul.f32 %v882_v8, %v1784_v31  ;;  %v822_v62 = vand.u32 2147483648, %v810_v10 }
 0x1d1   : > { %v847_v24 = vmul.f32 %v846_v12, %v1761_v37  ;;  %v836_v40 = vmul.f32 %v835_v17, %v1761_v37  ;;  %v872_v55 = vmul.f32 %v871_v41, %v1784_v31  ;;  %vm816_vm12 = vweird.f32 %v810_v10 }
 0x1d2   : > { %v1807_v20 = vmin.f32 %v908_v14, 16.0  ;;  %v884_v33 = vadd.f32 0.014752088, %v883_v23  ;;  %v820_v2 = vand.u32 2147483647, %v810_v10  ;;  %v823_v17 = vor.u32 1.1754944e-38, %v822_v62 }
 0x1d3   : > { %v762_v21 = vpop.f32.mrf.mxu1  ;;  %v848_v30 = vadd.f32 0.4994258, %v847_v24  ;;  %v837_v54 = vadd.f32 0.18741608, %v836_v40  ;;  %v799_v4 = vadd.f32 1.1283791, %v798_v52 }
 0x1d4   : > { %v1811_v27 = vadd.f32 %v1725_v57, %v762_v21  ;;  %v910_v29 = vmul.f32 2.1237322e-06, %v1807_v20  ;;  %v885_v43 = vmul.f32 %v884_v33, %v1784_v31  ;;  %v921_v19 = vmul.f32 3.8918573e-05, %v1807_v20 }
 0x1d5   : > { %v849_v42 = vmul.f32 %v848_v30, %v1761_v37  ;;  %v873_v5 = vadd.f32 0.0036580483, %v872_v55  ;;  %v838_v9 = vmul.f32 %v837_v54, %v1761_v37  ;;  %vm821_vm14 = vcmp.eq.f32.partialorder %v820_v2, 8.507059e+37 }
 0x1d6   : > { %v1815_v35 = vmul.f32 0.70710677, %v1811_v27  ;;  %v1439_v38 = vpop.eup %1438  ;;  %v911_v26 = vadd.f32 0.00028619796, %v910_v29  ;;  %v886_v6 = vadd.f32 0.112945676, %v885_v43  ;;  %v800_v33 = vmul.f32 %v799_v4, %v1734_v11 }
 0x1d7   : > { %v812_v44 = vmul.f32 %v1439_v38, %v810_v10  ;;  %v1822_v48 = vadd.f32 1.0, %v849_v42  ;;  %vm817_vm11 = vweird.f32 %v1439_v38  ;;  %v922_v51 = vadd.f32 0.001143296, %v921_v19 }
 0x1d8   : > { %v948_v45 = vmul.f32 %v1815_v35, %v1815_v35  ;;  %v912_v50 = vmul.f32 %v911_v26, %v1807_v20  ;;  %v887_v36 = vmul.f32 %v886_v6, %v1784_v31  ;;  %vm818_vm13 = vmor %vm816_vm12, %vm817_vm11  ;;  %v839_v34 = vadd.f32 1.1283791, %v838_v9 }
 0x1d9   : > { %v813_v49 = vsub.f32 1.0, %v812_v44  ;;  %1440 = vrcp.f32 %v1822_v48  ;;  %v923_v37 = vmul.f32 %v922_v51, %v1807_v20  ;;  %v860_v43 = vand.u32 2147483647, %v1822_v48 }
 0x1da   : > { %v1831_v61 = vmin.f32 %v948_v45, 16.0  ;;  %v913_v12 = vadd.f32 0.0036580483, %v912_v50  ;;  %v888_v14 = vadd.f32 0.4994258, %v887_v36  ;;  %v862_v6 = vand.u32 2147483648, %v1822_v48 }
 0x1db   : > { %v764_v56 = vpop.f32.mrf.mxu1  ;;  %v814_v59 = vmul.f32 %v1439_v38, %v813_v49  ;;  %v924_v49 = vadd.f32 0.014752088, %v923_v37  ;;  %vm856_vm1 = vweird.f32 %v1822_v48  ;;  %vm861_vm3 = vcmp.eq.f32.partialorder %v860_v43, 8.507059e+37 }
 0x1dc   : > { %v1829_v58 = vadd.f32 %v1725_v57, %v764_v56  ;;  %v950_v24 = vmul.f32 2.1237322e-06, %v1831_v61  ;;  %v889_v30 = vmul.f32 %v888_v14, %v1784_v31  ;;  %v914_v40 = vmul.f32 %v913_v12, %v1807_v20 }
 0x1dd   : > { %v815_v1 = vadd.f32 %v1439_v38, %v814_v59  ;;  %v863_v36 = vor.u32 1.1754944e-38, %v862_v6  ;;  %v925_v19 = vmul.f32 %v924_v49, %v1807_v20 }
 0x1de   : > { %v1836_v0 = vmul.f32 0.70710677, %v1829_v58  ;;  %v951_v41 = vadd.f32 0.00028619796, %v950_v24  ;;  %v1849_v26 = vadd.f32 1.0, %v889_v30 }
 0x1df   : > { %v819_v8 = vsel %vm818_vm13, %v1439_v38, %v815_v1  ;;  %v1441_v15 = vpop.eup %1440  ;;  %v874_v38 = vmul.f32 %v873_v5, %v1784_v31  ;;  %v915_v55 = vadd.f32 0.05243302, %v914_v40  ;;  %v840_v1 = vmul.f32 %v839_v34, %v1752_v28 }
 0x1e0   : > { %v988_v21 = vmul.f32 %v1836_v0, %v1836_v0  ;;  %v852_v23 = vmul.f32 %v1441_v15, %v1822_v48  ;;  %v824_v29 = vsel %vm821_vm14, %v823_v17, %v819_v8  ;;  %vm857_vm15 = vweird.f32 %v1441_v15 }
 0x1e1   : > { %v825_v45 = vmul.f32 %v824_v29, %v800_v33  ;;  %1442 = vrcp.f32 %v1849_v26  ;;  %v875_v54 = vadd.f32 0.05243302, %v874_v38  ;;  %v952_v56 = vmul.f32 %v951_v41, %v1831_v61  ;;  %vm858_vm2 = vmor %vm856_vm1, %vm857_vm15 }
 0x1e2   : > { %v853_v42 = vsub.f32 1.0, %v852_v23  ;;  %v1851_v44 = vmin.f32 %v988_v21, 16.0  ;;  %v916_v12 = vmul.f32 %v915_v55, %v1807_v20  ;;  %v926_v51 = vadd.f32 0.112945676, %v925_v19 }
 0x1e3   : > { %v767_v10 = vpop.f32.mrf.mxu1  ;;  %v1344_v62 = vclamps-f32 %v825_v45, 1.0  ;;  %v876_v9 = vmul.f32 %v875_v54, %v1784_v31  ;;  %v953_v24 = vadd.f32 0.0036580483, %v952_v56  ;;  %v961_v28 = vmul.f32 3.8918573e-05, %v1831_v61 }
 0x1e4   : > { %v1855_v52 = vadd.f32 %v1725_v57, %v767_v10  ;;  %v854_v11 = vmul.f32 %v1441_v15, %v853_v42  ;;  %v990_v59 = vmul.f32 2.1237322e-06, %v1851_v44  ;;  %v772_v21 = vmul.f32 0.5, %v1731_v16 }
 0x1e5   : > { %v773_v29 = vmul.f32 0.5, %v1748_v22  ;;  %v877_v33 = vadd.f32 0.18741608, %v876_v9  ;;  %v917_v34 = vadd.f32 0.18741608, %v916_v12  ;;  %v927_v40 = vmul.f32 %v926_v51, %v1807_v20 }
 0x1e6   : > { %v855_v50 = vadd.f32 %v1441_v15, %v854_v11  ;;  %v1864_v2 = vmul.f32 0.70710677, %v1855_v52  ;;  %v991_v23 = vadd.f32 0.00028619796, %v990_v59  ;;  %v954_v16 = vmul.f32 %v953_v24, %v1831_v61 }
 0x1e7   : > { %v1871_v14 = vpop.eup %1442  ;;  %v962_v43 = vadd.f32 0.001143296, %v961_v28  ;;  %v928_v6 = vadd.f32 0.4994258, %v927_v40  ;;  %v1001_v49 = vmul.f32 3.8918573e-05, %v1851_v44  ;;  %vm896_vm5 = vweird.f32 %v1849_v26 }
 0x1e8   : > { %v859_v5 = vsel %vm858_vm2, %v1441_v15, %v855_v50  ;;  %v1108_v15 = vadd.f32 1.0, %v1344_v62  ;;  %v892_v10 = vmul.f32 %v1871_v14, %v1849_v26  ;;  %v992_v22 = vmul.f32 %v991_v23, %v1851_v44 }
 0x1e9   : > { %v864_v8 = vsel %vm861_vm3, %v863_v36, %v859_v5  ;;  %v963_v56 = vmul.f32 %v962_v43, %v1831_v61  ;;  %v878_v50 = vmul.f32 %v877_v33, %v1784_v31  ;;  %v929_v59 = vmul.f32 %v928_v6, %v1807_v20 }
 0x1ea   : > { %v865_v17 = vmul.f32 %v864_v8, %v840_v1  ;;  %v893_v38 = vsub.f32 1.0, %v892_v10  ;;  %v1116_v45 = vmul.f32 %v1108_v15, %v772_v21  ;;  %v1002_v62 = vadd.f32 0.001143296, %v1001_v49 }
 0x1eb   : > { %v769_v4 = vpop.f32.mrf.mxu1  ;;  %v918_v36 = vmul.f32 %v917_v34, %v1807_v20  ;;  %v955_v5 = vadd.f32 0.05243302, %v954_v16  ;;  %v993_v9 = vadd.f32 0.0036580483, %v992_v22  ;;  %v1898_v12 = vadd.f32 1.0, %v929_v59 }
 0x1ec   : > { %v1869_v48 = vadd.f32 %v1725_v57, %v769_v4  ;;  %v1028_v57 = vmul.f32 %v1864_v2, %v1864_v2  ;;  %v1345_v37 = vclamps-f32 %v865_v17, 1.0  ;;  %v894_v55 = vmul.f32 %v1871_v14, %v893_v38 }
 0x1ed   : > { %v964_v4 = vadd.f32 0.014752088, %v963_v56  ;;  %v1003_v8 = vmul.f32 %v1002_v62, %v1851_v44  ;;  %vm897_vm4 = vweird.f32 %v1871_v14  ;;  %v902_v20 = vand.u32 2147483648, %v1849_v26 }
 0x1ee   : > { %v1881_v30 = vmul.f32 0.70710677, %v1869_v48  ;;  %v1109_v42 = vadd.f32 1.0, %v1345_v37  ;;  %v1889_v11 = vmin.f32 %v1028_v57, 16.0  ;;  %v895_v31 = vadd.f32 %v1871_v14, %v894_v55  ;;  %vm1910_vm6 = vmor %vm896_vm5, %vm897_vm4 }
 0x1ef   : > { %v965_v17 = vmul.f32 %v964_v4, %v1831_v61  ;;  %1444 = vrcp.f32 %v1898_v12  ;;  %v879_v51 = vadd.f32 1.1283791, %v878_v50  ;;  %v900_v21 = vand.u32 2147483647, %v1849_v26 }
 0x1f0   : > { %v1068_v41 = vmul.f32 %v1881_v30, %v1881_v30  ;;  %v1117_v54 = vmul.f32 %v1109_v42, %v773_v29  ;;  %v1030_v24 = vmul.f32 2.1237322e-06, %v1889_v11  ;;  %v919_v23 = vadd.f32 1.1283791, %v918_v36 }
 0x1f1   : > { %v966_v10 = vadd.f32 0.112945676, %v965_v17  ;;  %v1004_v29 = vadd.f32 0.014752088, %v1003_v8  ;;  %v956_v57 = vmul.f32 %v955_v5, %v1831_v61  ;;  %v994_v37 = vmul.f32 %v993_v9, %v1851_v44 }
 0x1f2   : > { %v1896_v19 = vmin.f32 %v1068_v41, 16.0  ;;  %v1124_v1 = vpack.c.bf16 %v1117_v54, %v1116_v45  ;;  %v1031_v33 = vadd.f32 0.00028619796, %v1030_v24  ;;  %v899_v34 = vsel %vm1910_vm6, %v1871_v14, %v895_v31 }
 0x1f3   : > { %v903_v38 = vor.u32 1.1754944e-38, %v902_v20  ;;  %v967_v40 = vmul.f32 %v966_v10, %v1831_v61  ;;  %v1005_v26 = vmul.f32 %v1004_v29, %v1851_v44  ;;  %v1041_v16 = vmul.f32 3.8918573e-05, %v1889_v11 }
 0x1f4   : > { %1204 = vmatmul.bf16.vlgmr.msra.gmra.mxu2 %v1124_v1  ;;  %v1070_v28 = vmul.f32 2.1237322e-06, %v1896_v19  ;;  %v880_v41 = vmul.f32 %v879_v51, %v1773_v47  ;;  %vm901_vm7 = vcmp.eq.f32.partialorder %v900_v21, 8.507059e+37  ;;  %v1081_v43 = vmul.f32 3.8918573e-05, %v1896_v19 }
 0x1f5   : > { %v1445_v22 = vpop.eup %1444  ;;  %v904_v45 = vsel %vm901_vm7, %v903_v38, %v899_v34  ;;  %v968_v6 = vadd.f32 0.4994258, %v967_v40  ;;  %v1006_v49 = vadd.f32 0.112945676, %v1005_v26  ;;  %v1042_v54 = vadd.f32 0.001143296, %v1041_v16 }
 0x1f6   : > { %v1071_v42 = vadd.f32 0.00028619796, %v1070_v28  ;;  %v957_v55 = vadd.f32 0.18741608, %v956_v57  ;;  %v995_v14 = vadd.f32 0.05243302, %v994_v37  ;;  %v1032_v56 = vmul.f32 %v1031_v33, %v1889_v11 }
 0x1f7   : > { %v932_v50 = vmul.f32 %v1445_v22, %v1898_v12  ;;  %v969_v59 = vmul.f32 %v968_v6, %v1831_v61  ;;  %v1007_v62 = vmul.f32 %v1006_v49, %v1851_v44  ;;  %v1043_v47 = vmul.f32 %v1042_v54, %v1889_v11 }
 0x1f8   : > { %v1082_v36 = vadd.f32 0.001143296, %v1081_v43  ;;  %v1072_v1 = vmul.f32 %v1071_v42, %v1896_v19  ;;  %v905_v4 = vmul.f32 %v904_v45, %v880_v41  ;;  %v942_v9 = vand.u32 2147483648, %v1898_v12 }
 0x1f9   : > { %v933_v5 = vsub.f32 1.0, %v932_v50  ;;  %v1931_v8 = vadd.f32 1.0, %v969_v59  ;;  %v1008_v24 = vadd.f32 0.4994258, %v1007_v62  ;;  %v1044_v31 = vadd.f32 0.014752088, %v1043_v47 }
 0x1fa   : > { %v1083_v17 = vmul.f32 %v1082_v36, %v1896_v19  ;;  %v958_v20 = vmul.f32 %v957_v55, %v1831_v61  ;;  %vm937_vm8 = vweird.f32 %v1445_v22  ;;  %v940_v28 = vand.u32 2147483647, %v1898_v12 }
 0x1fb   : > { %v934_v51 = vmul.f32 %v1445_v22, %v933_v5  ;;  %v996_v21 = vmul.f32 %v995_v14, %v1851_v44  ;;  %v1033_v15 = vadd.f32 0.0036580483, %v1032_v56  ;;  %vm936_vm9 = vweird.f32 %v1898_v12 }
 0x1fc   : > { %1446 = vrcp.f32 %v1931_v8  ;;  %v1346_v10 = vclamps-f32 %v905_v4, 1.0  ;;  %v1009_v57 = vmul.f32 %v1008_v24, %v1851_v44  ;;  %v1045_v37 = vmul.f32 %v1044_v31, %v1889_v11  ;;  %vm938_vm10 = vmor %vm936_vm9, %vm937_vm8 }
 0x1fd   : > { %v935_v29 = vadd.f32 %v1445_v22, %v934_v51  ;;  %v920_v33 = vmul.f32 %v919_v23, %v1797_v7  ;;  %v1073_v61 = vadd.f32 0.0036580483, %v1072_v1  ;;  %v943_v34 = vor.u32 1.1754944e-38, %v942_v9 }
 0x1fe   : > { %v1084_v38 = vadd.f32 0.014752088, %v1083_v17  ;;  %vm941_vm11 = vcmp.eq.f32.partialorder %v940_v28, 8.507059e+37  ;;  %v1942_v26 = vadd.f32 1.0, %v1009_v57  ;;  %v1046_v16 = vadd.f32 0.112945676, %v1045_v37 }
 0x1ff   : > { %v939_v40 = vsel %vm938_vm10, %v1445_v22, %v935_v29  ;;  %v959_v12 = vadd.f32 1.1283791, %v958_v20  ;;  %v997_v41 = vadd.f32 0.18741608, %v996_v21  ;;  %v1034_v45 = vmul.f32 %v1033_v15, %v1889_v11 }
 0x200   : > { %v944_v42 = vsel %vm941_vm11, %v943_v34, %v939_v40  ;;  %v1085_v43 = vmul.f32 %v1084_v38, %v1896_v19  ;;  %v1110_v49 = vadd.f32 1.0, %v1346_v10  ;;  %1448 = vrcp.f32 %v1942_v26 }
 0x201   : > { %v945_v6 = vmul.f32 %v944_v42, %v920_v33  ;;  %v1074_v23 = vmul.f32 %v1073_v61, %v1896_v19  ;;  %v1047_v22 = vmul.f32 %v1046_v16, %v1889_v11  ;;  %v774_v55 = vmul.f32 0.5, %v1768_v13 }
 0x202   : > { %v1447_v7 = vpop.eup %1446  ;;  %v1086_v54 = vadd.f32 0.112945676, %v1085_v43  ;;  %v775_v14 = vmul.f32 0.5, %v1790_v63  ;;  %v960_v59 = vmul.f32 %v959_v12, %v1815_v35  ;;  %v998_v62 = vmul.f32 %v997_v41, %v1851_v44 }
 0x203   : > { %v1347_v56 = vclamps-f32 %v945_v6, 1.0  ;;  %v972_v50 = vmul.f32 %v1447_v7, %v1931_v8  ;;  %v1048_v47 = vadd.f32 0.4994258, %v1047_v22  ;;  %v1035_v1 = vadd.f32 0.05243302, %v1034_v45 }
 0x204   : > { %v1087_v36 = vmul.f32 %v1086_v54, %v1896_v19  ;;  %v1118_v5 = vmul.f32 %v1110_v49, %v774_v55  ;;  %v1075_v24 = vadd.f32 0.05243302, %v1074_v23  ;;  %v982_v31 = vand.u32 2147483648, %v1931_v8 }
 0x205   : > { %v1111_v4 = vadd.f32 1.0, %v1347_v56  ;;  %v973_v9 = vsub.f32 1.0, %v972_v50  ;;  %v1049_v13 = vmul.f32 %v1048_v47, %v1889_v11  ;;  %vm977_vm12 = vweird.f32 %v1447_v7 }
 0x206   : > { %v1088_v63 = vadd.f32 0.4994258, %v1087_v36  ;;  %v1449_v17 = vpop.eup %1448  ;;  %v980_v35 = vand.u32 2147483647, %v1931_v8  ;;  %v999_v44 = vadd.f32 1.1283791, %v998_v62  ;;  %v1036_v10 = vmul.f32 %v1035_v1, %v1889_v11 }
 0x207   : > { %v1119_v20 = vmul.f32 %v1111_v4, %v775_v14  ;;  %v974_v51 = vmul.f32 %v1447_v7, %v973_v9  ;;  %v1012_v28 = vmul.f32 %v1449_v17, %v1942_v26  ;;  %v1959_v21 = vadd.f32 1.0, %v1049_v13 }
 0x208   : > { %v1089_v15 = vmul.f32 %v1088_v63, %v1896_v19  ;;  %vm976_vm13 = vweird.f32 %v1931_v8  ;;  %v1076_v37 = vmul.f32 %v1075_v24, %v1896_v19  ;;  %v983_v33 = vor.u32 1.1754944e-38, %v982_v31 }
 0x209   : > { %v1125_v29 = vpack.c.bf16 %v1119_v20, %v1118_v5  ;;  %v975_v57 = vadd.f32 %v1447_v7, %v974_v51  ;;  %vm978_vm14 = vmor %vm976_vm13, %vm977_vm12  ;;  %v1013_v61 = vsub.f32 1.0, %v1012_v28  ;;  %1450 = vrcp.f32 %v1959_v21 }
 0x20a   : > { %vm981_vm15 = vcmp.eq.f32.partialorder %v980_v35, 8.507059e+37  ;;  %v1022_v38 = vand.u32 2147483648, %v1942_v26  ;;  %v1090_v40 = vadd.f32 1.0, %v1089_v15  ;;  %vm1017_vm1 = vweird.f32 %v1449_v17 }
 0x20b   : > { %1209 = vmatmul.bf16.vlgmr.msra.gmra.mxu3 %v1125_v29  ;;  %v979_v34 = vsel %vm978_vm14, %v1447_v7, %v975_v57  ;;  %v1014_v12 = vmul.f32 %v1449_v17, %v1013_v61  ;;  %v1020_v41 = vand.u32 2147483647, %v1942_v26  ;;  %v1037_v42 = vadd.f32 0.18741608, %v1036_v10 }
 0x20c   : > { %v984_v16 = vsel %vm981_vm15, %v983_v33, %v979_v34  ;;  %1452 = vrcp.f32 %v1090_v40  ;;  %v1077_v43 = vadd.f32 0.18741608, %v1076_v37  ;;  %vm1016_vm2 = vweird.f32 %v1942_v26 }
 0x20d   : > { %v985_v8 = vmul.f32 %v984_v16, %v960_v59  ;;  %v1015_v45 = vadd.f32 %v1449_v17, %v1014_v12  ;;  %vm1018_vm3 = vmor %vm1016_vm2, %vm1017_vm1  ;;  %v1023_v6 = vor.u32 1.1754944e-38, %v1022_v38  ;;  %v1000_v7 = vmul.f32 %v999_v44, %v1836_v0 }
 0x20e   : > { %vm1021_vm4 = vcmp.eq.f32.partialorder %v1020_v41, 8.507059e+37  ;;  %v1038_v54 = vmul.f32 %v1037_v42, %v1889_v11  ;;  %v1078_v56 = vmul.f32 %v1077_v43, %v1896_v19  ;;  %v776_v62 = vmul.f32 0.5, %v1811_v27 }
 0x20f   : > { %v1451_v49 = vpop.eup %1450  ;;  %v1348_v23 = vclamps-f32 %v985_v8, 1.0  ;;  %v1019_v22 = vsel %vm1018_vm3, %v1449_v17, %v1015_v45  ;;  %v1062_v47 = vand.u32 2147483648, %v1959_v21  ;;  %v777_v36 = vmul.f32 0.5, %v1829_v58 }
 0x210   : > { %v1024_v55 = vsel %vm1021_vm4, %v1023_v6, %v1019_v22  ;;  %v1052_v14 = vmul.f32 %v1451_v49, %v1959_v21  ;;  %v1039_v5 = vadd.f32 1.1283791, %v1038_v54  ;;  %vm1057_vm5 = vweird.f32 %v1451_v49 }
 0x211   : > { %v1025_v50 = vmul.f32 %v1024_v55, %v1000_v7  ;;  %v1112_v1 = vadd.f32 1.0, %v1348_v23  ;;  %v1060_v11 = vand.u32 2147483647, %v1959_v21  ;;  %v1079_v24 = vadd.f32 1.1283791, %v1078_v56 }
 0x212   : > { %v1453_v59 = vpop.eup %1452  ;;  %v1053_v26 = vsub.f32 1.0, %v1052_v14  ;;  %vm1056_vm6 = vweird.f32 %v1959_v21  ;;  %v1063_v27 = vor.u32 1.1754944e-38, %v1062_v47  ;;  %v1100_v63 = vand.u32 2147483647, %v1090_v40 }
 0x213   : > { %v1349_v0 = vclamps-f32 %v1025_v50, 1.0  ;;  %v1092_v4 = vmul.f32 %v1453_v59, %v1090_v40  ;;  %v1102_v17 = vand.u32 2147483648, %v1090_v40  ;;  %v1120_v20 = vmul.f32 %v1112_v1, %v776_v62  ;;  %vm1058_vm7 = vmor %vm1056_vm6, %vm1057_vm5 }
 0x214   : > { %v1054_v9 = vmul.f32 %v1451_v49, %v1053_v26  ;;  %vm1097_vm8 = vweird.f32 %v1453_v59  ;;  %v1040_v35 = vmul.f32 %v1039_v5, %v1864_v2  ;;  %vm1061_vm9 = vcmp.eq.f32.partialorder %v1060_v11, 8.507059e+37 }
 0x215   : > { %v1113_v31 = vadd.f32 1.0, %v1349_v0  ;;  %v1093_v19 = vsub.f32 1.0, %v1092_v4  ;;  %vm1096_vm10 = vweird.f32 %v1090_v40  ;;  %v1103_v21 = vor.u32 1.1754944e-38, %v1102_v17 }
 0x216   : > { %v1055_v13 = vadd.f32 %v1451_v49, %v1054_v9  ;;  %vm1098_vm11 = vmor %vm1096_vm10, %vm1097_vm8  ;;  %v1080_v57 = vmul.f32 %v1079_v24, %v1881_v30  ;;  %vm1101_vm12 = vcmp.eq.f32.partialorder %v1100_v63, 8.507059e+37  ;;  %v779_v2 = vmul.f32 0.5, %v1869_v48  ;;  %v1419_v30 = vld [vmem:[%s2017_s9] ss:$0 sm:$0xff] }
 0x217   : > { %v1121_v51 = vmul.f32 %v1113_v31, %v777_v36  ;;  %v1094_v58 = vmul.f32 %v1453_v59, %v1093_v19  ;;  %v778_v41 = vmul.f32 0.5, %v1855_v52 }
 0x218   : > { %v1059_v44 = vsel %vm1058_vm7, %v1451_v49, %v1055_v13 }
 0x219   : > { %v1126_v28 = vpack.c.bf16 %v1121_v51, %v1120_v20  ;;  %v1064_v15 = vsel %vm1061_vm9, %v1063_v27, %v1059_v44  ;;  %v1095_v10 = vadd.f32 %v1453_v59, %v1094_v58 }
 0x21a   : > { %v1065_v29 = vmul.f32 %v1064_v15, %v1040_v35 }
 0x21b   : > { %1214 = vmatmul.bf16.gmra.mxu3 %v1126_v28  ;;  %v1099_v37 = vsel %vm1098_vm11, %v1453_v59, %v1095_v10 }
 0x21c   : > { %v1104_v33 = vsel %vm1101_vm12, %v1103_v21, %v1099_v37  ;;  %v1350_v61 = vclamps-f32 %v1065_v29, 1.0 }
 0x21d   : > { %v1105_v34 = vmul.f32 %v1104_v33, %v1080_v57 }
 0x21e   : > { %v1114_v16 = vadd.f32 1.0, %v1350_v61 }
 0x21f   : > { %v1351_v38 = vclamps-f32 %v1105_v34, 1.0 }
 0x220   : > { %v1122_v42 = vmul.f32 %v1114_v16, %v778_v41 }
 0x221   : > { %v1115_v12 = vadd.f32 1.0, %v1351_v38 }
 0x223   : > { %v1123_v40 = vmul.f32 %v1115_v12, %v779_v2 }
 0x225   : > { %v1127_v8 = vpack.c.bf16 %v1123_v40, %v1122_v42 }
 0x22b   : > { %1219 = vmatmul.bf16.gmra.mxu3 %v1127_v8 }
 0x277   : > { %v1205_v43 = vpop.f32.mrf.mxu2 }
 0x278   : > { %v1206_v45 = vadd.f32 %v1419_v30, %v1205_v43 }
 0x27a   : > { %v1225_v48 = vadd.f32 %v1206_v45, %v1555_v18 }
 0x27c   : > { %1233 = vst.msk [vmem:[%s383_s23] sm:$0xff] %vm418_vm0, %v1225_v48 }
 0x27f   : > { %v1207_v6 = vpop.f32.mrf.mxu2 }
 0x280   : > { %v1208_v52 = vadd.f32 %v1419_v30, %v1207_v6 }
 0x282   : > { %v1226_v49 = vadd.f32 %v1208_v52, %v1564_v25 }
 0x284   : > { %1234 = vst.msk [vmem:[%s383_s23 + $0x8] sm:$0xff] %vm418_vm0, %v1226_v49 }
 0x28e   : > { %v1210_v7 = vpop.f32.mrf.mxu3 }
 0x28f   : > { %v1211_v23 = vadd.f32 %v1419_v30, %v1210_v7 }
 0x291   : > { %v1227_v22 = vadd.f32 %v1211_v23, %v1573_v32 }
 0x293   : > { %1235 = vst.msk [vmem:[%s383_s23 + $0x10] sm:$0xff] %vm418_vm0, %v1227_v22 }
 0x296   : > { %v1212_v54 = vpop.f32.mrf.mxu3 }
 0x297   : > { %v1213_v55 = vadd.f32 %v1419_v30, %v1212_v54 }
 0x299   : > { %v1228_v14 = vadd.f32 %v1213_v55, %v1582_v39 }
 0x29b   : > { %1236 = vst.msk [vmem:[%s383_s23 + $0x18] sm:$0xff] %vm418_vm0, %v1228_v14 }
 0x29e   : > { %v1215_v18 = vpop.f32.mrf.mxu3 }
 0x29f   : > { %v1216_v56 = vadd.f32 %v1419_v30, %v1215_v18 }
 0x2a1   : > { %v1229_v50 = vadd.f32 %v1216_v56, %v1591_v46 }
 0x2a3   : > { %1237 = vst.msk [vmem:[%s383_s23 + $0x20] sm:$0xff] %vm418_vm0, %v1229_v50 }
 0x2a6   : > { %v1217_v25 = vpop.f32.mrf.mxu3 }
 0x2a7   : > { %v1218_v59 = vadd.f32 %v1419_v30, %v1217_v25 }
 0x2a9   : > { %v1230_v62 = vadd.f32 %v1218_v59, %v1600_v53 }
 0x2ab   : > { %1238 = vst.msk [vmem:[%s383_s23 + $0x28] sm:$0xff] %vm418_vm0, %v1230_v62 }
 0x2ae   : > { %v1220_v32 = vpop.f32.mrf.mxu3 }
 0x2af   : > { %v1221_v26 = vadd.f32 %v1419_v30, %v1220_v32 }
 0x2b1   : > { %v1231_v47 = vadd.f32 %v1221_v26, %v1609_v60 }
 0x2b3   : > { %1239 = vst.msk [vmem:[%s383_s23 + $0x30] sm:$0xff] %vm418_vm0, %v1231_v47 }
 0x2b6   : > { %v1222_v39 = vpop.f32.mrf.mxu3 }
 0x2b7   : > { %v1223_v36 = vadd.f32 %v1419_v30, %v1222_v39 }
 0x2b9   : > { %v1232_v0 = vadd.f32 %v1223_v36, %v1618_v3 }
 0x2bb   : > { %1240 = vst.msk [vmem:[%s383_s23 + $0x38] sm:$0xff] %vm418_vm0, %v1232_v0 }
 0x2bc PF: > { %s20_s13 = sadd.s32 1, %s1460_s13  }
 0x2bd   : > { %p17_p4 = scmp.ge.s32.totalorder %s20_s13, 4  }
 0x2bf   :  { %19 = sbr.rel (!%p17_p4) target bundleno = 1 (0x1), region = 93 }

// kernel: basic_layer_up_forward.8
= control target key start
LH: loop header
LB: loop body
LE: loop exit
PB: predicated region body
PF: predicated region fallthrough
CT: control target
= control target key end

     0   :  { %s1908_s18 = smov 0   ;;  %s1910_s19 = smov 0   ;;  %s2952_s0 = inlined_call_operand.vmem [shape: f32[32,16,8], index: 0, kind: input, shape index: {}]   ;;  %s2953_s1 = inlined_call_operand.vmem [shape: f32[32,8,16], index: 1, kind: input, shape index: {}]   ;;  %s2954_s2 = inlined_call_operand.vmem [shape: f32[32,16,8], index: 2, kind: input, shape index: {}]   ;;  %s2955_s3 = inlined_call_operand.vmem [shape: f32[4,1,1], index: 3, kind: input, shape index: {}]   ;;  %s2956_s4 = inlined_call_operand.vmem [shape: f32[4,16,16], index: 4, kind: input, shape index: {}]   ;;  %s2957_s5 = inlined_call_operand.vmem [shape: f32[32,16,8], index: 5, kind: output, shape index: {}]  }
   0x1   :  { %s1912_s20 = smov 0   ;;  %s1914_s21 = smov 0  }
   0x2   :  { %s1916_s22 = smov 0  }
   0x3 LB: > { %s24_s23 = sadd.s32 1, %s1867_s20  ;;  %s27_s24 = sadd.s32 1, %s1871_s21  ;;  %s1875_s22 = sphi %s1916_s22, %s15_s22   ;;  %s1871_s21 = sphi %s1914_s21, %s3007_s21   ;;  %s1867_s20 = sphi %s1912_s20, %s3006_s20   ;;  %s1863_s19 = sphi %s1910_s19, %s3005_s19   ;;  %s1859_s18 = sphi %s1908_s18, %s3004_s18  }
   0x4   : > { %p25_p0 = scmp.ge.s32.totalorder %s24_s23, 2  ;;  %p1640_p1 = scmp.ge.s32.totalorder %s1875_s22, 1 }
   0x5   : > { %p252_p2 = scmp.lt.s32.totalorder %s1875_s22, 5 }
   0x6   : > { %s3009_s23 = smov (%p25_p0, %s24_s23), 0  ;;  %s3011_s24 = smov (!%p25_p0, %s27_s24), %s1871_s21 }
   0x7   : > { %p253_p3 = pnand %p1640_p1, %p252_p2  ;;  %p29_p4 = scmp.ge.s32.totalorder %s3011_s24, 2 }
   0x8   : > { %s1641_s25 = sshll.u32 (!%p253_p3), %s1863_s19, 1 }
   0x9   : > { %s3013_s24 = smov (%p29_p4, %s3011_s24), 0  ;;  %256 = sbr.rel (%p253_p3) target bundleno = 801 (0x321), region = 40 }
   0xa   : > { %s302_s26 = sadd.s32 (!%p253_p3), %s1859_s18, %s1641_s25 }
   0xb   : > { %s1642_s27 = sshll.u32 (!%p253_p3), %s302_s26, 3 }
   0xc   : > { %p304_p5 = scmp.lt.s32.totalorder (!%p253_p3), %s1642_s27, 31 }
   0xe   : > { %s3015_s27 = smov (!%p304_p5, %s1642_s27), 31  ;;  %vm385_vm0 = vcmask 64512   ;;  %v1877_v24 = vmov 0   ;;  %v1721_v44 = vld [vmem:[%s2955_s3 + $0x2] ss:$0 sm:$0xff]  ;;  %vm634_vm1 = vcmask 130048  }
   0xf   : > { %s1941_s28 = sshll.u32 %s3015_s27, 4  ;;  %1718 = vset.pattern.permute.xlu0 %v1877_v24  ;;  %1719 = vset.pattern.permute.xlu1 %v1877_v24  ;;  %v1722_v46 = vld [vmem:[%s2955_s3 + $0x3] ss:$0 sm:$0xff]  ;;  %v1723_v50 = vld [vmem:[%s2955_s3] ss:$0 sm:$0xff]  ;;  %s1647_s15 = sshll.u32 %s3015_s27, 3 }
  0x10   : > { %s1947_s6 = scalar_lea.vmem %s2952_s0, %s1941_s28  ;;  %1720 = vset.pattern.permute.xlu2 %v1877_v24  ;;  %v1724_v52 = vld [vmem:[%s2955_s3 + $0x1] ss:$0 sm:$0xff]  ;;  %s2061_s18 = scalar_lea.vmem %s2953_s1, %s1647_s15  ;;  %vm871_vm10 = vcmask 1043456  }
  0x11   : > { %v1950_v0 = vld [vmem:[%s1947_s6 + $0x30] sm:$0xff]  ;;  %v1953_v1 = vld [vmem:[%s1947_s6 + $0x20] sm:$0xff]  ;;  %v1965_v6 = vld [vmem:[%s1947_s6 + $0x38] sm:$0xff]  ;;  %s2903_s26 = scalar_lea.vmem %s2957_s5, %s1941_s28 }
  0x12   : > { %v1956_v2 = vld [vmem:[%s1947_s6] sm:$0xff]  ;;  %v375_v3 = vmul.f32 %v1950_v0, %v1950_v0  ;;  %v373_v4 = vmul.f32 %v1953_v1, %v1953_v1  ;;  %v1968_v7 = vld [vmem:[%s1947_s6 + $0x28] sm:$0xff]  ;;  %v376_v12 = vmul.f32 %v1965_v6, %v1965_v6  ;;  %v1986_v18 = vld [vmem:[%s1947_s6 + $0x18] sm:$0xff] }
  0x13   : > { %v369_v5 = vmul.f32 %v1956_v2, %v1956_v2  ;;  %v1974_v11 = vld [vmem:[%s1947_s6 + $0x8] sm:$0xff]  ;;  %v374_v13 = vmul.f32 %v1968_v7, %v1968_v7  ;;  %v1989_v19 = vld [vmem:[%s1947_s6 + $0x10] sm:$0xff]  ;;  %v1992_v20 = vld [vmem:[%s1947_s6 + $0x60] sm:$0xff]  ;;  %v372_v21 = vmul.f32 %v1986_v18, %v1986_v18 }
  0x14   : > { %v404_v8 = vsel %vm385_vm0, %v375_v3, 0.0  ;;  %v398_v9 = vsel %vm385_vm0, %v373_v4, 0.0  ;;  %v370_v14 = vmul.f32 %v1974_v11, %v1974_v11  ;;  %v407_v15 = vsel %vm385_vm0, %v376_v12, 0.0  ;;  %v2004_v28 = vld [vmem:[%s1947_s6 + $0x70] sm:$0xff]  ;;  %v2007_v29 = vld [vmem:[%s1947_s6 + $0x68] sm:$0xff]  ;;  %v2010_v30 = vld [vmem:[%s1947_s6 + $0x78] sm:$0xff] }
  0x15   : > { %v386_v10 = vsel %vm385_vm0, %v369_v5, 0.0  ;;  %405 = vadd.xlane.f32.xlu1 %v404_v8  ;;  %399 = vadd.xlane.f32.xlu0 %v398_v9  ;;  %v401_v16 = vsel %vm385_vm0, %v374_v13, 0.0  ;;  %v371_v22 = vmul.f32 %v1989_v19, %v1989_v19  ;;  %v381_v23 = vmul.f32 %v1992_v20, %v1992_v20  ;;  %v2022_v37 = vld [vmem:[%s1947_s6 + $0x40] sm:$0xff]  ;;  %v2028_v40 = vld [vmem:[%s1947_s6 + $0x48] sm:$0xff]  ;;  %v2034_v43 = vld [vmem:[%s1947_s6 + $0x50] sm:$0xff] }
  0x16   : > { %387 = vadd.xlane.f32.xlu2 %v386_v10  ;;  %v389_v17 = vsel %vm385_vm0, %v370_v14, 0.0  ;;  %v395_v25 = vsel %vm385_vm0, %v372_v21, 0.0  ;;  %v383_v31 = vmul.f32 %v2004_v28, %v2004_v28  ;;  %v382_v32 = vmul.f32 %v2007_v29, %v2007_v29  ;;  %v2046_v48 = vld [vmem:[%s1947_s6 + $0x58] sm:$0xff]  ;;  %v2064_v53 = vld [vmem:[%s2061_s18 + $0x10] sm:$0xff] }
  0x17   : > { %v392_v26 = vsel %vm385_vm0, %v371_v22, 0.0  ;;  %v422_v27 = vsel %vm385_vm0, %v381_v23, 0.0  ;;  %v384_v33 = vmul.f32 %v2010_v30, %v2010_v30  ;;  %v377_v38 = vmul.f32 %v2022_v37, %v2022_v37  ;;  %v2070_v58 = vld [vmem:[%s2061_s18 + $0x18] sm:$0xff] }
  0x18   : > { %v428_v34 = vsel %vm385_vm0, %v383_v31, 0.0  ;;  %v425_v35 = vsel %vm385_vm0, %v382_v32, 0.0  ;;  %v378_v41 = vmul.f32 %v2028_v40, %v2028_v40  ;;  %v379_v45 = vmul.f32 %v2034_v43, %v2034_v43 }
  0x19   : > { %v431_v36 = vsel %vm385_vm0, %v384_v33, 0.0  ;;  %v410_v39 = vsel %vm385_vm0, %v377_v38, 0.0  ;;  %v380_v49 = vmul.f32 %v2046_v48, %v2046_v48  ;;  %v628_v54 = vmul.f32 %v2064_v53, %v2064_v53 }
  0x1a   : > { %v413_v42 = vsel %vm385_vm0, %v378_v41, 0.0  ;;  %v416_v47 = vsel %vm385_vm0, %v379_v45, 0.0  ;;  %v629_v59 = vmul.f32 %v2070_v58, %v2070_v58 }
  0x1b   : > { %v419_v51 = vsel %vm385_vm0, %v380_v49, 0.0  ;;  %v649_v55 = vsel %vm634_vm1, %v628_v54, 0.0 }
  0x1c   : > { %v650_v56 = vrot.slane %v649_v55, 4  ;;  %v656_v61 = vsel %vm634_vm1, %v629_v59, 0.0 }
  0x1d   : > { %408 = vadd.xlane.f32.xlu1 %v407_v15  ;;  %402 = vadd.xlane.f32.xlu0 %v401_v16  ;;  %v657_v63 = vrot.slane %v656_v61, 4 }
  0x1e   : > { %390 = vadd.xlane.f32.xlu2 %v389_v17  ;;  %v651_v57 = vadd.f32 %v650_v56, %v649_v55 }
  0x1f   : > { %v658_v4 = vadd.f32 %v657_v63, %v656_v61 }
  0x20   : > { %v652_v60 = vrot.slane %v651_v57, 2 }
  0x21   : > { %v659_v8 = vrot.slane %v658_v4, 2 }
  0x22   : > { %v653_v62 = vadd.f32 %v652_v60, %v651_v57 }
  0x23   : > { %v660_v14 = vadd.f32 %v659_v8, %v658_v4 }
  0x24   : > { %v654_v3 = vrot.slane %v653_v62, 1 }
  0x25   : > { %396 = vadd.xlane.f32.xlu1 %v395_v25  ;;  %393 = vadd.xlane.f32.xlu0 %v392_v26  ;;  %v661_v15 = vrot.slane %v660_v14, 1 }
  0x26   : > { %423 = vadd.xlane.f32.xlu2 %v422_v27  ;;  %v655_v5 = vadd.f32 %v654_v3, %v653_v62 }
  0x27   : > { %v662_v26 = vadd.f32 %v661_v15, %v660_v14 }
  0x28   : > { %v693_v9 = vmax.f32 %v655_v5, 1e-24 }
  0x29   : > { %v2091_v33 = vmax.f32 %v662_v26, 1e-24 }
  0x2a   : > { %1725 = vrsqrt.f32 %v693_v9  ;;  %vm725_vm2 = vweird.f32 %v693_v9 }
  0x2d   : > { %429 = vadd.xlane.f32.xlu1 %v428_v34  ;;  %426 = vadd.xlane.f32.xlu0 %v425_v35 }
  0x2e   : > { %432 = vadd.xlane.f32.xlu2 %v431_v36 }
  0x30   : > { %v2079_v23 = vpop.eup %1725 }
  0x31   : > { %v720_v31 = vmul.f32 %v2079_v23, %v693_v9  ;;  %vm726_vm3 = vweird.f32 %v2079_v23 }
  0x32   : > { %vm2138_vm4 = vmor %vm725_vm2, %vm726_vm3 }
  0x33   : > { %v721_v34 = vmul.f32 %v2079_v23, %v720_v31 }
  0x36   : > { %411 = vadd.xlane.f32.xlu2 %v410_v39 }
  0x3e   : > { %414 = vadd.xlane.f32.xlu2 %v413_v42 }
  0x41   : > { %808 = vperm.xlu0 %1718, %v1721_v44   ;;  %v722_v44 = vmul.f32 0.5, %v721_v34 }
  0x43   : > { %v723_v55 = vsub.f32 1.5, %v722_v44 }
  0x46   : > { %417 = vadd.xlane.f32.xlu2 %v416_v47  ;;  %812 = vperm.xlu1 %1719, %v1722_v46  }
  0x4e   : > { %420 = vadd.xlane.f32.xlu2 %v419_v51  ;;  %800 = vperm.xlu1 %1719, %v1723_v50  }
  0x66   : > { %804 = vperm.xlu2 %1720, %v1724_v52  }
  0x88   : > { %v406_v10 = vpop.xlane.xlu1 %405  ;;  %v400_v12 = vpop.xlane.xlu0 %399 }
  0x89   : > { %v388_v13 = vpop.xlane.xlu2 %387  ;;  %v2075_v16 = vmax.f32 %v406_v10, 1e-24  ;;  %v2077_v17 = vmax.f32 %v400_v12, 1e-24  ;;  %v724_v10 = vmul.f32 %v2079_v23, %v723_v55  ;;  %v2135_v12 = vld [vmem:[%s2061_s18] sm:$0xff] }
  0x8a   : > { %v2088_v32 = vmax.f32 %v388_v13, 1e-24  ;;  %v626_v31 = vmul.f32 %v2135_v12, %v2135_v12 }
  0x8b   : > { %1727 = vrsqrt.f32 %v2075_v16  ;;  %vm496_vm6 = vweird.f32 %v2077_v17  ;;  %vm516_vm11 = vweird.f32 %v2075_v16 }
  0x8c   : > { %1729 = vrsqrt.f32 %v2077_v17  ;;  %vm456_vm13 = vweird.f32 %v2088_v32 }
  0x90   : > { %v409_v21 = vpop.xlane.xlu1 %408  ;;  %v403_v22 = vpop.xlane.xlu0 %402 }
  0x91   : > { %v2081_v24 = vmax.f32 %v403_v22, 1e-24  ;;  %v391_v25 = vpop.xlane.xlu2 %390  ;;  %v2084_v27 = vmax.f32 %v409_v21, 1e-24  ;;  %v2095_v35 = vpop.eup %1727 }
  0x92   : > { %v2098_v39 = vpop.eup %1729  ;;  %v511_v46 = vmul.f32 %v2095_v35, %v2075_v16  ;;  %v2117_v54 = vmax.f32 %v391_v25, 1e-24  ;;  %vm517_vm5 = vweird.f32 %v2095_v35 }
  0x93   : > { %1731 = vrsqrt.f32 %v2081_v24  ;;  %v491_v47 = vmul.f32 %v2098_v39, %v2077_v17  ;;  %vm497_vm7 = vweird.f32 %v2098_v39  ;;  %vm506_vm8 = vweird.f32 %v2081_v24  ;;  %vm2205_vm2 = vmor %vm516_vm11, %vm517_vm5 }
  0x94   : > { %1733 = vrsqrt.f32 %v2084_v27  ;;  %v512_v56 = vmul.f32 %v2095_v35, %v511_v46  ;;  %vm2183_vm12 = vmor %vm496_vm6, %vm497_vm7  ;;  %vm526_vm14 = vweird.f32 %v2084_v27 }
  0x95   : > { %1735 = vrsqrt.f32 %v2088_v32  ;;  %v492_v57 = vmul.f32 %v2098_v39, %v491_v47 }
  0x96   : > { %1737 = vrsqrt.f32 %v2091_v33  ;;  %v513_v9 = vmul.f32 0.5, %v512_v56 }
  0x97   : > { %1739 = vrsqrt.f32 %v2117_v54  ;;  %v493_v13 = vmul.f32 0.5, %v492_v57 }
  0x98   : > { %v394_v36 = vpop.xlane.xlu0 %393  ;;  %v397_v41 = vpop.xlane.xlu1 %396  ;;  %v514_v44 = vsub.f32 1.5, %v513_v9 }
  0x99   : > { %v424_v38 = vpop.xlane.xlu2 %423  ;;  %v2101_v42 = vpop.eup %1731  ;;  %v2131_v5 = vmax.f32 %v397_v41, 1e-24  ;;  %v728_v41 = vsel %vm2138_vm4, %v2079_v23, %v724_v10  ;;  %v494_v46 = vsub.f32 1.5, %v493_v13  ;;  %vm735_vm4 = vweird.f32 %v2091_v33 }
  0x9a   : > { %v2103_v45 = vpop.eup %1733  ;;  %v501_v49 = vmul.f32 %v2101_v42, %v2081_v24  ;;  %v2121_v59 = vmax.f32 %v424_v38, 1e-24  ;;  %v2153_v38 = vmax.f32 %v394_v36, 1e-24  ;;  %vm507_vm9 = vweird.f32 %v2101_v42 }
  0x9b   : > { %v2111_v50 = vpop.eup %1735  ;;  %v521_v52 = vmul.f32 %v2103_v45, %v2084_v27  ;;  %vm2196_vm15 = vmor %vm506_vm8, %vm507_vm9  ;;  %vm527_vm3 = vweird.f32 %v2103_v45 }
  0x9c   : > { %v2113_v51 = vpop.eup %1737  ;;  %v502_v61 = vmul.f32 %v2101_v42, %v501_v49  ;;  %v451_v62 = vmul.f32 %v2111_v50, %v2088_v32  ;;  %1741 = vrsqrt.f32 %v2121_v59  ;;  %v781_v49 = vmul.f32 %v728_v41, %v2064_v53  ;;  %vm2243_vm7 = vmor %vm526_vm14, %vm527_vm3 }
  0x9d   : > { %v730_v3 = vmul.f32 %v2113_v51, %v2091_v33  ;;  %v522_v4 = vmul.f32 %v2103_v45, %v521_v52  ;;  %1743 = vrsqrt.f32 %v2131_v5  ;;  %v2161_v52 = vpop.eup %1739  ;;  %vm736_vm5 = vweird.f32 %v2113_v51 }
  0x9e   : > { %v503_v15 = vmul.f32 0.5, %v502_v61  ;;  %v452_v22 = vmul.f32 %v2111_v50, %v451_v62  ;;  %v857_v57 = vpack.c.bf16 %v781_v49, %v781_v49  ;;  %v515_v61 = vmul.f32 %v2095_v35, %v514_v44  ;;  %vm2266_vm8 = vmor %vm735_vm4, %vm736_vm5 }
  0x9f   : > { %v731_v26 = vmul.f32 %v2113_v51, %v730_v3  ;;  %v523_v34 = vmul.f32 0.5, %v522_v4  ;;  %v495_v62 = vmul.f32 %v2098_v39, %v494_v46  ;;  %vm457_vm6 = vweird.f32 %v2111_v50 }
  0xa0   : > { %v427_v63 = vpop.xlane.xlu0 %426  ;;  %v430_v8 = vpop.xlane.xlu1 %429  ;;  %v504_v55 = vsub.f32 1.5, %v503_v15  ;;  %v453_v56 = vmul.f32 0.5, %v452_v22  ;;  %v923_v17 = vsel %vm871_vm10, %v857_v57, 0  ;;  %v2212_v22 = vsel %vm634_vm1, %v626_v31, 0.0  ;;  %vm2279_vm9 = vmor %vm456_vm13, %vm457_vm6 }
  0xa1   : > { %v433_v60 = vpop.xlane.xlu2 %432  ;;  %v2144_v21 = vmax.f32 %v427_v63, 1e-24  ;;  %v2147_v25 = vmax.f32 %v430_v8, 1e-24  ;;  %v732_v53 = vmul.f32 0.5, %v731_v26  ;;  %v461_v63 = vmul.f32 %v2161_v52, %v2117_v54  ;;  %932 = vmatpush.bf16.msra.mxu2 %v923_v17 }
  0xa2   : > { %v2158_v47 = vmax.f32 %v433_v60, 1e-24  ;;  %v2166_v36 = vpop.eup %1741  ;;  %v524_v60 = vsub.f32 1.5, %v523_v34  ;;  %v505_v8 = vmul.f32 %v2101_v42, %v504_v55  ;;  %v454_v9 = vsub.f32 1.5, %v453_v56 }
  0xa3   : > { %1745 = vrsqrt.f32 %v2144_v21  ;;  %v2176_v3 = vpop.eup %1743  ;;  %v571_v10 = vmul.f32 %v2166_v36, %v2121_v59  ;;  %v733_v24 = vsub.f32 1.5, %v732_v53  ;;  %v519_v34 = vsel %vm2205_vm2, %v2095_v35, %v515_v61 }
  0xa4   : > { %1747 = vrsqrt.f32 %v2147_v25  ;;  %v525_v15 = vmul.f32 %v2103_v45, %v524_v60  ;;  %v499_v41 = vsel %vm2183_vm12, %v2098_v39, %v495_v62  ;;  %v462_v44 = vmul.f32 %v2161_v52, %v461_v63 }
  0xa5   : > { %1749 = vrsqrt.f32 %v2153_v38  ;;  %v481_v46 = vmul.f32 %v2176_v3, %v2131_v5  ;;  %v509_v31 = vsel %vm2196_vm15, %v2101_v42, %v505_v8  ;;  %v572_v55 = vmul.f32 %v2166_v36, %v571_v10 }
  0xa6   : > { %1751 = vrsqrt.f32 %v2158_v47  ;;  %v2236_v39 = vmul.f32 %v2111_v50, %v454_v9  ;;  %v636_v60 = vrot.slane %v2212_v22, 4  ;;  %v529_v53 = vsel %vm2243_vm7, %v2103_v45, %v525_v15 }
  0xa7   : > { %v614_v27 = vmul.f32 %v499_v41, %v1953_v1  ;;  %v734_v62 = vmul.f32 %v2113_v51, %v733_v24  ;;  %v463_v63 = vmul.f32 0.5, %v462_v44  ;;  %v482_v4 = vmul.f32 %v2176_v3, %v481_v46 }
  0xa8   : > { %v615_v10 = vmul.f32 %v509_v31, %v1968_v7  ;;  %v616_v9 = vmul.f32 %v519_v34, %v1950_v0  ;;  %v573_v16 = vmul.f32 0.5, %v572_v55  ;;  %v617_v24 = vmul.f32 %v529_v53, %v1965_v6  ;;  %v2456_v0 = vld [vmem:[%s2061_s18 + $0x20] sm:$0xff] }
  0xa9   : > { %v412_v23 = vpop.xlane.xlu2 %411  ;;  %v2201_v13 = vpop.eup %1745  ;;  %v459_v34 = vsel %vm2279_vm9, %v2111_v50, %v2236_v39  ;;  %vm467_vm11 = vweird.f32 %v2161_v52  ;;  %v464_v46 = vsub.f32 1.5, %v463_v63  ;;  %v483_v31 = vmul.f32 0.5, %v482_v4 }
  0xaa   : > { %v2214_v26 = vpop.eup %1747  ;;  %v581_v42 = vmul.f32 %v2201_v13, %v2144_v21  ;;  %v2284_v33 = vmax.f32 %v412_v23, 1e-24  ;;  %v738_v23 = vsel %vm2266_vm8, %v2113_v51, %v734_v62  ;;  %vm466_vm12 = vweird.f32 %v2117_v54 }
  0xab   : > { %v2225_v49 = vpop.eup %1749  ;;  %v591_v61 = vmul.f32 %v2214_v26, %v2147_v25  ;;  %vm476_vm13 = vweird.f32 %v2153_v38  ;;  %v782_v62 = vmul.f32 %v738_v23, %v2070_v58  ;;  %vm486_vm14 = vweird.f32 %v2131_v5  ;;  %vm2339_vm7 = vmor %vm466_vm12, %vm467_vm11 }
  0xac   : > { %v2233_v35 = vpop.eup %1751  ;;  %v471_v1 = vmul.f32 %v2225_v49, %v2153_v38  ;;  %v582_v7 = vmul.f32 %v2201_v13, %v581_v42  ;;  %v574_v42 = vsub.f32 1.5, %v573_v16  ;;  %1753 = vrsqrt.f32 %v2284_v33 }
  0xad   : > { %v601_v17 = vmul.f32 %v2233_v35, %v2158_v47  ;;  %v592_v32 = vmul.f32 %v2214_v26, %v591_v61  ;;  %vm487_vm15 = vweird.f32 %v2176_v3  ;;  %vm576_vm2 = vweird.f32 %v2121_v59 }
  0xae   : > { %v472_v56 = vmul.f32 %v2225_v49, %v471_v1  ;;  %vm577_vm3 = vweird.f32 %v2166_v36  ;;  %v575_v45 = vmul.f32 %v2166_v36, %v574_v42  ;;  %v484_v16 = vsub.f32 1.5, %v483_v31 }
  0xaf   : > { %v602_v53 = vmul.f32 %v2233_v35, %v601_v17  ;;  %v593_v63 = vmul.f32 0.5, %v592_v32  ;;  %v637_v23 = vadd.f32 %v636_v60, %v2212_v22  ;;  %vm2323_vm4 = vmor %vm576_vm2, %vm577_vm3  ;;  %vm586_vm5 = vweird.f32 %v2144_v21 }
  0xb0   : > { %vm587_vm6 = vweird.f32 %v2201_v13  ;;  %v579_v59 = vsel %vm2323_vm4, %v2166_v36, %v575_v45  ;;  %vm477_vm8 = vweird.f32 %v2225_v49  ;;  %vm596_vm2 = vweird.f32 %v2147_v25  ;;  %vm2373_vm3 = vmor %vm486_vm14, %vm487_vm15 }
  0xb1   : > { %v415_v8 = vpop.xlane.xlu2 %414  ;;  %v603_v58 = vmul.f32 0.5, %v602_v53  ;;  %v638_v36 = vrot.slane %v637_v23, 2  ;;  %vm597_vm11 = vweird.f32 %v2214_v26  ;;  %vm2356_vm12 = vmor %vm586_vm5, %vm587_vm6  ;;  %v622_v45 = vmul.f32 %v579_v59, %v1992_v20  ;;  %v2399_v20 = vld [vmem:[%s2061_s18 + $0x38] sm:$0xff] }
  0xb2   : > { %v2294_v41 = vmax.f32 %v415_v8, 1e-24  ;;  %vm2391_vm14 = vmor %vm476_vm13, %vm477_vm8  ;;  %vm606_vm15 = vweird.f32 %v2158_v47  ;;  %vm607_vm4 = vweird.f32 %v2233_v35  ;;  %v610_v59 = vmul.f32 %v459_v34, %v1956_v2 }
  0xb3   : > { %v2249_v57 = vpop.permute.xlu0 %808  ;;  %v604_v22 = vsub.f32 1.5, %v603_v58  ;;  %v639_v58 = vadd.f32 %v638_v36, %v637_v23  ;;  %vm2405_vm5 = vmor %vm596_vm2, %vm597_vm11  ;;  %vm536_vm8 = vweird.f32 %v2284_v33 }
  0xb4   : > { %v819_v14 = vmul.f32 %v2249_v57, %v614_v27  ;;  %v820_v15 = vmul.f32 %v2249_v57, %v615_v10  ;;  %v583_v27 = vmul.f32 0.5, %v582_v7  ;;  %1755 = vrsqrt.f32 %v2294_v41  ;;  %vm2425_vm13 = vmor %vm606_vm15, %vm607_vm4 }
  0xb5   : > { %v2312_v10 = vmul.f32 %v2161_v52, %v464_v46  ;;  %v858_v7 = vpack.c.bf16 %v782_v62, %v782_v62  ;;  %v2319_v46 = vpop.eup %1753  ;;  %vm546_vm9 = vweird.f32 %v2294_v41 }
  0xb6   : > { %v843_v61 = vpack.c.bf16 %v819_v14, %v819_v14  ;;  %v844_v51 = vpack.c.bf16 %v820_v15, %v820_v15  ;;  %v584_v17 = vsub.f32 1.5, %v583_v27  ;;  %v594_v15 = vsub.f32 1.5, %v593_v63 }
  0xb7   : > { %v531_v63 = vmul.f32 %v2319_v46, %v2284_v33 }
  0xb8   : > { %v2296_v44 = vpop.permute.xlu1 %812  ;;  %v916_v1 = vunpack.c.l.b16 %v843_v61  ;;  %v917_v14 = vunpack.c.l.b16 %v844_v51  ;;  %v585_v27 = vmul.f32 %v2201_v13, %v584_v17  ;;  %v2348_v51 = vmul.f32 %v2176_v3, %v484_v16  ;;  %v2481_v16 = vld [vmem:[%s2061_s18 + $0x28] sm:$0xff] }
  0xb9   : > { %v821_v6 = vmul.f32 %v2296_v44, %v616_v9  ;;  %v822_v55 = vmul.f32 %v2296_v44, %v617_v24  ;;  %v473_v9 = vmul.f32 0.5, %v472_v56  ;;  %v418_v31 = vpop.xlane.xlu2 %417  ;;  %v948_v56 = vsel %vm871_vm10, %v858_v7, 0 }
  0xba   : > { %v2330_v42 = vpop.eup %1755  ;;  %957 = vmatpush.bf16.msra.mxu3 %v948_v56  ;;  %v595_v62 = vmul.f32 %v2214_v26, %v594_v15  ;;  %v589_v38 = vsel %vm2356_vm12, %v2201_v13, %v585_v27  ;;  %v827_v17 = vmul.f32 %v2249_v57, %v622_v45  ;;  %v489_v7 = vsel %vm2373_vm3, %v2176_v3, %v2348_v51 }
  0xbb   : > { %v845_v4 = vpack.c.bf16 %v821_v6, %v821_v6  ;;  %v846_v8 = vpack.c.bf16 %v822_v55, %v822_v55  ;;  %v918_v55 = vpack.c.b16 %v917_v14, %v916_v1  ;;  %v474_v53 = vsub.f32 1.5, %v473_v9  ;;  %v2382_v1 = vld [vmem:[%s2061_s18 + $0x8] sm:$0xff] }
  0xbc   : > { %v541_v9 = vmul.f32 %v2330_v42, %v2294_v41  ;;  %v640_v14 = vrot.slane %v639_v58, 1  ;;  %v599_v25 = vsel %vm2405_vm5, %v2214_v26, %v595_v62  ;;  %v532_v15 = vmul.f32 %v2319_v46, %v531_v63 }
  0xbd   : > { %v941_v24 = vunpack.c.l.b16 %v845_v4  ;;  %v942_v32 = vunpack.c.l.b16 %v846_v8  ;;  %1658 = vmatmul.msk.bf16.vlgmr.msra.gmra.mxu2 %vm385_vm0, %v918_v55  ;;  %v2363_v4 = vld [vmem:[%s2061_s18 + $0x30] sm:$0xff]  ;;  %v469_v8 = vsel %vm2339_vm7, %v2161_v52, %v2312_v10  ;;  %v2385_v52 = vmul.f32 %v2225_v49, %v474_v53  ;;  %s2857_s18 = scalar_lea.vmem %s2954_s2, %s1941_s28 }
  0xbe   : > { %v605_v10 = vmul.f32 %v2233_v35, %v604_v22  ;;  %v632_v47 = vmul.f32 %v2363_v4, %v2363_v4  ;;  %v627_v13 = vmul.f32 %v2382_v1, %v2382_v1  ;;  %v641_v23 = vadd.f32 %v640_v14, %v639_v58 }
  0xbf   : > { %v943_v60 = vpack.c.b16 %v942_v32, %v941_v24  ;;  %v542_v32 = vmul.f32 %v2330_v42, %v541_v9  ;;  %v633_v55 = vmul.f32 %v2399_v20, %v2399_v20  ;;  %v479_v26 = vsel %vm2391_vm14, %v2225_v49, %v2385_v52 }
  0xc0   : > { %v677_v6 = vsel %vm634_vm1, %v632_v47, 0.0  ;;  %v609_v56 = vsel %vm2425_vm13, %v2233_v35, %v605_v10  ;;  %v623_v53 = vmul.f32 %v589_v38, %v2007_v29  ;;  %v851_v22 = vpack.c.bf16 %v827_v17, %v827_v17  ;;  %v2472_v9 = vpop.permute.xlu1 %800 }
  0xc1   : > { %1659 = vmatmul.msk.bf16.vlgmr.msra.gmra.mxu3 %vm385_vm0, %v943_v60  ;;  %v421_v60 = vpop.xlane.xlu2 %420  ;;  %v2447_v61 = vmax.f32 %v641_v23, 1e-24  ;;  %v678_v27 = vrot.slane %v677_v6, 4  ;;  %v642_v36 = vsel %vm634_vm1, %v627_v13, 0.0  ;;  %v624_v62 = vmul.f32 %v599_v25, %v2004_v28 }
  0xc2   : > { %v2451_v54 = vmax.f32 %v418_v31, 1e-24  ;;  %v611_v29 = vmul.f32 %v469_v8, %v1974_v11  ;;  %v684_v35 = vsel %vm634_vm1, %v633_v55, 0.0  ;;  %v2458_v63 = vmul.f32 0.5, %v532_v15 }
  0xc3   : > { %v543_v2 = vmul.f32 0.5, %v542_v32  ;;  %v625_v50 = vmul.f32 %v609_v56, %v2010_v30  ;;  %1757 = vrsqrt.f32 %v2447_v61  ;;  %v2463_v39 = vmul.f32 %v2249_v57, %v623_v53 }
  0xc4   : > { %v2465_v28 = vmax.f32 %v421_v60, 1e-24  ;;  %v679_v34 = vadd.f32 %v678_v27, %v677_v6  ;;  %v643_v31 = vrot.slane %v642_v36, 4  ;;  %v2467_v11 = vunpack.c.l.b16 %v851_v22 }
  0xc5   : > { %v2470_v8 = vmul.f32 %v2296_v44, %v624_v62  ;;  %v685_v45 = vrot.slane %v684_v35, 4  ;;  %v630_v30 = vmul.f32 %v2456_v0, %v2456_v0  ;;  %v2477_v58 = vmul.f32 %v2296_v44, %v625_v50 }
  0xc6   : > { %1759 = vrsqrt.f32 %v2451_v54  ;;  %v680_v57 = vrot.slane %v679_v34, 2  ;;  %v644_v10 = vadd.f32 %v643_v31, %v642_v36  ;;  %v534_v38 = vsub.f32 1.5, %v2458_v63 }
  0xc7   : > { %v544_v17 = vsub.f32 1.5, %v543_v2  ;;  %v686_v14 = vadd.f32 %v685_v45, %v684_v35  ;;  %v663_v47 = vsel %vm634_vm1, %v630_v30, 0.0  ;;  %v2486_v25 = vmul.f32 %v2472_v9, %v610_v59 }
  0xc8   : > { %1761 = vrsqrt.f32 %v2465_v28  ;;  %v681_v15 = vadd.f32 %v680_v57, %v679_v34  ;;  %v645_v44 = vrot.slane %v644_v10, 2  ;;  %vm547_vm6 = vweird.f32 %v2330_v42 }
  0xc9   : > { %v1758_v13 = vpop.eup %1757  ;;  %v687_v24 = vrot.slane %v686_v14, 2  ;;  %v664_v32 = vrot.slane %v663_v47, 4  ;;  %v631_v23 = vmul.f32 %v2481_v16, %v2481_v16  ;;  %v852_v6 = vpack.c.bf16 %v2463_v39, %v2463_v39  ;;  %vm2534_vm15 = vmor %vm546_vm9, %vm547_vm6 }
  0xca   : > { %v853_v55 = vpack.c.bf16 %v2470_v8, %v2470_v8  ;;  %v700_v56 = vmul.f32 %v1758_v13, %v2447_v61  ;;  %v682_v53 = vrot.slane %v681_v15, 1  ;;  %vm537_vm7 = vweird.f32 %v2319_v46 }
  0xcb   : > { %v854_v59 = vpack.c.bf16 %v2477_v58, %v2477_v58  ;;  %v816_v22 = vmul.f32 %v2472_v9, %v611_v29  ;;  %v646_v60 = vadd.f32 %v645_v44, %v644_v10  ;;  %v688_v27 = vadd.f32 %v687_v24, %v686_v14  ;;  %vm2558_vm4 = vmor %vm536_vm8, %vm537_vm7 }
  0xcc   : > { %v2502_v36 = vpop.eup %1759  ;;  %v545_v62 = vmul.f32 %v2330_v42, %v544_v17  ;;  %v839_v35 = vpack.c.bf16 %v2486_v25, %v2486_v25  ;;  %v701_v63 = vmul.f32 %v1758_v13, %v700_v56  ;;  %v683_v2 = vadd.f32 %v682_v53, %v681_v15 }
  0xcd   : > { %v647_v50 = vrot.slane %v646_v60, 1  ;;  %v689_v39 = vrot.slane %v688_v27, 1  ;;  %v665_v34 = vadd.f32 %v664_v32, %v663_v47  ;;  %v670_v31 = vsel %vm634_vm1, %v631_v23, 0.0 }
  0xce   : > { %v2509_v8 = vpop.eup %1761  ;;  %v702_v29 = vmul.f32 0.5, %v701_v63  ;;  %vm705_vm2 = vweird.f32 %v2447_v61  ;;  %vm706_vm11 = vweird.f32 %v1758_v13  ;;  %v2512_v45 = vmax.f32 %v683_v2, 1e-24 }
  0xcf   : > { %v551_v30 = vmul.f32 %v2502_v36, %v2451_v54  ;;  %v648_v58 = vadd.f32 %v647_v50, %v646_v60  ;;  %v690_v57 = vadd.f32 %v689_v39, %v688_v27  ;;  %v666_v10 = vrot.slane %v665_v34, 2  ;;  %vm2519_vm12 = vmor %vm705_vm2, %vm706_vm11  ;;  %v2552_v39 = vpop.permute.xlu2 %804 }
  0xd0   : > { %v840_v17 = vpack.c.bf16 %v816_v22, %v816_v22  ;;  %v703_v14 = vsub.f32 1.5, %v702_v29  ;;  %1763 = vrsqrt.f32 %v2512_v45  ;;  %v671_v47 = vrot.slane %v670_v31, 4 }
  0xd1   : > { %v561_v25 = vmul.f32 %v2509_v8, %v2465_v28  ;;  %v2523_v61 = vmax.f32 %v648_v58, 1e-24  ;;  %v2525_v44 = vmax.f32 %v690_v57, 1e-24  ;;  %v667_v24 = vadd.f32 %v666_v10, %v665_v34 }
  0xd2   : > { %v2528_v32 = vmul.f32 %v2319_v46, %v534_v38  ;;  %v2538_v56 = vunpack.c.l.b16 %v852_v6  ;;  %v704_v53 = vmul.f32 %v1758_v13, %v703_v14  ;;  %v672_v22 = vadd.f32 %v671_v47, %v670_v31 }
  0xd3   : > { %v549_v60 = vsel %vm2534_vm15, %v2330_v42, %v545_v62  ;;  %v2543_v27 = vunpack.c.l.b16 %v853_v55  ;;  %v552_v38 = vmul.f32 %v2502_v36, %v551_v30  ;;  %1765 = vrsqrt.f32 %v2523_v61 }
  0xd4   : > { %v708_v41 = vsel %vm2519_vm12, %v1758_v13, %v704_v53  ;;  %1767 = vrsqrt.f32 %v2525_v44  ;;  %v668_v63 = vrot.slane %v667_v24, 1  ;;  %v673_v6 = vrot.slane %v672_v22, 2 }
  0xd5   : > { %v562_v2 = vmul.f32 %v2509_v8, %v561_v25  ;;  %v779_v50 = vmul.f32 %v708_v41, %v2135_v12  ;;  %v865_v42 = vunpack.c.l.b16 %v839_v35  ;;  %v866_v55 = vunpack.c.l.b16 %v840_v17 }
  0xd6   : > { %v1764_v62 = vpop.eup %1763  ;;  %v2562_v13 = vunpack.c.l.b16 %v854_v59  ;;  %v612_v12 = vmul.f32 %v479_v26, %v1989_v19  ;;  %v669_v35 = vadd.f32 %v668_v63, %v667_v24  ;;  %v674_v31 = vadd.f32 %v673_v6, %v672_v22 }
  0xd7   : > { %v539_v33 = vsel %vm2558_vm4, %v2319_v46, %v2528_v32  ;;  %v619_v29 = vmul.f32 %v549_v60, %v2028_v40  ;;  %v855_v30 = vpack.c.bf16 %v779_v50, %v779_v50  ;;  %v760_v59 = vmul.f32 %v1764_v62, %v2512_v45 }
  0xd8   : > { %v553_v58 = vmul.f32 0.5, %v552_v38  ;;  %v817_v57 = vmul.f32 %v2552_v39, %v612_v12  ;;  %v2577_v5 = vmax.f32 %v669_v35, 1e-24  ;;  %v675_v10 = vrot.slane %v674_v31, 1  ;;  %v831_v35 = vld [vmem:[%s2956_s4] sm:$0xff] }
  0xd9   : > { %v1766_v49 = vpop.eup %1765  ;;  %v563_v19 = vmul.f32 0.5, %v562_v2  ;;  %v873_v52 = vsel %vm871_vm10, %v855_v30, 0  ;;  %v867_v26 = vpack.c.b16 %v866_v55, %v865_v42  ;;  %v761_v17 = vmul.f32 %v1764_v62, %v760_v59 }
  0xda   : > { %v1768_v14 = vpop.eup %1767  ;;  %882 = vmatpush.bf16.msra.mxu0 %v873_v52  ;;  %v613_v40 = vmul.f32 %v489_v7, %v1986_v18  ;;  %vm765_vm14 = vweird.f32 %v2512_v45  ;;  %v710_v46 = vmul.f32 %v1766_v49, %v2523_v61  ;;  %1769 = vrsqrt.f32 %v2577_v5 }
  0xdb   : > { %v762_v47 = vmul.f32 0.5, %v761_v17  ;;  %vm766_vm5 = vweird.f32 %v1764_v62  ;;  %v770_v25 = vmul.f32 %v1768_v14, %v2525_v44  ;;  %v676_v15 = vadd.f32 %v675_v10, %v674_v31 }
  0xdc   : > { %v554_v24 = vsub.f32 1.5, %v553_v58  ;;  %v818_v32 = vmul.f32 %v2552_v39, %v613_v40  ;;  %v841_v23 = vpack.c.bf16 %v817_v57, %v817_v57  ;;  %v711_v21 = vmul.f32 %v1766_v49, %v710_v46  ;;  %vm2597_vm3 = vmor %vm765_vm14, %vm766_vm5 }
  0xdd   : > { %vm556_vm13 = vweird.f32 %v2451_v54  ;;  %v564_v3 = vsub.f32 1.5, %v563_v19  ;;  %1656 = vmatmul.msk.bf16.vlgmr.msra.gmra.mxu0 %vm385_vm0, %v867_v26  ;;  %v763_v18 = vsub.f32 1.5, %v762_v47  ;;  %v771_v51 = vmul.f32 %v1768_v14, %v770_v25 }
  0xde   : > { %v2593_v7 = vmax.f32 %v676_v15, 1e-24  ;;  %v712_v22 = vmul.f32 0.5, %v711_v21  ;;  %vm715_vm9 = vweird.f32 %v2523_v61  ;;  %vm716_vm6 = vweird.f32 %v1766_v49 }
  0xdf   : > { %vm775_vm7 = vweird.f32 %v2525_v44  ;;  %v764_v60 = vmul.f32 %v1764_v62, %v763_v18  ;;  %v772_v38 = vmul.f32 0.5, %v771_v51  ;;  %vm776_vm8 = vweird.f32 %v1768_v14  ;;  %vm2609_vm11 = vmor %vm715_vm9, %vm716_vm6 }
  0xe0   : > { %1771 = vrsqrt.f32 %v2593_v7  ;;  %v1770_v41 = vpop.eup %1769  ;;  %vm557_vm2 = vweird.f32 %v2502_v36  ;;  %v618_v45 = vmul.f32 %v539_v33, %v2022_v37  ;;  %v842_v63 = vpack.c.bf16 %v818_v32, %v818_v32  ;;  %vm2620_vm15 = vmor %vm775_vm7, %vm776_vm8 }
  0xe1   : > { %v713_v6 = vsub.f32 1.5, %v712_v22  ;;  %v824_v2 = vmul.f32 %v2472_v9, %v619_v29  ;;  %v768_v61 = vsel %vm2597_vm3, %v1764_v62, %v764_v60  ;;  %v773_v42 = vsub.f32 1.5, %v772_v38  ;;  %vm2635_vm5 = vmor %vm556_vm13, %vm557_vm2 }
  0xe2   : > { %v740_v55 = vmul.f32 %v1770_v41, %v2577_v5  ;;  %v555_v34 = vmul.f32 %v2502_v36, %v554_v24  ;;  %vm567_vm12 = vweird.f32 %v2509_v8  ;;  %v785_v37 = vmul.f32 %v768_v61, %v2363_v4 }
  0xe3   : > { %v714_v12 = vmul.f32 %v1766_v49, %v713_v6  ;;  %v565_v62 = vmul.f32 %v2509_v8, %v564_v3  ;;  %v774_v31 = vmul.f32 %v1768_v14, %v773_v42  ;;  %v891_v33 = vunpack.c.l.b16 %v841_v23 }
  0xe4   : > { %v741_v29 = vmul.f32 %v1770_v41, %v740_v55  ;;  %v861_v30 = vpack.c.bf16 %v785_v37, %v785_v37  ;;  %v892_v58 = vunpack.c.l.b16 %v842_v63  ;;  %vm745_vm4 = vweird.f32 %v2577_v5 }
  0xe5   : > { %v718_v59 = vsel %vm2609_vm11, %v1766_v49, %v714_v12  ;;  %v778_v44 = vsel %vm2620_vm15, %v1768_v14, %v774_v31  ;;  %vm746_vm14 = vweird.f32 %v1770_v41  ;;  %vm566_vm3 = vweird.f32 %v2465_v28 }
  0xe6   : > { %v1772_v4 = vpop.eup %1771  ;;  %v780_v57 = vmul.f32 %v718_v59, %v2382_v1  ;;  %v742_v10 = vmul.f32 0.5, %v741_v29  ;;  %v1023_v49 = vsel %vm871_vm10, %v861_v30, 0  ;;  %v786_v52 = vmul.f32 %v778_v44, %v2399_v20  ;;  %vm2646_vm9 = vmor %vm566_vm3, %vm567_vm12  ;;  %v832_v29 = vld [vmem:[%s2956_s4 + $0x8] sm:$0xff] }
  0xe7   : > { %v750_v1 = vmul.f32 %v1772_v4, %v2593_v7  ;;  %v823_v26 = vmul.f32 %v2472_v9, %v618_v45  ;;  %1032 = vmatpush.bf16.msrb.mxu2 %v1023_v49  ;;  %v1018_v54 = vpack.c.b16 %v2538_v56, %v2467_v11  ;;  %v848_v40 = vpack.c.bf16 %v824_v2, %v824_v2  ;;  %vm2658_vm13 = vmor %vm745_vm4, %vm746_vm14 }
  0xe8   : > { %v856_v14 = vpack.c.bf16 %v780_v57, %v780_v57  ;;  %v743_v28 = vsub.f32 1.5, %v742_v10  ;;  %v569_v20 = vsel %vm2646_vm9, %v2509_v8, %v565_v62  ;;  %v862_v46 = vpack.c.bf16 %v786_v52, %v786_v52  ;;  %v838_v57 = vld [vmem:[%s2956_s4 + $0x38] sm:$0xff]  ;;  %v833_v10 = vld [vmem:[%s2956_s4 + $0x10] sm:$0xff] }
  0xe9   : > { %v751_v47 = vmul.f32 %v1772_v4, %v750_v1  ;;  %v559_v11 = vsel %vm2635_vm5, %v2502_v36, %v555_v34  ;;  %v893_v25 = vpack.c.b16 %v892_v58, %v891_v33  ;;  %vm755_vm6 = vweird.f32 %v2593_v7 }
  0xea   : > { %v898_v56 = vsel %vm871_vm10, %v856_v14, 0  ;;  %v744_v15 = vmul.f32 %v1770_v41, %v743_v28  ;;  %1662 = vmatmul.msk.bf16.vlgmr.msrb.gmra.mxu2 %vm385_vm0, %v1018_v54  ;;  %v1048_v8 = vsel %vm871_vm10, %v862_v46, 0  ;;  %vm756_vm7 = vweird.f32 %v1772_v4  ;;  %v836_v54 = vld [vmem:[%s2956_s4 + $0x28] sm:$0xff] }
  0xeb   : > { %907 = vmatpush.bf16.msra.mxu1 %v898_v56  ;;  %v752_v24 = vmul.f32 0.5, %v751_v47  ;;  %v621_v5 = vmul.f32 %v569_v20, %v2046_v48  ;;  %1057 = vmatpush.bf16.msrb.mxu3 %v1048_v8  ;;  %v847_v36 = vpack.c.bf16 %v823_v26, %v823_v26  ;;  %v1043_v23 = vpack.c.b16 %v2562_v13, %v2543_v27  ;;  %vm757_vm8 = vmor %vm755_vm6, %vm756_vm7 }
  0xec   : > { %v748_v32 = vsel %vm2658_vm13, %v1770_v41, %v744_v15  ;;  %v620_v18 = vmul.f32 %v559_v11, %v2034_v43  ;;  %v967_v51 = vunpack.c.l.b16 %v848_v40  ;;  %v834_v40 = vld [vmem:[%s2956_s4 + $0x18] sm:$0xff] }
  0xed   : > { %v783_v21 = vmul.f32 %v748_v32, %v2456_v0  ;;  %v753_v3 = vsub.f32 1.5, %v752_v24  ;;  %v826_v53 = vmul.f32 %v2552_v39, %v621_v5  ;;  %v966_v22 = vunpack.c.l.b16 %v847_v36 }
  0xee   : > { %1657 = vmatmul.msk.bf16.vlgmr.msra.gmra.mxu1 %vm385_vm0, %v893_v25  ;;  %1663 = vmatmul.msk.bf16.vlgmr.msrb.gmra.mxu3 %vm385_vm0, %v1043_v23  ;;  %v825_v27 = vmul.f32 %v2552_v39, %v620_v18  ;;  %v835_v39 = vld [vmem:[%s2956_s4 + $0x20] sm:$0xff] }
  0xef   : > { %v859_v48 = vpack.c.bf16 %v783_v21, %v783_v21  ;;  %v754_v7 = vmul.f32 %v1772_v4, %v753_v3  ;;  %v968_v43 = vpack.c.b16 %v967_v51, %v966_v22  ;;  %v850_v13 = vpack.c.bf16 %v826_v53, %v826_v53 }
  0xf0   : > { %v849_v45 = vpack.c.bf16 %v825_v27, %v825_v27 }
  0xf1   : > { %v973_v60 = vsel %vm871_vm10, %v859_v48, 0  ;;  %v758_v38 = vsel %vm757_vm8, %v1772_v4, %v754_v7  ;;  %v992_v6 = vunpack.c.l.b16 %v850_v13 }
  0xf2   : > { %982 = vmatpush.bf16.msrb.mxu0 %v973_v60  ;;  %v784_v0 = vmul.f32 %v758_v38, %v2481_v16  ;;  %v991_v2 = vunpack.c.l.b16 %v849_v45  ;;  %v837_v16 = vld [vmem:[%s2956_s4 + $0x30] sm:$0xff] }
  0xf4   : > { %v860_v41 = vpack.c.bf16 %v784_v0, %v784_v0  ;;  %v993_v61 = vpack.c.b16 %v992_v6, %v991_v2 }
  0xf5   : > { %1660 = vmatmul.msk.bf16.vlgmr.msrb.gmra.mxu0 %vm385_vm0, %v968_v43 }
  0xf6   : > { %v998_v63 = vsel %vm871_vm10, %v860_v41, 0 }
  0xf7   : > { %1007 = vmatpush.bf16.msrb.mxu1 %v998_v63 }
  0xfe   : > { %1661 = vmatmul.msk.bf16.vlgmr.msrb.gmra.mxu1 %vm385_vm0, %v993_v61 }
 0x140   : > { %v934_v50 = vpop.f32.mrf.mxu2 }
 0x141   : > { %v2691_v42 = vadd.f32 %v934_v50, %v835_v39 }
 0x143   : > { %v1076_v34 = vsel %vm634_vm1, %v2691_v42, -inf }
 0x144   : > { %v959_v55 = vpop.f32.mrf.mxu3  ;;  %1077 = vmax.xlane.f32.xlu1 %v1076_v34 }
 0x145   : > { %v2695_v37 = vadd.f32 %v959_v55, %v837_v16 }
 0x147   : > { %v1082_v12 = vsel %vm634_vm1, %v2695_v37, -inf }
 0x148   : > { %1083 = vmax.xlane.f32.xlu2 %v1082_v12  ;;  %v936_v59 = vpop.f32.mrf.mxu2 }
 0x149   : > { %v2737_v20 = vadd.f32 %v936_v59, %v836_v54 }
 0x14b   : > { %v1079_v56 = vsel %vm634_vm1, %v2737_v20, -inf }
 0x14c   : > { %v961_v44 = vpop.f32.mrf.mxu3 }
 0x14d   : > { %v2719_v19 = vadd.f32 %v961_v44, %v838_v57 }
 0x14f   : > { %v1085_v17 = vsel %vm634_vm1, %v2719_v19, -inf }
 0x15a   : > { %v884_v62 = vpop.f32.mrf.mxu0 }
 0x15b   : > { %v2702_v31 = vadd.f32 %v884_v62, %v831_v35 }
 0x15d   : > { %v1064_v33 = vsel %vm634_vm1, %v2702_v31, -inf }
 0x15e   : > { %1065 = vmax.xlane.f32.xlu0 %v1064_v33 }
 0x162   : > { %v886_v30 = vpop.f32.mrf.mxu0 }
 0x163   : > { %v2709_v58 = vadd.f32 %v886_v30, %v832_v29 }
 0x165   : > { %v1067_v4 = vsel %vm634_vm1, %v2709_v58, -inf }
 0x166   : > { %1068 = vmax.xlane.f32.xlu1 %v1067_v4 }
 0x16b   : > { %v909_v49 = vpop.f32.mrf.mxu1 }
 0x16c   : > { %v2721_v52 = vadd.f32 %v909_v49, %v833_v10 }
 0x16d   : > { %v1034_v1 = vpop.f32.mrf.mxu2 }
 0x16e   : > { %v1070_v26 = vsel %vm634_vm1, %v2721_v52, -inf  ;;  %v2730_v14 = vadd.f32 %v1034_v1, %v835_v39  ;;  %1086 = vmax.xlane.f32.xlu1 %v1085_v17 }
 0x16f   : > { %1071 = vmax.xlane.f32.xlu0 %v1070_v26 }
 0x170   : > { %v1100_v28 = vsel %vm634_vm1, %v2730_v14, -inf }
 0x171   : > { %1101 = vmax.xlane.f32.xlu2 %v1100_v28  ;;  %v1059_v46 = vpop.f32.mrf.mxu3 }
 0x172   : > { %v984_v11 = vpop.f32.mrf.mxu0  ;;  %v2745_v15 = vadd.f32 %v1059_v46, %v837_v16 }
 0x173   : > { %v911_v9 = vpop.f32.mrf.mxu1  ;;  %v2747_v8 = vadd.f32 %v984_v11, %v831_v35 }
 0x174   : > { %v2739_v47 = vadd.f32 %v911_v9, %v834_v40  ;;  %v1106_v21 = vsel %vm634_vm1, %v2745_v15, -inf }
 0x175   : > { %v1088_v23 = vsel %vm634_vm1, %v2747_v8, -inf  ;;  %v1036_v3 = vpop.f32.mrf.mxu2 }
 0x176   : > { %v1073_v25 = vsel %vm634_vm1, %v2739_v47, -inf  ;;  %v2759_v48 = vadd.f32 %v1036_v3, %v836_v54 }
 0x177   : > { %1080 = vmax.xlane.f32.xlu0 %v1079_v56  ;;  %1074 = vmax.xlane.f32.xlu1 %v1073_v25 }
 0x178   : > { %v1103_v22 = vsel %vm634_vm1, %v2759_v48, -inf }
 0x179   : > { %v1061_v24 = vpop.f32.mrf.mxu3 }
 0x17a   : > { %v2749_v5 = vadd.f32 %v1061_v24, %v838_v57  ;;  %v986_v18 = vpop.f32.mrf.mxu0 }
 0x17b   : > { %v1009_v32 = vpop.f32.mrf.mxu1  ;;  %v2761_v7 = vadd.f32 %v986_v18, %v832_v29 }
 0x17c   : > { %v1109_v36 = vsel %vm634_vm1, %v2749_v5, -inf  ;;  %v2757_v51 = vadd.f32 %v1009_v32, %v833_v10 }
 0x17d   : > { %1110 = vmax.xlane.f32.xlu2 %v1109_v36  ;;  %v1091_v60 = vsel %vm634_vm1, %v2761_v7, -inf }
 0x17e   : > { %v1094_v53 = vsel %vm634_vm1, %v2757_v51, -inf }
 0x17f   : > { %1089 = vmax.xlane.f32.xlu0 %v1088_v23  ;;  %1107 = vmax.xlane.f32.xlu1 %v1106_v21 }
 0x183   : > { %v1011_v38 = vpop.f32.mrf.mxu1 }
 0x184   : > { %v2769_v27 = vadd.f32 %v1011_v38, %v834_v40 }
 0x185   : > { %1095 = vmax.xlane.f32.xlu2 %v1094_v53 }
 0x186   : > { %v1097_v0 = vsel %vm634_vm1, %v2769_v27, -inf }
 0x187   : > { %1104 = vmax.xlane.f32.xlu0 %v1103_v22  ;;  %1092 = vmax.xlane.f32.xlu1 %v1091_v60 }
 0x18f   : > { %1098 = vmax.xlane.f32.xlu0 %v1097_v0 }
 0x1b7   : > { %v1078_v6 = vpop.xlane.xlu1 %1077 }
 0x1bb   : > { %v1084_v43 = vpop.xlane.xlu2 %1083 }
 0x1bc   : > { %v1118_v13 = vsub.f32 %v2695_v37, %v1084_v43 }
 0x1be   : > { %v1140_v41 = vmul.f32 1.442695, %v1118_v13 }
 0x1c0   : > { %1773 = vpow2.f32 %v1140_v41 }
 0x1c6   : > { %v2774_v45 = vpop.eup %1773 }
 0x1c7   : > { %v1178_v63 = vsel %vm634_vm1, %v2774_v45, 0.0 }
 0x1c8   : > { %1179 = vadd.xlane.f32.xlu0 %v1178_v63 }
 0x1d1   : > { %v1066_v2 = vpop.xlane.xlu0 %1065 }
 0x1d2   : > { %v1112_v61 = vsub.f32 %v2702_v31, %v1066_v2  ;;  %v1116_v31 = vsub.f32 %v2691_v42, %v1078_v6 }
 0x1d4   : > { %v1128_v39 = vmul.f32 1.442695, %v1112_v61  ;;  %v1136_v57 = vmul.f32 1.442695, %v1116_v31 }
 0x1d6   : > { %1775 = vpow2.f32 %v1128_v39 }
 0x1d9   : > { %v1069_v50 = vpop.xlane.xlu1 %1068 }
 0x1da   : > { %v1113_v16 = vsub.f32 %v2709_v58, %v1069_v50 }
 0x1dc   : > { %v2780_v55 = vpop.eup %1775  ;;  %v1130_v34 = vmul.f32 1.442695, %v1113_v16 }
 0x1dd   : > { %v1160_v37 = vsel %vm634_vm1, %v2780_v55, 0.0 }
 0x1de   : > { %1777 = vpow2.f32 %v1130_v34  ;;  %1161 = vadd.xlane.f32.xlu2 %v1160_v37 }
 0x1e1   : > { %v1087_v35 = vpop.xlane.xlu1 %1086 }
 0x1e2   : > { %v1072_v12 = vpop.xlane.xlu0 %1071  ;;  %v1119_v42 = vsub.f32 %v2719_v19, %v1087_v35 }
 0x1e3   : > { %v1114_v62 = vsub.f32 %v2721_v52, %v1072_v12 }
 0x1e4   : > { %v2785_v33 = vpop.eup %1777  ;;  %v1102_v30 = vpop.xlane.xlu2 %1101  ;;  %v1142_v28 = vmul.f32 1.442695, %v1119_v42  ;;  %v1261_v42 = vld [vmem:[%s2857_s18 + $0x28] sm:$0xff] }
 0x1e5   : > { %v1132_v29 = vmul.f32 1.442695, %v1114_v62  ;;  %v1124_v59 = vsub.f32 %v2730_v14, %v1102_v30  ;;  %v1163_v58 = vsel %vm634_vm1, %v2785_v33, 0.0  ;;  %v1257_v30 = vld [vmem:[%s2857_s18 + $0x8] sm:$0xff] }
 0x1e6   : > { %1164 = vadd.xlane.f32.xlu0 %v1163_v58  ;;  %v1273_v58 = vpack.c.bf16 %v1257_v30, %v1257_v30  ;;  %v1265_v30 = vld [vmem:[%s2857_s18 + $0x48] sm:$0xff] }
 0x1e7   : > { %1779 = vpow2.f32 %v1132_v29  ;;  %v1152_v4 = vmul.f32 1.442695, %v1124_v59  ;;  %v1256_v29 = vld [vmem:[%s2857_s18] sm:$0xff] }
 0x1e8   : > { %v1272_v59 = vpack.c.bf16 %v1256_v29, %v1256_v29 }
 0x1e9   : > { %1781 = vpow2.f32 %v1152_v4 }
 0x1ea   : > { %v1081_v44 = vpop.xlane.xlu0 %1080  ;;  %v1075_v10 = vpop.xlane.xlu1 %1074  ;;  %1783 = vpow2.f32 %v1136_v57  ;;  %v1295_v4 = vunpack.c.l.b16 %v1272_v59  ;;  %v1296_v57 = vunpack.c.l.b16 %v1273_v58 }
 0x1eb   : > { %v1117_v49 = vsub.f32 %v2737_v20, %v1081_v44  ;;  %v1115_v52 = vsub.f32 %v2739_v47, %v1075_v10 }
 0x1ec   : > { %v1297_v44 = vpack.c.b16 %v1296_v57, %v1295_v4 }
 0x1ed   : > { %v2793_v1 = vpop.eup %1779  ;;  %v1138_v26 = vmul.f32 1.442695, %v1117_v49  ;;  %v1134_v54 = vmul.f32 1.442695, %v1115_v52  ;;  %v1260_v52 = vld [vmem:[%s2857_s18 + $0x20] sm:$0xff] }
 0x1ee   : > { %v1166_v17 = vsel %vm634_vm1, %v2793_v1, 0.0  ;;  %1309 = vmatpush.bf16.msra.mxu0 %v1297_v44 }
 0x1ef   : > { %1785 = vpow2.f32 %v1138_v26  ;;  %1167 = vadd.xlane.f32.xlu1 %v1166_v17  ;;  %v2798_v14 = vpop.eup %1781  ;;  %v1276_v26 = vpack.c.bf16 %v1260_v52, %v1260_v52  ;;  %v1277_v17 = vpack.c.bf16 %v1261_v42, %v1261_v42  ;;  %v1281_v42 = vpack.c.bf16 %v1265_v30, %v1265_v30 }
 0x1f0   : > { %v1111_v40 = vpop.xlane.xlu2 %1110  ;;  %v1196_v20 = vsel %vm634_vm1, %v2798_v14, 0.0  ;;  %v2803_v19 = vpop.eup %1783  ;;  %1787 = vpow2.f32 %v1134_v54 }
 0x1f1   : > { %v1127_v46 = vsub.f32 %v2749_v5, %v1111_v40  ;;  %1197 = vadd.xlane.f32.xlu0 %v1196_v20  ;;  %1789 = vpow2.f32 %v1142_v28  ;;  %v1172_v32 = vsel %vm634_vm1, %v2803_v19, 0.0  ;;  %v1351_v54 = vunpack.c.l.b16 %v1276_v26 }
 0x1f2   : > { %v1090_v9 = vpop.xlane.xlu0 %1089  ;;  %v1108_v47 = vpop.xlane.xlu1 %1107  ;;  %v1352_v28 = vunpack.c.l.b16 %v1277_v17 }
 0x1f3   : > { %v1126_v11 = vsub.f32 %v2745_v15, %v1108_v47  ;;  %v1158_v56 = vmul.f32 1.442695, %v1127_v46  ;;  %v1120_v24 = vsub.f32 %v2747_v8, %v1090_v9  ;;  %v1262_v46 = vld [vmem:[%s2857_s18 + $0x30] sm:$0xff]  ;;  %v1263_v9 = vld [vmem:[%s2857_s18 + $0x38] sm:$0xff] }
 0x1f4   : > { %v1353_v40 = vpack.c.b16 %v1352_v28, %v1351_v54  ;;  %v1258_v47 = vld [vmem:[%s2857_s18 + $0x10] sm:$0xff]  ;;  %v1408_v28 = vunpack.c.l.b16 %v1281_v42 }
 0x1f5   : > { %v2806_v25 = vpop.eup %1785  ;;  %1791 = vpow2.f32 %v1158_v56  ;;  %v1156_v36 = vmul.f32 1.442695, %v1126_v11  ;;  %v1144_v21 = vmul.f32 1.442695, %v1120_v24  ;;  %v1278_v56 = vpack.c.bf16 %v1262_v46, %v1262_v46  ;;  %v1267_v46 = vld [vmem:[%s2857_s18 + $0x58] sm:$0xff] }
 0x1f6   : > { %v1175_v5 = vsel %vm634_vm1, %v2806_v25, 0.0  ;;  %v2813_v23 = vpop.eup %1787  ;;  %1365 = vmatpush.bf16.msra.mxu2 %v1353_v40  ;;  %v1279_v24 = vpack.c.bf16 %v1263_v9, %v1263_v9 }
 0x1f7   : > { %1173 = vadd.xlane.f32.xlu1 %v1172_v32  ;;  %1176 = vadd.xlane.f32.xlu2 %v1175_v5  ;;  %v2816_v22 = vpop.eup %1789  ;;  %1793 = vpow2.f32 %v1156_v36  ;;  %v1169_v0 = vsel %vm634_vm1, %v2813_v23, 0.0  ;;  %v1259_v32 = vld [vmem:[%s2857_s18 + $0x18] sm:$0xff]  ;;  %v1274_v5 = vpack.c.bf16 %v1258_v47, %v1258_v47 }
 0x1f8   : > { %v1096_v15 = vpop.xlane.xlu2 %1095  ;;  %1795 = vpow2.f32 %v1144_v21  ;;  %v1275_v36 = vpack.c.bf16 %v1259_v32, %v1259_v32  ;;  %v1379_v21 = vunpack.c.l.b16 %v1278_v56 }
 0x1f9   : > { %v1122_v3 = vsub.f32 %v2757_v51, %v1096_v15  ;;  %v1181_v51 = vsel %vm634_vm1, %v2816_v22, 0.0  ;;  %v1380_v15 = vunpack.c.l.b16 %v1279_v24 }
 0x1fa   : > { %v1105_v18 = vpop.xlane.xlu0 %1104  ;;  %v1093_v53 = vpop.xlane.xlu1 %1092 }
 0x1fb   : > { %v1121_v8 = vsub.f32 %v2761_v7, %v1093_v53  ;;  %v2819_v60 = vpop.eup %1791  ;;  %v1148_v38 = vmul.f32 1.442695, %v1122_v3  ;;  %v1125_v43 = vsub.f32 %v2759_v48, %v1105_v18  ;;  %v1323_v3 = vunpack.c.l.b16 %v1274_v5 }
 0x1fc   : > { %v1205_v13 = vsel %vm634_vm1, %v2819_v60, 0.0  ;;  %v1324_v53 = vunpack.c.l.b16 %v1275_v36  ;;  %v1283_v36 = vpack.c.bf16 %v1267_v46, %v1267_v46 }
 0x1fd   : > { %1797 = vpow2.f32 %v1148_v38  ;;  %1206 = vadd.xlane.f32.xlu0 %v1205_v13  ;;  %v1146_v7 = vmul.f32 1.442695, %v1121_v8  ;;  %v2828_v41 = vpop.eup %1793  ;;  %v1154_v63 = vmul.f32 1.442695, %v1125_v43  ;;  %v1381_v8 = vpack.c.b16 %v1380_v15, %v1379_v21 }
 0x1fe   : > { %v2830_v2 = vpop.eup %1795  ;;  %v1202_v48 = vsel %vm634_vm1, %v2828_v41, 0.0  ;;  %v1325_v38 = vpack.c.b16 %v1324_v53, %v1323_v3  ;;  %v1436_v53 = vunpack.c.l.b16 %v1283_v36 }
 0x1ff   : > { %1182 = vadd.xlane.f32.xlu1 %v1181_v51  ;;  %1170 = vadd.xlane.f32.xlu2 %v1169_v0  ;;  %1799 = vpow2.f32 %v1146_v7  ;;  %v1184_v16 = vsel %vm634_vm1, %v2830_v2, 0.0 }
 0x200   : > { %1801 = vpow2.f32 %v1154_v63  ;;  %1393 = vmatpush.bf16.msra.mxu3 %v1381_v8  ;;  %1337 = vmatpush.bf16.msra.mxu1 %v1325_v38 }
 0x202   : > { %v1099_v6 = vpop.xlane.xlu0 %1098 }
 0x203   : > { %v2832_v61 = vpop.eup %1797  ;;  %v1123_v39 = vsub.f32 %v2769_v27, %v1099_v6 }
 0x204   : > { %v1190_v50 = vsel %vm634_vm1, %v2832_v61, 0.0 }
 0x205   : > { %1191 = vadd.xlane.f32.xlu0 %v1190_v50  ;;  %v2841_v34 = vpop.eup %1799  ;;  %v1150_v37 = vmul.f32 1.442695, %v1123_v39  ;;  %v1268_v50 = vld [vmem:[%s2857_s18 + $0x60] sm:$0xff] }
 0x206   : > { %v2843_v12 = vpop.eup %1801  ;;  %v1187_v35 = vsel %vm634_vm1, %v2841_v34, 0.0 }
 0x207   : > { %1203 = vadd.xlane.f32.xlu2 %v1202_v48  ;;  %1185 = vadd.xlane.f32.xlu1 %v1184_v16  ;;  %1803 = vpow2.f32 %v1150_v37  ;;  %v1199_v27 = vsel %vm634_vm1, %v2843_v12, 0.0  ;;  %v1269_v16 = vld [vmem:[%s2857_s18 + $0x68] sm:$0xff]  ;;  %v1270_v37 = vld [vmem:[%s2857_s18 + $0x70] sm:$0xff] }
 0x208   : > { %v1286_v29 = vpack.c.bf16 %v1270_v37, %v1270_v37 }
 0x20d   : > { %v2849_v62 = vpop.eup %1803 }
 0x20e   : > { %v1193_v31 = vsel %vm634_vm1, %v2849_v62, 0.0 }
 0x20f   : > { %1188 = vadd.xlane.f32.xlu2 %v1187_v35  ;;  %1200 = vadd.xlane.f32.xlu1 %v1199_v27  ;;  %v1284_v35 = vpack.c.bf16 %v1268_v50, %v1268_v50  ;;  %v1285_v27 = vpack.c.bf16 %v1269_v16, %v1269_v16 }
 0x211   : > { %v1463_v57 = vunpack.c.l.b16 %v1284_v35  ;;  %v1464_v44 = vunpack.c.l.b16 %v1285_v27 }
 0x213   : > { %v1465_v17 = vpack.c.b16 %v1464_v44, %v1463_v57 }
 0x215   : > { %1477 = vmatpush.bf16.msrb.mxu2 %v1465_v17 }
 0x217   : > { %1194 = vadd.xlane.f32.xlu1 %v1193_v31  ;;  %v1271_v31 = vld [vmem:[%s2857_s18 + $0x78] sm:$0xff] }
 0x218   : > { %v1287_v59 = vpack.c.bf16 %v1271_v31, %v1271_v31 }
 0x21a   : > { %v1492_v52 = vunpack.c.l.b16 %v1287_v59 }
 0x23b   : > { %v1180_v10 = vpop.xlane.xlu0 %1179 }
 0x251   : > { %v1162_v49 = vpop.xlane.xlu2 %1161 }
 0x252   : > { %1805 = vrcp.f32 %v1162_v49  ;;  %v1491_v49 = vunpack.c.l.b16 %v1286_v29 }
 0x254   : > { %v1493_v54 = vpack.c.b16 %v1492_v52, %v1491_v49 }
 0x256   : > { %1505 = vmatpush.bf16.msrb.mxu3 %v1493_v54 }
 0x258   : > { %v1806_v11 = vpop.eup %1805 }
 0x259   : > { %v1165_v20 = vpop.xlane.xlu0 %1164  ;;  %v1224_v18 = vmul.f32 %v1806_v11, %v2780_v55 }
 0x25a   : > { %1807 = vrcp.f32 %v1165_v20  ;;  %v1266_v20 = vld [vmem:[%s2857_s18 + $0x50] sm:$0xff] }
 0x25b   : > { %v1240_v43 = vpack.c.bf16 %v1224_v18, %v1224_v18  ;;  %v1282_v24 = vpack.c.bf16 %v1266_v20, %v1266_v20 }
 0x25d   : > { %v1290_v63 = vunpack.c.l.b16 %v1240_v43  ;;  %v1435_v3 = vunpack.c.l.b16 %v1282_v24 }
 0x260   : > { %v1808_v0 = vpop.eup %1807 }
 0x261   : > { %v1225_v51 = vmul.f32 %v1808_v0, %v2785_v33  ;;  %v1264_v33 = vld [vmem:[%s2857_s18 + $0x40] sm:$0xff] }
 0x262   : > { %v1168_v13 = vpop.xlane.xlu1 %1167  ;;  %v1280_v58 = vpack.c.bf16 %v1264_v33, %v1264_v33 }
 0x263   : > { %v1241_v7 = vpack.c.bf16 %v1225_v51, %v1225_v51 }
 0x264   : > { %v1198_v4 = vpop.xlane.xlu0 %1197  ;;  %v1407_v26 = vunpack.c.l.b16 %v1280_v58 }
 0x265   : > { %v1291_v6 = vunpack.c.l.b16 %v1241_v7 }
 0x266   : > { %v1409_v56 = vpack.c.b16 %v1408_v28, %v1407_v26 }
 0x267   : > { %v1292_v55 = vpack.c.b16 %v1291_v6, %v1290_v63 }
 0x268   : > { %1421 = vmatpush.bf16.msrb.mxu0 %v1409_v56 }
 0x269   : > { %1664 = vmatmul.msk.bf16.vlgmr.msra.gmra.mxu0 %vm634_vm1, %v1292_v55 }
 0x26a   : > { %v1174_v48 = vpop.xlane.xlu1 %1173  ;;  %v1177_v39 = vpop.xlane.xlu2 %1176 }
 0x26b   : > { %1809 = vrcp.f32 %v1174_v48 }
 0x26c   : > { %1811 = vrcp.f32 %v1177_v39 }
 0x26d   : > { %1813 = vrcp.f32 %v1180_v10 }
 0x26e   : > { %1815 = vrcp.f32 %v1168_v13  ;;  %v1437_v13 = vpack.c.b16 %v1436_v53, %v1435_v3 }
 0x270   : > { %v1207_v43 = vpop.xlane.xlu0 %1206  ;;  %1449 = vmatpush.bf16.msrb.mxu1 %v1437_v13 }
 0x271   : > { %v1810_v40 = vpop.eup %1809 }
 0x272   : > { %v1812_v9 = vpop.eup %1811  ;;  %v1228_v47 = vmul.f32 %v1810_v40, %v2803_v19  ;;  %v1183_v11 = vpop.xlane.xlu1 %1182 }
 0x273   : > { %v1171_v10 = vpop.xlane.xlu2 %1170  ;;  %v1814_v32 = vpop.eup %1813  ;;  %v1229_v5 = vmul.f32 %v1812_v9, %v2806_v25  ;;  %1817 = vrcp.f32 %v1183_v11 }
 0x274   : > { %v1816_v21 = vpop.eup %1815  ;;  %v1244_v15 = vpack.c.bf16 %v1228_v47, %v1228_v47  ;;  %1819 = vrcp.f32 %v1171_v10  ;;  %v1230_v8 = vmul.f32 %v1814_v32, %v2774_v45 }
 0x275   : > { %v1245_v18 = vpack.c.bf16 %v1229_v5, %v1229_v5  ;;  %v1226_v38 = vmul.f32 %v1816_v21, %v2793_v1  ;;  %1821 = vrcp.f32 %v1198_v4 }
 0x276   : > { %v1346_v19 = vunpack.c.l.b16 %v1244_v15  ;;  %v1246_v63 = vpack.c.bf16 %v1230_v8, %v1230_v8 }
 0x277   : > { %v1347_v0 = vunpack.c.l.b16 %v1245_v18  ;;  %v1242_v39 = vpack.c.bf16 %v1226_v38, %v1226_v38 }
 0x278   : > { %v1374_v16 = vunpack.c.l.b16 %v1246_v63  ;;  %v1192_v33 = vpop.xlane.xlu0 %1191 }
 0x279   : > { %v1818_v51 = vpop.eup %1817  ;;  %v1348_v7 = vpack.c.b16 %v1347_v0, %v1346_v19  ;;  %v1318_v35 = vunpack.c.l.b16 %v1242_v39 }
 0x27a   : > { %v1820_v25 = vpop.eup %1819  ;;  %v1231_v6 = vmul.f32 %v1818_v51, %v2816_v22  ;;  %v1186_v55 = vpop.xlane.xlu1 %1185 }
 0x27b   : > { %v1204_v48 = vpop.xlane.xlu2 %1203  ;;  %v1227_v50 = vmul.f32 %v1820_v25, %v2813_v23  ;;  %1666 = vmatmul.msk.bf16.vlgmr.msra.gmra.mxu2 %vm634_vm1, %v1348_v7  ;;  %v1822_v29 = vpop.eup %1821 }
 0x27c   : > { %v1247_v45 = vpack.c.bf16 %v1231_v6, %v1231_v6  ;;  %1823 = vrcp.f32 %v1204_v48  ;;  %v1236_v44 = vmul.f32 %v1822_v29, %v2798_v14 }
 0x27d   : > { %1825 = vrcp.f32 %v1207_v43  ;;  %v1243_v1 = vpack.c.bf16 %v1227_v50, %v1227_v50 }
 0x27e   : > { %v1375_v37 = vunpack.c.l.b16 %v1247_v45  ;;  %1827 = vrcp.f32 %v1186_v55  ;;  %v1252_v54 = vpack.c.bf16 %v1236_v44, %v1236_v44 }
 0x27f   : > { %v1319_v27 = vunpack.c.l.b16 %v1243_v1 }
 0x280   : > { %v1376_v31 = vpack.c.b16 %v1375_v37, %v1374_v16  ;;  %v1458_v10 = vunpack.c.l.b16 %v1252_v54 }
 0x281   : > { %v1320_v22 = vpack.c.b16 %v1319_v27, %v1318_v35 }
 0x282   : > { %v1824_v30 = vpop.eup %1823  ;;  %v1201_v59 = vpop.xlane.xlu1 %1200  ;;  %1667 = vmatmul.msk.bf16.vlgmr.msra.gmra.mxu3 %vm634_vm1, %v1376_v31 }
 0x283   : > { %v1189_v23 = vpop.xlane.xlu2 %1188  ;;  %v1826_v58 = vpop.eup %1825  ;;  %1829 = vrcp.f32 %v1201_v59  ;;  %1665 = vmatmul.msk.bf16.vlgmr.msra.gmra.mxu1 %vm634_vm1, %v1320_v22  ;;  %v1238_v57 = vmul.f32 %v1824_v30, %v2828_v41 }
 0x284   : > { %v1828_v4 = vpop.eup %1827  ;;  %1831 = vrcp.f32 %v1189_v23  ;;  %v1239_v49 = vmul.f32 %v1826_v58, %v2819_v60 }
 0x285   : > { %1833 = vrcp.f32 %v1192_v33  ;;  %v1232_v52 = vmul.f32 %v1828_v4, %v2830_v2  ;;  %v1254_v42 = vpack.c.bf16 %v1238_v57, %v1238_v57 }
 0x286   : > { %v1255_v28 = vpack.c.bf16 %v1239_v49, %v1239_v49 }
 0x287   : > { %v1248_v9 = vpack.c.bf16 %v1232_v52, %v1232_v52  ;;  %v1486_v47 = vunpack.c.l.b16 %v1254_v42 }
 0x288   : > { %v1487_v60 = vunpack.c.l.b16 %v1255_v28 }
 0x289   : > { %v1830_v26 = vpop.eup %1829  ;;  %v1402_v24 = vunpack.c.l.b16 %v1248_v9 }
 0x28a   : > { %v1832_v17 = vpop.eup %1831  ;;  %v1237_v40 = vmul.f32 %v1830_v26, %v2843_v12  ;;  %v1195_v20 = vpop.xlane.xlu1 %1194  ;;  %v1488_v5 = vpack.c.b16 %v1487_v60, %v1486_v47 }
 0x28b   : > { %v1834_v46 = vpop.eup %1833  ;;  %v1233_v41 = vmul.f32 %v1832_v17, %v2841_v34  ;;  %1835 = vrcp.f32 %v1195_v20 }
 0x28c   : > { %v1253_v11 = vpack.c.bf16 %v1237_v40, %v1237_v40  ;;  %v1234_v2 = vmul.f32 %v1834_v46, %v2832_v61 }
 0x28d   : > { %v1249_v14 = vpack.c.bf16 %v1233_v41, %v1233_v41 }
 0x28e   : > { %v1459_v56 = vunpack.c.l.b16 %v1253_v11  ;;  %v1250_v15 = vpack.c.bf16 %v1234_v2, %v1234_v2 }
 0x28f   : > { %v1403_v32 = vunpack.c.l.b16 %v1249_v14 }
 0x290   : > { %v1460_v36 = vpack.c.b16 %v1459_v56, %v1458_v10  ;;  %v1430_v18 = vunpack.c.l.b16 %v1250_v15 }
 0x291   : > { %v1836_v12 = vpop.eup %1835  ;;  %v1404_v21 = vpack.c.b16 %v1403_v32, %v1402_v24 }
 0x292   : > { %v1235_v3 = vmul.f32 %v1836_v12, %v2849_v62  ;;  %1670 = vmatmul.msk.bf16.vlgmr.msrb.gmra.mxu2 %vm634_vm1, %v1460_v36  ;;  %1671 = vmatmul.msk.bf16.vlgmr.msrb.gmra.mxu3 %vm634_vm1, %v1488_v5 }
 0x293   : > { %1668 = vmatmul.msk.bf16.vlgmr.msrb.gmra.mxu0 %vm634_vm1, %v1404_v21 }
 0x294   : > { %v1251_v34 = vpack.c.bf16 %v1235_v3, %v1235_v3 }
 0x296   : > { %v1431_v61 = vunpack.c.l.b16 %v1251_v34 }
 0x298   : > { %v1432_v53 = vpack.c.b16 %v1431_v61, %v1430_v18 }
 0x29a   : > { %1669 = vmatmul.msk.bf16.vlgmr.msrb.gmra.mxu1 %vm634_vm1, %v1432_v53 }
 0x2e6   : > { %v1311_v62 = vpop.f32.mrf.mxu0 }
 0x2e7   : > { %1512 = vst.msk [vmem:[%s2903_s26] sm:$0xff] %vm385_vm0, %v1311_v62 }
 0x2ee   : > { %v1313_v8 = vpop.f32.mrf.mxu0 }
 0x2ef   : > { %1513 = vst.msk [vmem:[%s2903_s26 + $0x8] sm:$0xff] %vm385_vm0, %v1313_v8 }
 0x2fe   : > { %v1367_v19 = vpop.f32.mrf.mxu2 }
 0x2ff   : > { %1516 = vst.msk [vmem:[%s2903_s26 + $0x20] sm:$0xff] %vm385_vm0, %v1367_v19 }
 0x300   : > { %v1339_v38 = vpop.f32.mrf.mxu1 }
 0x301   : > { %1514 = vst.msk [vmem:[%s2903_s26 + $0x10] sm:$0xff] %vm385_vm0, %v1339_v38 }
 0x305   : > { %v1395_v0 = vpop.f32.mrf.mxu3 }
 0x306   : > { %v1369_v43 = vpop.f32.mrf.mxu2  ;;  %1518 = vst.msk [vmem:[%s2903_s26 + $0x30] sm:$0xff] %vm385_vm0, %v1395_v0 }
 0x307   : > { %1517 = vst.msk [vmem:[%s2903_s26 + $0x28] sm:$0xff] %vm385_vm0, %v1369_v43 }
 0x308   : > { %v1341_v13 = vpop.f32.mrf.mxu1 }
 0x309   : > { %1515 = vst.msk [vmem:[%s2903_s26 + $0x18] sm:$0xff] %vm385_vm0, %v1341_v13 }
 0x30d   : > { %v1397_v51 = vpop.f32.mrf.mxu3 }
 0x30e   : > { %1519 = vst.msk [vmem:[%s2903_s26 + $0x38] sm:$0xff] %vm385_vm0, %v1397_v51 }
 0x310   : > { %v1423_v7 = vpop.f32.mrf.mxu0 }
 0x311   : > { %1520 = vst.msk [vmem:[%s2903_s26 + $0x40] sm:$0xff] %vm385_vm0, %v1423_v7 }
 0x315   : > { %v1479_v25 = vpop.f32.mrf.mxu2  ;;  %v1507_v63 = vpop.f32.mrf.mxu3 }
 0x316   : > { %1524 = vst.msk [vmem:[%s2903_s26 + $0x60] sm:$0xff] %vm385_vm0, %v1479_v25 }
 0x317   : > { %1526 = vst.msk [vmem:[%s2903_s26 + $0x70] sm:$0xff] %vm385_vm0, %v1507_v63  ;;  %v1451_v6 = vpop.f32.mrf.mxu1 }
 0x318   : > { %v1425_v55 = vpop.f32.mrf.mxu0  ;;  %1522 = vst.msk [vmem:[%s2903_s26 + $0x50] sm:$0xff] %vm385_vm0, %v1451_v6 }
 0x319   : > { %1521 = vst.msk [vmem:[%s2903_s26 + $0x48] sm:$0xff] %vm385_vm0, %v1425_v55 }
 0x31d   : > { %v1481_v48 = vpop.f32.mrf.mxu2  ;;  %v1509_v39 = vpop.f32.mrf.mxu3 }
 0x31e   : > { %1525 = vst.msk [vmem:[%s2903_s26 + $0x68] sm:$0xff] %vm385_vm0, %v1481_v48 }
 0x31f   : > { %1527 = vst.msk [vmem:[%s2903_s26 + $0x78] sm:$0xff] %vm385_vm0, %v1509_v39  ;;  %v1453_v50 = vpop.f32.mrf.mxu1 }
 0x320   : > { %1523 = vst.msk [vmem:[%s2903_s26 + $0x58] sm:$0xff] %vm385_vm0, %v1453_v50 }
 0x321 PF: > { %s15_s22 = sadd.s32 1, %s1875_s22   ;;  %s3004_s18 = smov %s1867_s20 }
 0x322   : > { %p12_p6 = scmp.ge.s32.totalorder %s15_s22, 6   ;;  %s3005_s19 = smov %s1871_s21 }
 0x323   : > { %s3006_s20 = smov %s3009_s23  ;;  %s3007_s21 = smov %s3013_s24 }
 0x324   :  { %14 = sbr.rel (!%p12_p6) target bundleno = 3 (0x3), region = 76 }

// kernel: basic_layer_up_forward.11
= control target key start
LH: loop header
LB: loop body
LE: loop exit
PB: predicated region body
PF: predicated region fallthrough
CT: control target
= control target key end

     0   :  { %s1957_s18 = smov 0   ;;  %s1959_s19 = smov 0   ;;  %s3002_s0 = inlined_call_operand.vmem [shape: f32[32,16,8], index: 0, kind: input, shape index: {}]   ;;  %s3003_s1 = inlined_call_operand.vmem [shape: f32[32,8,16], index: 1, kind: input, shape index: {}]   ;;  %s3004_s2 = inlined_call_operand.vmem [shape: f32[32,16,8], index: 2, kind: input, shape index: {}]   ;;  %s3005_s3 = inlined_call_operand.vmem [shape: f32[4,1,1], index: 3, kind: input, shape index: {}]   ;;  %s3006_s4 = inlined_call_operand.vmem [shape: f32[16,16,16], index: 4, kind: input, shape index: {}]   ;;  %s3007_s5 = inlined_call_operand.vmem [shape: f32[32,16,8], index: 5, kind: output, shape index: {}]  }
   0x1   :  { %s1961_s20 = smov 0   ;;  %s1963_s21 = smov 0  }
   0x2   :  { %s1965_s22 = smov 0  }
   0x3 LB: > { %s24_s23 = sadd.s32 1, %s1916_s20  ;;  %s27_s24 = sadd.s32 1, %s1920_s21  ;;  %s1924_s22 = sphi %s1965_s22, %s15_s22   ;;  %s1920_s21 = sphi %s1963_s21, %s3057_s21   ;;  %s1916_s20 = sphi %s1961_s20, %s3056_s20   ;;  %s1912_s19 = sphi %s1959_s19, %s3055_s19   ;;  %s1908_s18 = sphi %s1957_s18, %s3054_s18  }
   0x4   : > { %p25_p0 = scmp.ge.s32.totalorder %s24_s23, 2  ;;  %p1685_p1 = scmp.ge.s32.totalorder %s1924_s22, 1 }
   0x5   : > { %p264_p2 = scmp.lt.s32.totalorder %s1924_s22, 5 }
   0x6   : > { %s3059_s23 = smov (%p25_p0, %s24_s23), 0  ;;  %s3061_s24 = smov (!%p25_p0, %s27_s24), %s1920_s21 }
   0x7   : > { %p265_p3 = pnand %p1685_p1, %p264_p2  ;;  %p29_p4 = scmp.ge.s32.totalorder %s3061_s24, 2 }
   0x8   : > { %s1686_s25 = sshll.u32 (!%p265_p3), %s1912_s19, 1 }
   0x9   : > { %s3063_s24 = smov (%p29_p4, %s3061_s24), 0  ;;  %268 = sbr.rel (%p265_p3) target bundleno = 801 (0x321), region = 40 }
   0xa   : > { %s320_s26 = sadd.s32 (!%p265_p3), %s1908_s18, %s1686_s25  ;;  %s1697_s25 = sshll.u32 (!%p265_p3), %s1908_s18, 3 }
   0xb   : > { %s1687_s27 = sshll.u32 (!%p265_p3), %s320_s26, 3  ;;  %p352_p6 = scmp.lt.s32.totalorder (!%p265_p3), %s1697_s25, 15 }
   0xc   : > { %p322_p5 = scmp.lt.s32.totalorder (!%p265_p3), %s1687_s27, 31 }
   0xe   : > { %s3065_s27 = smov (!%p322_p5, %s1687_s27), 31  ;;  %vm410_vm0 = vcmask 64512   ;;  %v1926_v24 = vmov 0   ;;  %v1770_v44 = vld [vmem:[%s3005_s3 + $0x2] ss:$0 sm:$0xff]  ;;  %vm659_vm1 = vcmask 130048  }
   0xf   : > { %s1993_s28 = sshll.u32 %s3065_s27, 4  ;;  %1767 = vset.pattern.permute.xlu0 %v1926_v24  ;;  %1768 = vset.pattern.permute.xlu1 %v1926_v24  ;;  %v1771_v46 = vld [vmem:[%s3005_s3 + $0x3] ss:$0 sm:$0xff]  ;;  %v1772_v50 = vld [vmem:[%s3005_s3] ss:$0 sm:$0xff]  ;;  %s1692_s15 = sshll.u32 %s3065_s27, 3 }
  0x10   : > { %s1999_s6 = scalar_lea.vmem %s3002_s0, %s1993_s28  ;;  %1769 = vset.pattern.permute.xlu2 %v1926_v24  ;;  %v1773_v52 = vld [vmem:[%s3005_s3 + $0x1] ss:$0 sm:$0xff]  ;;  %s2113_s19 = scalar_lea.vmem %s3003_s1, %s1692_s15  ;;  %vm904_vm10 = vcmask 1043456  }
  0x11   : > { %v2002_v0 = vld [vmem:[%s1999_s6 + $0x30] sm:$0xff]  ;;  %v2005_v1 = vld [vmem:[%s1999_s6 + $0x20] sm:$0xff]  ;;  %v2017_v6 = vld [vmem:[%s1999_s6 + $0x38] sm:$0xff]  ;;  %s3067_s25 = smov (!%p352_p6, %s1697_s25), 15  ;;  %s2907_s7 = scalar_lea.vmem %s3004_s2, %s1993_s28 }
  0x12   : > { %v2008_v2 = vld [vmem:[%s1999_s6] sm:$0xff]  ;;  %v400_v3 = vmul.f32 %v2002_v0, %v2002_v0  ;;  %v398_v4 = vmul.f32 %v2005_v1, %v2005_v1  ;;  %v2020_v7 = vld [vmem:[%s1999_s6 + $0x28] sm:$0xff]  ;;  %v401_v12 = vmul.f32 %v2017_v6, %v2017_v6  ;;  %v2038_v18 = vld [vmem:[%s1999_s6 + $0x18] sm:$0xff]  ;;  %s1724_s26 = sshll.u32 %s3067_s25, 4  ;;  %s2953_s10 = scalar_lea.vmem %s3007_s5, %s1993_s28 }
  0x13   : > { %v394_v5 = vmul.f32 %v2008_v2, %v2008_v2  ;;  %v2026_v11 = vld [vmem:[%s1999_s6 + $0x8] sm:$0xff]  ;;  %v399_v13 = vmul.f32 %v2020_v7, %v2020_v7  ;;  %v2041_v19 = vld [vmem:[%s1999_s6 + $0x10] sm:$0xff]  ;;  %v2044_v20 = vld [vmem:[%s1999_s6 + $0x60] sm:$0xff]  ;;  %v397_v21 = vmul.f32 %v2038_v18, %v2038_v18  ;;  %s2741_s30 = scalar_lea.vmem %s3006_s4, %s1724_s26 }
  0x14   : > { %v429_v8 = vsel %vm410_vm0, %v400_v3, 0.0  ;;  %v423_v9 = vsel %vm410_vm0, %v398_v4, 0.0  ;;  %v395_v14 = vmul.f32 %v2026_v11, %v2026_v11  ;;  %v432_v15 = vsel %vm410_vm0, %v401_v12, 0.0  ;;  %v2056_v28 = vld [vmem:[%s1999_s6 + $0x70] sm:$0xff]  ;;  %v2059_v29 = vld [vmem:[%s1999_s6 + $0x68] sm:$0xff]  ;;  %v2062_v30 = vld [vmem:[%s1999_s6 + $0x78] sm:$0xff] }
  0x15   : > { %v411_v10 = vsel %vm410_vm0, %v394_v5, 0.0  ;;  %430 = vadd.xlane.f32.xlu1 %v429_v8  ;;  %424 = vadd.xlane.f32.xlu0 %v423_v9  ;;  %v426_v16 = vsel %vm410_vm0, %v399_v13, 0.0  ;;  %v396_v22 = vmul.f32 %v2041_v19, %v2041_v19  ;;  %v406_v23 = vmul.f32 %v2044_v20, %v2044_v20  ;;  %v2074_v37 = vld [vmem:[%s1999_s6 + $0x40] sm:$0xff]  ;;  %v2080_v40 = vld [vmem:[%s1999_s6 + $0x48] sm:$0xff]  ;;  %v2086_v43 = vld [vmem:[%s1999_s6 + $0x50] sm:$0xff] }
  0x16   : > { %412 = vadd.xlane.f32.xlu2 %v411_v10  ;;  %v414_v17 = vsel %vm410_vm0, %v395_v14, 0.0  ;;  %v420_v25 = vsel %vm410_vm0, %v397_v21, 0.0  ;;  %v408_v31 = vmul.f32 %v2056_v28, %v2056_v28  ;;  %v407_v32 = vmul.f32 %v2059_v29, %v2059_v29  ;;  %v2098_v48 = vld [vmem:[%s1999_s6 + $0x58] sm:$0xff]  ;;  %v2116_v53 = vld [vmem:[%s2113_s19 + $0x10] sm:$0xff] }
  0x17   : > { %v417_v26 = vsel %vm410_vm0, %v396_v22, 0.0  ;;  %v447_v27 = vsel %vm410_vm0, %v406_v23, 0.0  ;;  %v409_v33 = vmul.f32 %v2062_v30, %v2062_v30  ;;  %v402_v38 = vmul.f32 %v2074_v37, %v2074_v37  ;;  %v2122_v58 = vld [vmem:[%s2113_s19 + $0x18] sm:$0xff] }
  0x18   : > { %v453_v34 = vsel %vm410_vm0, %v408_v31, 0.0  ;;  %v450_v35 = vsel %vm410_vm0, %v407_v32, 0.0  ;;  %v403_v41 = vmul.f32 %v2080_v40, %v2080_v40  ;;  %v404_v45 = vmul.f32 %v2086_v43, %v2086_v43 }
  0x19   : > { %v456_v36 = vsel %vm410_vm0, %v409_v33, 0.0  ;;  %v435_v39 = vsel %vm410_vm0, %v402_v38, 0.0  ;;  %v405_v49 = vmul.f32 %v2098_v48, %v2098_v48  ;;  %v653_v54 = vmul.f32 %v2116_v53, %v2116_v53 }
  0x1a   : > { %v438_v42 = vsel %vm410_vm0, %v403_v41, 0.0  ;;  %v441_v47 = vsel %vm410_vm0, %v404_v45, 0.0  ;;  %v654_v59 = vmul.f32 %v2122_v58, %v2122_v58 }
  0x1b   : > { %v444_v51 = vsel %vm410_vm0, %v405_v49, 0.0  ;;  %v674_v55 = vsel %vm659_vm1, %v653_v54, 0.0 }
  0x1c   : > { %v675_v56 = vrot.slane %v674_v55, 4  ;;  %v681_v61 = vsel %vm659_vm1, %v654_v59, 0.0 }
  0x1d   : > { %433 = vadd.xlane.f32.xlu1 %v432_v15  ;;  %427 = vadd.xlane.f32.xlu0 %v426_v16  ;;  %v682_v63 = vrot.slane %v681_v61, 4 }
  0x1e   : > { %415 = vadd.xlane.f32.xlu2 %v414_v17  ;;  %v676_v57 = vadd.f32 %v675_v56, %v674_v55 }
  0x1f   : > { %v683_v4 = vadd.f32 %v682_v63, %v681_v61 }
  0x20   : > { %v677_v60 = vrot.slane %v676_v57, 2 }
  0x21   : > { %v684_v8 = vrot.slane %v683_v4, 2 }
  0x22   : > { %v678_v62 = vadd.f32 %v677_v60, %v676_v57 }
  0x23   : > { %v685_v14 = vadd.f32 %v684_v8, %v683_v4 }
  0x24   : > { %v679_v3 = vrot.slane %v678_v62, 1 }
  0x25   : > { %421 = vadd.xlane.f32.xlu1 %v420_v25  ;;  %418 = vadd.xlane.f32.xlu0 %v417_v26  ;;  %v686_v15 = vrot.slane %v685_v14, 1 }
  0x26   : > { %448 = vadd.xlane.f32.xlu2 %v447_v27  ;;  %v680_v5 = vadd.f32 %v679_v3, %v678_v62 }
  0x27   : > { %v687_v26 = vadd.f32 %v686_v15, %v685_v14 }
  0x28   : > { %v718_v9 = vmax.f32 %v680_v5, 1e-24 }
  0x29   : > { %v2143_v33 = vmax.f32 %v687_v26, 1e-24 }
  0x2a   : > { %1774 = vrsqrt.f32 %v718_v9  ;;  %vm750_vm2 = vweird.f32 %v718_v9 }
  0x2d   : > { %454 = vadd.xlane.f32.xlu1 %v453_v34  ;;  %451 = vadd.xlane.f32.xlu0 %v450_v35 }
  0x2e   : > { %457 = vadd.xlane.f32.xlu2 %v456_v36 }
  0x30   : > { %v2131_v23 = vpop.eup %1774 }
  0x31   : > { %v745_v31 = vmul.f32 %v2131_v23, %v718_v9  ;;  %vm751_vm3 = vweird.f32 %v2131_v23 }
  0x32   : > { %vm2190_vm4 = vmor %vm750_vm2, %vm751_vm3 }
  0x33   : > { %v746_v34 = vmul.f32 %v2131_v23, %v745_v31 }
  0x36   : > { %436 = vadd.xlane.f32.xlu2 %v435_v39 }
  0x3e   : > { %439 = vadd.xlane.f32.xlu2 %v438_v42 }
  0x41   : > { %833 = vperm.xlu0 %1767, %v1770_v44   ;;  %v747_v44 = vmul.f32 0.5, %v746_v34 }
  0x43   : > { %v748_v55 = vsub.f32 1.5, %v747_v44 }
  0x46   : > { %442 = vadd.xlane.f32.xlu2 %v441_v47  ;;  %837 = vperm.xlu1 %1768, %v1771_v46  }
  0x4e   : > { %445 = vadd.xlane.f32.xlu2 %v444_v51  ;;  %825 = vperm.xlu1 %1768, %v1772_v50  }
  0x66   : > { %829 = vperm.xlu2 %1769, %v1773_v52  }
  0x88   : > { %v431_v10 = vpop.xlane.xlu1 %430  ;;  %v425_v12 = vpop.xlane.xlu0 %424 }
  0x89   : > { %v413_v13 = vpop.xlane.xlu2 %412  ;;  %v2127_v16 = vmax.f32 %v431_v10, 1e-24  ;;  %v2129_v17 = vmax.f32 %v425_v12, 1e-24  ;;  %v749_v10 = vmul.f32 %v2131_v23, %v748_v55  ;;  %v2187_v12 = vld [vmem:[%s2113_s19] sm:$0xff] }
  0x8a   : > { %v2140_v32 = vmax.f32 %v413_v13, 1e-24  ;;  %v651_v31 = vmul.f32 %v2187_v12, %v2187_v12 }
  0x8b   : > { %1776 = vrsqrt.f32 %v2127_v16  ;;  %vm521_vm6 = vweird.f32 %v2129_v17  ;;  %vm541_vm11 = vweird.f32 %v2127_v16 }
  0x8c   : > { %1778 = vrsqrt.f32 %v2129_v17  ;;  %vm481_vm13 = vweird.f32 %v2140_v32 }
  0x90   : > { %v434_v21 = vpop.xlane.xlu1 %433  ;;  %v428_v22 = vpop.xlane.xlu0 %427 }
  0x91   : > { %v2133_v24 = vmax.f32 %v428_v22, 1e-24  ;;  %v416_v25 = vpop.xlane.xlu2 %415  ;;  %v2136_v27 = vmax.f32 %v434_v21, 1e-24  ;;  %v2147_v35 = vpop.eup %1776 }
  0x92   : > { %v2150_v39 = vpop.eup %1778  ;;  %v536_v46 = vmul.f32 %v2147_v35, %v2127_v16  ;;  %v2169_v54 = vmax.f32 %v416_v25, 1e-24  ;;  %vm542_vm5 = vweird.f32 %v2147_v35 }
  0x93   : > { %1780 = vrsqrt.f32 %v2133_v24  ;;  %v516_v47 = vmul.f32 %v2150_v39, %v2129_v17  ;;  %vm522_vm7 = vweird.f32 %v2150_v39  ;;  %vm531_vm8 = vweird.f32 %v2133_v24  ;;  %vm2257_vm2 = vmor %vm541_vm11, %vm542_vm5 }
  0x94   : > { %1782 = vrsqrt.f32 %v2136_v27  ;;  %v537_v56 = vmul.f32 %v2147_v35, %v536_v46  ;;  %vm2235_vm12 = vmor %vm521_vm6, %vm522_vm7  ;;  %vm551_vm14 = vweird.f32 %v2136_v27 }
  0x95   : > { %1784 = vrsqrt.f32 %v2140_v32  ;;  %v517_v57 = vmul.f32 %v2150_v39, %v516_v47 }
  0x96   : > { %1786 = vrsqrt.f32 %v2143_v33  ;;  %v538_v9 = vmul.f32 0.5, %v537_v56 }
  0x97   : > { %1788 = vrsqrt.f32 %v2169_v54  ;;  %v518_v13 = vmul.f32 0.5, %v517_v57 }
  0x98   : > { %v419_v36 = vpop.xlane.xlu0 %418  ;;  %v422_v41 = vpop.xlane.xlu1 %421  ;;  %v539_v44 = vsub.f32 1.5, %v538_v9 }
  0x99   : > { %v449_v38 = vpop.xlane.xlu2 %448  ;;  %v2153_v42 = vpop.eup %1780  ;;  %v2183_v5 = vmax.f32 %v422_v41, 1e-24  ;;  %v753_v41 = vsel %vm2190_vm4, %v2131_v23, %v749_v10  ;;  %v519_v46 = vsub.f32 1.5, %v518_v13  ;;  %vm760_vm4 = vweird.f32 %v2143_v33 }
  0x9a   : > { %v2155_v45 = vpop.eup %1782  ;;  %v526_v49 = vmul.f32 %v2153_v42, %v2133_v24  ;;  %v2173_v59 = vmax.f32 %v449_v38, 1e-24  ;;  %v2205_v38 = vmax.f32 %v419_v36, 1e-24  ;;  %vm532_vm9 = vweird.f32 %v2153_v42 }
  0x9b   : > { %v2163_v50 = vpop.eup %1784  ;;  %v546_v52 = vmul.f32 %v2155_v45, %v2136_v27  ;;  %vm2248_vm15 = vmor %vm531_vm8, %vm532_vm9  ;;  %vm552_vm3 = vweird.f32 %v2155_v45 }
  0x9c   : > { %v2165_v51 = vpop.eup %1786  ;;  %v527_v61 = vmul.f32 %v2153_v42, %v526_v49  ;;  %v476_v62 = vmul.f32 %v2163_v50, %v2140_v32  ;;  %1790 = vrsqrt.f32 %v2173_v59  ;;  %v806_v49 = vmul.f32 %v753_v41, %v2116_v53  ;;  %vm2295_vm7 = vmor %vm551_vm14, %vm552_vm3 }
  0x9d   : > { %v755_v3 = vmul.f32 %v2165_v51, %v2143_v33  ;;  %v547_v4 = vmul.f32 %v2155_v45, %v546_v52  ;;  %1792 = vrsqrt.f32 %v2183_v5  ;;  %v2213_v52 = vpop.eup %1788  ;;  %vm761_vm5 = vweird.f32 %v2165_v51 }
  0x9e   : > { %v528_v15 = vmul.f32 0.5, %v527_v61  ;;  %v477_v22 = vmul.f32 %v2163_v50, %v476_v62  ;;  %v890_v57 = vpack.c.bf16 %v806_v49, %v806_v49  ;;  %v540_v61 = vmul.f32 %v2147_v35, %v539_v44  ;;  %vm2318_vm8 = vmor %vm760_vm4, %vm761_vm5 }
  0x9f   : > { %v756_v26 = vmul.f32 %v2165_v51, %v755_v3  ;;  %v548_v34 = vmul.f32 0.5, %v547_v4  ;;  %v520_v62 = vmul.f32 %v2150_v39, %v519_v46  ;;  %vm482_vm6 = vweird.f32 %v2163_v50 }
  0xa0   : > { %v452_v63 = vpop.xlane.xlu0 %451  ;;  %v455_v8 = vpop.xlane.xlu1 %454  ;;  %v529_v55 = vsub.f32 1.5, %v528_v15  ;;  %v478_v56 = vmul.f32 0.5, %v477_v22  ;;  %v956_v17 = vsel %vm904_vm10, %v890_v57, 0  ;;  %v2264_v22 = vsel %vm659_vm1, %v651_v31, 0.0  ;;  %vm2331_vm9 = vmor %vm481_vm13, %vm482_vm6 }
  0xa1   : > { %v458_v60 = vpop.xlane.xlu2 %457  ;;  %v2196_v21 = vmax.f32 %v452_v63, 1e-24  ;;  %v2199_v25 = vmax.f32 %v455_v8, 1e-24  ;;  %v757_v53 = vmul.f32 0.5, %v756_v26  ;;  %v486_v63 = vmul.f32 %v2213_v52, %v2169_v54  ;;  %965 = vmatpush.bf16.msra.mxu2 %v956_v17 }
  0xa2   : > { %v2210_v47 = vmax.f32 %v458_v60, 1e-24  ;;  %v2218_v36 = vpop.eup %1790  ;;  %v549_v60 = vsub.f32 1.5, %v548_v34  ;;  %v530_v8 = vmul.f32 %v2153_v42, %v529_v55  ;;  %v479_v9 = vsub.f32 1.5, %v478_v56 }
  0xa3   : > { %1794 = vrsqrt.f32 %v2196_v21  ;;  %v2228_v3 = vpop.eup %1792  ;;  %v596_v10 = vmul.f32 %v2218_v36, %v2173_v59  ;;  %v758_v24 = vsub.f32 1.5, %v757_v53  ;;  %v544_v34 = vsel %vm2257_vm2, %v2147_v35, %v540_v61 }
  0xa4   : > { %1796 = vrsqrt.f32 %v2199_v25  ;;  %v550_v15 = vmul.f32 %v2155_v45, %v549_v60  ;;  %v524_v41 = vsel %vm2235_vm12, %v2150_v39, %v520_v62  ;;  %v487_v44 = vmul.f32 %v2213_v52, %v486_v63 }
  0xa5   : > { %1798 = vrsqrt.f32 %v2205_v38  ;;  %v506_v46 = vmul.f32 %v2228_v3, %v2183_v5  ;;  %v534_v31 = vsel %vm2248_vm15, %v2153_v42, %v530_v8  ;;  %v597_v55 = vmul.f32 %v2218_v36, %v596_v10 }
  0xa6   : > { %1800 = vrsqrt.f32 %v2210_v47  ;;  %v2288_v39 = vmul.f32 %v2163_v50, %v479_v9  ;;  %v661_v60 = vrot.slane %v2264_v22, 4  ;;  %v554_v53 = vsel %vm2295_vm7, %v2155_v45, %v550_v15 }
  0xa7   : > { %v639_v27 = vmul.f32 %v524_v41, %v2005_v1  ;;  %v759_v62 = vmul.f32 %v2165_v51, %v758_v24  ;;  %v488_v63 = vmul.f32 0.5, %v487_v44  ;;  %v507_v4 = vmul.f32 %v2228_v3, %v506_v46 }
  0xa8   : > { %v640_v10 = vmul.f32 %v534_v31, %v2020_v7  ;;  %v641_v9 = vmul.f32 %v544_v34, %v2002_v0  ;;  %v598_v16 = vmul.f32 0.5, %v597_v55  ;;  %v642_v24 = vmul.f32 %v554_v53, %v2017_v6  ;;  %v2508_v0 = vld [vmem:[%s2113_s19 + $0x20] sm:$0xff] }
  0xa9   : > { %v437_v23 = vpop.xlane.xlu2 %436  ;;  %v2253_v13 = vpop.eup %1794  ;;  %v484_v34 = vsel %vm2331_vm9, %v2163_v50, %v2288_v39  ;;  %vm492_vm11 = vweird.f32 %v2213_v52  ;;  %v489_v46 = vsub.f32 1.5, %v488_v63  ;;  %v508_v31 = vmul.f32 0.5, %v507_v4 }
  0xaa   : > { %v2266_v26 = vpop.eup %1796  ;;  %v606_v42 = vmul.f32 %v2253_v13, %v2196_v21  ;;  %v2336_v33 = vmax.f32 %v437_v23, 1e-24  ;;  %v763_v23 = vsel %vm2318_vm8, %v2165_v51, %v759_v62  ;;  %vm491_vm12 = vweird.f32 %v2169_v54 }
  0xab   : > { %v2277_v49 = vpop.eup %1798  ;;  %v616_v61 = vmul.f32 %v2266_v26, %v2199_v25  ;;  %vm501_vm13 = vweird.f32 %v2205_v38  ;;  %v807_v62 = vmul.f32 %v763_v23, %v2122_v58  ;;  %vm511_vm14 = vweird.f32 %v2183_v5  ;;  %vm2391_vm7 = vmor %vm491_vm12, %vm492_vm11 }
  0xac   : > { %v2285_v35 = vpop.eup %1800  ;;  %v496_v1 = vmul.f32 %v2277_v49, %v2205_v38  ;;  %v607_v7 = vmul.f32 %v2253_v13, %v606_v42  ;;  %v599_v42 = vsub.f32 1.5, %v598_v16  ;;  %1802 = vrsqrt.f32 %v2336_v33 }
  0xad   : > { %v626_v17 = vmul.f32 %v2285_v35, %v2210_v47  ;;  %v617_v32 = vmul.f32 %v2266_v26, %v616_v61  ;;  %vm512_vm15 = vweird.f32 %v2228_v3  ;;  %vm601_vm2 = vweird.f32 %v2173_v59 }
  0xae   : > { %v497_v56 = vmul.f32 %v2277_v49, %v496_v1  ;;  %vm602_vm3 = vweird.f32 %v2218_v36  ;;  %v600_v45 = vmul.f32 %v2218_v36, %v599_v42  ;;  %v509_v16 = vsub.f32 1.5, %v508_v31 }
  0xaf   : > { %v627_v53 = vmul.f32 %v2285_v35, %v626_v17  ;;  %v618_v63 = vmul.f32 0.5, %v617_v32  ;;  %v662_v23 = vadd.f32 %v661_v60, %v2264_v22  ;;  %vm2375_vm4 = vmor %vm601_vm2, %vm602_vm3  ;;  %vm611_vm5 = vweird.f32 %v2196_v21 }
  0xb0   : > { %vm612_vm6 = vweird.f32 %v2253_v13  ;;  %v604_v59 = vsel %vm2375_vm4, %v2218_v36, %v600_v45  ;;  %vm502_vm8 = vweird.f32 %v2277_v49  ;;  %vm621_vm2 = vweird.f32 %v2199_v25  ;;  %vm2425_vm3 = vmor %vm511_vm14, %vm512_vm15 }
  0xb1   : > { %v440_v8 = vpop.xlane.xlu2 %439  ;;  %v628_v58 = vmul.f32 0.5, %v627_v53  ;;  %v663_v36 = vrot.slane %v662_v23, 2  ;;  %vm622_vm11 = vweird.f32 %v2266_v26  ;;  %vm2408_vm12 = vmor %vm611_vm5, %vm612_vm6  ;;  %v647_v45 = vmul.f32 %v604_v59, %v2044_v20  ;;  %v2451_v20 = vld [vmem:[%s2113_s19 + $0x38] sm:$0xff] }
  0xb2   : > { %v2346_v41 = vmax.f32 %v440_v8, 1e-24  ;;  %vm2443_vm14 = vmor %vm501_vm13, %vm502_vm8  ;;  %vm631_vm15 = vweird.f32 %v2210_v47  ;;  %vm632_vm4 = vweird.f32 %v2285_v35  ;;  %v635_v59 = vmul.f32 %v484_v34, %v2008_v2 }
  0xb3   : > { %v2301_v57 = vpop.permute.xlu0 %833  ;;  %v629_v22 = vsub.f32 1.5, %v628_v58  ;;  %v664_v58 = vadd.f32 %v663_v36, %v662_v23  ;;  %vm2457_vm5 = vmor %vm621_vm2, %vm622_vm11  ;;  %vm561_vm8 = vweird.f32 %v2336_v33 }
  0xb4   : > { %v844_v14 = vmul.f32 %v2301_v57, %v639_v27  ;;  %v845_v15 = vmul.f32 %v2301_v57, %v640_v10  ;;  %v608_v27 = vmul.f32 0.5, %v607_v7  ;;  %1804 = vrsqrt.f32 %v2346_v41  ;;  %vm2477_vm13 = vmor %vm631_vm15, %vm632_vm4 }
  0xb5   : > { %v2364_v10 = vmul.f32 %v2213_v52, %v489_v46  ;;  %v891_v7 = vpack.c.bf16 %v807_v62, %v807_v62  ;;  %v2371_v46 = vpop.eup %1802  ;;  %vm571_vm9 = vweird.f32 %v2346_v41 }
  0xb6   : > { %v876_v61 = vpack.c.bf16 %v844_v14, %v844_v14  ;;  %v877_v51 = vpack.c.bf16 %v845_v15, %v845_v15  ;;  %v609_v17 = vsub.f32 1.5, %v608_v27  ;;  %v619_v15 = vsub.f32 1.5, %v618_v63 }
  0xb7   : > { %v556_v63 = vmul.f32 %v2371_v46, %v2336_v33 }
  0xb8   : > { %v2348_v44 = vpop.permute.xlu1 %837  ;;  %v949_v1 = vunpack.c.l.b16 %v876_v61  ;;  %v950_v14 = vunpack.c.l.b16 %v877_v51  ;;  %v610_v27 = vmul.f32 %v2253_v13, %v609_v17  ;;  %v2400_v51 = vmul.f32 %v2228_v3, %v509_v16  ;;  %v2533_v16 = vld [vmem:[%s2113_s19 + $0x28] sm:$0xff] }
  0xb9   : > { %v846_v6 = vmul.f32 %v2348_v44, %v641_v9  ;;  %v847_v55 = vmul.f32 %v2348_v44, %v642_v24  ;;  %v498_v9 = vmul.f32 0.5, %v497_v56  ;;  %v443_v31 = vpop.xlane.xlu2 %442  ;;  %v981_v56 = vsel %vm904_vm10, %v891_v7, 0 }
  0xba   : > { %v2382_v42 = vpop.eup %1804  ;;  %990 = vmatpush.bf16.msra.mxu3 %v981_v56  ;;  %v620_v62 = vmul.f32 %v2266_v26, %v619_v15  ;;  %v614_v38 = vsel %vm2408_vm12, %v2253_v13, %v610_v27  ;;  %v852_v17 = vmul.f32 %v2301_v57, %v647_v45  ;;  %v514_v7 = vsel %vm2425_vm3, %v2228_v3, %v2400_v51 }
  0xbb   : > { %v878_v4 = vpack.c.bf16 %v846_v6, %v846_v6  ;;  %v879_v8 = vpack.c.bf16 %v847_v55, %v847_v55  ;;  %v951_v55 = vpack.c.b16 %v950_v14, %v949_v1  ;;  %v499_v53 = vsub.f32 1.5, %v498_v9  ;;  %v2434_v1 = vld [vmem:[%s2113_s19 + $0x8] sm:$0xff] }
  0xbc   : > { %v566_v9 = vmul.f32 %v2382_v42, %v2346_v41  ;;  %v665_v14 = vrot.slane %v664_v58, 1  ;;  %v624_v25 = vsel %vm2457_vm5, %v2266_v26, %v620_v62  ;;  %v557_v15 = vmul.f32 %v2371_v46, %v556_v63 }
  0xbd   : > { %v974_v24 = vunpack.c.l.b16 %v878_v4  ;;  %v975_v32 = vunpack.c.l.b16 %v879_v8  ;;  %1706 = vmatmul.msk.bf16.vlgmr.msra.gmra.mxu2 %vm410_vm0, %v951_v55  ;;  %v2415_v4 = vld [vmem:[%s2113_s19 + $0x30] sm:$0xff]  ;;  %v494_v8 = vsel %vm2391_vm7, %v2213_v52, %v2364_v10  ;;  %v2437_v52 = vmul.f32 %v2277_v49, %v499_v53 }
  0xbe   : > { %v630_v10 = vmul.f32 %v2285_v35, %v629_v22  ;;  %v657_v47 = vmul.f32 %v2415_v4, %v2415_v4  ;;  %v652_v13 = vmul.f32 %v2434_v1, %v2434_v1  ;;  %v666_v23 = vadd.f32 %v665_v14, %v664_v58 }
  0xbf   : > { %v976_v60 = vpack.c.b16 %v975_v32, %v974_v24  ;;  %v567_v32 = vmul.f32 %v2382_v42, %v566_v9  ;;  %v658_v55 = vmul.f32 %v2451_v20, %v2451_v20  ;;  %v504_v26 = vsel %vm2443_vm14, %v2277_v49, %v2437_v52 }
  0xc0   : > { %v702_v6 = vsel %vm659_vm1, %v657_v47, 0.0  ;;  %v634_v56 = vsel %vm2477_vm13, %v2285_v35, %v630_v10  ;;  %v648_v53 = vmul.f32 %v614_v38, %v2059_v29  ;;  %v884_v22 = vpack.c.bf16 %v852_v17, %v852_v17  ;;  %v2524_v9 = vpop.permute.xlu1 %825 }
  0xc1   : > { %1707 = vmatmul.msk.bf16.vlgmr.msra.gmra.mxu3 %vm410_vm0, %v976_v60  ;;  %v446_v60 = vpop.xlane.xlu2 %445  ;;  %v2499_v61 = vmax.f32 %v666_v23, 1e-24  ;;  %v703_v27 = vrot.slane %v702_v6, 4  ;;  %v667_v36 = vsel %vm659_vm1, %v652_v13, 0.0  ;;  %v649_v62 = vmul.f32 %v624_v25, %v2056_v28 }
  0xc2   : > { %v2503_v54 = vmax.f32 %v443_v31, 1e-24  ;;  %v636_v29 = vmul.f32 %v494_v8, %v2026_v11  ;;  %v709_v35 = vsel %vm659_vm1, %v658_v55, 0.0  ;;  %v2510_v63 = vmul.f32 0.5, %v557_v15 }
  0xc3   : > { %v568_v2 = vmul.f32 0.5, %v567_v32  ;;  %v650_v50 = vmul.f32 %v634_v56, %v2062_v30  ;;  %1806 = vrsqrt.f32 %v2499_v61  ;;  %v2515_v39 = vmul.f32 %v2301_v57, %v648_v53 }
  0xc4   : > { %v2517_v28 = vmax.f32 %v446_v60, 1e-24  ;;  %v704_v34 = vadd.f32 %v703_v27, %v702_v6  ;;  %v668_v31 = vrot.slane %v667_v36, 4  ;;  %v2519_v11 = vunpack.c.l.b16 %v884_v22 }
  0xc5   : > { %v2522_v8 = vmul.f32 %v2348_v44, %v649_v62  ;;  %v710_v45 = vrot.slane %v709_v35, 4  ;;  %v655_v30 = vmul.f32 %v2508_v0, %v2508_v0  ;;  %v2529_v58 = vmul.f32 %v2348_v44, %v650_v50 }
  0xc6   : > { %1808 = vrsqrt.f32 %v2503_v54  ;;  %v705_v57 = vrot.slane %v704_v34, 2  ;;  %v669_v10 = vadd.f32 %v668_v31, %v667_v36  ;;  %v559_v38 = vsub.f32 1.5, %v2510_v63 }
  0xc7   : > { %v569_v17 = vsub.f32 1.5, %v568_v2  ;;  %v711_v14 = vadd.f32 %v710_v45, %v709_v35  ;;  %v688_v47 = vsel %vm659_vm1, %v655_v30, 0.0  ;;  %v2538_v25 = vmul.f32 %v2524_v9, %v635_v59 }
  0xc8   : > { %1810 = vrsqrt.f32 %v2517_v28  ;;  %v706_v15 = vadd.f32 %v705_v57, %v704_v34  ;;  %v670_v44 = vrot.slane %v669_v10, 2  ;;  %vm572_vm6 = vweird.f32 %v2382_v42 }
  0xc9   : > { %v1807_v13 = vpop.eup %1806  ;;  %v712_v24 = vrot.slane %v711_v14, 2  ;;  %v689_v32 = vrot.slane %v688_v47, 4  ;;  %v656_v23 = vmul.f32 %v2533_v16, %v2533_v16  ;;  %v885_v6 = vpack.c.bf16 %v2515_v39, %v2515_v39  ;;  %vm2586_vm15 = vmor %vm571_vm9, %vm572_vm6 }
  0xca   : > { %v886_v55 = vpack.c.bf16 %v2522_v8, %v2522_v8  ;;  %v725_v56 = vmul.f32 %v1807_v13, %v2499_v61  ;;  %v707_v53 = vrot.slane %v706_v15, 1  ;;  %vm562_vm7 = vweird.f32 %v2371_v46 }
  0xcb   : > { %v887_v59 = vpack.c.bf16 %v2529_v58, %v2529_v58  ;;  %v841_v22 = vmul.f32 %v2524_v9, %v636_v29  ;;  %v671_v60 = vadd.f32 %v670_v44, %v669_v10  ;;  %v713_v27 = vadd.f32 %v712_v24, %v711_v14  ;;  %vm2610_vm4 = vmor %vm561_vm8, %vm562_vm7 }
  0xcc   : > { %v2554_v36 = vpop.eup %1808  ;;  %v570_v62 = vmul.f32 %v2382_v42, %v569_v17  ;;  %v872_v35 = vpack.c.bf16 %v2538_v25, %v2538_v25  ;;  %v726_v63 = vmul.f32 %v1807_v13, %v725_v56  ;;  %v708_v2 = vadd.f32 %v707_v53, %v706_v15 }
  0xcd   : > { %v672_v50 = vrot.slane %v671_v60, 1  ;;  %v714_v39 = vrot.slane %v713_v27, 1  ;;  %v690_v34 = vadd.f32 %v689_v32, %v688_v47  ;;  %v695_v31 = vsel %vm659_vm1, %v656_v23, 0.0 }
  0xce   : > { %v2561_v8 = vpop.eup %1810  ;;  %v727_v29 = vmul.f32 0.5, %v726_v63  ;;  %vm730_vm2 = vweird.f32 %v2499_v61  ;;  %vm731_vm11 = vweird.f32 %v1807_v13  ;;  %v2564_v45 = vmax.f32 %v708_v2, 1e-24 }
  0xcf   : > { %v576_v30 = vmul.f32 %v2554_v36, %v2503_v54  ;;  %v673_v58 = vadd.f32 %v672_v50, %v671_v60  ;;  %v715_v57 = vadd.f32 %v714_v39, %v713_v27  ;;  %v691_v10 = vrot.slane %v690_v34, 2  ;;  %vm2571_vm12 = vmor %vm730_vm2, %vm731_vm11  ;;  %v2604_v39 = vpop.permute.xlu2 %829 }
  0xd0   : > { %v873_v17 = vpack.c.bf16 %v841_v22, %v841_v22  ;;  %v728_v14 = vsub.f32 1.5, %v727_v29  ;;  %1812 = vrsqrt.f32 %v2564_v45  ;;  %v696_v47 = vrot.slane %v695_v31, 4 }
  0xd1   : > { %v586_v25 = vmul.f32 %v2561_v8, %v2517_v28  ;;  %v2575_v61 = vmax.f32 %v673_v58, 1e-24  ;;  %v2577_v44 = vmax.f32 %v715_v57, 1e-24  ;;  %v692_v24 = vadd.f32 %v691_v10, %v690_v34 }
  0xd2   : > { %v2580_v32 = vmul.f32 %v2371_v46, %v559_v38  ;;  %v2590_v56 = vunpack.c.l.b16 %v885_v6  ;;  %v729_v53 = vmul.f32 %v1807_v13, %v728_v14  ;;  %v697_v22 = vadd.f32 %v696_v47, %v695_v31 }
  0xd3   : > { %v574_v60 = vsel %vm2586_vm15, %v2382_v42, %v570_v62  ;;  %v2595_v27 = vunpack.c.l.b16 %v886_v55  ;;  %v577_v38 = vmul.f32 %v2554_v36, %v576_v30  ;;  %1814 = vrsqrt.f32 %v2575_v61 }
  0xd4   : > { %v733_v41 = vsel %vm2571_vm12, %v1807_v13, %v729_v53  ;;  %1816 = vrsqrt.f32 %v2577_v44  ;;  %v693_v63 = vrot.slane %v692_v24, 1  ;;  %v698_v6 = vrot.slane %v697_v22, 2 }
  0xd5   : > { %v587_v2 = vmul.f32 %v2561_v8, %v586_v25  ;;  %v804_v50 = vmul.f32 %v733_v41, %v2187_v12  ;;  %v898_v42 = vunpack.c.l.b16 %v872_v35  ;;  %v899_v55 = vunpack.c.l.b16 %v873_v17 }
  0xd6   : > { %v1813_v62 = vpop.eup %1812  ;;  %v2614_v13 = vunpack.c.l.b16 %v887_v59  ;;  %v637_v12 = vmul.f32 %v504_v26, %v2041_v19  ;;  %v694_v35 = vadd.f32 %v693_v63, %v692_v24  ;;  %v699_v31 = vadd.f32 %v698_v6, %v697_v22 }
  0xd7   : > { %v564_v33 = vsel %vm2610_vm4, %v2371_v46, %v2580_v32  ;;  %v644_v29 = vmul.f32 %v574_v60, %v2080_v40  ;;  %v888_v30 = vpack.c.bf16 %v804_v50, %v804_v50  ;;  %v785_v59 = vmul.f32 %v1813_v62, %v2564_v45  ;;  %v862_v50 = vld [vmem:[%s2741_s30 + $0x30] sm:$0xff] }
  0xd8   : > { %v578_v58 = vmul.f32 0.5, %v577_v38  ;;  %v842_v57 = vmul.f32 %v2604_v39, %v637_v12  ;;  %v2629_v5 = vmax.f32 %v694_v35, 1e-24  ;;  %v700_v10 = vrot.slane %v699_v31, 1  ;;  %v856_v35 = vld [vmem:[%s2741_s30] sm:$0xff] }
  0xd9   : > { %v1815_v49 = vpop.eup %1814  ;;  %v588_v19 = vmul.f32 0.5, %v587_v2  ;;  %v906_v52 = vsel %vm904_vm10, %v888_v30, 0  ;;  %v900_v26 = vpack.c.b16 %v899_v55, %v898_v42  ;;  %v786_v17 = vmul.f32 %v1813_v62, %v785_v59 }
  0xda   : > { %v1817_v14 = vpop.eup %1816  ;;  %915 = vmatpush.bf16.msra.mxu0 %v906_v52  ;;  %v638_v40 = vmul.f32 %v514_v7, %v2038_v18  ;;  %vm790_vm14 = vweird.f32 %v2564_v45  ;;  %v735_v46 = vmul.f32 %v1815_v49, %v2575_v61  ;;  %1818 = vrsqrt.f32 %v2629_v5 }
  0xdb   : > { %v787_v47 = vmul.f32 0.5, %v786_v17  ;;  %vm791_vm5 = vweird.f32 %v1813_v62  ;;  %v795_v25 = vmul.f32 %v1817_v14, %v2577_v44  ;;  %v701_v15 = vadd.f32 %v700_v10, %v699_v31 }
  0xdc   : > { %v579_v24 = vsub.f32 1.5, %v578_v58  ;;  %v843_v32 = vmul.f32 %v2604_v39, %v638_v40  ;;  %v874_v23 = vpack.c.bf16 %v842_v57, %v842_v57  ;;  %v736_v21 = vmul.f32 %v1815_v49, %v735_v46  ;;  %vm2649_vm3 = vmor %vm790_vm14, %vm791_vm5 }
  0xdd   : > { %vm581_vm13 = vweird.f32 %v2503_v54  ;;  %v589_v3 = vsub.f32 1.5, %v588_v19  ;;  %1704 = vmatmul.msk.bf16.vlgmr.msra.gmra.mxu0 %vm410_vm0, %v900_v26  ;;  %v788_v18 = vsub.f32 1.5, %v787_v47  ;;  %v796_v51 = vmul.f32 %v1817_v14, %v795_v25 }
  0xde   : > { %v2645_v7 = vmax.f32 %v701_v15, 1e-24  ;;  %v737_v22 = vmul.f32 0.5, %v736_v21  ;;  %vm740_vm9 = vweird.f32 %v2575_v61  ;;  %vm741_vm6 = vweird.f32 %v1815_v49 }
  0xdf   : > { %vm800_vm7 = vweird.f32 %v2577_v44  ;;  %v789_v60 = vmul.f32 %v1813_v62, %v788_v18  ;;  %v797_v38 = vmul.f32 0.5, %v796_v51  ;;  %vm801_vm8 = vweird.f32 %v1817_v14  ;;  %vm2661_vm11 = vmor %vm740_vm9, %vm741_vm6 }
  0xe0   : > { %1820 = vrsqrt.f32 %v2645_v7  ;;  %v1819_v41 = vpop.eup %1818  ;;  %vm582_vm2 = vweird.f32 %v2554_v36  ;;  %v643_v45 = vmul.f32 %v564_v33, %v2074_v37  ;;  %v875_v63 = vpack.c.bf16 %v843_v32, %v843_v32  ;;  %vm2672_vm15 = vmor %vm800_vm7, %vm801_vm8 }
  0xe1   : > { %v738_v6 = vsub.f32 1.5, %v737_v22  ;;  %v849_v2 = vmul.f32 %v2524_v9, %v644_v29  ;;  %v793_v61 = vsel %vm2649_vm3, %v1813_v62, %v789_v60  ;;  %v798_v42 = vsub.f32 1.5, %v797_v38  ;;  %vm2687_vm5 = vmor %vm581_vm13, %vm582_vm2 }
  0xe2   : > { %v765_v55 = vmul.f32 %v1819_v41, %v2629_v5  ;;  %v580_v34 = vmul.f32 %v2554_v36, %v579_v24  ;;  %vm592_vm12 = vweird.f32 %v2561_v8  ;;  %v810_v37 = vmul.f32 %v793_v61, %v2415_v4 }
  0xe3   : > { %v739_v12 = vmul.f32 %v1815_v49, %v738_v6  ;;  %v590_v62 = vmul.f32 %v2561_v8, %v589_v3  ;;  %v799_v31 = vmul.f32 %v1817_v14, %v798_v42  ;;  %v924_v33 = vunpack.c.l.b16 %v874_v23 }
  0xe4   : > { %v766_v29 = vmul.f32 %v1819_v41, %v765_v55  ;;  %v894_v30 = vpack.c.bf16 %v810_v37, %v810_v37  ;;  %v925_v58 = vunpack.c.l.b16 %v875_v63  ;;  %vm770_vm4 = vweird.f32 %v2629_v5 }
  0xe5   : > { %v743_v59 = vsel %vm2661_vm11, %v1815_v49, %v739_v12  ;;  %v803_v44 = vsel %vm2672_vm15, %v1817_v14, %v799_v31  ;;  %vm771_vm14 = vweird.f32 %v1819_v41  ;;  %vm591_vm3 = vweird.f32 %v2517_v28 }
  0xe6   : > { %v1821_v4 = vpop.eup %1820  ;;  %v805_v57 = vmul.f32 %v743_v59, %v2434_v1  ;;  %v767_v10 = vmul.f32 0.5, %v766_v29  ;;  %v1056_v49 = vsel %vm904_vm10, %v894_v30, 0  ;;  %v811_v52 = vmul.f32 %v803_v44, %v2451_v20  ;;  %vm2698_vm9 = vmor %vm591_vm3, %vm592_vm12  ;;  %v857_v29 = vld [vmem:[%s2741_s30 + $0x8] sm:$0xff] }
  0xe7   : > { %v775_v1 = vmul.f32 %v1821_v4, %v2645_v7  ;;  %v848_v26 = vmul.f32 %v2524_v9, %v643_v45  ;;  %1065 = vmatpush.bf16.msrb.mxu2 %v1056_v49  ;;  %v1051_v54 = vpack.c.b16 %v2590_v56, %v2519_v11  ;;  %v881_v40 = vpack.c.bf16 %v849_v2, %v849_v2  ;;  %vm2710_vm13 = vmor %vm770_vm4, %vm771_vm14 }
  0xe8   : > { %v889_v14 = vpack.c.bf16 %v805_v57, %v805_v57  ;;  %v768_v28 = vsub.f32 1.5, %v767_v10  ;;  %v594_v20 = vsel %vm2698_vm9, %v2561_v8, %v590_v62  ;;  %v895_v46 = vpack.c.bf16 %v811_v52, %v811_v52  ;;  %v863_v57 = vld [vmem:[%s2741_s30 + $0x38] sm:$0xff]  ;;  %v858_v10 = vld [vmem:[%s2741_s30 + $0x10] sm:$0xff] }
  0xe9   : > { %v776_v47 = vmul.f32 %v1821_v4, %v775_v1  ;;  %v584_v11 = vsel %vm2687_vm5, %v2554_v36, %v580_v34  ;;  %v926_v25 = vpack.c.b16 %v925_v58, %v924_v33  ;;  %vm780_vm6 = vweird.f32 %v2645_v7  ;;  %v868_v1 = vld [vmem:[%s2741_s30 + $0x60] sm:$0xff] }
  0xea   : > { %v931_v56 = vsel %vm904_vm10, %v889_v14, 0  ;;  %v769_v15 = vmul.f32 %v1819_v41, %v768_v28  ;;  %1710 = vmatmul.msk.bf16.vlgmr.msrb.gmra.mxu2 %vm410_vm0, %v1051_v54  ;;  %v1081_v8 = vsel %vm904_vm10, %v895_v46, 0  ;;  %vm781_vm7 = vweird.f32 %v1821_v4  ;;  %v861_v14 = vld [vmem:[%s2741_s30 + $0x28] sm:$0xff] }
  0xeb   : > { %940 = vmatpush.bf16.msra.mxu1 %v931_v56  ;;  %v777_v24 = vmul.f32 0.5, %v776_v47  ;;  %v646_v5 = vmul.f32 %v594_v20, %v2098_v48  ;;  %1090 = vmatpush.bf16.msrb.mxu3 %v1081_v8  ;;  %v880_v36 = vpack.c.bf16 %v848_v26, %v848_v26  ;;  %v1076_v23 = vpack.c.b16 %v2614_v13, %v2595_v27  ;;  %vm782_vm8 = vmor %vm780_vm6, %vm781_vm7  ;;  %v859_v20 = vld [vmem:[%s2741_s30 + $0x18] sm:$0xff]  ;;  %v870_v8 = vld [vmem:[%s2741_s30 + $0x70] sm:$0xff] }
  0xec   : > { %v773_v32 = vsel %vm2710_vm13, %v1819_v41, %v769_v15  ;;  %v645_v18 = vmul.f32 %v584_v11, %v2086_v43  ;;  %v1000_v51 = vunpack.c.l.b16 %v881_v40 }
  0xed   : > { %v808_v21 = vmul.f32 %v773_v32, %v2508_v0  ;;  %v778_v3 = vsub.f32 1.5, %v777_v24  ;;  %v851_v53 = vmul.f32 %v2604_v39, %v646_v5  ;;  %v999_v22 = vunpack.c.l.b16 %v880_v36  ;;  %v864_v24 = vld [vmem:[%s2741_s30 + $0x40] sm:$0xff]  ;;  %v871_v5 = vld [vmem:[%s2741_s30 + $0x78] sm:$0xff] }
  0xee   : > { %1705 = vmatmul.msk.bf16.vlgmr.msra.gmra.mxu1 %vm410_vm0, %v926_v25  ;;  %1711 = vmatmul.msk.bf16.vlgmr.msrb.gmra.mxu3 %vm410_vm0, %v1076_v23  ;;  %v850_v0 = vmul.f32 %v2604_v39, %v645_v18 }
  0xef   : > { %v892_v48 = vpack.c.bf16 %v808_v21, %v808_v21  ;;  %v779_v7 = vmul.f32 %v1821_v4, %v778_v3  ;;  %v1001_v13 = vpack.c.b16 %v1000_v51, %v999_v22  ;;  %v883_v38 = vpack.c.bf16 %v851_v53, %v851_v53  ;;  %v866_v51 = vld [vmem:[%s2741_s30 + $0x50] sm:$0xff]  ;;  %v869_v53 = vld [vmem:[%s2741_s30 + $0x68] sm:$0xff] }
  0xf0   : > { %v882_v45 = vpack.c.bf16 %v850_v0, %v850_v0 }
  0xf1   : > { %v1006_v60 = vsel %vm904_vm10, %v892_v48, 0  ;;  %v783_v27 = vsel %vm782_vm8, %v1821_v4, %v779_v7  ;;  %v1025_v6 = vunpack.c.l.b16 %v883_v38 }
  0xf2   : > { %1015 = vmatpush.bf16.msrb.mxu0 %v1006_v60  ;;  %v809_v43 = vmul.f32 %v783_v27, %v2533_v16  ;;  %v1024_v2 = vunpack.c.l.b16 %v882_v45  ;;  %v860_v16 = vld [vmem:[%s2741_s30 + $0x20] sm:$0xff]  ;;  %v865_v60 = vld [vmem:[%s2741_s30 + $0x48] sm:$0xff] }
  0xf4   : > { %v893_v41 = vpack.c.bf16 %v809_v43, %v809_v43  ;;  %v1026_v61 = vpack.c.b16 %v1025_v6, %v1024_v2 }
  0xf5   : > { %1708 = vmatmul.msk.bf16.vlgmr.msrb.gmra.mxu0 %vm410_vm0, %v1001_v13 }
  0xf6   : > { %v1031_v63 = vsel %vm904_vm10, %v893_v41, 0 }
  0xf7   : > { %1040 = vmatpush.bf16.msrb.mxu1 %v1031_v63  ;;  %v867_v63 = vld [vmem:[%s2741_s30 + $0x58] sm:$0xff] }
  0xfe   : > { %1709 = vmatmul.msk.bf16.vlgmr.msrb.gmra.mxu1 %vm410_vm0, %v1026_v61 }
 0x140   : > { %v967_v39 = vpop.f32.mrf.mxu2 }
 0x141   : > { %v2745_v42 = vadd.f32 %v967_v39, %v860_v16 }
 0x143   : > { %v1109_v34 = vsel %vm659_vm1, %v2745_v42, -inf }
 0x144   : > { %v992_v55 = vpop.f32.mrf.mxu3  ;;  %1110 = vmax.xlane.f32.xlu1 %v1109_v34 }
 0x145   : > { %v2749_v37 = vadd.f32 %v992_v55, %v862_v50 }
 0x147   : > { %v1115_v12 = vsel %vm659_vm1, %v2749_v37, -inf }
 0x148   : > { %1116 = vmax.xlane.f32.xlu2 %v1115_v12  ;;  %v969_v59 = vpop.f32.mrf.mxu2 }
 0x149   : > { %v2780_v46 = vadd.f32 %v969_v59, %v861_v14 }
 0x14b   : > { %v1112_v25 = vsel %vm659_vm1, %v2780_v46, -inf }
 0x14c   : > { %v994_v44 = vpop.f32.mrf.mxu3 }
 0x14d   : > { %v2765_v19 = vadd.f32 %v994_v44, %v863_v57 }
 0x14f   : > { %v1118_v54 = vsel %vm659_vm1, %v2765_v19, -inf }
 0x15a   : > { %v917_v62 = vpop.f32.mrf.mxu0 }
 0x15b   : > { %v2754_v31 = vadd.f32 %v917_v62, %v856_v35 }
 0x15d   : > { %v1097_v33 = vsel %vm659_vm1, %v2754_v31, -inf }
 0x15e   : > { %1098 = vmax.xlane.f32.xlu0 %v1097_v33 }
 0x162   : > { %v919_v30 = vpop.f32.mrf.mxu0 }
 0x163   : > { %v2759_v58 = vadd.f32 %v919_v30, %v857_v29 }
 0x165   : > { %v1100_v4 = vsel %vm659_vm1, %v2759_v58, -inf }
 0x166   : > { %1101 = vmax.xlane.f32.xlu1 %v1100_v4 }
 0x16b   : > { %v942_v49 = vpop.f32.mrf.mxu1 }
 0x16c   : > { %v2767_v52 = vadd.f32 %v942_v49, %v858_v10 }
 0x16d   : > { %v1067_v26 = vpop.f32.mrf.mxu2 }
 0x16e   : > { %v1103_v17 = vsel %vm659_vm1, %v2767_v52, -inf  ;;  %v2775_v28 = vadd.f32 %v1067_v26, %v868_v1  ;;  %1119 = vmax.xlane.f32.xlu1 %v1118_v54 }
 0x16f   : > { %1104 = vmax.xlane.f32.xlu0 %v1103_v17 }
 0x170   : > { %v1133_v40 = vsel %vm659_vm1, %v2775_v28, -inf }
 0x171   : > { %1134 = vmax.xlane.f32.xlu2 %v1133_v40  ;;  %v1092_v9 = vpop.f32.mrf.mxu3 }
 0x172   : > { %v1017_v56 = vpop.f32.mrf.mxu0  ;;  %v2791_v32 = vadd.f32 %v1092_v9, %v870_v8 }
 0x173   : > { %v944_v47 = vpop.f32.mrf.mxu1  ;;  %v2793_v36 = vadd.f32 %v1017_v56, %v864_v24 }
 0x174   : > { %v2782_v11 = vadd.f32 %v944_v47, %v859_v20  ;;  %v1139_v7 = vsel %vm659_vm1, %v2791_v32, -inf }
 0x175   : > { %v1121_v48 = vsel %vm659_vm1, %v2793_v36, -inf  ;;  %v1069_v22 = vpop.f32.mrf.mxu2 }
 0x176   : > { %v1106_v15 = vsel %vm659_vm1, %v2782_v11, -inf  ;;  %v2808_v43 = vadd.f32 %v1069_v22, %v869_v53 }
 0x177   : > { %1113 = vmax.xlane.f32.xlu0 %v1112_v25  ;;  %1107 = vmax.xlane.f32.xlu1 %v1106_v15 }
 0x178   : > { %v1136_v41 = vsel %vm659_vm1, %v2808_v43, -inf }
 0x179   : > { %v1094_v23 = vpop.f32.mrf.mxu3 }
 0x17a   : > { %v2795_v21 = vadd.f32 %v1094_v23, %v871_v5  ;;  %v1019_v27 = vpop.f32.mrf.mxu0 }
 0x17b   : > { %v1042_v3 = vpop.f32.mrf.mxu1  ;;  %v2810_v13 = vadd.f32 %v1019_v27, %v865_v60 }
 0x17c   : > { %v1142_v18 = vsel %vm659_vm1, %v2795_v21, -inf  ;;  %v2806_v0 = vadd.f32 %v1042_v3, %v866_v51 }
 0x17d   : > { %1143 = vmax.xlane.f32.xlu2 %v1142_v18  ;;  %v1124_v45 = vsel %vm659_vm1, %v2810_v13, -inf }
 0x17e   : > { %v1127_v38 = vsel %vm659_vm1, %v2806_v0, -inf }
 0x17f   : > { %1122 = vmax.xlane.f32.xlu0 %v1121_v48  ;;  %1140 = vmax.xlane.f32.xlu1 %v1139_v7 }
 0x183   : > { %v1044_v6 = vpop.f32.mrf.mxu1 }
 0x184   : > { %v2819_v2 = vadd.f32 %v1044_v6, %v867_v63 }
 0x185   : > { %1128 = vmax.xlane.f32.xlu2 %v1127_v38 }
 0x186   : > { %v1130_v61 = vsel %vm659_vm1, %v2819_v2, -inf }
 0x187   : > { %1137 = vmax.xlane.f32.xlu0 %v1136_v41  ;;  %1125 = vmax.xlane.f32.xlu1 %v1124_v45 }
 0x18f   : > { %1131 = vmax.xlane.f32.xlu0 %v1130_v61 }
 0x1b7   : > { %v1111_v12 = vpop.xlane.xlu1 %1110 }
 0x1bb   : > { %v1117_v16 = vpop.xlane.xlu2 %1116 }
 0x1bc   : > { %v1151_v39 = vsub.f32 %v2749_v37, %v1117_v16 }
 0x1be   : > { %v1173_v50 = vmul.f32 1.442695, %v1151_v39 }
 0x1c0   : > { %1822 = vpow2.f32 %v1173_v50 }
 0x1c6   : > { %v2824_v55 = vpop.eup %1822 }
 0x1c7   : > { %v1211_v34 = vsel %vm659_vm1, %v2824_v55, 0.0 }
 0x1c8   : > { %1212 = vadd.xlane.f32.xlu0 %v1211_v34 }
 0x1d1   : > { %v1099_v35 = vpop.xlane.xlu0 %1098 }
 0x1d2   : > { %v1145_v62 = vsub.f32 %v2754_v31, %v1099_v35  ;;  %v1149_v31 = vsub.f32 %v2745_v42, %v1111_v12 }
 0x1d4   : > { %v1161_v33 = vmul.f32 1.442695, %v1145_v62  ;;  %v1169_v14 = vmul.f32 1.442695, %v1149_v31 }
 0x1d6   : > { %1824 = vpow2.f32 %v1161_v33 }
 0x1d9   : > { %v1102_v29 = vpop.xlane.xlu1 %1101 }
 0x1da   : > { %v1146_v30 = vsub.f32 %v2759_v58, %v1102_v29 }
 0x1dc   : > { %v2830_v59 = vpop.eup %1824  ;;  %v1163_v37 = vmul.f32 1.442695, %v1146_v30 }
 0x1dd   : > { %v1193_v4 = vsel %vm659_vm1, %v2830_v59, 0.0 }
 0x1de   : > { %1826 = vpow2.f32 %v1163_v37  ;;  %1194 = vadd.xlane.f32.xlu2 %v1193_v4 }
 0x1e1   : > { %v1120_v44 = vpop.xlane.xlu1 %1119 }
 0x1e2   : > { %v1105_v57 = vpop.xlane.xlu0 %1104  ;;  %v1152_v42 = vsub.f32 %v2765_v19, %v1120_v44 }
 0x1e3   : > { %v1147_v10 = vsub.f32 %v2767_v52, %v1105_v57 }
 0x1e4   : > { %v2835_v49 = vpop.eup %1826  ;;  %v1135_v26 = vpop.xlane.xlu2 %1134  ;;  %v1175_v8 = vmul.f32 1.442695, %v1152_v42  ;;  %v1294_v42 = vld [vmem:[%s2907_s7 + $0x28] sm:$0xff] }
 0x1e5   : > { %v1165_v1 = vmul.f32 1.442695, %v1147_v10  ;;  %v1157_v58 = vsub.f32 %v2775_v28, %v1135_v26  ;;  %v1196_v17 = vsel %vm659_vm1, %v2835_v49, 0.0  ;;  %v1290_v26 = vld [vmem:[%s2907_s7 + $0x8] sm:$0xff] }
 0x1e6   : > { %1197 = vadd.xlane.f32.xlu0 %v1196_v17  ;;  %v1306_v17 = vpack.c.bf16 %v1290_v26, %v1290_v26  ;;  %v1298_v26 = vld [vmem:[%s2907_s7 + $0x48] sm:$0xff] }
 0x1e7   : > { %1828 = vpow2.f32 %v1165_v1  ;;  %v1185_v54 = vmul.f32 1.442695, %v1157_v58  ;;  %v1289_v1 = vld [vmem:[%s2907_s7] sm:$0xff] }
 0x1e8   : > { %v1305_v58 = vpack.c.bf16 %v1289_v1, %v1289_v1 }
 0x1e9   : > { %1830 = vpow2.f32 %v1185_v54 }
 0x1ea   : > { %v1114_v40 = vpop.xlane.xlu0 %1113  ;;  %v1108_v20 = vpop.xlane.xlu1 %1107  ;;  %1832 = vpow2.f32 %v1169_v14  ;;  %v1328_v54 = vunpack.c.l.b16 %v1305_v58  ;;  %v1329_v14 = vunpack.c.l.b16 %v1306_v17 }
 0x1eb   : > { %v1150_v52 = vsub.f32 %v2780_v46, %v1114_v40  ;;  %v1148_v9 = vsub.f32 %v2782_v11, %v1108_v20 }
 0x1ec   : > { %v1330_v40 = vpack.c.b16 %v1329_v14, %v1328_v54 }
 0x1ed   : > { %v2843_v47 = vpop.eup %1828  ;;  %v1171_v28 = vmul.f32 1.442695, %v1150_v52  ;;  %v1167_v25 = vmul.f32 1.442695, %v1148_v9  ;;  %v1293_v9 = vld [vmem:[%s2907_s7 + $0x20] sm:$0xff] }
 0x1ee   : > { %v1199_v56 = vsel %vm659_vm1, %v2843_v47, 0.0  ;;  %1342 = vmatpush.bf16.msra.mxu0 %v1330_v40 }
 0x1ef   : > { %1834 = vpow2.f32 %v1171_v28  ;;  %1200 = vadd.xlane.f32.xlu1 %v1199_v56  ;;  %v2848_v15 = vpop.eup %1830  ;;  %v1309_v28 = vpack.c.bf16 %v1293_v9, %v1293_v9  ;;  %v1310_v56 = vpack.c.bf16 %v1294_v42, %v1294_v42  ;;  %v1314_v42 = vpack.c.bf16 %v1298_v26, %v1298_v26 }
 0x1f0   : > { %v1144_v24 = vpop.xlane.xlu2 %1143  ;;  %v1229_v46 = vsel %vm659_vm1, %v2848_v15, 0.0  ;;  %v2853_v19 = vpop.eup %1832  ;;  %1836 = vpow2.f32 %v1167_v25 }
 0x1f1   : > { %v1160_v11 = vsub.f32 %v2795_v21, %v1144_v24  ;;  %1230 = vadd.xlane.f32.xlu0 %v1229_v46  ;;  %1838 = vpow2.f32 %v1175_v8  ;;  %v1205_v7 = vsel %vm659_vm1, %v2853_v19, 0.0  ;;  %v1384_v25 = vunpack.c.l.b16 %v1309_v28 }
 0x1f2   : > { %v1123_v5 = vpop.xlane.xlu0 %1122  ;;  %v1141_v23 = vpop.xlane.xlu1 %1140  ;;  %v1385_v8 = vunpack.c.l.b16 %v1310_v56 }
 0x1f3   : > { %v1159_v3 = vsub.f32 %v2791_v32, %v1141_v23  ;;  %v1191_v18 = vmul.f32 1.442695, %v1160_v11  ;;  %v1153_v48 = vsub.f32 %v2793_v36, %v1123_v5  ;;  %v1295_v11 = vld [vmem:[%s2907_s7 + $0x30] sm:$0xff]  ;;  %v1296_v5 = vld [vmem:[%s2907_s7 + $0x38] sm:$0xff] }
 0x1f4   : > { %v1386_v24 = vpack.c.b16 %v1385_v8, %v1384_v25  ;;  %v1291_v23 = vld [vmem:[%s2907_s7 + $0x10] sm:$0xff]  ;;  %v1441_v8 = vunpack.c.l.b16 %v1314_v42 }
 0x1f5   : > { %v2856_v51 = vpop.eup %1834  ;;  %1840 = vpow2.f32 %v1191_v18  ;;  %v1189_v53 = vmul.f32 1.442695, %v1159_v3  ;;  %v1177_v60 = vmul.f32 1.442695, %v1153_v48  ;;  %v1311_v18 = vpack.c.bf16 %v1295_v11, %v1295_v11  ;;  %v1300_v11 = vld [vmem:[%s2907_s7 + $0x58] sm:$0xff] }
 0x1f6   : > { %v1208_v21 = vsel %vm659_vm1, %v2856_v51, 0.0  ;;  %v2863_v22 = vpop.eup %1836  ;;  %1398 = vmatpush.bf16.msra.mxu2 %v1386_v24  ;;  %v1312_v48 = vpack.c.bf16 %v1296_v5, %v1296_v5 }
 0x1f7   : > { %1206 = vadd.xlane.f32.xlu1 %v1205_v7  ;;  %1209 = vadd.xlane.f32.xlu2 %v1208_v21  ;;  %v2866_v45 = vpop.eup %1838  ;;  %1842 = vpow2.f32 %v1189_v53  ;;  %v1202_v61 = vsel %vm659_vm1, %v2863_v22, 0.0  ;;  %v1292_v7 = vld [vmem:[%s2907_s7 + $0x18] sm:$0xff]  ;;  %v1307_v21 = vpack.c.bf16 %v1291_v23, %v1291_v23 }
 0x1f8   : > { %v1129_v32 = vpop.xlane.xlu2 %1128  ;;  %1844 = vpow2.f32 %v1177_v60  ;;  %v1308_v53 = vpack.c.bf16 %v1292_v7, %v1292_v7  ;;  %v1412_v60 = vunpack.c.l.b16 %v1311_v18 }
 0x1f9   : > { %v1155_v27 = vsub.f32 %v2806_v0, %v1129_v32  ;;  %v1214_v0 = vsel %vm659_vm1, %v2866_v45, 0.0  ;;  %v1413_v32 = vunpack.c.l.b16 %v1312_v48 }
 0x1fa   : > { %v1138_v38 = vpop.xlane.xlu0 %1137  ;;  %v1126_v41 = vpop.xlane.xlu1 %1125 }
 0x1fb   : > { %v1154_v36 = vsub.f32 %v2810_v13, %v1126_v41  ;;  %v2869_v63 = vpop.eup %1840  ;;  %v1181_v6 = vmul.f32 1.442695, %v1155_v27  ;;  %v1158_v16 = vsub.f32 %v2808_v43, %v1138_v38  ;;  %v1356_v27 = vunpack.c.l.b16 %v1307_v21 }
 0x1fc   : > { %v1238_v39 = vsel %vm659_vm1, %v2869_v63, 0.0  ;;  %v1357_v41 = vunpack.c.l.b16 %v1308_v53  ;;  %v1316_v53 = vpack.c.bf16 %v1300_v11, %v1300_v11 }
 0x1fd   : > { %1846 = vpow2.f32 %v1181_v6  ;;  %1239 = vadd.xlane.f32.xlu0 %v1238_v39  ;;  %v1179_v13 = vmul.f32 1.442695, %v1154_v36  ;;  %v2878_v50 = vpop.eup %1842  ;;  %v1187_v34 = vmul.f32 1.442695, %v1158_v16  ;;  %v1414_v36 = vpack.c.b16 %v1413_v32, %v1412_v60 }
 0x1fe   : > { %v2880_v35 = vpop.eup %1844  ;;  %v1235_v43 = vsel %vm659_vm1, %v2878_v50, 0.0  ;;  %v1358_v6 = vpack.c.b16 %v1357_v41, %v1356_v27  ;;  %v1469_v41 = vunpack.c.l.b16 %v1316_v53 }
 0x1ff   : > { %1215 = vadd.xlane.f32.xlu1 %v1214_v0  ;;  %1203 = vadd.xlane.f32.xlu2 %v1202_v61  ;;  %1848 = vpow2.f32 %v1179_v13  ;;  %v1217_v30 = vsel %vm659_vm1, %v2880_v35, 0.0 }
 0x200   : > { %1850 = vpow2.f32 %v1187_v34  ;;  %1426 = vmatpush.bf16.msra.mxu3 %v1414_v36  ;;  %1370 = vmatpush.bf16.msra.mxu1 %v1358_v6 }
 0x202   : > { %v1132_v12 = vpop.xlane.xlu0 %1131 }
 0x203   : > { %v2882_v62 = vpop.eup %1846  ;;  %v1156_v33 = vsub.f32 %v2819_v2, %v1132_v12 }
 0x204   : > { %v1223_v29 = vsel %vm659_vm1, %v2882_v62, 0.0 }
 0x205   : > { %1224 = vadd.xlane.f32.xlu0 %v1223_v29  ;;  %v2891_v37 = vpop.eup %1848  ;;  %v1183_v4 = vmul.f32 1.442695, %v1156_v33  ;;  %v1301_v29 = vld [vmem:[%s2907_s7 + $0x60] sm:$0xff] }
 0x206   : > { %v2893_v57 = vpop.eup %1850  ;;  %v1220_v44 = vsel %vm659_vm1, %v2891_v37, 0.0 }
 0x207   : > { %1236 = vadd.xlane.f32.xlu2 %v1235_v43  ;;  %1218 = vadd.xlane.f32.xlu1 %v1217_v30  ;;  %1852 = vpow2.f32 %v1183_v4  ;;  %v1232_v2 = vsel %vm659_vm1, %v2893_v57, 0.0  ;;  %v1302_v30 = vld [vmem:[%s2907_s7 + $0x68] sm:$0xff]  ;;  %v1303_v4 = vld [vmem:[%s2907_s7 + $0x70] sm:$0xff] }
 0x208   : > { %v1319_v1 = vpack.c.bf16 %v1303_v4, %v1303_v4 }
 0x20d   : > { %v2899_v10 = vpop.eup %1852 }
 0x20e   : > { %v1226_v31 = vsel %vm659_vm1, %v2899_v10, 0.0 }
 0x20f   : > { %1221 = vadd.xlane.f32.xlu2 %v1220_v44  ;;  %1233 = vadd.xlane.f32.xlu1 %v1232_v2  ;;  %v1317_v44 = vpack.c.bf16 %v1301_v29, %v1301_v29  ;;  %v1318_v2 = vpack.c.bf16 %v1302_v30, %v1302_v30 }
 0x211   : > { %v1496_v14 = vunpack.c.l.b16 %v1317_v44  ;;  %v1497_v40 = vunpack.c.l.b16 %v1318_v2 }
 0x213   : > { %v1498_v56 = vpack.c.b16 %v1497_v40, %v1496_v14 }
 0x215   : > { %1510 = vmatpush.bf16.msrb.mxu2 %v1498_v56 }
 0x217   : > { %1227 = vadd.xlane.f32.xlu1 %v1226_v31  ;;  %v1304_v31 = vld [vmem:[%s2907_s7 + $0x78] sm:$0xff] }
 0x218   : > { %v1320_v58 = vpack.c.bf16 %v1304_v31, %v1304_v31 }
 0x21a   : > { %v1525_v9 = vunpack.c.l.b16 %v1320_v58 }
 0x23b   : > { %v1213_v20 = vpop.xlane.xlu0 %1212 }
 0x251   : > { %v1195_v52 = vpop.xlane.xlu2 %1194 }
 0x252   : > { %1854 = vrcp.f32 %v1195_v52  ;;  %v1524_v52 = vunpack.c.l.b16 %v1319_v1 }
 0x254   : > { %v1526_v25 = vpack.c.b16 %v1525_v9, %v1524_v52 }
 0x256   : > { %1538 = vmatpush.bf16.msrb.mxu3 %v1526_v25 }
 0x258   : > { %v1855_v3 = vpop.eup %1854 }
 0x259   : > { %v1198_v46 = vpop.xlane.xlu0 %1197  ;;  %v1257_v38 = vmul.f32 %v1855_v3, %v2830_v59 }
 0x25a   : > { %1856 = vrcp.f32 %v1198_v46  ;;  %v1299_v46 = vld [vmem:[%s2907_s7 + $0x50] sm:$0xff] }
 0x25b   : > { %v1273_v16 = vpack.c.bf16 %v1257_v38, %v1257_v38  ;;  %v1315_v48 = vpack.c.bf16 %v1299_v46, %v1299_v46 }
 0x25d   : > { %v1323_v34 = vunpack.c.l.b16 %v1273_v16  ;;  %v1468_v27 = vunpack.c.l.b16 %v1315_v48 }
 0x260   : > { %v1857_v61 = vpop.eup %1856 }
 0x261   : > { %v1258_v0 = vmul.f32 %v1857_v61, %v2835_v49  ;;  %v1297_v49 = vld [vmem:[%s2907_s7 + $0x40] sm:$0xff] }
 0x262   : > { %v1201_v39 = vpop.xlane.xlu1 %1200  ;;  %v1313_v17 = vpack.c.bf16 %v1297_v49, %v1297_v49 }
 0x263   : > { %v1274_v13 = vpack.c.bf16 %v1258_v0, %v1258_v0 }
 0x264   : > { %v1231_v54 = vpop.xlane.xlu0 %1230  ;;  %v1440_v28 = vunpack.c.l.b16 %v1313_v17 }
 0x265   : > { %v1324_v12 = vunpack.c.l.b16 %v1274_v13 }
 0x266   : > { %v1442_v18 = vpack.c.b16 %v1441_v8, %v1440_v28 }
 0x267   : > { %v1325_v59 = vpack.c.b16 %v1324_v12, %v1323_v34 }
 0x268   : > { %1454 = vmatpush.bf16.msrb.mxu0 %v1442_v18 }
 0x269   : > { %1712 = vmatmul.msk.bf16.vlgmr.msra.gmra.mxu0 %vm659_vm1, %v1325_v59 }
 0x26a   : > { %v1207_v43 = vpop.xlane.xlu1 %1206  ;;  %v1210_v33 = vpop.xlane.xlu2 %1209 }
 0x26b   : > { %1858 = vrcp.f32 %v1207_v43 }
 0x26c   : > { %1860 = vrcp.f32 %v1210_v33 }
 0x26d   : > { %1862 = vrcp.f32 %v1213_v20 }
 0x26e   : > { %1864 = vrcp.f32 %v1201_v39  ;;  %v1470_v39 = vpack.c.b16 %v1469_v41, %v1468_v27 }
 0x270   : > { %v1240_v16 = vpop.xlane.xlu0 %1239  ;;  %1482 = vmatpush.bf16.msrb.mxu1 %v1470_v39 }
 0x271   : > { %v1859_v24 = vpop.eup %1858 }
 0x272   : > { %v1861_v5 = vpop.eup %1860  ;;  %v1261_v23 = vmul.f32 %v1859_v24, %v2853_v19  ;;  %v1216_v3 = vpop.xlane.xlu1 %1215 }
 0x273   : > { %v1204_v20 = vpop.xlane.xlu2 %1203  ;;  %v1863_v7 = vpop.eup %1862  ;;  %v1262_v21 = vmul.f32 %v1861_v5, %v2856_v51  ;;  %1866 = vrcp.f32 %v1216_v3 }
 0x274   : > { %v1865_v60 = vpop.eup %1864  ;;  %v1277_v32 = vpack.c.bf16 %v1261_v23, %v1261_v23  ;;  %1868 = vrcp.f32 %v1204_v20  ;;  %v1263_v36 = vmul.f32 %v1863_v7, %v2824_v55 }
 0x275   : > { %v1278_v38 = vpack.c.bf16 %v1262_v21, %v1262_v21  ;;  %v1259_v6 = vmul.f32 %v1865_v60, %v2843_v47  ;;  %1870 = vrcp.f32 %v1231_v54 }
 0x276   : > { %v1379_v19 = vunpack.c.l.b16 %v1277_v32  ;;  %v1279_v34 = vpack.c.bf16 %v1263_v36, %v1263_v36 }
 0x277   : > { %v1380_v61 = vunpack.c.l.b16 %v1278_v38  ;;  %v1275_v33 = vpack.c.bf16 %v1259_v6, %v1259_v6 }
 0x278   : > { %v1407_v30 = vunpack.c.l.b16 %v1279_v34  ;;  %v1225_v49 = vpop.xlane.xlu0 %1224 }
 0x279   : > { %v1867_v0 = vpop.eup %1866  ;;  %v1381_v13 = vpack.c.b16 %v1380_v61, %v1379_v19  ;;  %v1351_v44 = vunpack.c.l.b16 %v1275_v33 }
 0x27a   : > { %v1869_v51 = vpop.eup %1868  ;;  %v1264_v12 = vmul.f32 %v1867_v0, %v2866_v45  ;;  %v1219_v59 = vpop.xlane.xlu1 %1218 }
 0x27b   : > { %v1237_v43 = vpop.xlane.xlu2 %1236  ;;  %v1260_v29 = vmul.f32 %v1869_v51, %v2863_v22  ;;  %1714 = vmatmul.msk.bf16.vlgmr.msra.gmra.mxu2 %vm659_vm1, %v1381_v13  ;;  %v1871_v1 = vpop.eup %1870 }
 0x27c   : > { %v1280_v55 = vpack.c.bf16 %v1264_v12, %v1264_v12  ;;  %1872 = vrcp.f32 %v1237_v43  ;;  %v1269_v40 = vmul.f32 %v1871_v1, %v2848_v15 }
 0x27d   : > { %1874 = vrcp.f32 %v1240_v16  ;;  %v1276_v47 = vpack.c.bf16 %v1260_v29, %v1260_v29 }
 0x27e   : > { %v1408_v4 = vunpack.c.l.b16 %v1280_v55  ;;  %1876 = vrcp.f32 %v1219_v59  ;;  %v1285_v25 = vpack.c.bf16 %v1269_v40, %v1269_v40 }
 0x27f   : > { %v1352_v2 = vunpack.c.l.b16 %v1276_v47 }
 0x280   : > { %v1409_v31 = vpack.c.b16 %v1408_v4, %v1407_v30  ;;  %v1491_v20 = vunpack.c.l.b16 %v1285_v25 }
 0x281   : > { %v1353_v45 = vpack.c.b16 %v1352_v2, %v1351_v44 }
 0x282   : > { %v1873_v26 = vpop.eup %1872  ;;  %v1234_v58 = vpop.xlane.xlu1 %1233  ;;  %1715 = vmatmul.msk.bf16.vlgmr.msra.gmra.mxu3 %vm659_vm1, %v1409_v31 }
 0x283   : > { %v1222_v22 = vpop.xlane.xlu2 %1221  ;;  %v1875_v17 = vpop.eup %1874  ;;  %1878 = vrcp.f32 %v1234_v58  ;;  %1713 = vmatmul.msk.bf16.vlgmr.msra.gmra.mxu1 %vm659_vm1, %v1353_v45  ;;  %v1271_v14 = vmul.f32 %v1873_v26, %v2878_v50 }
 0x284   : > { %v1877_v54 = vpop.eup %1876  ;;  %1880 = vrcp.f32 %v1222_v22  ;;  %v1272_v52 = vmul.f32 %v1875_v17, %v2869_v63 }
 0x285   : > { %1882 = vrcp.f32 %v1225_v49  ;;  %v1265_v9 = vmul.f32 %v1877_v54, %v2880_v35  ;;  %v1287_v42 = vpack.c.bf16 %v1271_v14, %v1271_v14 }
 0x286   : > { %v1288_v8 = vpack.c.bf16 %v1272_v52, %v1272_v52 }
 0x287   : > { %v1281_v5 = vpack.c.bf16 %v1265_v9, %v1265_v9  ;;  %v1519_v23 = vunpack.c.l.b16 %v1287_v42 }
 0x288   : > { %v1520_v63 = vunpack.c.l.b16 %v1288_v8 }
 0x289   : > { %v1879_v28 = vpop.eup %1878  ;;  %v1435_v48 = vunpack.c.l.b16 %v1281_v5 }
 0x28a   : > { %v1881_v56 = vpop.eup %1880  ;;  %v1270_v24 = vmul.f32 %v1879_v28, %v2893_v57  ;;  %v1228_v46 = vpop.xlane.xlu1 %1227  ;;  %v1521_v21 = vpack.c.b16 %v1520_v63, %v1519_v23 }
 0x28b   : > { %v1883_v11 = vpop.eup %1882  ;;  %v1266_v50 = vmul.f32 %v1881_v56, %v2891_v37  ;;  %1884 = vrcp.f32 %v1228_v46 }
 0x28c   : > { %v1286_v3 = vpack.c.bf16 %v1270_v24, %v1270_v24  ;;  %v1267_v35 = vmul.f32 %v1883_v11, %v2882_v62 }
 0x28d   : > { %v1282_v15 = vpack.c.bf16 %v1266_v50, %v1266_v50 }
 0x28e   : > { %v1492_v18 = vunpack.c.l.b16 %v1286_v3  ;;  %v1283_v32 = vpack.c.bf16 %v1267_v35, %v1267_v35 }
 0x28f   : > { %v1436_v7 = vunpack.c.l.b16 %v1282_v15 }
 0x290   : > { %v1493_v53 = vpack.c.b16 %v1492_v18, %v1491_v20  ;;  %v1463_v38 = vunpack.c.l.b16 %v1283_v32 }
 0x291   : > { %v1885_v57 = vpop.eup %1884  ;;  %v1437_v60 = vpack.c.b16 %v1436_v7, %v1435_v48 }
 0x292   : > { %v1268_v27 = vmul.f32 %v1885_v57, %v2899_v10  ;;  %1718 = vmatmul.msk.bf16.vlgmr.msrb.gmra.mxu2 %vm659_vm1, %v1493_v53  ;;  %1719 = vmatmul.msk.bf16.vlgmr.msrb.gmra.mxu3 %vm659_vm1, %v1521_v21 }
 0x293   : > { %1716 = vmatmul.msk.bf16.vlgmr.msrb.gmra.mxu0 %vm659_vm1, %v1437_v60 }
 0x294   : > { %v1284_v37 = vpack.c.bf16 %v1268_v27, %v1268_v27 }
 0x296   : > { %v1464_v62 = vunpack.c.l.b16 %v1284_v37 }
 0x298   : > { %v1465_v41 = vpack.c.b16 %v1464_v62, %v1463_v38 }
 0x29a   : > { %1717 = vmatmul.msk.bf16.vlgmr.msrb.gmra.mxu1 %vm659_vm1, %v1465_v41 }
 0x2e6   : > { %v1344_v10 = vpop.f32.mrf.mxu0 }
 0x2e7   : > { %1545 = vst.msk [vmem:[%s2953_s10] sm:$0xff] %vm410_vm0, %v1344_v10 }
 0x2ee   : > { %v1346_v36 = vpop.f32.mrf.mxu0 }
 0x2ef   : > { %1546 = vst.msk [vmem:[%s2953_s10 + $0x8] sm:$0xff] %vm410_vm0, %v1346_v36 }
 0x2fe   : > { %v1400_v19 = vpop.f32.mrf.mxu2 }
 0x2ff   : > { %1549 = vst.msk [vmem:[%s2953_s10 + $0x20] sm:$0xff] %vm410_vm0, %v1400_v19 }
 0x300   : > { %v1372_v6 = vpop.f32.mrf.mxu1 }
 0x301   : > { %1547 = vst.msk [vmem:[%s2953_s10 + $0x10] sm:$0xff] %vm410_vm0, %v1372_v6 }
 0x305   : > { %v1428_v61 = vpop.f32.mrf.mxu3 }
 0x306   : > { %v1402_v16 = vpop.f32.mrf.mxu2  ;;  %1551 = vst.msk [vmem:[%s2953_s10 + $0x30] sm:$0xff] %vm410_vm0, %v1428_v61 }
 0x307   : > { %1550 = vst.msk [vmem:[%s2953_s10 + $0x28] sm:$0xff] %vm410_vm0, %v1402_v16 }
 0x308   : > { %v1374_v39 = vpop.f32.mrf.mxu1 }
 0x309   : > { %1548 = vst.msk [vmem:[%s2953_s10 + $0x18] sm:$0xff] %vm410_vm0, %v1374_v39 }
 0x30d   : > { %v1430_v0 = vpop.f32.mrf.mxu3 }
 0x30e   : > { %1552 = vst.msk [vmem:[%s2953_s10 + $0x38] sm:$0xff] %vm410_vm0, %v1430_v0 }
 0x310   : > { %v1456_v13 = vpop.f32.mrf.mxu0 }
 0x311   : > { %1553 = vst.msk [vmem:[%s2953_s10 + $0x40] sm:$0xff] %vm410_vm0, %v1456_v13 }
 0x315   : > { %v1512_v51 = vpop.f32.mrf.mxu2  ;;  %v1540_v34 = vpop.f32.mrf.mxu3 }
 0x316   : > { %1557 = vst.msk [vmem:[%s2953_s10 + $0x60] sm:$0xff] %vm410_vm0, %v1512_v51 }
 0x317   : > { %1559 = vst.msk [vmem:[%s2953_s10 + $0x70] sm:$0xff] %vm410_vm0, %v1540_v34  ;;  %v1484_v12 = vpop.f32.mrf.mxu1 }
 0x318   : > { %v1458_v59 = vpop.f32.mrf.mxu0  ;;  %1555 = vst.msk [vmem:[%s2953_s10 + $0x50] sm:$0xff] %vm410_vm0, %v1484_v12 }
 0x319   : > { %1554 = vst.msk [vmem:[%s2953_s10 + $0x48] sm:$0xff] %vm410_vm0, %v1458_v59 }
 0x31d   : > { %v1514_v43 = vpop.f32.mrf.mxu2  ;;  %v1542_v33 = vpop.f32.mrf.mxu3 }
 0x31e   : > { %1558 = vst.msk [vmem:[%s2953_s10 + $0x68] sm:$0xff] %vm410_vm0, %v1514_v43 }
 0x31f   : > { %1560 = vst.msk [vmem:[%s2953_s10 + $0x78] sm:$0xff] %vm410_vm0, %v1542_v33  ;;  %v1486_v29 = vpop.f32.mrf.mxu1 }
 0x320   : > { %1556 = vst.msk [vmem:[%s2953_s10 + $0x58] sm:$0xff] %vm410_vm0, %v1486_v29 }
 0x321 PF: > { %s15_s22 = sadd.s32 1, %s1924_s22   ;;  %s3054_s18 = smov %s1916_s20 }
 0x322   : > { %p12_p7 = scmp.ge.s32.totalorder %s15_s22, 6   ;;  %s3055_s19 = smov %s1920_s21 }
 0x323   : > { %s3056_s20 = smov %s3059_s23  ;;  %s3057_s21 = smov %s3063_s24 }
 0x324   :  { %14 = sbr.rel (!%p12_p7) target bundleno = 3 (0x3), region = 79 }

// kernel: basic_layer_up_forward.13
= control target key start
LH: loop header
LB: loop body
LE: loop exit
PB: predicated region body
PF: predicated region fallthrough
CT: control target
= control target key end

     0   :  { %s1350_s17 = smov 0   ;;  %s1776_s0 = inlined_call_operand.vmem [shape: f32[128,32], index: 0, kind: input, shape index: {}]   ;;  %s1777_s1 = inlined_call_operand.vmem [shape: f32[128,48], index: 1, kind: input, shape index: {}]   ;;  %s1778_s2 = inlined_call_operand.vmem [shape: bf16[48,32], index: 2, kind: input, shape index: {}]   ;;  %s1779_s3 = inlined_call_operand.vmem [shape: f32[1,32], index: 3, kind: input, shape index: {}]   ;;  %s1780_s4 = inlined_call_operand.vmem [shape: f32[1,32], index: 4, kind: input, shape index: {}]   ;;  %s1781_s5 = inlined_call_operand.vmem [shape: f32[1,32], index: 5, kind: input, shape index: {}]   ;;  %s1782_s6 = inlined_call_operand.vmem [shape: bf16[32,32], index: 6, kind: input, shape index: {}]   ;;  %s1783_s7 = inlined_call_operand.vmem [shape: bf16[32,32], index: 7, kind: input, shape index: {}]   ;;  %s1784_s8 = inlined_call_operand.vmem [shape: f32[1,32], index: 8, kind: input, shape index: {}]   ;;  %s1785_s9 = inlined_call_operand.vmem [shape: f32[1,32], index: 9, kind: input, shape index: {}]   ;;  %s1786_s10 = inlined_call_operand.vmem [shape: f32[1,32], index: 10, kind: input, shape index: {}]   ;;  %s1787_s11 = inlined_call_operand.vmem [shape: f32[128,32], index: 11, kind: output, shape index: {}]  }
   0x1 LB: > { %s1169_s18 = sadd.s32 4294967295, %s1287_s17   ;;  %p1173_p0 = scmp.ge.s32.totalorder %s1287_s17, 1  ;;  %s1287_s17 = sphi %s1350_s17, %s21_s17  }
   0x2   : > { %p349_p1 = scmp.lt.s32.totalorder %s1287_s17, 3 }
   0x4   : > { %p350_p2 = pnand %p1173_p0, %p349_p1 }
   0x5   : > { %s1174_s21 = sshll.u32 (!%p350_p2), %s1169_s18, 3 }
   0x6   : > { %353 = sbr.rel (%p350_p2) target bundleno = 656 (0x290), region = 64  ;;  %p395_p3 = scmp.lt.s32.totalorder (!%p350_p2), %s1174_s21, 15 }
   0xb   : > { %v1224_v0 = vld [vmem:[%s1778_s2 + $0x10] sm:$0xff]  ;;  %v1223_v1 = vld [vmem:[%s1778_s2 + $0x8] sm:$0xff]  ;;  %s1795_s21 = smov (!%p395_p3, %s1174_s21), 15  ;;  %v1222_v2 = vld [vmem:[%s1778_s2] sm:$0xff]  ;;  %vm453_vm0 = vcmask 392192   ;;  %vm497_vm1 = vcmask 261120  }
   0xc   : > { %471 = vmatpush.bf16.msra.mxu0 %v1224_v0  ;;  %1229 = vmatpush.bf16.msra.mxu3 %v1224_v0  ;;  %s1364_s24 = sshll.u32 %s1795_s21, 3  ;;  %v1241_v15 = vld [vmem:[%s1779_s3] ss:$0 sm:$0xff]  ;;  %v1289_v56 = vmov 32.0   ;;  %v1226_v61 = vld [vmem:[%s1782_s6 + $0x8] sm:$0xff] }
   0xd   : > { %s404_s29 = scalar_lea.vmem %s1777_s1, %s1364_s24  ;;  %1247 = vrcp.f32 %v1289_v56  ;;  %834 = vmatpush.bf16.msra.mxu2 %v1226_v61  ;;  %s1439_s18 = scalar_lea.vmem %s1776_s0, %s1364_s24  ;;  %v1225_v63 = vld [vmem:[%s1782_s6] sm:$0xff] }
   0xe   : > { %v413_v3 = vld [vmem:[%s404_s29] sm:$0xff]  ;;  %v414_v4 = vld [vmem:[%s404_s29 + $0x8] sm:$0xff]  ;;  %v415_v5 = vld [vmem:[%s404_s29 + $0x10] sm:$0xff]  ;;  %s1712_s20 = scalar_lea.vmem %s1787_s11, %s1364_s24 }
   0xf   : > { %v416_v6 = vld [vmem:[%s404_s29 + $0x18] sm:$0xff]  ;;  %v421_v7 = vpack.c.bf16 %v414_v4, %v413_v3  ;;  %v417_v9 = vld [vmem:[%s404_s29 + $0x20] sm:$0xff]  ;;  %v418_v10 = vld [vmem:[%s404_s29 + $0x28] sm:$0xff] }
  0x10   : > { %472 = vmatpush.bf16.msra.mxu0 %v1223_v1  ;;  %1230 = vmatpush.bf16.msra.mxu3 %v1223_v1  ;;  %v422_v8 = vpack.c.bf16 %v416_v6, %v415_v5  ;;  %v423_v11 = vpack.c.bf16 %v418_v10, %v417_v9  ;;  %v419_v12 = vld [vmem:[%s404_s29 + $0x30] sm:$0xff]  ;;  %v420_v13 = vld [vmem:[%s404_s29 + $0x38] sm:$0xff]  ;;  %v727_v0 = vld [vmem:[%s1439_s18] sm:$0xff] }
  0x11   : > { %v424_v14 = vpack.c.bf16 %v420_v13, %v419_v12  ;;  %835 = vmatpush.bf16.msra.mxu2 %v1225_v63  ;;  %v728_v1 = vld [vmem:[%s1439_s18 + $0x8] sm:$0xff] }
  0x12   : > { %v735_v3 = vpack.c.bf16 %v728_v1, %v727_v0  ;;  %v1228_v10 = vld [vmem:[%s1783_s7 + $0x8] sm:$0xff] }
  0x13   : > { %v1248_v57 = vpop.eup %1247  ;;  %781 = vmatpush.bf16.msra.mxu1 %v1228_v10 }
  0x14   : > { %473 = vmatpush.bf16.msra.mxu0 %v1222_v2  ;;  %1231 = vmatpush.bf16.msra.mxu3 %v1222_v2  ;;  %v523_v58 = vmul.f32 32.0, %v1248_v57  ;;  %vm527_vm2 = vweird.f32 %v1248_v57 }
  0x15   : > { %1216 = vmatmul.msk.bf16.vlgmr.msra.gmra.mxu2 %vm497_vm1, %v735_v3  ;;  %v731_v3 = vld [vmem:[%s1439_s18 + $0x20] sm:$0xff] }
  0x16   : > { %v524_v59 = vsub.f32 1.0, %v523_v58 }
  0x17   : > { %1192 = vmatmul.msk.bf16.vlgmr.msra.gmra.mxu0 %vm453_vm0, %v421_v7  ;;  %1193 = vmatmul.msk.bf16.vlgmr.msra.gmra.mxu3 %vm453_vm0, %v422_v8 }
  0x18   : > { %v525_v60 = vmul.f32 %v1248_v57, %v524_v59 }
  0x1a   : > { %v526_v62 = vadd.f32 %v1248_v57, %v525_v60 }
  0x1c   : > { %v1446_v2 = vsel %vm527_vm2, %v1248_v57, %v526_v62 }
  0x27   : > { %1194 = vmatmul.msk.bf16.gmra.mxu3 %vm453_vm0, %v423_v11 }
  0x37   : > { %1195 = vmatmul.msk.bf16.gmra.mxu3 %vm453_vm0, %v424_v14 }
  0x94   : > { %v475_v16 = vpop.f32.mrf.mxu0 }
  0x95   : > { %v1376_v17 = vadd.f32 %v1241_v15, %v475_v16  ;;  %v1227_v16 = vld [vmem:[%s1783_s7] sm:$0xff] }
  0x96   : > { %782 = vmatpush.bf16.msra.mxu1 %v1227_v16 }
  0x97   : > { %v498_v18 = vsel %vm497_vm1, %v1376_v17, 0.0  ;;  %v537_v19 = vmul.f32 %v1376_v17, %v1376_v17 }
  0x98   : > { %499 = vadd.xlane.f32.xlu0 %v498_v18 }
  0x99   : > { %v545_v20 = vsel %vm497_vm1, %v537_v19, 0.0 }
  0x9a   : > { %v480_v21 = vpop.f32.mrf.mxu3  ;;  %546 = vadd.xlane.f32.xlu1 %v545_v20 }
  0x9b   : > { %v1383_v22 = vadd.f32 %v1241_v15, %v480_v21 }
  0x9c   : > { %v477_v23 = vpop.f32.mrf.mxu0 }
  0x9d   : > { %v1385_v24 = vadd.f32 %v1241_v15, %v477_v23  ;;  %v504_v25 = vsel %vm497_vm1, %v1383_v22, 0.0  ;;  %v539_v29 = vmul.f32 %v1383_v22, %v1383_v22 }
  0x9e   : > { %505 = vadd.xlane.f32.xlu2 %v504_v25 }
  0x9f   : > { %v501_v26 = vsel %vm497_vm1, %v1385_v24, 0.0  ;;  %v538_v27 = vmul.f32 %v1385_v24, %v1385_v24  ;;  %v551_v33 = vsel %vm497_vm1, %v539_v29, 0.0 }
  0xa0   : > { %502 = vadd.xlane.f32.xlu0 %v501_v26  ;;  %v729_v26 = vld [vmem:[%s1439_s18 + $0x10] sm:$0xff] }
  0xa1   : > { %v548_v28 = vsel %vm497_vm1, %v538_v27, 0.0  ;;  %v730_v27 = vld [vmem:[%s1439_s18 + $0x18] sm:$0xff] }
  0xa2   : > { %v482_v30 = vpop.f32.mrf.mxu3  ;;  %549 = vadd.xlane.f32.xlu1 %v548_v28 }
  0xa3   : > { %v1396_v31 = vadd.f32 %v1241_v15, %v482_v30  ;;  %v736_v30 = vpack.c.bf16 %v730_v27, %v729_v26  ;;  %v1525_v26 = vld [vmem:[%s1780_s4] ss:$0 sm:$0xff] }
  0xa5   : > { %v507_v32 = vsel %vm497_vm1, %v1396_v31, 0.0  ;;  %v540_v34 = vmul.f32 %v1396_v31, %v1396_v31  ;;  %1217 = vmatmul.msk.bf16.gmra.mxu2 %vm497_vm1, %v736_v30 }
  0xa6   : > { %508 = vadd.xlane.f32.xlu2 %v507_v32 }
  0xa7   : > { %v554_v35 = vsel %vm497_vm1, %v540_v34, 0.0 }
  0xa8   : > { %552 = vadd.xlane.f32.xlu0 %v551_v33 }
  0xaa   : > { %v485_v36 = vpop.f32.mrf.mxu3  ;;  %555 = vadd.xlane.f32.xlu1 %v554_v35 }
  0xab   : > { %v1404_v37 = vadd.f32 %v1241_v15, %v485_v36 }
  0xad   : > { %v510_v38 = vsel %vm497_vm1, %v1404_v37, 0.0  ;;  %v541_v39 = vmul.f32 %v1404_v37, %v1404_v37 }
  0xae   : > { %511 = vadd.xlane.f32.xlu2 %v510_v38 }
  0xaf   : > { %v557_v40 = vsel %vm497_vm1, %v541_v39, 0.0 }
  0xb2   : > { %v487_v41 = vpop.f32.mrf.mxu3  ;;  %558 = vadd.xlane.f32.xlu1 %v557_v40 }
  0xb3   : > { %v1411_v42 = vadd.f32 %v1241_v15, %v487_v41 }
  0xb5   : > { %v513_v43 = vsel %vm497_vm1, %v1411_v42, 0.0  ;;  %v542_v44 = vmul.f32 %v1411_v42, %v1411_v42 }
  0xb6   : > { %514 = vadd.xlane.f32.xlu0 %v513_v43 }
  0xb7   : > { %v560_v45 = vsel %vm497_vm1, %v542_v44, 0.0 }
  0xb8   : > { %561 = vadd.xlane.f32.xlu2 %v560_v45 }
  0xba   : > { %v490_v46 = vpop.f32.mrf.mxu3 }
  0xbb   : > { %v1418_v47 = vadd.f32 %v1241_v15, %v490_v46 }
  0xbd   : > { %v516_v48 = vsel %vm497_vm1, %v1418_v47, 0.0  ;;  %v543_v49 = vmul.f32 %v1418_v47, %v1418_v47 }
  0xbe   : > { %517 = vadd.xlane.f32.xlu0 %v516_v48 }
  0xbf   : > { %v563_v50 = vsel %vm497_vm1, %v543_v49, 0.0 }
  0xc0   : > { %564 = vadd.xlane.f32.xlu2 %v563_v50 }
  0xc2   : > { %v492_v51 = vpop.f32.mrf.mxu3 }
  0xc3   : > { %v1425_v52 = vadd.f32 %v1241_v15, %v492_v51 }
  0xc5   : > { %v519_v53 = vsel %vm497_vm1, %v1425_v52, 0.0  ;;  %v544_v54 = vmul.f32 %v1425_v52, %v1425_v52 }
  0xc6   : > { %520 = vadd.xlane.f32.xlu1 %v519_v53 }
  0xc7   : > { %v566_v55 = vsel %vm497_vm1, %v544_v54, 0.0 }
  0xc8   : > { %567 = vadd.xlane.f32.xlu0 %v566_v55 }
 0x10b   : > { %v500_v4 = vpop.xlane.xlu0 %499 }
 0x10c   : > { %v1450_v5 = vmul.f32 %v1446_v2, %v500_v4  ;;  %v732_v4 = vld [vmem:[%s1439_s18 + $0x28] sm:$0xff] }
 0x10d   : > { %v547_v6 = vpop.xlane.xlu1 %546  ;;  %v737_v10 = vpack.c.bf16 %v732_v4, %v731_v3  ;;  %v733_v4 = vld [vmem:[%s1439_s18 + $0x30] sm:$0xff] }
 0x10e   : > { %v577_v7 = vmul.f32 %v1450_v5, %v1450_v5  ;;  %v569_v8 = vmul.f32 %v547_v6, %v1446_v2 }
 0x10f   : > { %1218 = vmatmul.msk.bf16.gmra.mxu2 %vm497_vm1, %v737_v10 }
 0x110   : > { %v585_v9 = vsub.f32 %v569_v8, %v577_v7 }
 0x111   : > { %v506_v11 = vpop.xlane.xlu2 %505 }
 0x112   : > { %v593_v12 = vmax.f32 %v585_v9, 0.0  ;;  %v1468_v21 = vmul.f32 %v1446_v2, %v506_v11  ;;  %v601_v11 = vsub.f32 %v1376_v17, %v1450_v5 }
 0x113   : > { %v503_v13 = vpop.xlane.xlu0 %502 }
 0x114   : > { %v609_v14 = vadd.f32 1e-05, %v593_v12  ;;  %v1459_v15 = vmul.f32 %v1446_v2, %v503_v13  ;;  %v579_v28 = vmul.f32 %v1468_v21, %v1468_v21 }
 0x115   : > { %v550_v18 = vpop.xlane.xlu1 %549 }
 0x116   : > { %1249 = vrsqrt.f32 %v609_v14  ;;  %v578_v19 = vmul.f32 %v1459_v15, %v1459_v15  ;;  %v570_v20 = vmul.f32 %v550_v18, %v1446_v2  ;;  %vm623_vm4 = vweird.f32 %v609_v14 }
 0x117   : > { %v602_v30 = vsub.f32 %v1385_v24, %v1459_v15 }
 0x118   : > { %v586_v23 = vsub.f32 %v570_v20, %v578_v19 }
 0x119   : > { %v509_v25 = vpop.xlane.xlu2 %508 }
 0x11a   : > { %v1475_v29 = vmul.f32 %v1446_v2, %v509_v25  ;;  %v594_v32 = vmax.f32 %v586_v23, 0.0 }
 0x11b   : > { %v553_v33 = vpop.xlane.xlu0 %552 }
 0x11c   : > { %v1250_v34 = vpop.eup %1249  ;;  %v580_v35 = vmul.f32 %v1475_v29, %v1475_v29  ;;  %v571_v36 = vmul.f32 %v553_v33, %v1446_v2  ;;  %v610_v39 = vadd.f32 1e-05, %v594_v32 }
 0x11d   : > { %v618_v38 = vmul.f32 %v1250_v34, %v609_v14  ;;  %v556_v40 = vpop.xlane.xlu1 %555  ;;  %vm624_vm3 = vweird.f32 %v1250_v34 }
 0x11e   : > { %v587_v41 = vsub.f32 %v571_v36, %v579_v28  ;;  %v572_v43 = vmul.f32 %v556_v40, %v1446_v2  ;;  %1251 = vrsqrt.f32 %v610_v39  ;;  %vm1494_vm5 = vmor %vm623_vm4, %vm624_vm3  ;;  %vm633_vm7 = vweird.f32 %v610_v39 }
 0x11f   : > { %v619_v44 = vmul.f32 %v1250_v34, %v618_v38 }
 0x120   : > { %v595_v45 = vmax.f32 %v587_v41, 0.0  ;;  %v588_v46 = vsub.f32 %v572_v43, %v580_v35 }
 0x121   : > { %v620_v48 = vmul.f32 0.5, %v619_v44  ;;  %v512_v49 = vpop.xlane.xlu2 %511 }
 0x122   : > { %v1482_v50 = vadd.f32 1e-05, %v595_v45  ;;  %v596_v51 = vmax.f32 %v588_v46, 0.0  ;;  %v1485_v54 = vmul.f32 %v1446_v2, %v512_v49 }
 0x123   : > { %v621_v53 = vsub.f32 1.5, %v620_v48 }
 0x124   : > { %1253 = vrsqrt.f32 %v1482_v50  ;;  %v1488_v55 = vadd.f32 1e-05, %v596_v51  ;;  %v1252_v56 = vpop.eup %1251  ;;  %v581_v57 = vmul.f32 %v1485_v54, %v1485_v54  ;;  %vm643_vm13 = vweird.f32 %v1482_v50 }
 0x125   : > { %v559_v58 = vpop.xlane.xlu1 %558  ;;  %v622_v59 = vmul.f32 %v1250_v34, %v621_v53  ;;  %v628_v60 = vmul.f32 %v1252_v56, %v610_v39  ;;  %vm634_vm6 = vweird.f32 %v1252_v56  ;;  %v1535_v39 = vld [vmem:[%s1781_s5] ss:$0 sm:$0xff] }
 0x126   : > { %1255 = vrsqrt.f32 %v1488_v55  ;;  %v573_v61 = vmul.f32 %v559_v58, %v1446_v2  ;;  %vm635_vm8 = vmor %vm633_vm7, %vm634_vm6  ;;  %vm653_vm11 = vweird.f32 %v1488_v55 }
 0x127   : > { %v629_v62 = vmul.f32 %v1252_v56, %v628_v60  ;;  %v626_v9 = vsel %vm1494_vm5, %v1250_v34, %v622_v59 }
 0x128   : > { %v589_v0 = vsub.f32 %v573_v61, %v581_v57  ;;  %v697_v25 = vmul.f32 %v626_v9, %v601_v11 }
 0x129   : > { %v515_v1 = vpop.xlane.xlu0 %514  ;;  %v630_v7 = vmul.f32 0.5, %v629_v62 }
 0x12a   : > { %v1500_v6 = vpop.eup %1253  ;;  %v1503_v8 = vmul.f32 %v1446_v2, %v515_v1  ;;  %v597_v13 = vmax.f32 %v589_v0, 0.0  ;;  %v708_v41 = vmul.f32 %v1525_v26, %v697_v25  ;;  %v604_v0 = vsub.f32 %v1396_v31, %v1475_v29 }
 0x12b   : > { %v638_v12 = vmul.f32 %v1500_v6, %v1482_v50  ;;  %v562_v14 = vpop.xlane.xlu2 %561  ;;  %v631_v18 = vsub.f32 1.5, %v630_v7  ;;  %vm644_vm10 = vweird.f32 %v1500_v6  ;;  %v734_v7 = vld [vmem:[%s1439_s18 + $0x38] sm:$0xff]  ;;  %v603_v50 = vsub.f32 %v1383_v22, %v1468_v21 }
 0x12c   : > { %v1511_v16 = vpop.eup %1255  ;;  %v582_v19 = vmul.f32 %v1503_v8, %v1503_v8  ;;  %v574_v20 = vmul.f32 %v562_v14, %v1446_v2  ;;  %v1520_v5 = vadd.f32 1e-05, %v597_v13  ;;  %vm1568_vm14 = vmor %vm643_vm13, %vm644_vm10 }
 0x12d   : > { %v639_v23 = vmul.f32 %v1500_v6, %v638_v12  ;;  %v648_v17 = vmul.f32 %v1511_v16, %v1488_v55  ;;  %v632_v27 = vmul.f32 %v1252_v56, %v631_v18  ;;  %vm654_vm9 = vweird.f32 %v1511_v16 }
 0x12e   : > { %v590_v28 = vsub.f32 %v574_v20, %v582_v19  ;;  %1257 = vrsqrt.f32 %v1520_v5  ;;  %vm1558_vm12 = vmor %vm653_vm11, %vm654_vm9  ;;  %vm663_vm0 = vweird.f32 %v1520_v5 }
 0x12f   : > { %v640_v32 = vmul.f32 0.5, %v639_v23  ;;  %v649_v33 = vmul.f32 %v1511_v16, %v648_v17  ;;  %v636_v35 = vsel %vm635_vm8, %v1252_v56, %v632_v27  ;;  %v719_v56 = vadd.f32 %v1535_v39, %v708_v41 }
 0x130   : > { %v598_v34 = vmax.f32 %v590_v28, 0.0  ;;  %v698_v40 = vmul.f32 %v636_v35, %v602_v30 }
 0x131   : > { %v650_v36 = vmul.f32 0.5, %v649_v33  ;;  %v518_v38 = vpop.xlane.xlu0 %517  ;;  %v641_v43 = vsub.f32 1.5, %v640_v32 }
 0x132   : > { %v1537_v24 = vadd.f32 1e-05, %v598_v34  ;;  %v1540_v15 = vmul.f32 %v1446_v2, %v518_v38  ;;  %v709_v46 = vmul.f32 %v1525_v26, %v698_v40 }
 0x133   : > { %v651_v44 = vsub.f32 1.5, %v650_v36  ;;  %v565_v45 = vpop.xlane.xlu2 %564  ;;  %v642_v58 = vmul.f32 %v1500_v6, %v641_v43 }
 0x134   : > { %1259 = vrsqrt.f32 %v1537_v24  ;;  %v583_v48 = vmul.f32 %v1540_v15, %v1540_v15  ;;  %v1547_v49 = vpop.eup %1257  ;;  %v575_v53 = vmul.f32 %v565_v45, %v1446_v2  ;;  %v720_v57 = vadd.f32 %v1535_v39, %v709_v46 }
 0x135   : > { %v652_v51 = vmul.f32 %v1511_v16, %v651_v44  ;;  %v658_v59 = vmul.f32 %v1547_v49, %v1520_v5  ;;  %v646_v31 = vsel %vm1568_vm14, %v1500_v6, %v642_v58  ;;  %vm664_vm2 = vweird.f32 %v1547_v49 }
 0x136   : > { %v591_v61 = vsub.f32 %v575_v53, %v583_v48  ;;  %v743_v62 = vpack.c.bf16 %v720_v57, %v719_v56  ;;  %v699_v19 = vmul.f32 %v646_v31, %v603_v50  ;;  %vm673_vm3 = vweird.f32 %v1537_v24  ;;  %vm665_vm5 = vmor %vm663_vm0, %vm664_vm2 }
 0x137   : > { %v656_v63 = vsel %vm1558_vm12, %v1511_v16, %v652_v51  ;;  %v659_v10 = vmul.f32 %v1547_v49, %v658_v59  ;;  %v738_v16 = vpack.c.bf16 %v734_v7, %v733_v4  ;;  %v606_v44 = vsub.f32 %v1411_v42, %v1503_v8 }
 0x138   : > { %v599_v1 = vmax.f32 %v591_v61, 0.0  ;;  %1204 = vmatmul.msk.bf16.vlgmr.msra.gmra.mxu1 %vm497_vm1, %v743_v62  ;;  %v700_v14 = vmul.f32 %v656_v63, %v604_v0  ;;  %v710_v28 = vmul.f32 %v1525_v26, %v699_v19  ;;  %v605_v48 = vsub.f32 %v1404_v37, %v1485_v54 }
 0x139   : > { %v521_v3 = vpop.xlane.xlu1 %520  ;;  %1219 = vmatmul.msk.bf16.gmra.mxu2 %vm497_vm1, %v738_v16  ;;  %v660_v20 = vmul.f32 0.5, %v659_v10 }
 0x13a   : > { %v1260_v9 = vpop.eup %1259  ;;  %v1579_v11 = vmul.f32 %v1446_v2, %v521_v3  ;;  %v615_v12 = vadd.f32 1e-05, %v599_v1  ;;  %v711_v6 = vmul.f32 %v1525_v26, %v700_v14  ;;  %v721_v36 = vadd.f32 %v1535_v39, %v710_v28 }
 0x13b   : > { %v668_v29 = vmul.f32 %v1260_v9, %v1537_v24  ;;  %v568_v13 = vpop.xlane.xlu0 %567  ;;  %v661_v30 = vsub.f32 1.5, %v660_v20  ;;  %vm674_vm15 = vweird.f32 %v1260_v9  ;;  %v607_v1 = vsub.f32 %v1418_v47, %v1540_v15 }
 0x13c   : > { %v584_v18 = vmul.f32 %v1579_v11, %v1579_v11  ;;  %v576_v22 = vmul.f32 %v568_v13, %v1446_v2  ;;  %1261 = vrsqrt.f32 %v615_v12  ;;  %v722_v34 = vadd.f32 %v1535_v39, %v711_v6  ;;  %vm675_vm4 = vmor %vm673_vm3, %vm674_vm15 }
 0x13d   : > { %v669_v21 = vmul.f32 %v1260_v9, %v668_v29  ;;  %v662_v38 = vmul.f32 %v1547_v49, %v661_v30  ;;  %vm683_vm7 = vweird.f32 %v615_v12  ;;  %v608_v0 = vsub.f32 %v1425_v52, %v1579_v11  ;;  %v837_v52 = vpop.f32.mrf.mxu2  ;;  %v1244_v29 = vld [vmem:[%s1784_s8] ss:$0 sm:$0xff] }
 0x13e   : > { %v592_v23 = vsub.f32 %v576_v22, %v584_v18  ;;  %v744_v41 = vpack.c.bf16 %v722_v34, %v721_v36 }
 0x13f   : > { %v670_v17 = vmul.f32 0.5, %v669_v21  ;;  %v666_v46 = vsel %vm665_vm5, %v1547_v49, %v662_v38 }
 0x140   : > { %v600_v25 = vmax.f32 %v592_v23, 0.0  ;;  %v701_v56 = vmul.f32 %v666_v46, %v605_v48 }
 0x141   : > { %v671_v27 = vsub.f32 1.5, %v670_v17 }
 0x142   : > { %v616_v32 = vadd.f32 1e-05, %v600_v25  ;;  %v1262_v33 = vpop.eup %1261  ;;  %v712_v42 = vmul.f32 %v1525_v26, %v701_v56 }
 0x143   : > { %v672_v35 = vmul.f32 %v1260_v9, %v671_v27  ;;  %v678_v40 = vmul.f32 %v1262_v33, %v615_v12  ;;  %vm684_vm8 = vweird.f32 %v1262_v33 }
 0x144   : > { %1263 = vrsqrt.f32 %v616_v32  ;;  %v723_v49 = vadd.f32 %v1535_v39, %v712_v42  ;;  %vm693_vm9 = vweird.f32 %v616_v32  ;;  %vm685_vm11 = vmor %vm683_vm7, %vm684_vm8 }
 0x145   : > { %v676_v43 = vsel %vm675_vm4, %v1260_v9, %v672_v35  ;;  %v679_v5 = vmul.f32 %v1262_v33, %v678_v40  ;;  %v839_v11 = vpop.f32.mrf.mxu2 }
 0x146   : > { %v702_v53 = vmul.f32 %v676_v43, %v606_v44 }
 0x147   : > { %v680_v57 = vmul.f32 0.5, %v679_v5 }
 0x148   : > { %1205 = vmatmul.msk.bf16.gmra.mxu1 %vm497_vm1, %v744_v41  ;;  %v713_v59 = vmul.f32 %v1525_v26, %v702_v53 }
 0x149   : > { %v681_v8 = vsub.f32 1.5, %v680_v57 }
 0x14a   : > { %v1264_v45 = vpop.eup %1263  ;;  %v724_v61 = vadd.f32 %v1535_v39, %v713_v59 }
 0x14b   : > { %v688_v51 = vmul.f32 %v1264_v45, %v616_v32  ;;  %vm694_vm6 = vweird.f32 %v1264_v45  ;;  %v682_v63 = vmul.f32 %v1262_v33, %v681_v8 }
 0x14c   : > { %vm695_vm10 = vmor %vm693_vm9, %vm694_vm6  ;;  %v745_v37 = vpack.c.bf16 %v724_v61, %v723_v49 }
 0x14d   : > { %v689_v24 = vmul.f32 %v1264_v45, %v688_v51  ;;  %v686_v55 = vsel %vm685_vm11, %v1262_v33, %v682_v63 }
 0x14e   : > { %v703_v4 = vmul.f32 %v686_v55, %v607_v1 }
 0x14f   : > { %v690_v58 = vmul.f32 0.5, %v689_v24 }
 0x150   : > { %v714_v9 = vmul.f32 %v1525_v26, %v703_v4 }
 0x151   : > { %v691_v60 = vsub.f32 1.5, %v690_v58 }
 0x152   : > { %v725_v10 = vadd.f32 %v1535_v39, %v714_v9 }
 0x153   : > { %v692_v62 = vmul.f32 %v1264_v45, %v691_v60 }
 0x155   : > { %v696_v54 = vsel %vm695_vm10, %v1264_v45, %v692_v62 }
 0x156   : > { %v704_v3 = vmul.f32 %v696_v54, %v608_v0 }
 0x158   : > { %1206 = vmatmul.msk.bf16.gmra.mxu1 %vm497_vm1, %v745_v37  ;;  %v715_v7 = vmul.f32 %v1525_v26, %v704_v3 }
 0x15a   : > { %v726_v50 = vadd.f32 %v1535_v39, %v715_v7  ;;  %v842_v39 = vpop.f32.mrf.mxu2 }
 0x15c   : > { %v746_v31 = vpack.c.bf16 %v726_v50, %v725_v10 }
 0x162   : > { %v844_v17 = vpop.f32.mrf.mxu2 }
 0x168   : > { %1207 = vmatmul.msk.bf16.gmra.mxu1 %vm497_vm1, %v746_v31 }
 0x192   : > { %v847_v34 = vpop.f32.mrf.mxu2 }
 0x19a   : > { %v849_v45 = vpop.f32.mrf.mxu2 }
 0x1b5   : > { %v784_v47 = vpop.f32.mrf.mxu1 }
 0x1b6   : > { %v838_v15 = vadd.f32 %v837_v52, %v784_v47 }
 0x1b8   : > { %v1620_v12 = vadd.f32 %v1244_v29, %v838_v15 }
 0x1ba   : > { %v871_v26 = vsel %vm497_vm1, %v1620_v12, 0.0  ;;  %v903_v13 = vmul.f32 %v1620_v12, %v1620_v12 }
 0x1bb   : > { %872 = vadd.xlane.f32.xlu1 %v871_v26 }
 0x1bc   : > { %v911_v14 = vsel %vm497_vm1, %v903_v13, 0.0  ;;  %v852_v57 = vpop.f32.mrf.mxu2 }
 0x1bd   : > { %v786_v16 = vpop.f32.mrf.mxu1  ;;  %912 = vadd.xlane.f32.xlu0 %v911_v14 }
 0x1be   : > { %v840_v18 = vadd.f32 %v839_v11, %v786_v16 }
 0x1c0   : > { %v1627_v22 = vadd.f32 %v1244_v29, %v840_v18 }
 0x1c2   : > { %v874_v21 = vsel %vm497_vm1, %v1627_v22, 0.0  ;;  %v904_v19 = vmul.f32 %v1627_v22, %v1627_v22 }
 0x1c3   : > { %875 = vadd.xlane.f32.xlu2 %v874_v21 }
 0x1c4   : > { %v914_v20 = vsel %vm497_vm1, %v904_v19, 0.0  ;;  %v854_v62 = vpop.f32.mrf.mxu2 }
 0x1c5   : > { %v789_v23 = vpop.f32.mrf.mxu1  ;;  %915 = vadd.xlane.f32.xlu1 %v914_v20 }
 0x1c6   : > { %v843_v6 = vadd.f32 %v842_v39, %v789_v23 }
 0x1c8   : > { %v1634_v25 = vadd.f32 %v1244_v29, %v843_v6 }
 0x1ca   : > { %v877_v27 = vsel %vm497_vm1, %v1634_v25, 0.0  ;;  %v905_v28 = vmul.f32 %v1634_v25, %v1634_v25 }
 0x1cb   : > { %878 = vadd.xlane.f32.xlu0 %v877_v27 }
 0x1cc   : > { %v917_v30 = vsel %vm497_vm1, %v905_v28, 0.0 }
 0x1cd   : > { %v791_v32 = vpop.f32.mrf.mxu1  ;;  %918 = vadd.xlane.f32.xlu2 %v917_v30 }
 0x1ce   : > { %v845_v33 = vadd.f32 %v844_v17, %v791_v32 }
 0x1d0   : > { %v1641_v35 = vadd.f32 %v1244_v29, %v845_v33 }
 0x1d2   : > { %v880_v36 = vsel %vm497_vm1, %v1641_v35, 0.0  ;;  %v906_v38 = vmul.f32 %v1641_v35, %v1641_v35 }
 0x1d3   : > { %881 = vadd.xlane.f32.xlu1 %v880_v36 }
 0x1d4   : > { %v920_v40 = vsel %vm497_vm1, %v906_v38, 0.0 }
 0x1d5   : > { %v794_v41 = vpop.f32.mrf.mxu1  ;;  %921 = vadd.xlane.f32.xlu0 %v920_v40 }
 0x1d6   : > { %v848_v43 = vadd.f32 %v847_v34, %v794_v41 }
 0x1d8   : > { %v1648_v44 = vadd.f32 %v1244_v29, %v848_v43 }
 0x1da   : > { %v883_v5 = vsel %vm497_vm1, %v1648_v44, 0.0  ;;  %v907_v46 = vmul.f32 %v1648_v44, %v1648_v44 }
 0x1db   : > { %884 = vadd.xlane.f32.xlu2 %v883_v5  ;;  %v1697_v5 = vld [vmem:[%s1785_s9] ss:$0 sm:$0xff] }
 0x1dc   : > { %v923_v48 = vsel %vm497_vm1, %v907_v46, 0.0 }
 0x1dd   : > { %v796_v51 = vpop.f32.mrf.mxu1  ;;  %924 = vadd.xlane.f32.xlu1 %v923_v48 }
 0x1de   : > { %v850_v53 = vadd.f32 %v849_v45, %v796_v51 }
 0x1e0   : > { %v1655_v24 = vadd.f32 %v1244_v29, %v850_v53 }
 0x1e2   : > { %v886_v56 = vsel %vm497_vm1, %v1655_v24, 0.0  ;;  %v908_v1 = vmul.f32 %v1655_v24, %v1655_v24 }
 0x1e3   : > { %887 = vadd.xlane.f32.xlu0 %v886_v56  ;;  %v1705_v56 = vld [vmem:[%s1786_s10] ss:$0 sm:$0xff] }
 0x1e4   : > { %v926_v3 = vsel %vm497_vm1, %v908_v1, 0.0 }
 0x1e5   : > { %v799_v58 = vpop.f32.mrf.mxu1 }
 0x1e6   : > { %v853_v59 = vadd.f32 %v852_v57, %v799_v58 }
 0x1e8   : > { %v1659_v60 = vadd.f32 %v1244_v29, %v853_v59 }
 0x1ea   : > { %v889_v42 = vsel %vm497_vm1, %v1659_v60, 0.0  ;;  %v909_v8 = vmul.f32 %v1659_v60, %v1659_v60 }
 0x1eb   : > { %890 = vadd.xlane.f32.xlu1 %v889_v42 }
 0x1ec   : > { %v929_v61 = vsel %vm497_vm1, %v909_v8, 0.0 }
 0x1ed   : > { %v801_v49 = vpop.f32.mrf.mxu1  ;;  %930 = vadd.xlane.f32.xlu0 %v929_v61 }
 0x1ee   : > { %v855_v63 = vadd.f32 %v854_v62, %v801_v49 }
 0x1f0   : > { %v1666_v37 = vadd.f32 %v1244_v29, %v855_v63 }
 0x1f2   : > { %v892_v54 = vsel %vm497_vm1, %v1666_v37, 0.0  ;;  %v910_v0 = vmul.f32 %v1666_v37, %v1666_v37 }
 0x1f3   : > { %893 = vadd.xlane.f32.xlu2 %v892_v54 }
 0x1f4   : > { %v932_v55 = vsel %vm497_vm1, %v910_v0, 0.0 }
 0x1f5   : > { %933 = vadd.xlane.f32.xlu1 %v932_v55 }
 0x1fb   : > { %927 = vadd.xlane.f32.xlu2 %v926_v3 }
 0x22e   : > { %v873_v4 = vpop.xlane.xlu1 %872 }
 0x22f   : > { %v895_v7 = vmul.f32 %v873_v4, %v1446_v2 }
 0x230   : > { %v913_v9 = vpop.xlane.xlu0 %912 }
 0x231   : > { %v943_v50 = vmul.f32 %v895_v7, %v895_v7  ;;  %v935_v10 = vmul.f32 %v913_v9, %v1446_v2  ;;  %v967_v45 = vsub.f32 %v1620_v12, %v895_v7 }
 0x233   : > { %v951_v31 = vsub.f32 %v935_v10, %v943_v50 }
 0x235   : > { %v959_v52 = vmax.f32 %v951_v31, 0.0 }
 0x236   : > { %v876_v11 = vpop.xlane.xlu2 %875 }
 0x237   : > { %v975_v29 = vadd.f32 1e-05, %v959_v52  ;;  %v1679_v47 = vmul.f32 %v876_v11, %v1446_v2 }
 0x238   : > { %v916_v15 = vpop.xlane.xlu1 %915 }
 0x239   : > { %1265 = vrsqrt.f32 %v975_v29  ;;  %v944_v26 = vmul.f32 %v1679_v47, %v1679_v47  ;;  %v936_v13 = vmul.f32 %v916_v15, %v1446_v2  ;;  %vm989_vm13 = vweird.f32 %v975_v29 }
 0x23a   : > { %v968_v9 = vsub.f32 %v1627_v22, %v1679_v47 }
 0x23b   : > { %v952_v39 = vsub.f32 %v936_v13, %v944_v26 }
 0x23d   : > { %v960_v14 = vmax.f32 %v952_v39, 0.0 }
 0x23e   : > { %v879_v16 = vpop.xlane.xlu0 %878 }
 0x23f   : > { %v1266_v18 = vpop.eup %1265  ;;  %v1685_v21 = vmul.f32 %v879_v16, %v1446_v2  ;;  %v976_v20 = vadd.f32 1e-05, %v960_v14 }
 0x240   : > { %v984_v19 = vmul.f32 %v1266_v18, %v975_v29  ;;  %v919_v23 = vpop.xlane.xlu2 %918  ;;  %vm990_vm12 = vweird.f32 %v1266_v18 }
 0x241   : > { %v945_v17 = vmul.f32 %v1685_v21, %v1685_v21  ;;  %v937_v6 = vmul.f32 %v919_v23, %v1446_v2  ;;  %1267 = vrsqrt.f32 %v976_v20  ;;  %vm991_vm14 = vmor %vm989_vm13, %vm990_vm12  ;;  %vm999_vm0 = vweird.f32 %v976_v20 }
 0x242   : > { %v985_v27 = vmul.f32 %v1266_v18, %v984_v19  ;;  %v969_v47 = vsub.f32 %v1634_v25, %v1685_v21 }
 0x243   : > { %v953_v28 = vsub.f32 %v937_v6, %v945_v17 }
 0x244   : > { %v986_v30 = vmul.f32 0.5, %v985_v27 }
 0x245   : > { %v961_v32 = vmax.f32 %v953_v28, 0.0 }
 0x246   : > { %v987_v33 = vsub.f32 1.5, %v986_v30  ;;  %v882_v34 = vpop.xlane.xlu1 %881 }
 0x247   : > { %v977_v36 = vadd.f32 1e-05, %v961_v32  ;;  %v1691_v38 = vmul.f32 %v882_v34, %v1446_v2  ;;  %v1268_v40 = vpop.eup %1267 }
 0x248   : > { %v988_v41 = vmul.f32 %v1266_v18, %v987_v33  ;;  %v922_v43 = vpop.xlane.xlu0 %921  ;;  %v994_v46 = vmul.f32 %v1268_v40, %v976_v20  ;;  %vm1000_vm15 = vweird.f32 %v1268_v40 }
 0x249   : > { %1269 = vrsqrt.f32 %v977_v36  ;;  %v946_v51 = vmul.f32 %v1691_v38, %v1691_v38  ;;  %v938_v53 = vmul.f32 %v922_v43, %v1446_v2  ;;  %vm1001_vm2 = vmor %vm999_vm0, %vm1000_vm15  ;;  %vm1009_vm4 = vweird.f32 %v977_v36 }
 0x24a   : > { %v992_v48 = vsel %vm991_vm14, %v1266_v18, %v988_v41  ;;  %v995_v57 = vmul.f32 %v1268_v40, %v994_v46  ;;  %v970_v41 = vsub.f32 %v1641_v35, %v1691_v38 }
 0x24b   : > { %v1063_v12 = vmul.f32 %v992_v48, %v967_v45  ;;  %v954_v58 = vsub.f32 %v938_v53, %v946_v51 }
 0x24c   : > { %v996_v42 = vmul.f32 0.5, %v995_v57 }
 0x24d   : > { %v1074_v59 = vmul.f32 %v1697_v5, %v1063_v12  ;;  %v962_v8 = vmax.f32 %v954_v58, 0.0 }
 0x24e   : > { %v885_v61 = vpop.xlane.xlu2 %884  ;;  %v997_v63 = vsub.f32 1.5, %v996_v42 }
 0x24f   : > { %v1270_v62 = vpop.eup %1269  ;;  %v1085_v49 = vadd.f32 %v1705_v56, %v1074_v59  ;;  %v1716_v54 = vmul.f32 %v885_v61, %v1446_v2  ;;  %v978_v55 = vadd.f32 1e-05, %v962_v8 }
 0x250   : > { %v1004_v0 = vmul.f32 %v1270_v62, %v977_v36  ;;  %v925_v1 = vpop.xlane.xlu1 %924  ;;  %v998_v3 = vmul.f32 %v1268_v40, %v997_v63  ;;  %vm1010_vm3 = vweird.f32 %v1270_v62 }
 0x251   : > { %1093 = vst.msk [vmem:[%s1712_s20] sm:$0xff] %vm497_vm1, %v1085_v49  ;;  %v947_v4 = vmul.f32 %v1716_v54, %v1716_v54  ;;  %v939_v7 = vmul.f32 %v925_v1, %v1446_v2  ;;  %1271 = vrsqrt.f32 %v978_v55  ;;  %vm1011_vm5 = vmor %vm1009_vm4, %vm1010_vm3  ;;  %vm1019_vm7 = vweird.f32 %v978_v55 }
 0x252   : > { %v1005_v50 = vmul.f32 %v1270_v62, %v1004_v0  ;;  %v1002_v10 = vsel %vm1001_vm2, %v1268_v40, %v998_v3  ;;  %v971_v38 = vsub.f32 %v1648_v44, %v1716_v54 }
 0x253   : > { %v955_v31 = vsub.f32 %v939_v7, %v947_v4  ;;  %v1064_v52 = vmul.f32 %v1002_v10, %v968_v9 }
 0x254   : > { %v1006_v11 = vmul.f32 0.5, %v1005_v50 }
 0x255   : > { %v963_v29 = vmax.f32 %v955_v31, 0.0  ;;  %v1075_v15 = vmul.f32 %v1697_v5, %v1064_v52 }
 0x256   : > { %v1007_v26 = vsub.f32 1.5, %v1006_v11  ;;  %v888_v22 = vpop.xlane.xlu0 %887 }
 0x257   : > { %v979_v13 = vadd.f32 1e-05, %v963_v29  ;;  %v1272_v39 = vpop.eup %1271  ;;  %v1086_v14 = vadd.f32 %v1705_v56, %v1075_v15 }
 0x258   : > { %v1008_v16 = vmul.f32 %v1270_v62, %v1007_v26  ;;  %v1014_v18 = vmul.f32 %v1272_v39, %v978_v55  ;;  %vm1020_vm6 = vweird.f32 %v1272_v39  ;;  %v900_v55 = vmul.f32 %v888_v22, %v1446_v2 }
 0x259   : > { %1273 = vrsqrt.f32 %v979_v13  ;;  %1094 = vst.msk [vmem:[%s1712_s20 + $0x8] sm:$0xff] %vm497_vm1, %v1086_v14  ;;  %vm1021_vm8 = vmor %vm1019_vm7, %vm1020_vm6  ;;  %vm1029_vm10 = vweird.f32 %v979_v13 }
 0x25a   : > { %v1012_v19 = vsel %vm1011_vm5, %v1270_v62, %v1008_v16  ;;  %v1015_v23 = vmul.f32 %v1272_v39, %v1014_v18  ;;  %v948_v54 = vmul.f32 %v900_v55, %v900_v55 }
 0x25b   : > { %v1065_v20 = vmul.f32 %v1012_v19, %v969_v47 }
 0x25c   : > { %v1016_v6 = vmul.f32 0.5, %v1015_v23 }
 0x25d   : > { %v1076_v17 = vmul.f32 %v1697_v5, %v1065_v20 }
 0x25e   : > { %v891_v27 = vpop.xlane.xlu1 %890  ;;  %v1017_v32 = vsub.f32 1.5, %v1016_v6 }
 0x25f   : > { %v1274_v28 = vpop.eup %1273  ;;  %v1087_v30 = vadd.f32 %v1705_v56, %v1076_v17  ;;  %v1734_v25 = vmul.f32 %v891_v27, %v1446_v2 }
 0x260   : > { %v1024_v21 = vmul.f32 %v1274_v28, %v979_v13  ;;  %v931_v33 = vpop.xlane.xlu0 %930  ;;  %v1018_v34 = vmul.f32 %v1272_v39, %v1017_v32  ;;  %vm1030_vm9 = vweird.f32 %v1274_v28 }
 0x261   : > { %1095 = vst.msk [vmem:[%s1712_s20 + $0x10] sm:$0xff] %vm497_vm1, %v1087_v30  ;;  %v949_v36 = vmul.f32 %v1734_v25, %v1734_v25  ;;  %v941_v40 = vmul.f32 %v931_v33, %v1446_v2  ;;  %vm1031_vm11 = vmor %vm1029_vm10, %vm1030_vm9 }
 0x262   : > { %v1025_v43 = vmul.f32 %v1274_v28, %v1024_v21  ;;  %v1022_v45 = vsel %vm1021_vm8, %v1272_v39, %v1018_v34 }
 0x263   : > { %v957_v46 = vsub.f32 %v941_v40, %v949_v36  ;;  %v1066_v48 = vmul.f32 %v1022_v45, %v970_v41  ;;  %v972_v40 = vsub.f32 %v1655_v24, %v900_v55 }
 0x264   : > { %v1026_v51 = vmul.f32 0.5, %v1025_v43 }
 0x265   : > { %v965_v53 = vmax.f32 %v957_v46, 0.0  ;;  %v1077_v12 = vmul.f32 %v1697_v5, %v1066_v48 }
 0x266   : > { %v1027_v57 = vsub.f32 1.5, %v1026_v51  ;;  %v894_v58 = vpop.xlane.xlu2 %893 }
 0x267   : > { %v981_v59 = vadd.f32 1e-05, %v965_v53  ;;  %v902_v42 = vmul.f32 %v894_v58, %v1446_v2  ;;  %v1088_v8 = vadd.f32 %v1705_v56, %v1077_v12 }
 0x268   : > { %v1028_v61 = vmul.f32 %v1274_v28, %v1027_v57  ;;  %v934_v35 = vpop.xlane.xlu1 %933 }
 0x269   : > { %1275 = vrsqrt.f32 %v981_v59  ;;  %v950_v62 = vmul.f32 %v902_v42, %v902_v42  ;;  %1096 = vst.msk [vmem:[%s1712_s20 + $0x18] sm:$0xff] %vm497_vm1, %v1088_v8  ;;  %v942_v63 = vmul.f32 %v934_v35, %v1446_v2  ;;  %vm1049_vm13 = vweird.f32 %v981_v59 }
 0x26a   : > { %v1032_v49 = vsel %vm1031_vm11, %v1274_v28, %v1028_v61 }
 0x26b   : > { %v1067_v0 = vmul.f32 %v1032_v49, %v971_v38  ;;  %v958_v1 = vsub.f32 %v942_v63, %v950_v62 }
 0x26d   : > { %v1078_v3 = vmul.f32 %v1697_v5, %v1067_v0  ;;  %v966_v4 = vmax.f32 %v958_v1, 0.0 }
 0x26e   : > { %v928_v7 = vpop.xlane.xlu2 %927 }
 0x26f   : > { %v1276_v9 = vpop.eup %1275  ;;  %v1089_v44 = vadd.f32 %v1705_v56, %v1078_v3  ;;  %v940_v50 = vmul.f32 %v928_v7, %v1446_v2  ;;  %v982_v31 = vadd.f32 1e-05, %v966_v4  ;;  %v973_v2 = vsub.f32 %v1659_v60, %v1734_v25 }
 0x270   : > { %v1044_v10 = vmul.f32 %v1276_v9, %v981_v59  ;;  %vm1050_vm12 = vweird.f32 %v1276_v9  ;;  %v974_v60 = vsub.f32 %v1666_v37, %v902_v42 }
 0x271   : > { %1097 = vst.msk [vmem:[%s1712_s20 + $0x20] sm:$0xff] %vm497_vm1, %v1089_v44  ;;  %v956_v52 = vsub.f32 %v940_v50, %v948_v54  ;;  %1277 = vrsqrt.f32 %v982_v31  ;;  %vm1051_vm14 = vmor %vm1049_vm13, %vm1050_vm12  ;;  %vm1059_vm0 = vweird.f32 %v982_v31 }
 0x272   : > { %v1045_v11 = vmul.f32 %v1276_v9, %v1044_v10 }
 0x273   : > { %v964_v29 = vmax.f32 %v956_v52, 0.0 }
 0x274   : > { %v1046_v15 = vmul.f32 0.5, %v1045_v11 }
 0x275   : > { %v980_v26 = vadd.f32 1e-05, %v964_v29 }
 0x276   : > { %v1047_v13 = vsub.f32 1.5, %v1046_v15 }
 0x277   : > { %1279 = vrsqrt.f32 %v980_v26  ;;  %v1278_v39 = vpop.eup %1277  ;;  %vm1039_vm4 = vweird.f32 %v980_v26 }
 0x278   : > { %v1048_v14 = vmul.f32 %v1276_v9, %v1047_v13  ;;  %v1054_v16 = vmul.f32 %v1278_v39, %v982_v31  ;;  %vm1060_vm15 = vweird.f32 %v1278_v39 }
 0x279   : > { %vm1061_vm2 = vmor %vm1059_vm0, %vm1060_vm15 }
 0x27a   : > { %v1052_v22 = vsel %vm1051_vm14, %v1276_v9, %v1048_v14  ;;  %v1055_v18 = vmul.f32 %v1278_v39, %v1054_v16 }
 0x27b   : > { %v1069_v47 = vmul.f32 %v1052_v22, %v973_v2 }
 0x27c   : > { %v1056_v23 = vmul.f32 0.5, %v1055_v18 }
 0x27d   : > { %v1280_v19 = vpop.eup %1279  ;;  %v1080_v20 = vmul.f32 %v1697_v5, %v1069_v47 }
 0x27e   : > { %v1034_v17 = vmul.f32 %v1280_v19, %v980_v26  ;;  %v1057_v27 = vsub.f32 1.5, %v1056_v23  ;;  %vm1040_vm3 = vweird.f32 %v1280_v19 }
 0x27f   : > { %v1091_v6 = vadd.f32 %v1705_v56, %v1080_v20  ;;  %vm1041_vm5 = vmor %vm1039_vm4, %vm1040_vm3 }
 0x280   : > { %v1035_v28 = vmul.f32 %v1280_v19, %v1034_v17  ;;  %v1058_v30 = vmul.f32 %v1278_v39, %v1057_v27 }
 0x281   : > { %1099 = vst.msk [vmem:[%s1712_s20 + $0x30] sm:$0xff] %vm497_vm1, %v1091_v6 }
 0x282   : > { %v1036_v32 = vmul.f32 0.5, %v1035_v28  ;;  %v1062_v25 = vsel %vm1061_vm2, %v1278_v39, %v1058_v30 }
 0x283   : > { %v1070_v21 = vmul.f32 %v1062_v25, %v974_v60 }
 0x284   : > { %v1037_v33 = vsub.f32 1.5, %v1036_v32 }
 0x285   : > { %v1081_v34 = vmul.f32 %v1697_v5, %v1070_v21 }
 0x286   : > { %v1038_v36 = vmul.f32 %v1280_v19, %v1037_v33 }
 0x287   : > { %v1092_v41 = vadd.f32 %v1705_v56, %v1081_v34 }
 0x288   : > { %v1042_v43 = vsel %vm1041_vm5, %v1280_v19, %v1038_v36 }
 0x289   : > { %v1068_v45 = vmul.f32 %v1042_v43, %v972_v40  ;;  %1100 = vst.msk [vmem:[%s1712_s20 + $0x38] sm:$0xff] %vm497_vm1, %v1092_v41 }
 0x28b   : > { %v1079_v37 = vmul.f32 %v1697_v5, %v1068_v45 }
 0x28d   : > { %v1090_v46 = vadd.f32 %v1705_v56, %v1079_v37 }
 0x28f   : > { %1098 = vst.msk [vmem:[%s1712_s20 + $0x28] sm:$0xff] %vm497_vm1, %v1090_v46 }
 0x290 PF: > { %s21_s17 = sadd.s32 1, %s1287_s17  }
 0x291   : > { %p18_p4 = scmp.ge.s32.totalorder %s21_s17, 4  }
 0x293   :  { %20 = sbr.rel (!%p18_p4) target bundleno = 1 (0x1), region = 97 }

</bundles_post_ra>
